<compile_context>
chip_gen: v5e
topology: v5e:2x2
jax: 0.10.0
libtpu: 0.0.40
codegen_flags: <defaults>
</compile_context>

<pallas_src>
import functools

import jax
import jax.numpy as jnp
from jax import lax
from jax.experimental import pallas as pl
from jax.experimental.pallas import tpu as pltpu


# ------------------------------ fused kernel --------------------------------

def _fused_temporal_xattn_kernel(x_ref, ctx_ref, wq_ref, wkv_ref, wo_ref, bo_ref,
                                 o_ref, *, heads, dim_head, inner_dim, approx_recip):
    # One batch tile per grid step.
    #   x_ref:   (TB, Nq, query_dim)
    #   ctx_ref: (TB, Nk, context_dim)
    #   wq_ref:  (query_dim, inner_dim)      -- softmax scale pre-folded
    #   wkv_ref: (context_dim, 2*inner_dim)  -- [K | V] along columns
    #   wo_ref:  (inner_dim, query_dim), bo_ref: (1, query_dim)
    #   o_ref:   (TB, Nq, query_dim)
    TB, Nq, qd = x_ref.shape
    _, Nk, cd = ctx_ref.shape
    out_dim = o_ref.shape[-1]

    # ---- projections: two large MXU matmuls over the flattened batch tile ----
    x2 = x_ref[...].reshape(TB * Nq, qd)
    c2 = ctx_ref[...].reshape(TB * Nk, cd)

    q = jnp.dot(x2, wq_ref[...], preferred_element_type=jnp.float32)     # (TB*Nq, inner)
    kv = jnp.dot(c2, wkv_ref[...], preferred_element_type=jnp.float32)   # (TB*Nk, 2*inner)

    q3 = q.reshape(TB, Nq, inner_dim)
    kv3 = kv.reshape(TB, Nk, 2 * inner_dim)
    k3 = kv3[:, :, :inner_dim]          # 128-lane-aligned split of the fused KV result
    v3 = kv3[:, :, inner_dim:]

    # ---- per-head attention, batched over the TB batch tile ----
    head_outs = []
    for h in range(heads):              # small static loop; batch dim carries the work
        lo = h * dim_head
        hi = lo + dim_head
        qh = q3[:, :, lo:hi]            # (TB, Nq, d)   (already scaled via w_q)
        kh = k3[:, :, lo:hi]            # (TB, Nk, d)
        vh = v3[:, :, lo:hi]            # (TB, Nk, d)

        # 'bqd,bkd->bqk' : batched QK^T without an explicit transpose.
        s = lax.dot_general(qh, kh, (((2,), (2,)), ((0,), (0,))),
                            preferred_element_type=jnp.float32)          # (TB, Nq, Nk)
        s = s - jnp.max(s, axis=-1, keepdims=True)
        p = jnp.exp(s)
        denom = jnp.sum(p, axis=-1, keepdims=True)
        if approx_recip:
            p = p * pl.reciprocal(denom, approx=True)
        else:
            p = p / denom                                               # exact softmax
        # 'bqk,bkd->bqd'
        oh = lax.dot_general(p.astype(vh.dtype), vh, (((2,), (1,)), ((0,), (0,))),
                             preferred_element_type=jnp.float32)         # (TB, Nq, d)
        head_outs.append(oh)

    attn = head_outs[0] if heads == 1 else jnp.concatenate(head_outs, axis=-1)

    # ---- to_out[0]: Linear(inner_dim, query_dim) with bias; Dropout(0.0) = identity ----
    a2 = attn.reshape(TB * Nq, inner_dim)
    out = jnp.dot(a2.astype(wo_ref.dtype), wo_ref[...],
                  preferred_element_type=jnp.float32)
    out = out + bo_ref[...].astype(jnp.float32)
    o_ref[...] = out.reshape(TB, Nq, out_dim).astype(o_ref.dtype)


def _pick_batch_tile(b, cap=16):
    """Largest batch tile <= cap that divides b."""
    for t in (32, 16, 8, 4, 2, 1):
        if t <= cap and b % t == 0:
            return t
    return 1


def temporal_cross_attention_pallas(x, context, w_q_scaled, w_kv, w_o, b_o, *,
                                    heads, dim_head, batch_tile=16,
                                    approx_recip=False):
    """Fused forward pass.

    x: (B, Nq, query_dim); context: (B, Nk, context_dim).
    w_q_scaled: (query_dim, inner_dim) with the softmax scale folded in.
    w_kv: (context_dim, 2*inner_dim) = [W_k | W_v]; w_o: (inner_dim, query_dim); b_o: (query_dim,).
    """
    B, Nq, qd = x.shape
    Bc, Nk, cd = context.shape
    assert B == Bc
    inner_dim = heads * dim_head
    assert w_q_scaled.shape == (qd, inner_dim)
    assert w_kv.shape == (cd, 2 * inner_dim)
    out_dim = w_o.shape[1]

    TB = _pick_batch_tile(B, batch_tile)

    kernel = functools.partial(
        _fused_temporal_xattn_kernel,
        heads=heads, dim_head=dim_head, inner_dim=inner_dim,
        approx_recip=approx_recip)

    return pl.pallas_call(
        kernel,
        grid=(B // TB,),
        in_specs=[
            pl.BlockSpec((TB, Nq, qd), lambda i: (i, 0, 0)),
            pl.BlockSpec((TB, Nk, cd), lambda i: (i, 0, 0)),
            # Resident weights / bias (constant index_map -> fetched once).
            pl.BlockSpec((qd, inner_dim), lambda i: (0, 0)),
            pl.BlockSpec((cd, 2 * inner_dim), lambda i: (0, 0)),
            pl.BlockSpec((inner_dim, out_dim), lambda i: (0, 0)),
            pl.BlockSpec((1, out_dim), lambda i: (0, 0)),
        ],
        out_specs=pl.BlockSpec((TB, Nq, out_dim), lambda i: (i, 0, 0)),
        out_shape=jax.ShapeDtypeStruct((B, Nq, out_dim), x.dtype),
        compiler_params=pltpu.CompilerParams(
            dimension_semantics=("parallel",)),
    )(x, context, w_q_scaled, w_kv, w_o, b_o.reshape(1, out_dim))


# ------------------------- Temporal_CrossAttention --------------------------

def _xavier_uniform(key, fan_in, fan_out, shape):
    bound = (6.0 / (fan_in + fan_out)) ** 0.5
    return jax.random.uniform(key, shape, jnp.float32, -bound, bound)


class TemporalCrossAttentionPallas:
    def __init__(self, query_dim, context_dim=None, heads=8, dim_head=64,
                 batch_tile=16, key=None):
        context_dim = query_dim if context_dim is None else context_dim
        inner_dim = heads * dim_head
        self.heads = heads
        self.dim_head = dim_head
        self.scale = dim_head ** (-0.5)
        self.query_dim = query_dim
        self.context_dim = context_dim
        self.inner_dim = inner_dim
        self.batch_tile = batch_tile

        k0, k1, k2, k3, k4 = jax.random.split(key, 5)
        # Weights stored pre-transposed: (in_dim, out_dim), matching y = x @ W.
        self.w_q = _xavier_uniform(k0, query_dim, inner_dim, (query_dim, inner_dim))
        self.w_k = _xavier_uniform(k1, context_dim, inner_dim, (context_dim, inner_dim))
        self.w_v = _xavier_uniform(k2, context_dim, inner_dim, (context_dim, inner_dim))
        self.w_o = _xavier_uniform(k3, inner_dim, query_dim, (inner_dim, query_dim))
        bound_o = (1.0 / inner_dim) ** 0.5
        self.b_o = jax.random.uniform(k4, (query_dim,), jnp.float32, -bound_o, bound_o)

        # Softmax scale folded into the q projection weight (read once per launch).
        self.w_q_scaled = self.w_q * self.scale
        # Fused K/V projection weight: context is read once, matmul N doubled.
        self.w_kv = jnp.concatenate([self.w_k, self.w_v], axis=1)   # (cd, 2*inner)

    def __call__(self, x, context=None):
        context = x if context is None else context
        return temporal_cross_attention_pallas(
            x, context, self.w_q_scaled, self.w_kv, self.w_o, self.b_o,
            heads=self.heads, dim_head=self.dim_head,
            batch_tile=self.batch_tile, approx_recip=False)


# --------------------------------- reference --------------------------------

def _reference(mod, x, context):
    ctx = x if context is None else context
    B, Nq, _ = x.shape
    _, Nk, _ = ctx.shape
    h, d = mod.heads, mod.dim_head

    q = x @ mod.w_q
    k = ctx @ mod.w_k
    v = ctx @ mod.w_v

    qh = q.reshape(B, Nq, h, d).transpose(0, 2, 1, 3)
    kh = k.reshape(B, Nk, h, d).transpose(0, 2, 1, 3)
    vh = v.reshape(B, Nk, h, d).transpose(0, 2, 1, 3)

    sim = jnp.einsum('bhid,bhjd->bhij', qh, kh) * mod.scale
    p = jax.nn.softmax(sim, axis=-1)
    o = jnp.einsum('bhij,bhjd->bhid', p, vh)
    o = o.transpose(0, 2, 1, 3).reshape(B, Nq, mod.inner_dim)
    return o @ mod.w_o + mod.b_o


# ----------------------------------- main ------------------------------------

if __name__ == "__main__":
    key = jax.random.PRNGKey(0)
    k_param, k_x, k_ctx = jax.random.split(key, 3)

    # Small shapes consistent with temporal cross-attention:
    # "batch" = b*h*w spatial positions (kept small here), query length = #frames,
    # context length = 8, query/context dim = 64, heads=4, dim_head=64 -> inner_dim=256.
    B, Nq, Nk = 32, 16, 8
    query_dim, context_dim = 64, 64
    heads, dim_head = 4, 64

    mod = TemporalCrossAttentionPallas(query_dim, context_dim,
                                       heads=heads, dim_head=dim_head,
                                       batch_tile=16, key=k_param)

    x = jax.random.normal(k_x, (B, Nq, query_dim), jnp.float32)
    context = jax.random.normal(k_ctx, (B, Nk, context_dim), jnp.float32)

    out = jax.block_until_ready(mod(x, context))
    ref = _reference(mod, x, context)

    assert out.shape == (B, Nq, query_dim)
    max_err = float(jnp.max(jnp.abs(out - ref)))
    assert jnp.allclose(out, ref, atol=1e-2, rtol=1e-2), (
        f"mismatch vs reference (max err {max_err})")

    print("KERNEL_OK")
</pallas_src>

<mosaic_0001>
module attributes {stable_mosaic.version = 11 : i64} {
  func.func @_fused_temporal_xattn_kernel(%arg0: i32, %arg1: memref<16x16x64xf32, #tpu.memory_space<vmem>>, %arg2: memref<16x8x64xf32, #tpu.memory_space<vmem>>, %arg3: memref<64x256xf32, #tpu.memory_space<vmem>>, %arg4: memref<64x512xf32, #tpu.memory_space<vmem>>, %arg5: memref<256x64xf32, #tpu.memory_space<vmem>>, %arg6: memref<1x64xf32, #tpu.memory_space<vmem>>, %arg7: memref<16x16x64xf32, #tpu.memory_space<vmem>>) attributes {dimension_semantics = [#tpu.dimension_semantics<parallel>], iteration_bounds = array<i64: 2>, scalar_prefetch = 0 : i64, scratch_operands = 0 : i64, tpu.core_type = #tpu.core_type<tc>, window_params = [{transform_indices = @transform_0, window_bounds = array<i64: 16, 16, 64>}, {transform_indices = @transform_1, window_bounds = array<i64: 16, 8, 64>}, {pipeline_mode = #tpu.pipeline_mode<synchronous>, transform_indices = @transform_2, window_bounds = array<i64: 64, 256>}, {pipeline_mode = #tpu.pipeline_mode<synchronous>, transform_indices = @transform_3, window_bounds = array<i64: 64, 512>}, {pipeline_mode = #tpu.pipeline_mode<synchronous>, transform_indices = @transform_4, window_bounds = array<i64: 256, 64>}, {pipeline_mode = #tpu.pipeline_mode<synchronous>, transform_indices = @transform_5, window_bounds = array<i64: 1, 64>}, {transform_indices = @transform_6, window_bounds = array<i64: 16, 16, 64>}]} {
    %c0 = arith.constant 0 : index
    %c0_0 = arith.constant 0 : index
    %c0_1 = arith.constant 0 : index
    %0 = vector.load %arg1[%c0, %c0_0, %c0_1] : memref<16x16x64xf32, #tpu.memory_space<vmem>>, vector<16x16x64xf32>
    %1 = vector.shape_cast %0 : vector<16x16x64xf32> to vector<256x64xf32>
    %c0_2 = arith.constant 0 : index
    %c0_3 = arith.constant 0 : index
    %c0_4 = arith.constant 0 : index
    %2 = vector.load %arg2[%c0_2, %c0_3, %c0_4] : memref<16x8x64xf32, #tpu.memory_space<vmem>>, vector<16x8x64xf32>
    %3 = vector.shape_cast %2 : vector<16x8x64xf32> to vector<128x64xf32>
    %c0_5 = arith.constant 0 : index
    %c0_6 = arith.constant 0 : index
    %4 = vector.load %arg3[%c0_5, %c0_6] : memref<64x256xf32, #tpu.memory_space<vmem>>, vector<64x256xf32>
    %cst = arith.constant dense<0.000000e+00> : vector<256x256xf32>
    %5 = tpu.matmul %1, %4, %cst {dimension_numbers = #tpu.dot_dimension_numbers<[1], [0], [0], [1], [0, 0, 1, 1], [], []>} : vector<256x64xf32>, vector<64x256xf32>, vector<256x256xf32> -> vector<256x256xf32>
    %c0_7 = arith.constant 0 : index
    %c0_8 = arith.constant 0 : index
    %6 = vector.load %arg4[%c0_7, %c0_8] : memref<64x512xf32, #tpu.memory_space<vmem>>, vector<64x512xf32>
    %cst_9 = arith.constant dense<0.000000e+00> : vector<128x512xf32>
    %7 = tpu.matmul %3, %6, %cst_9 {dimension_numbers = #tpu.dot_dimension_numbers<[1], [0], [0], [1], [0, 0, 1, 1], [], []>} : vector<128x64xf32>, vector<64x512xf32>, vector<128x512xf32> -> vector<128x512xf32>
    %8 = vector.shape_cast %5 : vector<256x256xf32> to vector<16x16x256xf32>
    %9 = vector.shape_cast %7 : vector<128x512xf32> to vector<16x8x512xf32>
    %10 = vector.extract_strided_slice %9 {offsets = [0, 0, 0], sizes = [16, 8, 256], strides = [1, 1, 1]} : vector<16x8x512xf32> to vector<16x8x256xf32>
    %11 = vector.extract_strided_slice %9 {offsets = [0, 0, 256], sizes = [16, 8, 256], strides = [1, 1, 1]} : vector<16x8x512xf32> to vector<16x8x256xf32>
    %12 = vector.extract_strided_slice %8 {offsets = [0, 0, 0], sizes = [16, 16, 64], strides = [1, 1, 1]} : vector<16x16x256xf32> to vector<16x16x64xf32>
    %13 = vector.extract_strided_slice %10 {offsets = [0, 0, 0], sizes = [16, 8, 64], strides = [1, 1, 1]} : vector<16x8x256xf32> to vector<16x8x64xf32>
    %14 = vector.extract_strided_slice %11 {offsets = [0, 0, 0], sizes = [16, 8, 64], strides = [1, 1, 1]} : vector<16x8x256xf32> to vector<16x8x64xf32>
    %cst_10 = arith.constant dense<0.000000e+00> : vector<16x16x8xf32>
    %15 = tpu.matmul %12, %13, %cst_10 {dimension_numbers = #tpu.dot_dimension_numbers<[2], [2], [1], [1], [0, 0, 0, 1, 1, 1], [0], [0]>} : vector<16x16x64xf32>, vector<16x8x64xf32>, vector<16x16x8xf32> -> vector<16x16x8xf32>
    %cst_11 = arith.constant dense<0xFF800000> : vector<16x16xf32>
    %16 = vector.multi_reduction <maximumf>, %15, %cst_11 [2] : vector<16x16x8xf32> to vector<16x16xf32>
    %17 = vector.shape_cast %16 : vector<16x16xf32> to vector<16x16x1xf32>
    %18 = vector.broadcast %17 : vector<16x16x1xf32> to vector<16x16x8xf32>
    %19 = arith.subf %15, %18 : vector<16x16x8xf32>
    %20 = math.exp %19 : vector<16x16x8xf32>
    %cst_12 = arith.constant dense<0.000000e+00> : vector<16x16xf32>
    %21 = vector.multi_reduction <add>, %20, %cst_12 [2] : vector<16x16x8xf32> to vector<16x16xf32>
    %22 = vector.shape_cast %21 : vector<16x16xf32> to vector<16x16x1xf32>
    %23 = vector.broadcast %22 : vector<16x16x1xf32> to vector<16x16x8xf32>
    %24 = arith.divf %20, %23 : vector<16x16x8xf32>
    %cst_13 = arith.constant dense<0.000000e+00> : vector<16x16x64xf32>
    %25 = tpu.matmul %24, %14, %cst_13 {dimension_numbers = #tpu.dot_dimension_numbers<[2], [1], [1], [2], [0, 0, 0, 1, 1, 2], [0], [0]>} : vector<16x16x8xf32>, vector<16x8x64xf32>, vector<16x16x64xf32> -> vector<16x16x64xf32>
    %26 = vector.extract_strided_slice %8 {offsets = [0, 0, 64], sizes = [16, 16, 64], strides = [1, 1, 1]} : vector<16x16x256xf32> to vector<16x16x64xf32>
    %27 = vector.extract_strided_slice %10 {offsets = [0, 0, 64], sizes = [16, 8, 64], strides = [1, 1, 1]} : vector<16x8x256xf32> to vector<16x8x64xf32>
    %28 = vector.extract_strided_slice %11 {offsets = [0, 0, 64], sizes = [16, 8, 64], strides = [1, 1, 1]} : vector<16x8x256xf32> to vector<16x8x64xf32>
    %cst_14 = arith.constant dense<0.000000e+00> : vector<16x16x8xf32>
    %29 = tpu.matmul %26, %27, %cst_14 {dimension_numbers = #tpu.dot_dimension_numbers<[2], [2], [1], [1], [0, 0, 0, 1, 1, 1], [0], [0]>} : vector<16x16x64xf32>, vector<16x8x64xf32>, vector<16x16x8xf32> -> vector<16x16x8xf32>
    %cst_15 = arith.constant dense<0xFF800000> : vector<16x16xf32>
    %30 = vector.multi_reduction <maximumf>, %29, %cst_15 [2] : vector<16x16x8xf32> to vector<16x16xf32>
    %31 = vector.shape_cast %30 : vector<16x16xf32> to vector<16x16x1xf32>
    %32 = vector.broadcast %31 : vector<16x16x1xf32> to vector<16x16x8xf32>
    %33 = arith.subf %29, %32 : vector<16x16x8xf32>
    %34 = math.exp %33 : vector<16x16x8xf32>
    %cst_16 = arith.constant dense<0.000000e+00> : vector<16x16xf32>
    %35 = vector.multi_reduction <add>, %34, %cst_16 [2] : vector<16x16x8xf32> to vector<16x16xf32>
    %36 = vector.shape_cast %35 : vector<16x16xf32> to vector<16x16x1xf32>
    %37 = vector.broadcast %36 : vector<16x16x1xf32> to vector<16x16x8xf32>
    %38 = arith.divf %34, %37 : vector<16x16x8xf32>
    %cst_17 = arith.constant dense<0.000000e+00> : vector<16x16x64xf32>
    %39 = tpu.matmul %38, %28, %cst_17 {dimension_numbers = #tpu.dot_dimension_numbers<[2], [1], [1], [2], [0, 0, 0, 1, 1, 2], [0], [0]>} : vector<16x16x8xf32>, vector<16x8x64xf32>, vector<16x16x64xf32> -> vector<16x16x64xf32>
    %40 = vector.extract_strided_slice %8 {offsets = [0, 0, 128], sizes = [16, 16, 64], strides = [1, 1, 1]} : vector<16x16x256xf32> to vector<16x16x64xf32>
    %41 = vector.extract_strided_slice %10 {offsets = [0, 0, 128], sizes = [16, 8, 64], strides = [1, 1, 1]} : vector<16x8x256xf32> to vector<16x8x64xf32>
    %42 = vector.extract_strided_slice %11 {offsets = [0, 0, 128], sizes = [16, 8, 64], strides = [1, 1, 1]} : vector<16x8x256xf32> to vector<16x8x64xf32>
    %cst_18 = arith.constant dense<0.000000e+00> : vector<16x16x8xf32>
    %43 = tpu.matmul %40, %41, %cst_18 {dimension_numbers = #tpu.dot_dimension_numbers<[2], [2], [1], [1], [0, 0, 0, 1, 1, 1], [0], [0]>} : vector<16x16x64xf32>, vector<16x8x64xf32>, vector<16x16x8xf32> -> vector<16x16x8xf32>
    %cst_19 = arith.constant dense<0xFF800000> : vector<16x16xf32>
    %44 = vector.multi_reduction <maximumf>, %43, %cst_19 [2] : vector<16x16x8xf32> to vector<16x16xf32>
    %45 = vector.shape_cast %44 : vector<16x16xf32> to vector<16x16x1xf32>
    %46 = vector.broadcast %45 : vector<16x16x1xf32> to vector<16x16x8xf32>
    %47 = arith.subf %43, %46 : vector<16x16x8xf32>
    %48 = math.exp %47 : vector<16x16x8xf32>
    %cst_20 = arith.constant dense<0.000000e+00> : vector<16x16xf32>
    %49 = vector.multi_reduction <add>, %48, %cst_20 [2] : vector<16x16x8xf32> to vector<16x16xf32>
    %50 = vector.shape_cast %49 : vector<16x16xf32> to vector<16x16x1xf32>
    %51 = vector.broadcast %50 : vector<16x16x1xf32> to vector<16x16x8xf32>
    %52 = arith.divf %48, %51 : vector<16x16x8xf32>
    %cst_21 = arith.constant dense<0.000000e+00> : vector<16x16x64xf32>
    %53 = tpu.matmul %52, %42, %cst_21 {dimension_numbers = #tpu.dot_dimension_numbers<[2], [1], [1], [2], [0, 0, 0, 1, 1, 2], [0], [0]>} : vector<16x16x8xf32>, vector<16x8x64xf32>, vector<16x16x64xf32> -> vector<16x16x64xf32>
    %54 = vector.extract_strided_slice %8 {offsets = [0, 0, 192], sizes = [16, 16, 64], strides = [1, 1, 1]} : vector<16x16x256xf32> to vector<16x16x64xf32>
    %55 = vector.extract_strided_slice %10 {offsets = [0, 0, 192], sizes = [16, 8, 64], strides = [1, 1, 1]} : vector<16x8x256xf32> to vector<16x8x64xf32>
    %56 = vector.extract_strided_slice %11 {offsets = [0, 0, 192], sizes = [16, 8, 64], strides = [1, 1, 1]} : vector<16x8x256xf32> to vector<16x8x64xf32>
    %cst_22 = arith.constant dense<0.000000e+00> : vector<16x16x8xf32>
    %57 = tpu.matmul %54, %55, %cst_22 {dimension_numbers = #tpu.dot_dimension_numbers<[2], [2], [1], [1], [0, 0, 0, 1, 1, 1], [0], [0]>} : vector<16x16x64xf32>, vector<16x8x64xf32>, vector<16x16x8xf32> -> vector<16x16x8xf32>
    %cst_23 = arith.constant dense<0xFF800000> : vector<16x16xf32>
    %58 = vector.multi_reduction <maximumf>, %57, %cst_23 [2] : vector<16x16x8xf32> to vector<16x16xf32>
    %59 = vector.shape_cast %58 : vector<16x16xf32> to vector<16x16x1xf32>
    %60 = vector.broadcast %59 : vector<16x16x1xf32> to vector<16x16x8xf32>
    %61 = arith.subf %57, %60 : vector<16x16x8xf32>
    %62 = math.exp %61 : vector<16x16x8xf32>
    %cst_24 = arith.constant dense<0.000000e+00> : vector<16x16xf32>
    %63 = vector.multi_reduction <add>, %62, %cst_24 [2] : vector<16x16x8xf32> to vector<16x16xf32>
    %64 = vector.shape_cast %63 : vector<16x16xf32> to vector<16x16x1xf32>
    %65 = vector.broadcast %64 : vector<16x16x1xf32> to vector<16x16x8xf32>
    %66 = arith.divf %62, %65 : vector<16x16x8xf32>
    %cst_25 = arith.constant dense<0.000000e+00> : vector<16x16x64xf32>
    %67 = tpu.matmul %66, %56, %cst_25 {dimension_numbers = #tpu.dot_dimension_numbers<[2], [1], [1], [2], [0, 0, 0, 1, 1, 2], [0], [0]>} : vector<16x16x8xf32>, vector<16x8x64xf32>, vector<16x16x64xf32> -> vector<16x16x64xf32>
    %68 = tpu.concatenate %25, %39, %53, %67 in 2 : vector<16x16x64xf32>, vector<16x16x64xf32>, vector<16x16x64xf32>, vector<16x16x64xf32> -> vector<16x16x256xf32>
    %69 = vector.shape_cast %68 : vector<16x16x256xf32> to vector<256x256xf32>
    %c0_26 = arith.constant 0 : index
    %c0_27 = arith.constant 0 : index
    %70 = vector.load %arg5[%c0_26, %c0_27] : memref<256x64xf32, #tpu.memory_space<vmem>>, vector<256x64xf32>
    %cst_28 = arith.constant dense<0.000000e+00> : vector<256x64xf32>
    %71 = tpu.matmul %69, %70, %cst_28 {dimension_numbers = #tpu.dot_dimension_numbers<[1], [0], [0], [1], [0, 0, 1, 1], [], []>} : vector<256x256xf32>, vector<256x64xf32>, vector<256x64xf32> -> vector<256x64xf32>
    %c0_29 = arith.constant 0 : index
    %c0_30 = arith.constant 0 : index
    %72 = vector.load %arg6[%c0_29, %c0_30] : memref<1x64xf32, #tpu.memory_space<vmem>>, vector<1x64xf32>
    %73 = vector.broadcast %72 : vector<1x64xf32> to vector<256x64xf32>
    %74 = arith.addf %71, %73 : vector<256x64xf32>
    %75 = vector.shape_cast %74 : vector<256x64xf32> to vector<16x16x64xf32>
    %c0_31 = arith.constant 0 : index
    %c0_32 = arith.constant 0 : index
    %c0_33 = arith.constant 0 : index
    %76 = vector.load %arg7[%c0_31, %c0_32, %c0_33] : memref<16x16x64xf32, #tpu.memory_space<vmem>>, vector<16x16x64xf32>
    tpu.vector_store %arg7[%c0_31, %c0_32, %c0_33], %75 {strides = array<i32>} : memref<16x16x64xf32, #tpu.memory_space<vmem>>, vector<16x16x64xf32>,
    return
  }
  func.func @transform_0(%arg0: i32) -> (i32, i32, i32) {
    %c0_i32 = arith.constant 0 : i32
    %c0_i32_0 = arith.constant 0 : i32
    %c0_i32_1 = arith.constant 0 : i32
    return %arg0, %c0_i32, %c0_i32_0 : i32, i32, i32
  }
  func.func @transform_1(%arg0: i32) -> (i32, i32, i32) {
    %c0_i32 = arith.constant 0 : i32
    %c0_i32_0 = arith.constant 0 : i32
    %c0_i32_1 = arith.constant 0 : i32
    return %arg0, %c0_i32, %c0_i32_0 : i32, i32, i32
  }
  func.func @transform_2(%arg0: i32) -> (i32, i32) {
    %c0_i32 = arith.constant 0 : i32
    %c0_i32_0 = arith.constant 0 : i32
    %c0_i32_1 = arith.constant 0 : i32
    return %c0_i32, %c0_i32_0 : i32, i32
  }
  func.func @transform_3(%arg0: i32) -> (i32, i32) {
    %c0_i32 = arith.constant 0 : i32
    %c0_i32_0 = arith.constant 0 : i32
    %c0_i32_1 = arith.constant 0 : i32
    return %c0_i32, %c0_i32_0 : i32, i32
  }
  func.func @transform_4(%arg0: i32) -> (i32, i32) {
    %c0_i32 = arith.constant 0 : i32
    %c0_i32_0 = arith.constant 0 : i32
    %c0_i32_1 = arith.constant 0 : i32
    return %c0_i32, %c0_i32_0 : i32, i32
  }
  func.func @transform_5(%arg0: i32) -> (i32, i32) {
    %c0_i32 = arith.constant 0 : i32
    %c0_i32_0 = arith.constant 0 : i32
    %c0_i32_1 = arith.constant 0 : i32
    return %c0_i32, %c0_i32_0 : i32, i32
  }
  func.func @transform_6(%arg0: i32) -> (i32, i32, i32) {
    %c0_i32 = arith.constant 0 : i32
    %c0_i32_0 = arith.constant 0 : i32
    %c0_i32_1 = arith.constant 0 : i32
    return %arg0, %c0_i32, %c0_i32_0 : i32, i32, i32
  }
}

</mosaic_0001>

<bundles_post_ra>
// kernel: tpu_custom_call.1
= control target key start
LH: loop header
LB: loop body
LE: loop exit
PB: predicated region body
PF: predicated region fallthrough
CT: control target
= control target key end

     0   :  { %11 = vsyncpa [#allocation3], 0  ;;  %s15009_s0 = inlined_call_operand.hbm [shape: f32[32,16,64], index: 0, kind: input, shape index: {}]   ;;  %s15010_s1 = inlined_call_operand.vmem [shape: f32[32,8,64], index: 1, kind: input, shape index: {}]   ;;  %s15011_s2 = inlined_call_operand.vmem [shape: f32[64,256], index: 2, kind: input, shape index: {}]   ;;  %s15012_s3 = inlined_call_operand.hbm [shape: f32[64,512], index: 3, kind: input, shape index: {}]   ;;  %s15013_s4 = inlined_call_operand.vmem [shape: f32[256,64], index: 4, kind: input, shape index: {}]   ;;  %s15014_s5 = inlined_call_operand.vmem [shape: f32[1,64], index: 5, kind: input, shape index: {}]   ;;  %s15015_s6 = inlined_call_operand.hbm [shape: f32[32,16,64], index: 6, kind: output, shape index: {}]  }
   0x1   :  { %13 = vsyncpa [#allocation3 + $0x1], 0 }
   0x2   :  { %14 = vsyncpa [#allocation6], 0 }
   0x3   :  { %15 = vsyncpa [#allocation4], 0 }
   0x4   :  { %17 = vsyncpa [#allocation4 + $0x1], 0  ;;  %s10448_s21 = smov 0   ;;  %s10450_s22 = smov 0  }
   0x5   :  { %s10452_s23 = smov 0   ;;  %s10454_s24 = smov 0  }
   0x6 LB: > { %s10469_s25 = sadd.s32 4294967295, %s10403_s24   ;;  %s8968_s26 = sadd.s32 4294967294, %s10403_s24   ;;  %s10403_s24 = sphi %s10454_s24, %s15674_s24   ;;  %s10399_s23 = sphi %s10452_s23, %s15673_s23   ;;  %s10395_s22 = sphi %s10450_s22, %s15672_s22   ;;  %s10391_s21 = sphi %s10448_s21, %s15671_s21  }
   0x7   : > { %p43_p0 = scmp.ne.s32.totalorder %s10395_s22, %s10391_s21  ;;  %p44_p1 = scmp.eq.s32.totalorder %s10469_s25, 0 }
   0x8   : > { %p177_p2 = scmp.eq.s32.totalorder %s10469_s25, 1  ;;  %p183_p3 = scmp.eq.s32.totalorder %s8968_s26, 1 }
   0x9   : > { %p10478_p4 = por %p44_p1, %p43_p0  ;;  %p8969_p5 = scmp.ge.s32.totalorder %s10403_s24, 1 }
   0xa   : > { %p10483_p6 = por %p183_p3, %p43_p0  ;;  %p190_p7 = scmp.lt.s32.totalorder %s10403_s24, 3 }
   0xb   : > { %s204_s7 = sshll.u32 %s15012_s3, 4  ;;  %s10405_s9 = smov [#allocation5]   ;;  %s205_s7 = int_to_ptr.hbm [resolvable:$true] %s204_s7 }
   0xc   : > { %p10491_p8 = pnand %p8969_p5, %p190_p7  ;;  %s206_s10 = sshll.u32 %s10405_s9, 4  ;;  %s207_s10 = int_to_ptr.vmem [resolvable:$true] %s206_s10 }
   0xd   : > { %s10501_s11 = sadd.s32 1, %s10403_s24   ;;  %s10406_s12 = smov 512  }
   0xe   : > { %p9464_p9 = pneg %p10491_p8  ;;  %s10407_s13 = smov 32  }
   0xf   : > { %s27_s14 = ssub.s32 %s10403_s24, %s10501_s11  ;;  %s30_s15 = sadd.s32 1, %s10399_s23 }
  0x10   : > { %p9465_p10 = pnand %p9464_p9, %p44_p1  ;;  %p28_p12 = scmp.eq.s32.totalorder %s27_s14, 0 }
  0x11   : > { %p37_p13 = scmp.ne.s32.totalorder %s10399_s23, %s10395_s22  ;;  %p38_p0 = scmp.eq.s32.totalorder %s10403_s24, 0 }
  0x12   : > { %9467 = dma.hbm_to_vmem [thread:$0]  (!%p9465_p10), %s205_s7, 4096, %s207_s10, [#allocation6], %s10406_s12, %s10406_s12, %s10407_s13  }
  0x13   : > { %p9477_p3 = scmp.lt.s32.totalorder %s10403_s24, 2  ;;  %p39_p5 = por %p38_p0, %p37_p13 }
  0x14   : > { %s10511_s16 = scalar_select %p28_p12, %s10399_s23, %s30_s15  }
  0x15   : > { %p10515_p7 = por %p177_p2, %p37_p13  ;;  %s226_s18 = sand.u32 1, %s10399_s23  }
  0x16   : > { %s9437_s19 = sshll.u32 %s10403_s24, 8  ;;  %s8972_s20 = sshll.u32 %s226_s18, 8 }
  0x17   : > { %s236_s30 = scalar_lea.hbm %s15009_s0, %s9437_s19  ;;  %s230_s9 = scalar_lea.vmem [#allocation2], %s8972_s20 }
  0x18   : > { %s237_s7 = sshll.u32 %s236_s30, 4  ;;  %s239_s10 = sshll.u32 %s230_s9, 4  ;;  %s238_s7 = int_to_ptr.hbm [resolvable:$true] %s237_s7  ;;  %s240_s10 = int_to_ptr.vmem [resolvable:$true] %s239_s10 }
  0x19   : > { %p10526_p9 = pnand %p9477_p3, %p39_p5  ;;  %s227_s13 = scalar_lea.sflag [#allocation3], %s226_s18 }
  0x1a   : > { %s10303_s14 = sshra.s32 %s238_s7, 4  ;;  %s10310_s26 = scalar_lea.hbm %s15009_s0, 512  ;;  %s10304_s14 = int_to_ptr.hbm [resolvable:$true] %s10303_s14 }
  0x1b   : > { %s10305_s15 = scalar_lea.hbm %s10304_s14, 256  ;;  %p10307_p10 = pneg %p10526_p9 }
  0x1c   : > { %p10306_p2 = scmp.ne.s32.totalorder %s10304_s14, %s10305_s15  ;;  %p10311_p0 = scmp.lt.s32.totalorder %s10304_s14, %s15009_s0 }
  0x1d   : > { %p10312_p3 = scmp.lt.s32.totalorder %s10310_s26, %s10305_s15 }
  0x1e   : > { %p10308_p12 = pnand %p10307_p10, %p10306_p2 }
  0x1f   : > { %p10313_p5 = por %p10312_p3, %p10311_p0 }
  0x20   : > { %p10309_p13 = pneg %p10308_p12 }
  0x22   : > { %p10314_p11 = pnand %p10313_p5, %p10309_p13 }
  0x24   : > { %10317 = shalt.err (!%p10314_p11)
}
  0x25   : > { %s10408_s18 = smov 128   ;;  %s10409_s9 = smov 8  }
  0x26   : > { %9471 = dma.hbm_to_vmem [thread:$0]  (!%p10526_p9), %s238_s7, 4096, %s240_s10, %s227_s13, %s10408_s18, %s10408_s18, %s10409_s9  }
  0x27   : > { %260 = sbr.rel (%p10491_p8) target bundleno = 3339 (0xd0b), region = 44 }
  0x2c   : > { %s10543_s19 = sand.u32 1, %s10395_s22  }
  0x2d   : > { %s8977_s14 = sshll.u32 %s10543_s19, 8  ;;  %s263_s15 = scalar_lea.sflag [#allocation3], %s10543_s19 }
  0x2e   : > { %s10549_s20 = scalar_lea.vmem [#allocation2], %s8977_s14 }
  0x2f   : > { %10378 = dma.done.wait (%p10478_p4), %s263_s15, 4096  }
  0x30   : > { %10380 = vsyncadd (%p10478_p4), %s263_s15, 4294963200 }
  0x31   : > { %10382 = dma.done.wait (%p44_p1), [#allocation6], 4096  }
  0x32   : > { %10384 = vsyncadd (%p44_p1), [#allocation6], 4294963200  ;;  %v376_v0 = vld [vmem:[%s15011_s2 + $0x70] sm:$0xff]  ;;  %v377_v1 = vld [vmem:[%s15011_s2 + $0x78] sm:$0xff]  ;;  %vm378_vm0 = vcmask 523264   ;;  %s8980_s30 = sshll.u32 %s10469_s25, 4 }
  0x33   : > { %v374_v2 = vld [vmem:[%s15011_s2 + $0x60] sm:$0xff]  ;;  %483 = vmatpush.msra.mxu0 %v376_v0  ;;  %9440 = vmatpush.msra.mxu2 %v376_v0  ;;  %v375_v3 = vld [vmem:[%s15011_s2 + $0x68] sm:$0xff]  ;;  %v372_v4 = vld [vmem:[%s15011_s2 + $0x50] sm:$0xff]  ;;  %p308_p1 = scmp.lt.s32.totalorder %s8980_s30, 31  ;;  %s10410_s18 = smov 64   ;;  %vm1553_vm1 = vcmask 64512  }
  0x34   : > { %9448 = vmatpush.msra.mxu3 %v377_v1  ;;  %596 = vmatpush.msra.mxu1 %v377_v1  ;;  %v373_v5 = vld [vmem:[%s15011_s2 + $0x58] sm:$0xff]  ;;  %v370_v6 = vld [vmem:[%s15011_s2 + $0x40] sm:$0xff]  ;;  %v371_v7 = vld [vmem:[%s15011_s2 + $0x48] sm:$0xff]  ;;  %s14793_s29 = scalar_lea.vmem [#allocation7], %s8977_s14  ;;  %s9439_s14 = sshll.u32 %s10469_s25, 8 }
  0x35   : > { %484 = vmatpush.msra.mxu0 %v374_v2  ;;  %9441 = vmatpush.msra.mxu2 %v374_v2  ;;  %v368_v8 = vld [vmem:[%s15011_s2 + $0x30] sm:$0xff]  ;;  %v369_v9 = vld [vmem:[%s15011_s2 + $0x38] sm:$0xff]  ;;  %v366_v10 = vld [vmem:[%s15011_s2 + $0x20] sm:$0xff]  ;;  %s15676_s30 = smov (!%p308_p1, %s8980_s30), 31  ;;  %s8870_s15 = sshll.u32 %s14793_s29, 4  ;;  %s8871_s15 = int_to_ptr.vmem [resolvable:$true] %s8870_s15 }
  0x36   : > { %9449 = vmatpush.msra.mxu3 %v375_v3  ;;  %597 = vmatpush.msra.mxu1 %v375_v3  ;;  %v367_v11 = vld [vmem:[%s15011_s2 + $0x28] sm:$0xff]  ;;  %v364_v12 = vld [vmem:[%s15011_s2 + $0x10] sm:$0xff]  ;;  %v365_v13 = vld [vmem:[%s15011_s2 + $0x18] sm:$0xff]  ;;  %s8981_s9 = sshll.u32 %s15676_s30, 3  ;;  %s10353_s13 = scalar_lea.hbm %s15015_s6, 512 }
  0x37   : > { %485 = vmatpush.msra.mxu0 %v372_v4  ;;  %9442 = vmatpush.msra.mxu2 %v372_v4  ;;  %v362_v14 = vld [vmem:[%s15011_s2] sm:$0xff]  ;;  %v363_v15 = vld [vmem:[%s15011_s2 + $0x8] sm:$0xff]  ;;  %v329_v17 = vld [vmem:[%s10549_s20 + $0x78] sm:$0xff]  ;;  %s10711_s7 = scalar_lea.vmem %s15010_s1, %s8981_s9  ;;  %s8869_s9 = scalar_lea.hbm %s15015_s6, %s9439_s14 }
  0x38   : > { %9450 = vmatpush.msra.mxu3 %v373_v5  ;;  %598 = vmatpush.msra.mxu1 %v373_v5  ;;  %v314_v16 = vld [vmem:[%s10549_s20] sm:$0xff]  ;;  %v315_v18 = vld [vmem:[%s10549_s20 + $0x8] sm:$0xff]  ;;  %v316_v20 = vld [vmem:[%s10549_s20 + $0x10] sm:$0xff]  ;;  %s8872_s8 = sshll.u32 %s8869_s9, 4  ;;  %s8873_s8 = int_to_ptr.hbm [resolvable:$true] %s8872_s8 }
  0x39   : > { %486 = vmatpush.msra.mxu0 %v370_v6  ;;  %9443 = vmatpush.msra.mxu2 %v370_v6  ;;  %v330_v19 = vld [vmem:[%s10549_s20 + $0x80] sm:$0xff]  ;;  %v331_v21 = vld [vmem:[%s10549_s20 + $0x88] sm:$0xff]  ;;  %v317_v22 = vld [vmem:[%s10549_s20 + $0x18] sm:$0xff] }
  0x3a   : > { %9451 = vmatpush.msra.mxu3 %v371_v7  ;;  %599 = vmatpush.msra.mxu1 %v371_v7  ;;  %v332_v23 = vld [vmem:[%s10549_s20 + $0x90] sm:$0xff]  ;;  %v318_v24 = vld [vmem:[%s10549_s20 + $0x20] sm:$0xff]  ;;  %v333_v25 = vld [vmem:[%s10549_s20 + $0x98] sm:$0xff] }
  0x3b   : > { %487 = vmatpush.msra.mxu0 %v368_v8  ;;  %9444 = vmatpush.msra.mxu2 %v368_v8  ;;  %v319_v26 = vld [vmem:[%s10549_s20 + $0x28] sm:$0xff]  ;;  %v334_v27 = vld [vmem:[%s10549_s20 + $0xa0] sm:$0xff]  ;;  %v320_v28 = vld [vmem:[%s10549_s20 + $0x30] sm:$0xff] }
  0x3c   : > { %9452 = vmatpush.msra.mxu3 %v369_v9  ;;  %600 = vmatpush.msra.mxu1 %v369_v9  ;;  %v335_v29 = vld [vmem:[%s10549_s20 + $0xa8] sm:$0xff]  ;;  %v321_v30 = vld [vmem:[%s10549_s20 + $0x38] sm:$0xff]  ;;  %v336_v31 = vld [vmem:[%s10549_s20 + $0xb0] sm:$0xff] }
  0x3d   : > { %488 = vmatpush.msra.mxu0 %v366_v10  ;;  %9445 = vmatpush.msra.mxu2 %v366_v10  ;;  %v729_v32 = vld [vmem:[#allocation5 + $0xe0] sm:$0xff]  ;;  %v337_v34 = vld [vmem:[%s10549_s20 + $0xb8] sm:$0xff]  ;;  %v323_v35 = vld [vmem:[%s10549_s20 + $0x48] sm:$0xff] }
  0x3e   : > { %9453 = vmatpush.msra.mxu3 %v367_v11  ;;  %601 = vmatpush.msra.mxu1 %v367_v11  ;;  %v322_v33 = vld [vmem:[%s10549_s20 + $0x40] sm:$0xff]  ;;  %v730_v38 = vld [vmem:[#allocation5 + $0xe8] sm:$0xff]  ;;  %v324_v39 = vld [vmem:[%s10549_s20 + $0x50] sm:$0xff] }
  0x3f   : > { %489 = vmatpush.msra.mxu0 %v364_v12  ;;  %9446 = vmatpush.msra.mxu2 %v364_v12  ;;  %v338_v36 = vld [vmem:[%s10549_s20 + $0xc0] sm:$0xff]  ;;  %v339_v40 = vld [vmem:[%s10549_s20 + $0xc8] sm:$0xff]  ;;  %v325_v41 = vld [vmem:[%s10549_s20 + $0x58] sm:$0xff] }
  0x40   : > { %9454 = vmatpush.msra.mxu3 %v365_v13  ;;  %602 = vmatpush.msra.mxu1 %v365_v13  ;;  %v725_v37 = vld [vmem:[#allocation5 + $0xc0] sm:$0xff]  ;;  %v340_v42 = vld [vmem:[%s10549_s20 + $0xd0] sm:$0xff]  ;;  %v726_v43 = vld [vmem:[#allocation5 + $0xc8] sm:$0xff] }
  0x41   : > { %490 = vmatpush.msra.mxu0 %v362_v14  ;;  %9447 = vmatpush.msra.mxu2 %v362_v14  ;;  %v326_v44 = vld [vmem:[%s10549_s20 + $0x60] sm:$0xff]  ;;  %v722_v46 = vld [vmem:[#allocation5 + $0xa8] sm:$0xff]  ;;  %v341_v47 = vld [vmem:[%s10549_s20 + $0xd8] sm:$0xff] }
  0x42   : > { %9455 = vmatpush.msra.mxu3 %v363_v15  ;;  %8982 = vmatmul.msk.f32.vlgmr.msra.gmra.mxu0 %vm378_vm0, %v314_v16  ;;  %v721_v45 = vld [vmem:[#allocation5 + $0xa0] sm:$0xff]  ;;  %v718_v49 = vld [vmem:[#allocation5 + $0x88] sm:$0xff]  ;;  %v328_v60 = vld [vmem:[%s10549_s20 + $0x70] sm:$0xff] }
  0x43   : > { %8997 = vmatmul.msk.f32.vlgmr.msra.gmra.mxu2 %vm378_vm0, %v329_v17  ;;  %9029 = vmatmul.msk.f32.vlgmr.msra.gmra.mxu3 %vm378_vm0, %v329_v17  ;;  %v717_v48 = vld [vmem:[#allocation5 + $0x80] sm:$0xff]  ;;  %v714_v51 = vld [vmem:[#allocation5 + $0x68] sm:$0xff]  ;;  %v344_v62 = vld [vmem:[%s10549_s20 + $0xf0] sm:$0xff] }
  0x44   : > { %603 = vmatpush.msra.mxu1 %v363_v15  ;;  %789 = vmatpush.msrb.mxu2 %v729_v32  ;;  %v713_v50 = vld [vmem:[#allocation5 + $0x60] sm:$0xff]  ;;  %v710_v53 = vld [vmem:[#allocation5 + $0x48] sm:$0xff]  ;;  %v345_v0 = vld [vmem:[%s10549_s20 + $0xf8] sm:$0xff] }
  0x45   : > { %9014 = vmatmul.msk.f32.vlgmr.msra.gmra.mxu1 %vm378_vm0, %v314_v16  ;;  %854 = vmatpush.msrb.mxu3 %v730_v38  ;;  %v709_v52 = vld [vmem:[#allocation5 + $0x40] sm:$0xff]  ;;  %v327_v54 = vld [vmem:[%s10549_s20 + $0x68] sm:$0xff]  ;;  %v10756_v12 = vld [vmem:[%s10711_s7 + $0x10] sm:$0xff] }
  0x46   : > { %790 = vmatpush.msrb.mxu2 %v725_v37  ;;  %v705_v55 = vld [vmem:[#allocation5 + $0x20] sm:$0xff]  ;;  %v706_v56 = vld [vmem:[#allocation5 + $0x28] sm:$0xff]  ;;  %v10773_v16 = vld [vmem:[%s10711_s7 + $0x18] sm:$0xff] }
  0x47   : > { %855 = vmatpush.msrb.mxu3 %v726_v43  ;;  %v342_v57 = vld [vmem:[%s10549_s20 + $0xe0] sm:$0xff]  ;;  %v702_v59 = vld [vmem:[#allocation5 + $0x8] sm:$0xff]  ;;  %v10841_v32 = vld [vmem:[%s10711_s7 + $0x38] sm:$0xff] }
  0x48   : > { %791 = vmatpush.msrb.mxu2 %v721_v45  ;;  %v701_v58 = vld [vmem:[#allocation5] sm:$0xff]  ;;  %v343_v61 = vld [vmem:[%s10549_s20 + $0xe8] sm:$0xff]  ;;  %s10347_s20 = sshra.s32 %s8873_s8, 4  ;;  %s10348_s20 = int_to_ptr.hbm [resolvable:$true] %s10347_s20 }
  0x49   : > { %856 = vmatpush.msrb.mxu3 %v722_v46  ;;  %v10722_v4 = vld [vmem:[%s10711_s7] sm:$0xff]  ;;  %v10737_v8 = vld [vmem:[%s10711_s7 + $0x8] sm:$0xff]  ;;  %v10894_v46 = vld [vmem:[%s10711_s7 + $0x50] sm:$0xff]  ;;  %s10349_s25 = scalar_lea.hbm %s10348_s20, 256  ;;  %p10354_p9 = scmp.lt.s32.totalorder %s10348_s20, %s15015_s6 }
  0x4a   : > { %8983 = vmatmul.msk.f32.gmra.mxu0 %vm378_vm0, %v315_v18  ;;  %792 = vmatpush.msrb.mxu2 %v717_v48  ;;  %v728_v48 = vld [vmem:[#allocation5 + $0xd8] sm:$0xff]  ;;  %p10350_p4 = scmp.ne.s32.totalorder %s10348_s20, %s10349_s25  ;;  %p10355_p2 = scmp.lt.s32.totalorder %s10353_s13, %s10349_s25 }
  0x4b   : > { %8998 = vmatmul.msk.f32.gmra.mxu2 %vm378_vm0, %v330_v19  ;;  %9030 = vmatmul.msk.f32.gmra.mxu3 %vm378_vm0, %v330_v19 }
  0x4c   : > { %857 = vmatpush.msrb.mxu3 %v718_v49  ;;  %793 = vmatpush.msrb.mxu2 %v713_v50  ;;  %p10351_p8 = pnand %p10350_p4, %p10515_p7  ;;  %p10356_p10 = por %p10355_p2, %p10354_p9 }
  0x4d   : > { %9015 = vmatmul.msk.f32.gmra.mxu1 %vm378_vm0, %v315_v18 }
  0x4e   : > { %858 = vmatpush.msrb.mxu3 %v714_v51  ;;  %794 = vmatpush.msrb.mxu2 %v709_v52  ;;  %v723_v51 = vld [vmem:[#allocation5 + $0xb0] sm:$0xff]  ;;  %v724_v52 = vld [vmem:[#allocation5 + $0xb8] sm:$0xff]  ;;  %p10352_p11 = pneg %p10351_p8 }
  0x50   : > { %859 = vmatpush.msrb.mxu3 %v710_v53  ;;  %795 = vmatpush.msrb.mxu2 %v705_v55  ;;  %v10909_v55 = vld [vmem:[%s10711_s7 + $0x58] sm:$0xff]  ;;  %p10357_p12 = pnand %p10356_p10, %p10352_p11 }
  0x52   : > { %8984 = vmatmul.msk.f32.gmra.mxu0 %vm378_vm0, %v316_v20  ;;  %860 = vmatpush.msrb.mxu3 %v706_v56  ;;  %v720_v56 = vld [vmem:[#allocation5 + $0x98] sm:$0xff] }
  0x53   : > { %8999 = vmatmul.msk.f32.gmra.mxu2 %vm378_vm0, %v331_v21  ;;  %9031 = vmatmul.msk.f32.gmra.mxu3 %vm378_vm0, %v331_v21 }
  0x54   : > { %796 = vmatpush.msrb.mxu2 %v701_v58  ;;  %861 = vmatpush.msrb.mxu3 %v702_v59  ;;  %v716_v58 = vld [vmem:[#allocation5 + $0x78] sm:$0xff]  ;;  %v711_v59 = vld [vmem:[#allocation5 + $0x50] sm:$0xff] }
  0x55   : > { %9016 = vmatmul.msk.f32.gmra.mxu1 %vm378_vm0, %v316_v20  ;;  %v10790_v20 = vld [vmem:[%s10711_s7 + $0x20] sm:$0xff] }
  0x5a   : > { %8985 = vmatmul.msk.f32.gmra.mxu0 %vm378_vm0, %v317_v22 }
  0x5b   : > { %9000 = vmatmul.msk.f32.gmra.mxu2 %vm378_vm0, %v332_v23  ;;  %9032 = vmatmul.msk.f32.gmra.mxu3 %vm378_vm0, %v332_v23 }
  0x5d   : > { %9017 = vmatmul.msk.f32.gmra.mxu1 %vm378_vm0, %v317_v22 }
  0x62   : > { %8986 = vmatmul.msk.f32.gmra.mxu0 %vm378_vm0, %v318_v24 }
  0x63   : > { %9001 = vmatmul.msk.f32.gmra.mxu2 %vm378_vm0, %v333_v25  ;;  %9033 = vmatmul.msk.f32.gmra.mxu3 %vm378_vm0, %v333_v25 }
  0x65   : > { %9018 = vmatmul.msk.f32.gmra.mxu1 %vm378_vm0, %v318_v24  ;;  %v10807_v24 = vld [vmem:[%s10711_s7 + $0x28] sm:$0xff] }
  0x6a   : > { %8987 = vmatmul.msk.f32.gmra.mxu0 %vm378_vm0, %v319_v26 }
  0x6b   : > { %9002 = vmatmul.msk.f32.gmra.mxu2 %vm378_vm0, %v334_v27  ;;  %9034 = vmatmul.msk.f32.gmra.mxu3 %vm378_vm0, %v334_v27 }
  0x6d   : > { %9019 = vmatmul.msk.f32.gmra.mxu1 %vm378_vm0, %v319_v26 }
  0x72   : > { %8988 = vmatmul.msk.f32.gmra.mxu0 %vm378_vm0, %v320_v28 }
  0x73   : > { %9003 = vmatmul.msk.f32.gmra.mxu2 %vm378_vm0, %v335_v29  ;;  %9035 = vmatmul.msk.f32.gmra.mxu3 %vm378_vm0, %v335_v29 }
  0x75   : > { %9020 = vmatmul.msk.f32.gmra.mxu1 %vm378_vm0, %v320_v28  ;;  %v10824_v28 = vld [vmem:[%s10711_s7 + $0x30] sm:$0xff] }
  0x7a   : > { %8989 = vmatmul.msk.f32.gmra.mxu0 %vm378_vm0, %v321_v30 }
  0x7b   : > { %9004 = vmatmul.msk.f32.gmra.mxu2 %vm378_vm0, %v336_v31  ;;  %9036 = vmatmul.msk.f32.gmra.mxu3 %vm378_vm0, %v336_v31 }
  0x7d   : > { %9021 = vmatmul.msk.f32.gmra.mxu1 %vm378_vm0, %v321_v30 }
  0x82   : > { %8990 = vmatmul.msk.f32.gmra.mxu0 %vm378_vm0, %v322_v33 }
  0x83   : > { %9005 = vmatmul.msk.f32.gmra.mxu2 %vm378_vm0, %v337_v34  ;;  %9037 = vmatmul.msk.f32.gmra.mxu3 %vm378_vm0, %v337_v34 }
  0x85   : > { %9022 = vmatmul.msk.f32.gmra.mxu1 %vm378_vm0, %v322_v33 }
  0x8a   : > { %8991 = vmatmul.msk.f32.gmra.mxu0 %vm378_vm0, %v323_v35 }
  0x8b   : > { %9006 = vmatmul.msk.f32.gmra.mxu2 %vm378_vm0, %v338_v36  ;;  %9038 = vmatmul.msk.f32.gmra.mxu3 %vm378_vm0, %v338_v36  ;;  %v10858_v36 = vld [vmem:[%s10711_s7 + $0x40] sm:$0xff] }
  0x8d   : > { %9023 = vmatmul.msk.f32.gmra.mxu1 %vm378_vm0, %v323_v35 }
  0x92   : > { %8992 = vmatmul.msk.f32.gmra.mxu0 %vm378_vm0, %v324_v39 }
  0x93   : > { %9007 = vmatmul.msk.f32.gmra.mxu2 %vm378_vm0, %v339_v40  ;;  %9039 = vmatmul.msk.f32.gmra.mxu3 %vm378_vm0, %v339_v40  ;;  %v731_v40 = vld [vmem:[#allocation5 + $0xf0] sm:$0xff] }
  0x94   : > { %919 = vmatpush.msra.mxu2 %v731_v40 }
  0x95   : > { %9024 = vmatmul.msk.f32.gmra.mxu1 %vm378_vm0, %v324_v39 }
  0x9a   : > { %8993 = vmatmul.msk.f32.gmra.mxu0 %vm378_vm0, %v325_v41 }
  0x9b   : > { %9008 = vmatmul.msk.f32.gmra.mxu2 %vm378_vm0, %v340_v42  ;;  %9040 = vmatmul.msk.f32.gmra.mxu3 %vm378_vm0, %v340_v42 }
  0x9d   : > { %9025 = vmatmul.msk.f32.gmra.mxu1 %vm378_vm0, %v325_v41  ;;  %v10875_v41 = vld [vmem:[%s10711_s7 + $0x48] sm:$0xff] }
  0xa2   : > { %8994 = vmatmul.msk.f32.gmra.mxu0 %vm378_vm0, %v326_v44 }
  0xa3   : > { %9009 = vmatmul.msk.f32.gmra.mxu2 %vm378_vm0, %v341_v47  ;;  %9041 = vmatmul.msk.f32.gmra.mxu3 %vm378_vm0, %v341_v47  ;;  %v727_v47 = vld [vmem:[#allocation5 + $0xd0] sm:$0xff] }
  0xa4   : > { %920 = vmatpush.msra.mxu2 %v727_v47  ;;  %v10924_v47 = vld [vmem:[%s10711_s7 + $0x60] sm:$0xff] }
  0xa5   : > { %9026 = vmatmul.msk.f32.gmra.mxu1 %vm378_vm0, %v326_v44  ;;  %v732_v44 = vld [vmem:[#allocation5 + $0xf8] sm:$0xff] }
  0xa6   : > { %984 = vmatpush.msra.mxu3 %v732_v44  ;;  %921 = vmatpush.msra.mxu2 %v723_v51  ;;  %v708_v44 = vld [vmem:[#allocation5 + $0x38] sm:$0xff] }
  0xa7   : > { %v704_v51 = vld [vmem:[#allocation5 + $0x18] sm:$0xff] }
  0xa8   : > { %985 = vmatpush.msra.mxu3 %v728_v48  ;;  %v703_v48 = vld [vmem:[#allocation5 + $0x10] sm:$0xff] }
  0xaa   : > { %8995 = vmatmul.msk.f32.gmra.mxu0 %vm378_vm0, %v327_v54  ;;  %986 = vmatpush.msra.mxu3 %v724_v52 }
  0xab   : > { %9010 = vmatmul.msk.f32.gmra.mxu2 %vm378_vm0, %v342_v57  ;;  %9042 = vmatmul.msk.f32.gmra.mxu3 %vm378_vm0, %v342_v57  ;;  %v715_v57 = vld [vmem:[#allocation5 + $0x70] sm:$0xff] }
  0xac   : > { %987 = vmatpush.msra.mxu3 %v720_v56 }
  0xad   : > { %9027 = vmatmul.msk.f32.gmra.mxu1 %vm378_vm0, %v327_v54  ;;  %v719_v54 = vld [vmem:[#allocation5 + $0x90] sm:$0xff] }
  0xae   : > { %922 = vmatpush.msra.mxu2 %v719_v54  ;;  %988 = vmatpush.msra.mxu3 %v716_v58 }
  0xb0   : > { %923 = vmatpush.msra.mxu2 %v715_v57  ;;  %v10943_v57 = vld [vmem:[%s10711_s7 + $0x68] sm:$0xff] }
  0xb2   : > { %8996 = vmatmul.msk.f32.gmra.mxu0 %vm378_vm0, %v328_v60  ;;  %924 = vmatpush.msra.mxu2 %v711_v59 }
  0xb3   : > { %9011 = vmatmul.msk.f32.gmra.mxu2 %vm378_vm0, %v343_v61  ;;  %9043 = vmatmul.msk.f32.gmra.mxu3 %vm378_vm0, %v343_v61 }
  0xb5   : > { %9028 = vmatmul.msk.f32.gmra.mxu1 %vm378_vm0, %v328_v60  ;;  %v712_v60 = vld [vmem:[#allocation5 + $0x58] sm:$0xff] }
  0xb6   : > { %989 = vmatpush.msra.mxu3 %v712_v60  ;;  %v10956_v60 = vld [vmem:[%s10711_s7 + $0x70] sm:$0xff] }
  0xb8   : > { %990 = vmatpush.msra.mxu3 %v708_v44 }
  0xba   : > { %991 = vmatpush.msra.mxu3 %v704_v51 }
  0xbb   : > { %9012 = vmatmul.msk.f32.gmra.mxu2 %vm378_vm0, %v344_v62  ;;  %9044 = vmatmul.msk.f32.gmra.mxu3 %vm378_vm0, %v344_v62 }
  0xbf   : > { %v10701_v63 = vpop.f32.mrf.mxu0 }
  0xc0   : > { %2786 = vrot.lane.b32.xlu2 %v10701_v63, %s10410_s18 }
  0xc3   : > { %9013 = vmatmul.msk.f32.gmra.mxu2 %vm378_vm0, %v345_v0  ;;  %9045 = vmatmul.msk.f32.gmra.mxu3 %vm378_vm0, %v345_v0  ;;  %v707_v0 = vld [vmem:[#allocation5 + $0x30] sm:$0xff] }
  0xc4   : > { %925 = vmatpush.msra.mxu2 %v707_v0 }
  0xc6   : > { %v10713_v1 = vpop.f32.mrf.mxu2  ;;  %v10715_v2 = vpop.f32.mrf.mxu3  ;;  %926 = vmatpush.msra.mxu2 %v703_v48  ;;  %v10967_v48 = vld [vmem:[%s10711_s7 + $0x78] sm:$0xff]  ;;  %s8857_s7 = scalar_lea.sflag [#allocation4], %s10543_s19 }
  0xc7   : > { %15109 = vst [vmem:[#allocation11_spill] sm:$0xff] %v10715_v2  ;;  %v10717_v3 = vpop.f32.mrf.mxu0 }
  0xc8   : > { %3033 = vrot.lane.b32.xlu2 %v10713_v1, %s10410_s18 }
  0xcb   : > { %9046 = vmatmul.msk.f32.vlgmr.msrb.gmra.mxu2 %vm378_vm0, %v10722_v4  ;;  %9062 = vmatmul.msk.f32.vlgmr.msrb.gmra.mxu3 %vm378_vm0, %v10722_v4 }
  0xce   : > { %v10728_v5 = vpop.f32.mrf.mxu2  ;;  %v10730_v6 = vpop.f32.mrf.mxu3 }
  0xcf   : > { %15110 = vst [vmem:[#allocation12_spill] sm:$0xff] %v10730_v6  ;;  %v10732_v7 = vpop.f32.mrf.mxu0 }
  0xd0   : > { %2788 = vrot.lane.b32.xlu2 %v10717_v3, %s10410_s18  ;;  %2821 = vrot.lane.b32.xlu1 %v10732_v7, %s10410_s18 }
  0xd3   : > { %9047 = vmatmul.msk.f32.gmra.mxu2 %vm378_vm0, %v10737_v8  ;;  %9063 = vmatmul.msk.f32.gmra.mxu3 %vm378_vm0, %v10737_v8 }
  0xd6   : > { %v10745_v9 = vpop.f32.mrf.mxu2  ;;  %v10747_v10 = vpop.f32.mrf.mxu3 }
  0xd7   : > { %15111 = vst [vmem:[#allocation13_spill] sm:$0xff] %v10747_v10  ;;  %3068 = vrot.lane.b32.xlu0 %v10745_v9, %s10410_s18  ;;  %v10751_v11 = vpop.f32.mrf.mxu0 }
  0xd8   : > { %3066 = vrot.lane.b32.xlu2 %v10728_v5, %s10410_s18 }
  0xdb   : > { %9048 = vmatmul.msk.f32.gmra.mxu2 %vm378_vm0, %v10756_v12  ;;  %9064 = vmatmul.msk.f32.gmra.mxu3 %vm378_vm0, %v10756_v12 }
  0xde   : > { %v10762_v13 = vpop.f32.mrf.mxu2  ;;  %v10764_v14 = vpop.f32.mrf.mxu3 }
  0xdf   : > { %15112 = vst [vmem:[#allocation14_spill] sm:$0xff] %v10764_v14  ;;  %3101 = vrot.lane.b32.xlu1 %v10762_v13, %s10410_s18  ;;  %v10768_v15 = vpop.f32.mrf.mxu0 }
  0xe0   : > { %2823 = vrot.lane.b32.xlu2 %v10751_v11, %s10410_s18 }
  0xe3   : > { %9049 = vmatmul.msk.f32.gmra.mxu2 %vm378_vm0, %v10773_v16  ;;  %9065 = vmatmul.msk.f32.gmra.mxu3 %vm378_vm0, %v10773_v16 }
  0xe6   : > { %v10779_v17 = vpop.f32.mrf.mxu2  ;;  %v10781_v18 = vpop.f32.mrf.mxu3 }
  0xe7   : > { %15113 = vst [vmem:[#allocation15_spill] sm:$0xff] %v10781_v18  ;;  %v10783_v19 = vpop.f32.mrf.mxu0  ;;  %2856 = vrot.lane.b32.xlu1 %v10768_v15, %s10410_s18 }
  0xe8   : > { %3103 = vrot.lane.b32.xlu2 %v10779_v17, %s10410_s18  ;;  %2858 = vrot.lane.b32.xlu0 %v10783_v19, %s10410_s18 }
  0xeb   : > { %9050 = vmatmul.msk.f32.gmra.mxu2 %vm378_vm0, %v10790_v20  ;;  %9066 = vmatmul.msk.f32.gmra.mxu3 %vm378_vm0, %v10790_v20 }
  0xee   : > { %v10798_v21 = vpop.f32.mrf.mxu2  ;;  %v10800_v22 = vpop.f32.mrf.mxu3 }
  0xef   : > { %15114 = vst [vmem:[#allocation16_spill] sm:$0xff] %v10800_v22  ;;  %v10802_v23 = vpop.f32.mrf.mxu0 }
  0xf0   : > { %3136 = vrot.lane.b32.xlu2 %v10798_v21, %s10410_s18  ;;  %2891 = vrot.lane.b32.xlu1 %v10802_v23, %s10410_s18 }
  0xf3   : > { %9051 = vmatmul.msk.f32.gmra.mxu2 %vm378_vm0, %v10807_v24  ;;  %9067 = vmatmul.msk.f32.gmra.mxu3 %vm378_vm0, %v10807_v24 }
  0xf6   : > { %v10815_v25 = vpop.f32.mrf.mxu2  ;;  %v10817_v26 = vpop.f32.mrf.mxu3 }
  0xf7   : > { %15115 = vst [vmem:[#allocation17_spill] sm:$0xff] %v10817_v26  ;;  %3138 = vrot.lane.b32.xlu0 %v10815_v25, %s10410_s18  ;;  %v10821_v27 = vpop.f32.mrf.mxu0 }
  0xf8   : > { %2893 = vrot.lane.b32.xlu2 %v10821_v27, %s10410_s18 }
  0xfb   : > { %9052 = vmatmul.msk.f32.gmra.mxu2 %vm378_vm0, %v10824_v28  ;;  %9068 = vmatmul.msk.f32.gmra.mxu3 %vm378_vm0, %v10824_v28 }
  0xfe   : > { %v10832_v29 = vpop.f32.mrf.mxu2  ;;  %v10834_v30 = vpop.f32.mrf.mxu3 }
  0xff   : > { %15116 = vst [vmem:[#allocation18_spill] sm:$0xff] %v10834_v30  ;;  %3171 = vrot.lane.b32.xlu1 %v10832_v29, %s10410_s18  ;;  %v10838_v31 = vpop.f32.mrf.mxu0 }
 0x100   : > { %2926 = vrot.lane.b32.xlu2 %v10838_v31, %s10410_s18 }
 0x103   : > { %9053 = vmatmul.msk.f32.gmra.mxu2 %vm378_vm0, %v10841_v32  ;;  %9069 = vmatmul.msk.f32.gmra.mxu3 %vm378_vm0, %v10841_v32 }
 0x106   : > { %v10849_v33 = vpop.f32.mrf.mxu2  ;;  %v10851_v34 = vpop.f32.mrf.mxu3 }
 0x107   : > { %15117 = vst [vmem:[#allocation19_spill] sm:$0xff] %v10851_v34  ;;  %3173 = vrot.lane.b32.xlu0 %v10849_v33, %s10410_s18  ;;  %v10855_v35 = vpop.f32.mrf.mxu0 }
 0x10b   : > { %9054 = vmatmul.msk.f32.gmra.mxu2 %vm378_vm0, %v10858_v36  ;;  %9070 = vmatmul.msk.f32.gmra.mxu3 %vm378_vm0, %v10858_v36 }
 0x10e   : > { %v10864_v37 = vpop.f32.mrf.mxu2  ;;  %v10866_v38 = vpop.f32.mrf.mxu3 }
 0x10f   : > { %15118 = vst [vmem:[#allocation20_spill] sm:$0xff] %v10866_v38  ;;  %3206 = vrot.lane.b32.xlu2 %v10864_v37, %s10410_s18  ;;  %2928 = vrot.lane.b32.xlu0 %v10855_v35, %s10410_s18  ;;  %v10872_v39 = vpop.f32.mrf.mxu0 }
 0x110   : > { %2961 = vrot.lane.b32.xlu1 %v10872_v39, %s10410_s18 }
 0x113   : > { %9055 = vmatmul.msk.f32.gmra.mxu2 %vm378_vm0, %v10875_v41  ;;  %9071 = vmatmul.msk.f32.gmra.mxu3 %vm378_vm0, %v10875_v41 }
 0x116   : > { %v10883_v42 = vpop.f32.mrf.mxu2  ;;  %v10885_v43 = vpop.f32.mrf.mxu3 }
 0x117   : > { %15119 = vst [vmem:[#allocation21_spill] sm:$0xff] %v10885_v43  ;;  %3208 = vrot.lane.b32.xlu0 %v10883_v42, %s10410_s18  ;;  %v10889_v45 = vpop.f32.mrf.mxu0 }
 0x118   : > { %2963 = vrot.lane.b32.xlu2 %v10889_v45, %s10410_s18 }
 0x11a   : > { %v11175_v22 = vpop.permute.xlu2 %2786 }
 0x11b   : > { %9056 = vmatmul.msk.f32.gmra.mxu2 %vm378_vm0, %v10894_v46  ;;  %9072 = vmatmul.msk.f32.gmra.mxu3 %vm378_vm0, %v10894_v46  ;;  %15159 = vst [vmem:[#allocation61_spill] sm:$0xff] %v11175_v22 }
 0x11e   : > { %v10900_v49 = vpop.f32.mrf.mxu2  ;;  %v10902_v50 = vpop.f32.mrf.mxu3 }
 0x11f   : > { %15120 = vst [vmem:[#allocation22_spill] sm:$0xff] %v10902_v50  ;;  %v10904_v53 = vpop.f32.mrf.mxu0 }
 0x120   : > { %3241 = vrot.lane.b32.xlu2 %v10900_v49, %s10410_s18 }
 0x123   : > { %9057 = vmatmul.msk.f32.gmra.mxu2 %vm378_vm0, %v10909_v55  ;;  %9073 = vmatmul.msk.f32.gmra.mxu3 %vm378_vm0, %v10909_v55 }
 0x126   : > { %v10915_v61 = vpop.f32.mrf.mxu2  ;;  %v10917_v62 = vpop.f32.mrf.mxu3 }
 0x127   : > { %15121 = vst [vmem:[#allocation23_spill] sm:$0xff] %v10917_v62  ;;  %v10919_v40 = vpop.f32.mrf.mxu0 }
 0x128   : > { %2996 = vrot.lane.b32.xlu2 %v10904_v53, %s10410_s18  ;;  %2998 = vrot.lane.b32.xlu0 %v10919_v40, %s10410_s18 }
 0x12b   : > { %9058 = vmatmul.msk.f32.gmra.mxu2 %vm378_vm0, %v10924_v47  ;;  %9074 = vmatmul.msk.f32.gmra.mxu3 %vm378_vm0, %v10924_v47 }
 0x12e   : > { %v10932_v52 = vpop.f32.mrf.mxu2  ;;  %v10934_v54 = vpop.f32.mrf.mxu3 }
 0x12f   : > { %15122 = vst [vmem:[#allocation24_spill] sm:$0xff] %v10934_v54  ;;  %v10936_v56 = vpop.f32.mrf.mxu0  ;;  %v10977_v54 = vpop.f32.mrf.mxu1 }
 0x130   : > { %3276 = vrot.lane.b32.xlu2 %v10932_v52, %s10410_s18  ;;  %3031 = vrot.lane.b32.xlu1 %v10936_v56, %s10410_s18  ;;  %15127 = vst [vmem:[#allocation29_spill] sm:$0xff] %v10977_v54 }
 0x133   : > { %9059 = vmatmul.msk.f32.gmra.mxu2 %vm378_vm0, %v10943_v57  ;;  %9075 = vmatmul.msk.f32.gmra.mxu3 %vm378_vm0, %v10943_v57 }
 0x136   : > { %v10949_v58 = vpop.f32.mrf.mxu2  ;;  %v10951_v59 = vpop.f32.mrf.mxu3 }
 0x137   : > { %15123 = vst [vmem:[#allocation25_spill] sm:$0xff] %v10951_v59  ;;  %v10987_v26 = vpop.f32.mrf.mxu1 }
 0x138   : > { %3278 = vrot.lane.b32.xlu1 %v10949_v58, %s10410_s18  ;;  %15129 = vst [vmem:[#allocation31_spill] sm:$0xff] %v10987_v26 }
 0x13b   : > { %9060 = vmatmul.msk.f32.gmra.mxu2 %vm378_vm0, %v10956_v60  ;;  %9076 = vmatmul.msk.f32.gmra.mxu3 %vm378_vm0, %v10956_v60 }
 0x13e   : > { %v10962_v0 = vpop.f32.mrf.mxu2  ;;  %v10964_v44 = vpop.f32.mrf.mxu3 }
 0x13f   : > { %15124 = vst [vmem:[#allocation26_spill] sm:$0xff] %v10964_v44 }
 0x143   : > { %9061 = vmatmul.msk.f32.gmra.mxu2 %vm378_vm0, %v10967_v48  ;;  %9077 = vmatmul.msk.f32.gmra.mxu3 %vm378_vm0, %v10967_v48 }
 0x146   : > { %v10973_v51 = vpop.f32.mrf.mxu2  ;;  %v10975_v59 = vpop.f32.mrf.mxu3 }
 0x147   : > { %15125 = vst [vmem:[#allocation27_spill] sm:$0xff] %v10973_v51 }
 0x148   : > { %15126 = vst [vmem:[#allocation28_spill] sm:$0xff] %v10975_v59 }
 0x14b   : > { %9078 = vmatmul.msk.f32.vlgmr.msra.gmra.mxu2 %vm378_vm0, %v10722_v4  ;;  %9094 = vmatmul.msk.f32.vlgmr.msra.gmra.mxu3 %vm378_vm0, %v10722_v4 }
 0x14e   : > { %v798_v44 = vpop.f32.mrf.mxu2  ;;  %v10983_v34 = vpop.f32.mrf.mxu3 }
 0x14f   : > { %15128 = vst [vmem:[#allocation30_spill] sm:$0xff] %v10983_v34  ;;  %9110 = vmatpush.xpose.msk.msrb.mxu0 %vm378_vm0, %v798_v44  ;;  %2790 = vrot.lane.b32.xlu1 %v798_v44, %s10410_s18 }
 0x152   : > { %9111 = vmatmul.msk.f32.vlgmr.msrb.gmra.mxu0 %vm378_vm0, %v10701_v63  ;;  %v11007_v63 = vpop.f32.mrf.mxu1 }
 0x153   : > { %9079 = vmatmul.msk.f32.gmra.mxu2 %vm378_vm0, %v10737_v8  ;;  %9095 = vmatmul.msk.f32.gmra.mxu3 %vm378_vm0, %v10737_v8  ;;  %15131 = vst [vmem:[#allocation33_spill] sm:$0xff] %v11007_v63 }
 0x156   : > { %v801_v59 = vpop.f32.mrf.mxu2  ;;  %v10995_v4 = vpop.f32.mrf.mxu3 }
 0x157   : > { %15130 = vst [vmem:[#allocation32_spill] sm:$0xff] %v10995_v4  ;;  %9113 = vmatpush.xpose.msk.msrb.mxu1 %vm378_vm0, %v801_v59  ;;  %2825 = vrot.lane.b32.xlu0 %v801_v59, %s10410_s18 }
 0x15a   : > { %9114 = vmatmul.msk.f32.vlgmr.msrb.gmra.mxu1 %vm378_vm0, %v10732_v7  ;;  %9112 = vmatmul.msk.f32.gmra.mxu0 %vm378_vm0, %v10717_v3  ;;  %v11019_v3 = vpop.f32.mrf.mxu1 }
 0x15b   : > { %9080 = vmatmul.msk.f32.gmra.mxu2 %vm378_vm0, %v10756_v12  ;;  %9096 = vmatmul.msk.f32.gmra.mxu3 %vm378_vm0, %v10756_v12  ;;  %15133 = vst [vmem:[#allocation35_spill] sm:$0xff] %v11019_v3 }
 0x15e   : > { %v804_v8 = vpop.f32.mrf.mxu2  ;;  %v11009_v44 = vpop.f32.mrf.mxu3 }
 0x15f   : > { %15132 = vst [vmem:[#allocation34_spill] sm:$0xff] %v11009_v44  ;;  %2860 = vrot.lane.b32.xlu0 %v804_v8, %s10410_s18  ;;  %9116 = vmatpush.xpose.msk.msrb.mxu2 %vm378_vm0, %v804_v8 }
 0x162   : > { %9115 = vmatmul.msk.f32.gmra.mxu1 %vm378_vm0, %v10751_v11 }
 0x163   : > { %9081 = vmatmul.msk.f32.gmra.mxu2 %vm378_vm0, %v10773_v16  ;;  %9097 = vmatmul.msk.f32.gmra.mxu3 %vm378_vm0, %v10773_v16  ;;  %v11032_v16 = vpop.f32.mrf.mxu1 }
 0x164   : > { %15136 = vst [vmem:[#allocation38_spill] sm:$0xff] %v11032_v16 }
 0x166   : > { %v807_v7 = vpop.f32.mrf.mxu2  ;;  %v11021_v12 = vpop.f32.mrf.mxu3 }
 0x167   : > { %15134 = vst [vmem:[#allocation36_spill] sm:$0xff] %v11021_v12  ;;  %2895 = vrot.lane.b32.xlu1 %v807_v7, %s10410_s18  ;;  %9119 = vmatpush.xpose.msk.msrb.mxu3 %vm378_vm0, %v807_v7 }
 0x16b   : > { %9082 = vmatmul.msk.f32.gmra.mxu2 %vm378_vm0, %v10790_v20  ;;  %9098 = vmatmul.msk.f32.gmra.mxu3 %vm378_vm0, %v10790_v20  ;;  %v11045_v7 = vpop.f32.mrf.mxu1 }
 0x16c   : > { %15138 = vst [vmem:[#allocation40_spill] sm:$0xff] %v11045_v7 }
 0x16e   : > { %v810_v11 = vpop.f32.mrf.mxu2  ;;  %v11029_v59 = vpop.f32.mrf.mxu3 }
 0x16f   : > { %15135 = vst [vmem:[#allocation37_spill] sm:$0xff] %v11029_v59  ;;  %9122 = vmatpush.xpose.msk.msra.mxu0 %vm378_vm0, %v810_v11  ;;  %2930 = vrot.lane.b32.xlu2 %v810_v11, %s10410_s18 }
 0x172   : > { %9123 = vmatmul.msk.f32.vlgmr.msra.gmra.mxu0 %vm378_vm0, %v10838_v31 }
 0x173   : > { %9083 = vmatmul.msk.f32.gmra.mxu2 %vm378_vm0, %v10807_v24  ;;  %9099 = vmatmul.msk.f32.gmra.mxu3 %vm378_vm0, %v10807_v24 }
 0x176   : > { %v813_v8 = vpop.f32.mrf.mxu2  ;;  %v11041_v20 = vpop.f32.mrf.mxu3 }
 0x177   : > { %15137 = vst [vmem:[#allocation39_spill] sm:$0xff] %v11041_v20  ;;  %9125 = vmatpush.xpose.msk.msra.mxu1 %vm378_vm0, %v813_v8  ;;  %2965 = vrot.lane.b32.xlu1 %v813_v8, %s10410_s18 }
 0x17a   : > { %9124 = vmatmul.msk.f32.gmra.mxu0 %vm378_vm0, %v10855_v35  ;;  %9126 = vmatmul.msk.f32.vlgmr.msra.gmra.mxu1 %vm378_vm0, %v10872_v39  ;;  %v11065_v35 = vpop.f32.mrf.mxu1 }
 0x17b   : > { %9084 = vmatmul.msk.f32.gmra.mxu2 %vm378_vm0, %v10824_v28  ;;  %9100 = vmatmul.msk.f32.gmra.mxu3 %vm378_vm0, %v10824_v28  ;;  %15140 = vst [vmem:[#allocation42_spill] sm:$0xff] %v11065_v35 }
 0x17e   : > { %v816_v24 = vpop.f32.mrf.mxu2  ;;  %v11055_v31 = vpop.f32.mrf.mxu3 }
 0x17f   : > { %15139 = vst [vmem:[#allocation41_spill] sm:$0xff] %v11055_v31  ;;  %3000 = vrot.lane.b32.xlu0 %v816_v24, %s10410_s18  ;;  %9128 = vmatpush.xpose.msk.msra.mxu2 %vm378_vm0, %v816_v24 }
 0x182   : > { %9127 = vmatmul.msk.f32.gmra.mxu1 %vm378_vm0, %v10889_v45  ;;  %v11075_v45 = vpop.f32.mrf.mxu1 }
 0x183   : > { %9085 = vmatmul.msk.f32.gmra.mxu2 %vm378_vm0, %v10841_v32  ;;  %9101 = vmatmul.msk.f32.gmra.mxu3 %vm378_vm0, %v10841_v32  ;;  %15142 = vst [vmem:[#allocation44_spill] sm:$0xff] %v11075_v45 }
 0x186   : > { %v819_v39 = vpop.f32.mrf.mxu2  ;;  %v11067_v28 = vpop.f32.mrf.mxu3 }
 0x187   : > { %15141 = vst [vmem:[#allocation43_spill] sm:$0xff] %v11067_v28  ;;  %3035 = vrot.lane.b32.xlu1 %v819_v39, %s10410_s18  ;;  %9131 = vmatpush.xpose.msk.msra.mxu3 %vm378_vm0, %v819_v39 }
 0x18a   : > { %v11090_v24 = vpop.f32.mrf.mxu1 }
 0x18b   : > { %9086 = vmatmul.msk.f32.gmra.mxu2 %vm378_vm0, %v10858_v36  ;;  %9102 = vmatmul.msk.f32.gmra.mxu3 %vm378_vm0, %v10858_v36  ;;  %15145 = vst [vmem:[#allocation47_spill] sm:$0xff] %v11090_v24 }
 0x18e   : > { %v822_v11 = vpop.f32.mrf.mxu2  ;;  %v11077_v8 = vpop.f32.mrf.mxu3 }
 0x18f   : > { %15143 = vst [vmem:[#allocation45_spill] sm:$0xff] %v11077_v8  ;;  %9134 = vmatpush.xpose.msk.msrb.mxu0 %vm378_vm0, %v822_v11  ;;  %3070 = vrot.lane.b32.xlu0 %v822_v11, %s10410_s18 }
 0x192   : > { %9135 = vmatmul.msk.f32.vlgmr.msrb.gmra.mxu0 %vm378_vm0, %v10728_v5  ;;  %v11104_v39 = vpop.f32.mrf.mxu1 }
 0x193   : > { %9087 = vmatmul.msk.f32.gmra.mxu2 %vm378_vm0, %v10875_v41  ;;  %9103 = vmatmul.msk.f32.gmra.mxu3 %vm378_vm0, %v10875_v41  ;;  %15147 = vst [vmem:[#allocation49_spill] sm:$0xff] %v11104_v39 }
 0x196   : > { %v825_v32 = vpop.f32.mrf.mxu2  ;;  %v11087_v36 = vpop.f32.mrf.mxu3 }
 0x197   : > { %15144 = vst [vmem:[#allocation46_spill] sm:$0xff] %v11087_v36  ;;  %9137 = vmatpush.xpose.msk.msrb.mxu1 %vm378_vm0, %v825_v32  ;;  %3105 = vrot.lane.b32.xlu1 %v825_v32, %s10410_s18 }
 0x19a   : > { %9136 = vmatmul.msk.f32.gmra.mxu0 %vm378_vm0, %v10745_v9  ;;  %9138 = vmatmul.msk.f32.vlgmr.msrb.gmra.mxu1 %vm378_vm0, %v10762_v13 }
 0x19b   : > { %9088 = vmatmul.msk.f32.gmra.mxu2 %vm378_vm0, %v10894_v46  ;;  %9104 = vmatmul.msk.f32.gmra.mxu3 %vm378_vm0, %v10894_v46  ;;  %v11119_v46 = vpop.f32.mrf.mxu1 }
 0x19c   : > { %15149 = vst [vmem:[#allocation51_spill] sm:$0xff] %v11119_v46 }
 0x19e   : > { %v828_v5 = vpop.f32.mrf.mxu2  ;;  %v11101_v41 = vpop.f32.mrf.mxu3 }
 0x19f   : > { %15146 = vst [vmem:[#allocation48_spill] sm:$0xff] %v11101_v41  ;;  %3140 = vrot.lane.b32.xlu0 %v828_v5, %s10410_s18 }
 0x1a2   : > { %9139 = vmatmul.msk.f32.gmra.mxu1 %vm378_vm0, %v10779_v17 }
 0x1a3   : > { %9089 = vmatmul.msk.f32.gmra.mxu2 %vm378_vm0, %v10909_v55  ;;  %9105 = vmatmul.msk.f32.gmra.mxu3 %vm378_vm0, %v10909_v55  ;;  %v11131_v55 = vpop.f32.mrf.mxu1 }
 0x1a4   : > { %15151 = vst [vmem:[#allocation53_spill] sm:$0xff] %v11131_v55 }
 0x1a6   : > { %v831_v9 = vpop.f32.mrf.mxu2  ;;  %v11112_v13 = vpop.f32.mrf.mxu3 }
 0x1a7   : > { %15148 = vst [vmem:[#allocation50_spill] sm:$0xff] %v11112_v13  ;;  %3175 = vrot.lane.b32.xlu1 %v831_v9, %s10410_s18 }
 0x1ab   : > { %9090 = vmatmul.msk.f32.gmra.mxu2 %vm378_vm0, %v10924_v47  ;;  %9106 = vmatmul.msk.f32.gmra.mxu3 %vm378_vm0, %v10924_v47 }
 0x1ae   : > { %v834_v17 = vpop.f32.mrf.mxu2  ;;  %v11121_v11 = vpop.f32.mrf.mxu3 }
 0x1af   : > { %15150 = vst [vmem:[#allocation52_spill] sm:$0xff] %v11121_v11  ;;  %9146 = vmatpush.xpose.msk.msra.mxu0 %vm378_vm0, %v834_v17  ;;  %3210 = vrot.lane.b32.xlu0 %v834_v17, %s10410_s18  ;;  %v11148_v17 = vpop.f32.mrf.mxu1 }
 0x1b0   : > { %15154 = vst [vmem:[#allocation56_spill] sm:$0xff] %v11148_v17 }
 0x1b2   : > { %9147 = vmatmul.msk.f32.vlgmr.msra.gmra.mxu0 %vm378_vm0, %v10864_v37 }
 0x1b3   : > { %9091 = vmatmul.msk.f32.gmra.mxu2 %vm378_vm0, %v10943_v57  ;;  %9107 = vmatmul.msk.f32.gmra.mxu3 %vm378_vm0, %v10943_v57 }
 0x1b6   : > { %v837_v47 = vpop.f32.mrf.mxu2  ;;  %v11133_v32 = vpop.f32.mrf.mxu3 }
 0x1b7   : > { %15152 = vst [vmem:[#allocation54_spill] sm:$0xff] %v11133_v32  ;;  %9149 = vmatpush.xpose.msk.msra.mxu1 %vm378_vm0, %v837_v47  ;;  %3245 = vrot.lane.b32.xlu1 %v837_v47, %s10410_s18 }
 0x1ba   : > { %9148 = vmatmul.msk.f32.gmra.mxu0 %vm378_vm0, %v10883_v42  ;;  %9150 = vmatmul.msk.f32.vlgmr.msra.gmra.mxu1 %vm378_vm0, %v10900_v49 }
 0x1bb   : > { %9092 = vmatmul.msk.f32.gmra.mxu2 %vm378_vm0, %v10956_v60  ;;  %9108 = vmatmul.msk.f32.gmra.mxu3 %vm378_vm0, %v10956_v60  ;;  %v11160_v60 = vpop.f32.mrf.mxu1 }
 0x1bc   : > { %15156 = vst [vmem:[#allocation58_spill] sm:$0xff] %v11160_v60 }
 0x1be   : > { %v840_v37 = vpop.f32.mrf.mxu2  ;;  %v11145_v57 = vpop.f32.mrf.mxu3 }
 0x1bf   : > { %15153 = vst [vmem:[#allocation55_spill] sm:$0xff] %v11145_v57  ;;  %3280 = vrot.lane.b32.xlu0 %v840_v37, %s10410_s18 }
 0x1c2   : > { %9151 = vmatmul.msk.f32.gmra.mxu1 %vm378_vm0, %v10915_v61 }
 0x1c3   : > { %9093 = vmatmul.msk.f32.gmra.mxu2 %vm378_vm0, %v10967_v48  ;;  %9109 = vmatmul.msk.f32.gmra.mxu3 %vm378_vm0, %v10967_v48  ;;  %v11173_v48 = vpop.permute.xlu1 %2821 }
 0x1c4   : > { %15158 = vst [vmem:[#allocation60_spill] sm:$0xff] %v11173_v48 }
 0x1c6   : > { %v11156_v42 = vpop.f32.mrf.mxu2  ;;  %v11158_v49 = vpop.f32.mrf.mxu3 }
 0x1c7   : > { %15155 = vst [vmem:[#allocation57_spill] sm:$0xff] %v11158_v49 }
 0x1cb   : > { %9117 = vmatmul.msk.f32.vlgmr.msrb.gmra.mxu2 %vm378_vm0, %v10768_v15  ;;  %9120 = vmatmul.msk.f32.vlgmr.msrb.gmra.mxu3 %vm378_vm0, %v10802_v23  ;;  %v11181_v15 = vpop.f32.mrf.mxu1 }
 0x1cc   : > { %9140 = vmatpush.xpose.msk.msrb.mxu2 %vm378_vm0, %v828_v5  ;;  %9143 = vmatpush.xpose.msk.msrb.mxu3 %vm378_vm0, %v831_v9  ;;  %15160 = vst [vmem:[#allocation62_spill] sm:$0xff] %v11181_v15  ;;  %v11188_v9 = vpop.permute.xlu1 %3101 }
 0x1cd   : > { %15162 = vst [vmem:[#allocation64_spill] sm:$0xff] %v11188_v9 }
 0x1ce   : > { %v11168_v47 = vpop.f32.mrf.mxu2  ;;  %v11170_v30 = vpop.f32.mrf.mxu3 }
 0x1cf   : > { %15157 = vst [vmem:[#allocation59_spill] sm:$0xff] %v11170_v30  ;;  %2343 = vmatpush.msrb.mxu0 %v11168_v47 }
 0x1d3   : > { %9118 = vmatmul.msk.f32.gmra.mxu2 %vm378_vm0, %v10783_v19  ;;  %9121 = vmatmul.msk.f32.gmra.mxu3 %vm378_vm0, %v10821_v27  ;;  %v11194_v19 = vpop.permute.xlu2 %3033  ;;  %v11199_v27 = vpop.f32.mrf.mxu0 }
 0x1d4   : > { %15163 = vst [vmem:[#allocation65_spill] sm:$0xff] %v11194_v19  ;;  %v11211_v57 = vpop.permute.xlu1 %2856  ;;  %v1554_v45 = vsel %vm1553_vm1, %v11199_v27, -inf }
 0x1d5   : > { %15166 = vst [vmem:[#allocation68_spill] sm:$0xff] %v11211_v57 }
 0x1d6   : > { %v11183_v23 = vpop.f32.mrf.mxu2  ;;  %v11185_v5 = vpop.f32.mrf.mxu3 }
 0x1d7   : > { %15161 = vst [vmem:[#allocation63_spill] sm:$0xff] %v11185_v5  ;;  %2372 = vmatpush.msrb.mxu1 %v11183_v23  ;;  %v11201_v2 = vpop.f32.mrf.mxu1 }
 0x1db   : > { %9129 = vmatmul.msk.f32.vlgmr.msra.gmra.mxu2 %vm378_vm0, %v10904_v53  ;;  %9132 = vmatmul.msk.f32.vlgmr.msra.gmra.mxu3 %vm378_vm0, %v10936_v56  ;;  %v1560_v53 = vsel %vm1553_vm1, %v11201_v2, -inf  ;;  %v11209_v56 = vpop.permute.xlu0 %3068  ;;  %v11223_v17 = vpop.permute.xlu2 %2788 }
 0x1dc   : > { %9152 = vmatpush.xpose.msk.msra.mxu2 %vm378_vm0, %v840_v37  ;;  %9155 = vmatpush.xpose.msk.msra.mxu3 %vm378_vm0, %v11156_v42  ;;  %15165 = vst [vmem:[#allocation67_spill] sm:$0xff] %v11209_v56 }
 0x1dd   : > { %15169 = vst [vmem:[#allocation71_spill] sm:$0xff] %v11223_v17 }
 0x1de   : > { %v11203_v60 = vpop.f32.mrf.mxu2  ;;  %v11205_v49 = vpop.f32.mrf.mxu3 }
 0x1df   : > { %15164 = vst [vmem:[#allocation66_spill] sm:$0xff] %v11205_v49  ;;  %v11221_v49 = vpop.f32.mrf.mxu0  ;;  %v11256_v35 = vpop.f32.mrf.mxu1 }
 0x1e1   : > { %1561 = vmax.xlane.f32.xlu1 %v1560_v53 }
 0x1e3   : > { %9130 = vmatmul.msk.f32.gmra.mxu2 %vm378_vm0, %v10919_v40  ;;  %9133 = vmatmul.msk.f32.gmra.mxu3 %vm378_vm0, %v10713_v1  ;;  %v11227_v53 = vpop.permute.xlu0 %2858  ;;  %v11235_v1 = vpop.permute.xlu1 %2891 }
 0x1e4   : > { %15170 = vst [vmem:[#allocation72_spill] sm:$0xff] %v11227_v53 }
 0x1e5   : > { %15171 = vst [vmem:[#allocation73_spill] sm:$0xff] %v11235_v1 }
 0x1e6   : > { %v11217_v37 = vpop.f32.mrf.mxu2  ;;  %v11219_v15 = vpop.f32.mrf.mxu3 }
 0x1e7   : > { %15167 = vst [vmem:[#allocation69_spill] sm:$0xff] %v11217_v37 }
 0x1e8   : > { %15168 = vst [vmem:[#allocation70_spill] sm:$0xff] %v11219_v15 }
 0x1e9   : > { %1555 = vmax.xlane.f32.xlu0 %v1554_v45  ;;  %v11248_v45 = vpop.permute.xlu2 %3066 }
 0x1ea   : > { %15173 = vst [vmem:[#allocation75_spill] sm:$0xff] %v11248_v45 }
 0x1eb   : > { %9141 = vmatmul.msk.f32.vlgmr.msrb.gmra.mxu2 %vm378_vm0, %v10798_v21  ;;  %9144 = vmatmul.msk.f32.vlgmr.msrb.gmra.mxu3 %vm378_vm0, %v10832_v29  ;;  %v1557_v21 = vsel %vm1553_vm1, %v11221_v49, -inf  ;;  %v11250_v41 = vpop.permute.xlu0 %3138 }
 0x1ec   : > { %2401 = vmatpush.msrb.mxu2 %v11203_v60  ;;  %2430 = vmatpush.msrb.mxu3 %v11217_v37  ;;  %15174 = vst [vmem:[#allocation76_spill] sm:$0xff] %v11250_v41 }
 0x1ee   : > { %v11237_v40 = vpop.f32.mrf.mxu2  ;;  %v11239_v15 = vpop.f32.mrf.mxu3 }
 0x1ef   : > { %15172 = vst [vmem:[#allocation74_spill] sm:$0xff] %v11239_v15  ;;  %v11241_v13 = vpop.f32.mrf.mxu0  ;;  %2459 = vmatpush.msra.mxu0 %v11237_v40 }
 0x1f0   : > { %v1578_v29 = vsel %vm1553_vm1, %v11241_v13, -inf }
 0x1f1   : > { %1558 = vmax.xlane.f32.xlu0 %v1557_v21  ;;  %1579 = vmax.xlane.f32.xlu2 %v1578_v29  ;;  %v11265_v21 = vpop.permute.xlu1 %3171  ;;  %v1563_v29 = vsel %vm1553_vm1, %v11256_v35, -inf  ;;  %v11279_v18 = vpop.permute.xlu2 %2823 }
 0x1f2   : > { %15176 = vst [vmem:[#allocation78_spill] sm:$0xff] %v11265_v21 }
 0x1f3   : > { %9142 = vmatmul.msk.f32.gmra.mxu2 %vm378_vm0, %v10815_v25  ;;  %9145 = vmatmul.msk.f32.gmra.mxu3 %vm378_vm0, %v10849_v33  ;;  %v11271_v33 = vpop.permute.xlu0 %3173  ;;  %15178 = vst [vmem:[#allocation80_spill] sm:$0xff] %v11279_v18 }
 0x1f4   : > { %15177 = vst [vmem:[#allocation79_spill] sm:$0xff] %v11271_v33 }
 0x1f6   : > { %v11258_v28 = vpop.f32.mrf.mxu2  ;;  %v11260_v62 = vpop.f32.mrf.mxu3 }
 0x1f7   : > { %15175 = vst [vmem:[#allocation77_spill] sm:$0xff] %v11260_v62  ;;  %v11262_v50 = vpop.f32.mrf.mxu0  ;;  %2488 = vmatpush.msra.mxu1 %v11258_v28  ;;  %v11277_v62 = vpop.f32.mrf.mxu1 }
 0x1f8   : > { %v1581_v25 = vsel %vm1553_vm1, %v11262_v50, -inf }
 0x1f9   : > { %1564 = vmax.xlane.f32.xlu0 %v1563_v29  ;;  %1582 = vmax.xlane.f32.xlu2 %v1581_v25  ;;  %v11286_v29 = vpop.permute.xlu1 %2961  ;;  %v1584_v25 = vsel %vm1553_vm1, %v11277_v62, -inf  ;;  %v11302_v32 = vpop.permute.xlu2 %3103 }
 0x1fa   : > { %15181 = vst [vmem:[#allocation83_spill] sm:$0xff] %v11286_v29 }
 0x1fb   : > { %9153 = vmatmul.msk.f32.vlgmr.msra.gmra.mxu2 %vm378_vm0, %v10932_v52  ;;  %9156 = vmatmul.msk.f32.vlgmr.msra.gmra.mxu3 %vm378_vm0, %v10962_v0  ;;  %v11294_v52 = vpop.permute.xlu0 %2928  ;;  %15184 = vst [vmem:[#allocation86_spill] sm:$0xff] %v11302_v32 }
 0x1fc   : > { %15182 = vst [vmem:[#allocation84_spill] sm:$0xff] %v11294_v52 }
 0x1fe   : > { %v11281_v5 = vpop.f32.mrf.mxu2  ;;  %v11283_v14 = vpop.f32.mrf.mxu3 }
 0x1ff   : > { %15179 = vst [vmem:[#allocation81_spill] sm:$0xff] %v11281_v5  ;;  %2517 = vmatpush.msra.mxu2 %v11281_v5  ;;  %v11296_v55 = vpop.f32.mrf.mxu1 }
 0x200   : > { %15180 = vst [vmem:[#allocation82_spill] sm:$0xff] %v11283_v14 }
 0x201   : > { %1585 = vmax.xlane.f32.xlu2 %v1584_v25  ;;  %v1587_v25 = vsel %vm1553_vm1, %v11296_v55, -inf  ;;  %v11319_v38 = vpop.permute.xlu2 %3136 }
 0x202   : > { %15188 = vst [vmem:[#allocation90_spill] sm:$0xff] %v11319_v38 }
 0x203   : > { %9154 = vmatmul.msk.f32.gmra.mxu2 %vm378_vm0, %v10949_v58  ;;  %9157 = vmatmul.msk.f32.gmra.mxu3 %vm378_vm0, %v10973_v51  ;;  %v11307_v58 = vpop.permute.xlu1 %3031  ;;  %v11315_v15 = vpop.permute.xlu0 %3208 }
 0x204   : > { %15185 = vst [vmem:[#allocation87_spill] sm:$0xff] %v11307_v58 }
 0x205   : > { %15187 = vst [vmem:[#allocation89_spill] sm:$0xff] %v11315_v15 }
 0x206   : > { %v11298_v31 = vpop.f32.mrf.mxu2  ;;  %v11300_v14 = vpop.f32.mrf.mxu3 }
 0x207   : > { %15183 = vst [vmem:[#allocation85_spill] sm:$0xff] %v11300_v14  ;;  %2546 = vmatpush.msra.mxu3 %v11298_v31 }
 0x209   : > { %1588 = vmax.xlane.f32.xlu2 %v1587_v25  ;;  %v11335_v24 = vpop.permute.xlu2 %2893 }
 0x20a   : > { %15192 = vst [vmem:[#allocation94_spill] sm:$0xff] %v11335_v24 }
 0x20b   : > { %v11321_v10 = vpop.permute.xlu1 %3278 }
 0x20c   : > { %15189 = vst [vmem:[#allocation91_spill] sm:$0xff] %v11321_v10 }
 0x20e   : > { %v11309_v46 = vpop.f32.mrf.mxu2  ;;  %v11311_v43 = vpop.f32.mrf.mxu3 }
 0x20f   : > { %15186 = vst [vmem:[#allocation88_spill] sm:$0xff] %v11311_v43  ;;  %v11313_v36 = vpop.f32.mrf.mxu0  ;;  %v11331_v43 = vpop.permute.xlu0 %2998 }
 0x210   : > { %v1602_v14 = vsel %vm1553_vm1, %v11313_v36, -inf  ;;  %15191 = vst [vmem:[#allocation93_spill] sm:$0xff] %v11331_v43 }
 0x211   : > { %1603 = vmax.xlane.f32.xlu1 %v1602_v14  ;;  %v11351_v44 = vpop.permute.xlu2 %2926 }
 0x212   : > { %15194 = vst [vmem:[#allocation96_spill] sm:$0xff] %v11351_v44 }
 0x213   : > { %v11337_v8 = vpop.permute.xlu1 %2790 }
 0x216   : > { %v11323_v30 = vpop.f32.mrf.mxu2  ;;  %v11325_v25 = vpop.f32.mrf.mxu3 }
 0x217   : > { %15190 = vst [vmem:[#allocation92_spill] sm:$0xff] %v11325_v25  ;;  %v11327_v6 = vpop.f32.mrf.mxu0  ;;  %v11329_v39 = vpop.f32.mrf.mxu1 }
 0x218   : > { %v1605_v11 = vsel %vm1553_vm1, %v11327_v6, -inf  ;;  %v1608_v12 = vsel %vm1553_vm1, %v11329_v39, -inf  ;;  %v11349_v3 = vpop.permute.xlu0 %2825 }
 0x219   : > { %1606 = vmax.xlane.f32.xlu1 %v1605_v11  ;;  %v11363_v16 = vpop.permute.xlu2 %3206 }
 0x21a   : > { %15200 = vst [vmem:[#allocation102_spill] sm:$0xff] %v11363_v16 }
 0x21b   : > { %v11353_v11 = vpop.permute.xlu1 %2895 }
 0x21c   : > { %15195 = vst [vmem:[#allocation97_spill] sm:$0xff] %v11353_v11 }
 0x21e   : > { %v11339_v14 = vpop.f32.mrf.mxu2  ;;  %v11341_v20 = vpop.f32.mrf.mxu3 }
 0x21f   : > { %15193 = vst [vmem:[#allocation95_spill] sm:$0xff] %v11341_v20  ;;  %v11343_v59 = vpop.f32.mrf.mxu1 }
 0x220   : > { %v1611_v25 = vsel %vm1553_vm1, %v11343_v59, -inf  ;;  %v11359_v20 = vpop.permute.xlu0 %2860 }
 0x221   : > { %1612 = vmax.xlane.f32.xlu2 %v1611_v25  ;;  %1609 = vmax.xlane.f32.xlu1 %v1608_v12  ;;  %15198 = vst [vmem:[#allocation100_spill] sm:$0xff] %v11359_v20 }
 0x223   : > { %v11361_v34 = vpop.permute.xlu1 %2965 }
 0x224   : > { %15199 = vst [vmem:[#allocation101_spill] sm:$0xff] %v11361_v34 }
 0x226   : > { %v11355_v4 = vpop.f32.mrf.mxu2  ;;  %v11357_v7 = vpop.f32.mrf.mxu3 }
 0x227   : > { %15196 = vst [vmem:[#allocation98_spill] sm:$0xff] %v11355_v4 }
 0x228   : > { %15197 = vst [vmem:[#allocation99_spill] sm:$0xff] %v11357_v7  ;;  %v11373_v26 = vpop.permute.xlu0 %3000  ;;  %v11377_v7 = vpop.permute.xlu2 %2963 }
 0x229   : > { %15202 = vst [vmem:[#allocation104_spill] sm:$0xff] %v11373_v26 }
 0x22a   : > { %15204 = vst [vmem:[#allocation106_spill] sm:$0xff] %v11377_v7 }
 0x22b   : > { %v11375_v33 = vpop.permute.xlu1 %3035 }
 0x22c   : > { %15203 = vst [vmem:[#allocation105_spill] sm:$0xff] %v11375_v33 }
 0x22e   : > { %v11365_v63 = vpop.f32.mrf.mxu2  ;;  %v11367_v25 = vpop.f32.mrf.mxu3 }
 0x22f   : > { %15201 = vst [vmem:[#allocation103_spill] sm:$0xff] %v11367_v25  ;;  %v11369_v12 = vpop.f32.mrf.mxu0 }
 0x230   : > { %v1626_v54 = vsel %vm1553_vm1, %v11369_v12, -inf  ;;  %v11391_v24 = vpop.permute.xlu0 %3070 }
 0x231   : > { %1627 = vmax.xlane.f32.xlu0 %v1626_v54  ;;  %15206 = vst [vmem:[#allocation108_spill] sm:$0xff] %v11391_v24 }
 0x233   : > { %v11393_v41 = vpop.permute.xlu1 %3105 }
 0x234   : > { %15207 = vst [vmem:[#allocation109_spill] sm:$0xff] %v11393_v41 }
 0x236   : > { %v11379_v21 = vpop.f32.mrf.mxu2  ;;  %v11381_v19 = vpop.f32.mrf.mxu3 }
 0x237   : > { %15205 = vst [vmem:[#allocation107_spill] sm:$0xff] %v11381_v19  ;;  %v11383_v10 = vpop.f32.mrf.mxu0  ;;  %v11385_v58 = vpop.f32.mrf.mxu1 }
 0x238   : > { %v1632_v25 = vsel %vm1553_vm1, %v11385_v58, -inf  ;;  %v1629_v54 = vsel %vm1553_vm1, %v11383_v10, -inf  ;;  %v11399_v19 = vpop.permute.xlu2 %3241  ;;  %v11405_v57 = vpop.permute.xlu0 %3140 }
 0x239   : > { %1633 = vmax.xlane.f32.xlu0 %v1632_v25  ;;  %1630 = vmax.xlane.f32.xlu1 %v1629_v54  ;;  %15210 = vst [vmem:[#allocation112_spill] sm:$0xff] %v11399_v19 }
 0x23a   : > { %15211 = vst [vmem:[#allocation113_spill] sm:$0xff] %v11405_v57 }
 0x23b   : > { %v11407_v25 = vpop.permute.xlu1 %3175 }
 0x23c   : > { %15212 = vst [vmem:[#allocation114_spill] sm:$0xff] %v11407_v25 }
 0x23e   : > { %v11395_v1 = vpop.f32.mrf.mxu2  ;;  %v11397_v38 = vpop.f32.mrf.mxu3 }
 0x23f   : > { %15208 = vst [vmem:[#allocation110_spill] sm:$0xff] %v11395_v1  ;;  %v11401_v43 = vpop.f32.mrf.mxu1 }
 0x240   : > { %15209 = vst [vmem:[#allocation111_spill] sm:$0xff] %v11397_v38  ;;  %v1635_v53 = vsel %vm1553_vm1, %v11401_v43, -inf  ;;  %v11413_v26 = vpop.permute.xlu2 %2996  ;;  %v11415_v11 = vpop.permute.xlu0 %3210 }
 0x241   : > { %1636 = vmax.xlane.f32.xlu2 %v1635_v53  ;;  %15215 = vst [vmem:[#allocation117_spill] sm:$0xff] %v11413_v26 }
 0x242   : > { %15216 = vst [vmem:[#allocation118_spill] sm:$0xff] %v11415_v11 }
 0x243   : > { %v11417_v38 = vpop.permute.xlu1 %3245 }
 0x244   : > { %15217 = vst [vmem:[#allocation119_spill] sm:$0xff] %v11417_v38 }
 0x246   : > { %v11409_v54 = vpop.f32.mrf.mxu2  ;;  %v11411_v33 = vpop.f32.mrf.mxu3 }
 0x247   : > { %15213 = vst [vmem:[#allocation115_spill] sm:$0xff] %v11409_v54 }
 0x248   : > { %15214 = vst [vmem:[#allocation116_spill] sm:$0xff] %v11411_v33  ;;  %v11425_v57 = vpop.permute.xlu2 %3276  ;;  %v11427_v25 = vpop.permute.xlu0 %3280 }
 0x249   : > { %15218 = vst [vmem:[#allocation120_spill] sm:$0xff] %v11425_v57 }
 0x24a   : > { %15219 = vst [vmem:[#allocation121_spill] sm:$0xff] %v11427_v25 }
 0x24e   : > { %v11419_v20 = vpop.f32.mrf.mxu2  ;;  %v11421_v19 = vpop.f32.mrf.mxu3 }
 0x24f   : > { %v1566_v53 = vsel %vm1553_vm1, %v11419_v20, -inf  ;;  %v1572_v9 = vsel %vm1553_vm1, %v11421_v19, -inf }
 0x250   : > { %1567 = vmax.xlane.f32.xlu1 %v1566_v53  ;;  %v11438_v53 = vpop.permute.xlu2 %2930 }
 0x254   : > { %v1562_v15 = vpop.xlane.xlu1 %1561 }
 0x255   : > { %v1652_v33 = vsub.f32 %v11201_v2, %v1562_v15 }
 0x256   : > { %v11430_v26 = vpop.f32.mrf.mxu2  ;;  %v11432_v32 = vpop.f32.mrf.mxu3 }
 0x257   : > { %v1686_v16 = vmul.f32 1.442695, %v1652_v33  ;;  %v1569_v54 = vsel %vm1553_vm1, %v11430_v26, -inf }
 0x258   : > { %1570 = vmax.xlane.f32.xlu2 %v1569_v54  ;;  %1573 = vmax.xlane.f32.xlu1 %v1572_v9 }
 0x259   : > { %9761 = vpow2.f32 %v1686_v16 }
 0x25c   : > { %v1556_v57 = vpop.xlane.xlu0 %1555 }
 0x25d   : > { %v1650_v25 = vsub.f32 %v11199_v27, %v1556_v57 }
 0x25e   : > { %v11441_v2 = vpop.f32.mrf.mxu2  ;;  %v11443_v15 = vpop.f32.mrf.mxu3 }
 0x25f   : > { %v11445_v56 = vpop.eup %9761  ;;  %v1682_v33 = vmul.f32 1.442695, %v1650_v25 }
 0x260   : > { %v1752_v7 = vsel %vm1553_vm1, %v11445_v56, 0.0 }
 0x261   : > { %9763 = vpow2.f32 %v1682_v33  ;;  %1753 = vadd.xlane.f32.xlu2 %v1752_v7 }
 0x264   : > { %v1559_v54 = vpop.xlane.xlu0 %1558  ;;  %v1580_v9 = vpop.xlane.xlu2 %1579 }
 0x265   : > { %v1651_v16 = vsub.f32 %v11221_v49, %v1559_v54  ;;  %v1658_v54 = vsub.f32 %v11241_v13, %v1580_v9 }
 0x266   : > { %v11450_v1 = vpop.f32.mrf.mxu2  ;;  %v11452_v38 = vpop.f32.mrf.mxu3 }
 0x267   : > { %v11454_v57 = vpop.eup %9763  ;;  %v1684_v27 = vmul.f32 1.442695, %v1651_v16 }
 0x268   : > { %v1746_v45 = vsel %vm1553_vm1, %v11454_v57, 0.0 }
 0x269   : > { %9765 = vpow2.f32 %v1684_v27  ;;  %1747 = vadd.xlane.f32.xlu1 %v1746_v45  ;;  %v1575_v27 = vsel %vm1553_vm1, %v11432_v32, -inf }
 0x26c   : > { %v1565_v25 = vpop.xlane.xlu0 %1564  ;;  %v1583_v29 = vpop.xlane.xlu2 %1582 }
 0x26d   : > { %v1653_v7 = vsub.f32 %v11256_v35, %v1565_v25  ;;  %v1698_v35 = vmul.f32 1.442695, %v1658_v54 }
 0x26e   : > { %v11459_v33 = vpop.f32.mrf.mxu2  ;;  %v11461_v52 = vpop.f32.mrf.mxu3 }
 0x26f   : > { %v11463_v49 = vpop.eup %9765  ;;  %v1688_v5 = vmul.f32 1.442695, %v1653_v7  ;;  %v1614_v16 = vsel %vm1553_vm1, %v11459_v33, -inf }
 0x270   : > { %1615 = vmax.xlane.f32.xlu2 %v1614_v16  ;;  %v1749_v45 = vsel %vm1553_vm1, %v11463_v49, 0.0 }
 0x271   : > { %9767 = vpow2.f32 %v1688_v5  ;;  %1750 = vadd.xlane.f32.xlu0 %v1749_v45  ;;  %1576 = vmax.xlane.f32.xlu1 %v1575_v27  ;;  %v1590_v5 = vsel %vm1553_vm1, %v11441_v2, -inf }
 0x272   : > { %9769 = vpow2.f32 %v1698_v35 }
 0x274   : > { %v1586_v25 = vpop.xlane.xlu2 %1585 }
 0x275   : > { %v1660_v13 = vsub.f32 %v11277_v62, %v1586_v25  ;;  %v1596_v25 = vsel %vm1553_vm1, %v11443_v15, -inf }
 0x276   : > { %v11472_v37 = vpop.f32.mrf.mxu2  ;;  %v11479_v7 = vpop.f32.mrf.mxu3 }
 0x277   : > { %v11474_v18 = vpop.eup %9767  ;;  %v1617_v9 = vsel %vm1553_vm1, %v11472_v37, -inf  ;;  %v1702_v16 = vmul.f32 1.442695, %v1660_v13  ;;  %v1623_v35 = vsel %vm1553_vm1, %v11479_v7, -inf }
 0x278   : > { %1618 = vmax.xlane.f32.xlu2 %v1617_v9  ;;  %v1755_v54 = vsel %vm1553_vm1, %v11474_v18, 0.0  ;;  %v11485_v27 = vpop.eup %9769 }
 0x279   : > { %1591 = vmax.xlane.f32.xlu0 %v1590_v5  ;;  %1756 = vadd.xlane.f32.xlu1 %v1755_v54  ;;  %9771 = vpow2.f32 %v1702_v16  ;;  %v1770_v9 = vsel %vm1553_vm1, %v11485_v27, 0.0 }
 0x27c   : > { %v1589_v45 = vpop.xlane.xlu2 %1588 }
 0x27d   : > { %v1661_v62 = vsub.f32 %v11296_v55, %v1589_v45  ;;  %v1593_v45 = vsel %vm1553_vm1, %v11450_v1, -inf }
 0x27e   : > { %v11494_v5 = vpop.f32.mrf.mxu3  ;;  %v11496_v54 = vpop.f32.mrf.mxu2 }
 0x27f   : > { %v1704_v13 = vmul.f32 1.442695, %v1661_v62  ;;  %v11498_v16 = vpop.eup %9771  ;;  %v1638_v55 = vsel %vm1553_vm1, %v11496_v54, -inf }
 0x280   : > { %1624 = vmax.xlane.f32.xlu2 %v1623_v35  ;;  %v1776_v35 = vsel %vm1553_vm1, %v11498_v16, 0.0 }
 0x281   : > { %1597 = vmax.xlane.f32.xlu0 %v1596_v25  ;;  %1771 = vadd.xlane.f32.xlu1 %v1770_v9  ;;  %9773 = vpow2.f32 %v1704_v13  ;;  %v1659_v9 = vsub.f32 %v11262_v50, %v1583_v29  ;;  %v1620_v50 = vsel %vm1553_vm1, %v11461_v52, -inf }
 0x284   : > { %v1604_v51 = vpop.xlane.xlu1 %1603 }
 0x285   : > { %v1666_v44 = vsub.f32 %v11313_v36, %v1604_v51 }
 0x286   : > { %v11506_v25 = vpop.f32.mrf.mxu3 }
 0x287   : > { %v11508_v62 = vpop.eup %9773  ;;  %v1647_v13 = vsel %vm1553_vm1, %v11506_v25, -inf }
 0x288   : > { %1639 = vmax.xlane.f32.xlu2 %v1638_v55  ;;  %v1599_v55 = vsel %vm1553_vm1, %v11452_v38, -inf  ;;  %v1779_v11 = vsel %vm1553_vm1, %v11508_v62, 0.0 }
 0x289   : > { %1594 = vmax.xlane.f32.xlu0 %v1593_v45  ;;  %1777 = vadd.xlane.f32.xlu1 %v1776_v35  ;;  %v1700_v45 = vmul.f32 1.442695, %v1659_v9  ;;  %v11517_v35 = vpop.f32.mrf.mxu2  ;;  %v1714_v9 = vmul.f32 1.442695, %v1666_v44 }
 0x28a   : > { %v1641_v29 = vsel %vm1553_vm1, %v11517_v35, -inf }
 0x28b   : > { %9775 = vpow2.f32 %v1700_v45 }
 0x28c   : > { %9777 = vpow2.f32 %v1714_v9 }
 0x290   : > { %1648 = vmax.xlane.f32.xlu2 %v1647_v13  ;;  %v1607_v13 = vpop.xlane.xlu1 %1606 }
 0x291   : > { %1600 = vmax.xlane.f32.xlu0 %v1599_v55  ;;  %1780 = vadd.xlane.f32.xlu1 %v1779_v11  ;;  %v11523_v41 = vpop.eup %9775  ;;  %v1667_v17 = vsub.f32 %v11327_v6, %v1607_v13 }
 0x292   : > { %v1773_v11 = vsel %vm1553_vm1, %v11523_v41, 0.0  ;;  %v11532_v24 = vpop.eup %9777 }
 0x294   : > { %v1613_v51 = vpop.xlane.xlu2 %1612 }
 0x298   : > { %v1610_v55 = vpop.xlane.xlu1 %1609 }
 0x299   : > { %1621 = vmax.xlane.f32.xlu0 %v1620_v50  ;;  %1642 = vmax.xlane.f32.xlu1 %v1641_v29  ;;  %v1644_v50 = vsel %vm1553_vm1, %v11494_v5, -inf  ;;  %v1716_v29 = vmul.f32 1.442695, %v1667_v17 }
 0x2a1   : > { %1774 = vadd.xlane.f32.xlu0 %v1773_v11 }
 0x2a4   : > { %v1628_v45 = vpop.xlane.xlu0 %1627 }
 0x2a5   : > { %v1674_v48 = vsub.f32 %v11369_v12, %v1628_v45  ;;  %v1668_v12 = vsub.f32 %v11329_v39, %v1610_v55  ;;  %v1669_v39 = vsub.f32 %v11343_v59, %v1613_v51 }
 0x2a7   : > { %v1730_v4 = vmul.f32 1.442695, %v1674_v48  ;;  %v1718_v13 = vmul.f32 1.442695, %v1668_v12 }
 0x2a9   : > { %9779 = vpow2.f32 %v1730_v4  ;;  %1645 = vmax.xlane.f32.xlu0 %v1644_v50  ;;  %v1794_v4 = vsel %vm1553_vm1, %v11532_v24, 0.0 }
 0x2aa   : > { %9781 = vpow2.f32 %v1716_v29 }
 0x2ac   : > { %v1631_v36 = vpop.xlane.xlu1 %1630  ;;  %v1634_v11 = vpop.xlane.xlu0 %1633 }
 0x2ad   : > { %v1675_v44 = vsub.f32 %v11383_v10, %v1631_v36  ;;  %v1676_v48 = vsub.f32 %v11385_v58, %v1634_v11  ;;  %v1720_v11 = vmul.f32 1.442695, %v1669_v39 }
 0x2af   : > { %v11535_v34 = vpop.eup %9779  ;;  %v1732_v6 = vmul.f32 1.442695, %v1675_v44  ;;  %v1734_v9 = vmul.f32 1.442695, %v1676_v48 }
 0x2b0   : > { %v1818_v17 = vsel %vm1553_vm1, %v11535_v34, 0.0  ;;  %v11543_v45 = vpop.eup %9781 }
 0x2b1   : > { %1795 = vadd.xlane.f32.xlu0 %v1794_v4  ;;  %1819 = vadd.xlane.f32.xlu2 %v1818_v17  ;;  %9783 = vpow2.f32 %v1732_v6  ;;  %v1797_v29 = vsel %vm1553_vm1, %v11543_v45, 0.0 }
 0x2b2   : > { %9785 = vpow2.f32 %v1718_v13 }
 0x2b3   : > { %9787 = vpow2.f32 %v1734_v9 }
 0x2b4   : > { %v1637_v10 = vpop.xlane.xlu2 %1636 }
 0x2b5   : > { %v1677_v50 = vsub.f32 %v11401_v43, %v1637_v10 }
 0x2b7   : > { %v1736_v58 = vmul.f32 1.442695, %v1677_v50  ;;  %v11547_v55 = vpop.eup %9783 }
 0x2b8   : > { %v1821_v36 = vsel %vm1553_vm1, %v11547_v55, 0.0  ;;  %v11553_v44 = vpop.eup %9785 }
 0x2b9   : > { %9789 = vpow2.f32 %v1736_v58  ;;  %1798 = vadd.xlane.f32.xlu0 %v1797_v29  ;;  %1822 = vadd.xlane.f32.xlu2 %v1821_v36  ;;  %v11555_v43 = vpop.eup %9787  ;;  %v1800_v51 = vsel %vm1553_vm1, %v11553_v44, 0.0 }
 0x2ba   : > { %15220 = vst [vmem:[#allocation122_spill] sm:$0xff] %v11555_v43  ;;  %9791 = vpow2.f32 %v1720_v11  ;;  %v1824_v6 = vsel %vm1553_vm1, %v11555_v43, 0.0 }
 0x2bf   : > { %v11557_v59 = vpop.eup %9789 }
 0x2c0   : > { %15221 = vst [vmem:[#allocation123_spill] sm:$0xff] %v11557_v59  ;;  %v1827_v12 = vsel %vm1553_vm1, %v11557_v59, 0.0  ;;  %v11566_v17 = vpop.eup %9791 }
 0x2c1   : > { %1801 = vadd.xlane.f32.xlu0 %v1800_v51  ;;  %1828 = vadd.xlane.f32.xlu1 %v1827_v12  ;;  %v1803_v9 = vsel %vm1553_vm1, %v11566_v17, 0.0 }
 0x2c2   : > { %1825 = vadd.xlane.f32.xlu2 %v1824_v6 }
 0x2c3   : > { %v1568_v48 = vpop.xlane.xlu1 %1567 }
 0x2c4   : > { %v1654_v4 = vsub.f32 %v11419_v20, %v1568_v48 }
 0x2c6   : > { %v1690_v13 = vmul.f32 1.442695, %v1654_v4 }
 0x2c8   : > { %9793 = vpow2.f32 %v1690_v13 }
 0x2c9   : > { %1804 = vadd.xlane.f32.xlu0 %v1803_v9 }
 0x2cb   : > { %v1571_v10 = vpop.xlane.xlu2 %1570  ;;  %v1574_v50 = vpop.xlane.xlu1 %1573 }
 0x2cc   : > { %v1655_v39 = vsub.f32 %v11430_v26, %v1571_v10  ;;  %v1656_v58 = vsub.f32 %v11421_v19, %v1574_v50 }
 0x2ce   : > { %v11572_v29 = vpop.eup %9793  ;;  %v1692_v36 = vmul.f32 1.442695, %v1655_v39  ;;  %v1694_v11 = vmul.f32 1.442695, %v1656_v58 }
 0x2cf   : > { %15222 = vst [vmem:[#allocation124_spill] sm:$0xff] %v11572_v29  ;;  %v1758_v20 = vsel %vm1553_vm1, %v11572_v29, 0.0 }
 0x2d0   : > { %9795 = vpow2.f32 %v1692_v36  ;;  %1759 = vadd.xlane.f32.xlu1 %v1758_v20 }
 0x2d1   : > { %9797 = vpow2.f32 %v1694_v11 }
 0x2d4   : > { %v1754_v51 = vpop.xlane.xlu2 %1753 }
 0x2d5   : > { %9799 = vrcp.f32 %v1754_v51  ;;  %v1883_v50 = vand.u32 2147483648, %v1754_v51  ;;  %v1881_v39 = vand.u32 2147483647, %v1754_v51  ;;  %vm1877_vm3 = vweird.f32 %v1754_v51 }
 0x2d6   : > { %v11576_v12 = vpop.eup %9795 }
 0x2d7   : > { %15223 = vst [vmem:[#allocation125_spill] sm:$0xff] %v11576_v12  ;;  %v11578_v6 = vpop.eup %9797  ;;  %v1761_v26 = vsel %vm1553_vm1, %v11576_v12, 0.0  ;;  %vm1882_vm5 = vcmp.eq.f32.partialorder %v1881_v39, 8.507059e+37 }
 0x2d8   : > { %15224 = vst [vmem:[#allocation126_spill] sm:$0xff] %v11578_v6  ;;  %1762 = vadd.xlane.f32.xlu0 %v1761_v26  ;;  %v1764_v19 = vsel %vm1553_vm1, %v11578_v6, 0.0  ;;  %v1884_v26 = vor.u32 1.1754944e-38, %v1883_v50 }
 0x2d9   : > { %1765 = vadd.xlane.f32.xlu2 %v1764_v19 }
 0x2db   : > { %v9800_v48 = vpop.eup %9799 }
 0x2dc   : > { %v1873_v4 = vmul.f32 %v9800_v48, %v1754_v51  ;;  %v1748_v13 = vpop.xlane.xlu1 %1747  ;;  %vm1878_vm2 = vweird.f32 %v9800_v48 }
 0x2dd   : > { %9801 = vrcp.f32 %v1748_v13  ;;  %vm1879_vm4 = vmor %vm1877_vm3, %vm1878_vm2  ;;  %v1853_v51 = vand.u32 2147483648, %v1748_v13  ;;  %vm1847_vm7 = vweird.f32 %v1748_v13 }
 0x2de   : > { %v1874_v9 = vsub.f32 1.0, %v1873_v4 }
 0x2e0   : > { %v1875_v10 = vmul.f32 %v9800_v48, %v1874_v9 }
 0x2e2   : > { %v1876_v58 = vadd.f32 %v9800_v48, %v1875_v10  ;;  %v1851_v10 = vand.u32 2147483647, %v1748_v13 }
 0x2e3   : > { %v9802_v36 = vpop.eup %9801  ;;  %v1616_v11 = vpop.xlane.xlu2 %1615 }
 0x2e4   : > { %v1880_v20 = vsel %vm1879_vm4, %v9800_v48, %v1876_v58  ;;  %v1843_v59 = vmul.f32 %v9802_v36, %v1748_v13  ;;  %v1751_v12 = vpop.xlane.xlu0 %1750  ;;  %v1577_v6 = vpop.xlane.xlu1 %1576  ;;  %vm1848_vm6 = vweird.f32 %v9802_v36  ;;  %vm1852_vm9 = vcmp.eq.f32.partialorder %v1851_v10, 8.507059e+37 }
 0x2e5   : > { %9803 = vrcp.f32 %v1751_v12  ;;  %v1657_v19 = vsub.f32 %v11432_v32, %v1577_v6  ;;  %v1885_v4 = vsel %vm1882_vm5, %v1884_v26, %v1880_v20  ;;  %vm1849_vm8 = vmor %vm1847_vm7, %vm1848_vm6  ;;  %v1670_v6 = vsub.f32 %v11459_v33, %v1616_v11 }
 0x2e6   : > { %v1844_v22 = vsub.f32 1.0, %v1843_v59  ;;  %v1886_v43 = vmul.f32 %v11445_v56, %v1885_v4  ;;  %v1854_v59 = vor.u32 1.1754944e-38, %v1853_v51  ;;  %v1868_v26 = vand.u32 2147483648, %v1751_v12 }
 0x2e7   : > { %v1696_v9 = vmul.f32 1.442695, %v1657_v19  ;;  %vm1862_vm11 = vweird.f32 %v1751_v12 }
 0x2e8   : > { %v1845_v29 = vmul.f32 %v9802_v36, %v1844_v22  ;;  %9160 = vmatmul.msk.f32.vlgmr.msrb.gmra.mxu1 %vm1553_vm1, %v1886_v43 }
 0x2e9   : > { %9805 = vpow2.f32 %v1696_v9  ;;  %2604 = vmatpush.msrb.mxu1 %v11323_v30  ;;  %v1722_v9 = vmul.f32 1.442695, %v1670_v6 }
 0x2ea   : > { %v1846_v48 = vadd.f32 %v9802_v36, %v1845_v29 }
 0x2eb   : > { %v9804_v50 = vpop.eup %9803  ;;  %v11588_v39 = vpop.xlane.xlu2 %1618 }
 0x2ec   : > { %v1850_v32 = vsel %vm1849_vm8, %v9802_v36, %v1846_v48  ;;  %v1858_v56 = vmul.f32 %v9804_v50, %v1751_v12  ;;  %v1592_v22 = vpop.xlane.xlu0 %1591  ;;  %v1757_v58 = vpop.xlane.xlu1 %1756  ;;  %vm1863_vm10 = vweird.f32 %v9804_v50 }
 0x2ed   : > { %v1662_v20 = vsub.f32 %v11441_v2, %v1592_v22  ;;  %9807 = vrcp.f32 %v1757_v58  ;;  %v1855_v29 = vsel %vm1852_vm9, %v1854_v59, %v1850_v32  ;;  %v1866_v2 = vand.u32 2147483647, %v1751_v12  ;;  %vm1864_vm12 = vmor %vm1862_vm11, %vm1863_vm10 }
 0x2ee   : > { %v1859_v43 = vsub.f32 1.0, %v1858_v56  ;;  %v1856_v4 = vmul.f32 %v11454_v57, %v1855_v29  ;;  %v1869_v57 = vor.u32 1.1754944e-38, %v1868_v26  ;;  %vm1892_vm15 = vweird.f32 %v1757_v58 }
 0x2ef   : > { %v11592_v13 = vpop.eup %9805  ;;  %v1706_v19 = vmul.f32 1.442695, %v1662_v20  ;;  %vm1867_vm13 = vcmp.eq.f32.partialorder %v1866_v2, 8.507059e+37 }
 0x2f0   : > { %v1860_v36 = vmul.f32 %v9804_v50, %v1859_v43  ;;  %v1767_v33 = vsel %vm1553_vm1, %v11592_v13, 0.0  ;;  %9158 = vmatmul.msk.f32.vlgmr.msrb.gmra.mxu0 %vm1553_vm1, %v1856_v4  ;;  %v1898_v4 = vand.u32 2147483648, %v1757_v58 }
 0x2f1   : > { %9809 = vpow2.f32 %v1706_v19  ;;  %1768 = vadd.xlane.f32.xlu0 %v1767_v33  ;;  %2575 = vmatpush.msrb.mxu0 %v11309_v46 }
 0x2f2   : > { %v1861_v11 = vadd.f32 %v9804_v50, %v1860_v36  ;;  %9811 = vpow2.f32 %v1722_v9  ;;  %v1899_v2 = vor.u32 1.1754944e-38, %v1898_v4 }
 0x2f3   : > { %v9808_v51 = vpop.eup %9807  ;;  %v11599_v10 = vpop.xlane.xlu2 %1624 }
 0x2f4   : > { %v1888_v48 = vmul.f32 %v9808_v51, %v1757_v58  ;;  %v1598_v32 = vpop.xlane.xlu0 %1597  ;;  %v1772_v59 = vpop.xlane.xlu1 %1771  ;;  %v1865_v6 = vsel %vm1864_vm12, %v9804_v50, %v1861_v11  ;;  %vm1893_vm14 = vweird.f32 %v9808_v51 }
 0x2f5   : > { %v1664_v56 = vsub.f32 %v11443_v15, %v1598_v32  ;;  %9813 = vrcp.f32 %v1772_v59  ;;  %v1870_v20 = vsel %vm1867_vm13, %v1869_v57, %v1865_v6  ;;  %v1896_v15 = vand.u32 2147483647, %v1757_v58  ;;  %vm1894_vm2 = vmor %vm1892_vm15, %vm1893_vm14 }
 0x2f6   : > { %v1889_v22 = vsub.f32 1.0, %v1888_v48  ;;  %v1871_v29 = vmul.f32 %v11463_v49, %v1870_v20  ;;  %vm1967_vm5 = vweird.f32 %v1772_v59 }
 0x2f7   : > { %v11602_v12 = vpop.eup %9809  ;;  %v1710_v43 = vmul.f32 1.442695, %v1664_v56  ;;  %vm1897_vm3 = vcmp.eq.f32.partialorder %v1896_v15, 8.507059e+37 }
 0x2f8   : > { %v1890_v19 = vmul.f32 %v9808_v51, %v1889_v22  ;;  %v1782_v26 = vsel %vm1553_vm1, %v11602_v12, 0.0  ;;  %9159 = vmatmul.msk.f32.gmra.mxu0 %vm1553_vm1, %v1871_v29  ;;  %v11608_v50 = vpop.eup %9811  ;;  %v1971_v29 = vand.u32 2147483647, %v1772_v59 }
 0x2f9   : > { %9815 = vpow2.f32 %v1710_v43  ;;  %1783 = vadd.xlane.f32.xlu1 %v1782_v26  ;;  %v1806_v58 = vsel %vm1553_vm1, %v11608_v50, 0.0 }
 0x2fa   : > { %v1891_v9 = vadd.f32 %v9808_v51, %v1890_v19  ;;  %v1973_v19 = vand.u32 2147483648, %v1772_v59  ;;  %vm1972_vm7 = vcmp.eq.f32.partialorder %v1971_v29, 8.507059e+37 }
 0x2fb   : > { %v9814_v36 = vpop.eup %9813  ;;  %v1640_v33 = vpop.xlane.xlu2 %1639 }
 0x2fc   : > { %v1963_v49 = vmul.f32 %v9814_v36, %v1772_v59  ;;  %v1678_v11 = vsub.f32 %v11496_v54, %v1640_v33  ;;  %v1595_v57 = vpop.xlane.xlu0 %1594  ;;  %v1778_v48 = vpop.xlane.xlu1 %1777  ;;  %v1895_v32 = vsel %vm1894_vm2, %v9808_v51, %v1891_v9  ;;  %vm1968_vm4 = vweird.f32 %v9814_v36 }
 0x2fd   : > { %v1663_v6 = vsub.f32 %v11450_v1, %v1595_v57  ;;  %9817 = vrcp.f32 %v1778_v48  ;;  %v1900_v20 = vsel %vm1897_vm3, %v1899_v2, %v1895_v32  ;;  %vm1969_vm6 = vmor %vm1967_vm5, %vm1968_vm4  ;;  %v1974_v9 = vor.u32 1.1754944e-38, %v1973_v19 }
 0x2fe   : > { %v1964_v56 = vsub.f32 1.0, %v1963_v49  ;;  %v1738_v22 = vmul.f32 1.442695, %v1678_v11  ;;  %v1901_v54 = vmul.f32 %v11474_v18, %v1900_v20  ;;  %v2003_v59 = vand.u32 2147483648, %v1778_v48 }
 0x2ff   : > { %v11614_v43 = vpop.eup %9815  ;;  %v1708_v4 = vmul.f32 1.442695, %v1663_v6  ;;  %v2001_v29 = vand.u32 2147483647, %v1778_v48  ;;  %vm1997_vm9 = vweird.f32 %v1778_v48 }
 0x300   : > { %v1965_v26 = vmul.f32 %v9814_v36, %v1964_v56  ;;  %9819 = vpow2.f32 %v1738_v22  ;;  %v1788_v1 = vsel %vm1553_vm1, %v11614_v43, 0.0  ;;  %9161 = vmatmul.msk.f32.gmra.mxu1 %vm1553_vm1, %v1901_v54 }
 0x301   : > { %9821 = vpow2.f32 %v1708_v4  ;;  %1807 = vadd.xlane.f32.xlu1 %v1806_v58  ;;  %1789 = vadd.xlane.f32.xlu2 %v1788_v1  ;;  %v2004_v4 = vor.u32 1.1754944e-38, %v2003_v59  ;;  %vm2002_vm11 = vcmp.eq.f32.partialorder %v2001_v29, 8.507059e+37 }
 0x302   : > { %v1966_v51 = vadd.f32 %v9814_v36, %v1965_v26 }
 0x303   : > { %v9818_v15 = vpop.eup %9817 }
 0x304   : > { %v1970_v33 = vsel %vm1969_vm6, %v9814_v36, %v1966_v51  ;;  %v1993_v2 = vmul.f32 %v9818_v15, %v1778_v48  ;;  %v1601_v18 = vpop.xlane.xlu0 %1600  ;;  %v1781_v49 = vpop.xlane.xlu1 %1780  ;;  %vm1998_vm8 = vweird.f32 %v9818_v15  ;;  %v1671_v48 = vsub.f32 %v11472_v37, %v11588_v39 }
 0x305   : > { %v1975_v11 = vsel %vm1972_vm7, %v1974_v9, %v1970_v33  ;;  %v1665_v57 = vsub.f32 %v11452_v38, %v1601_v18  ;;  %9823 = vrcp.f32 %v1781_v49  ;;  %vm1999_vm10 = vmor %vm1997_vm9, %vm1998_vm8  ;;  %vm2012_vm13 = vweird.f32 %v1781_v49 }
 0x306   : > { %v11621_v32 = vpop.eup %9819  ;;  %v1976_v6 = vmul.f32 %v11485_v27, %v1975_v11  ;;  %v1994_v56 = vsub.f32 1.0, %v1993_v2 }
 0x307   : > { %v11624_v22 = vpop.eup %9821  ;;  %v1712_v20 = vmul.f32 1.442695, %v1665_v57  ;;  %v1830_v36 = vsel %vm1553_vm1, %v11621_v32, 0.0 }
 0x308   : > { %v1995_v58 = vmul.f32 %v9818_v15, %v1994_v56  ;;  %1831 = vadd.xlane.f32.xlu0 %v1830_v36  ;;  %9166 = vmatmul.msk.f32.vlgmr.msra.gmra.mxu0 %vm1553_vm1, %v1976_v6  ;;  %v1785_v38 = vsel %vm1553_vm1, %v11624_v22, 0.0  ;;  %v2018_v6 = vand.u32 2147483648, %v1781_v49 }
 0x309   : > { %9825 = vpow2.f32 %v1712_v20  ;;  %2691 = vmatpush.msra.mxu0 %v11365_v63  ;;  %1786 = vadd.xlane.f32.xlu2 %v1785_v38  ;;  %v2016_v20 = vand.u32 2147483647, %v1781_v49 }
 0x30a   : > { %v1996_v27 = vadd.f32 %v9818_v15, %v1995_v58  ;;  %v2019_v37 = vor.u32 1.1754944e-38, %v2018_v6 }
 0x30b   : > { %v9824_v19 = vpop.eup %9823  ;;  %vm2017_vm15 = vcmp.eq.f32.partialorder %v2016_v20, 8.507059e+37 }
 0x30c   : > { %v2000_v54 = vsel %vm1999_vm10, %v9818_v15, %v1996_v27  ;;  %v2008_v26 = vmul.f32 %v9824_v19, %v1781_v49  ;;  %v1622_v1 = vpop.xlane.xlu0 %1621  ;;  %v1643_v51 = vpop.xlane.xlu1 %1642  ;;  %vm2013_vm12 = vweird.f32 %v9824_v19  ;;  %v1673_v27 = vsub.f32 %v11479_v7, %v11599_v10 }
 0x30d   : > { %v2005_v9 = vsel %vm2002_vm11, %v2004_v4, %v2000_v54  ;;  %v1672_v33 = vsub.f32 %v11461_v52, %v1622_v1  ;;  %v1679_v2 = vsub.f32 %v11517_v35, %v1643_v51  ;;  %v1724_v35 = vmul.f32 1.442695, %v1671_v48  ;;  %vm2014_vm14 = vmor %vm2012_vm13, %vm2013_vm12 }
 0x30e   : > { %v2006_v18 = vmul.f32 %v11498_v16, %v2005_v9  ;;  %v2009_v11 = vsub.f32 1.0, %v2008_v26  ;;  %v11655_v26 = vpop.xlane.xlu2 %1648 }
 0x30f   : > { %v11635_v57 = vpop.eup %9825  ;;  %v1726_v56 = vmul.f32 1.442695, %v1672_v33  ;;  %v1740_v15 = vmul.f32 1.442695, %v1679_v2 }
 0x310   : > { %v2010_v59 = vmul.f32 %v9824_v19, %v2009_v11  ;;  %9168 = vmatmul.msk.f32.vlgmr.msra.gmra.mxu1 %vm1553_vm1, %v2006_v18  ;;  %v1791_v52 = vsel %vm1553_vm1, %v11635_v57, 0.0 }
 0x311   : > { %9827 = vpow2.f32 %v1726_v56  ;;  %2720 = vmatpush.msra.mxu1 %v11379_v21  ;;  %1792 = vadd.xlane.f32.xlu2 %v1791_v52 }
 0x312   : > { %9829 = vpow2.f32 %v1740_v15  ;;  %v2011_v16 = vadd.f32 %v9824_v19, %v2010_v59 }
 0x314   : > { %v1775_v39 = vpop.xlane.xlu0 %1774  ;;  %v2015_v36 = vsel %vm2014_vm14, %v9824_v19, %v2011_v16 }
 0x315   : > { %9831 = vrcp.f32 %v1775_v39  ;;  %v2020_v58 = vsel %vm2017_vm15, %v2019_v37, %v2015_v36  ;;  %v1988_v11 = vand.u32 2147483648, %v1775_v39  ;;  %vm1982_vm3 = vweird.f32 %v1775_v39 }
 0x316   : > { %v2021_v29 = vmul.f32 %v11508_v62, %v2020_v58  ;;  %9833 = vpow2.f32 %v1724_v35  ;;  %v1728_v62 = vmul.f32 1.442695, %v1673_v27  ;;  %v1986_v6 = vand.u32 2147483647, %v1775_v39 }
 0x317   : > { %v11644_v38 = vpop.eup %9827  ;;  %v1989_v52 = vor.u32 1.1754944e-38, %v1988_v11 }
 0x318   : > { %v11648_v49 = vpop.eup %9829  ;;  %9169 = vmatmul.msk.f32.gmra.mxu1 %vm1553_vm1, %v2021_v29  ;;  %v1812_v4 = vsel %vm1553_vm1, %v11644_v38, 0.0  ;;  %9835 = vpow2.f32 %v1728_v62  ;;  %vm1987_vm5 = vcmp.eq.f32.partialorder %v1986_v6, 8.507059e+37 }
 0x319   : > { %1813 = vadd.xlane.f32.xlu1 %v1812_v4  ;;  %v1833_v19 = vsel %vm1553_vm1, %v11648_v49, 0.0 }
 0x31a   : > { %1834 = vadd.xlane.f32.xlu0 %v1833_v19 }
 0x31b   : > { %v9832_v54 = vpop.eup %9831 }
 0x31c   : > { %v1978_v1 = vmul.f32 %v9832_v54, %v1775_v39  ;;  %v1646_v51 = vpop.xlane.xlu0 %1645  ;;  %v11657_v9 = vpop.eup %9833  ;;  %vm1983_vm2 = vweird.f32 %v9832_v54 }
 0x31d   : > { %v1680_v7 = vsub.f32 %v11494_v5, %v1646_v51  ;;  %v1809_v18 = vsel %vm1553_vm1, %v11657_v9, 0.0  ;;  %vm1984_vm4 = vmor %vm1982_vm3, %vm1983_vm2 }
 0x31e   : > { %v1979_v10 = vsub.f32 1.0, %v1978_v1  ;;  %v11664_v5 = vpop.eup %9835 }
 0x31f   : > { %v1742_v33 = vmul.f32 1.442695, %v1680_v7  ;;  %v1815_v37 = vsel %vm1553_vm1, %v11664_v5, 0.0 }
 0x320   : > { %v1980_v2 = vmul.f32 %v9832_v54, %v1979_v10 }
 0x321   : > { %9837 = vpow2.f32 %v1742_v33  ;;  %1810 = vadd.xlane.f32.xlu1 %v1809_v18 }
 0x322   : > { %v1981_v48 = vadd.f32 %v9832_v54, %v1980_v2 }
 0x324   : > { %v11662_v56 = vpop.xlane.xlu2 %1819  ;;  %v1796_v15 = vpop.xlane.xlu0 %1795  ;;  %v1985_v59 = vsel %vm1984_vm4, %v9832_v54, %v1981_v48 }
 0x325   : > { %9839 = vrcp.f32 %v11662_v56  ;;  %v1990_v16 = vsel %vm1987_vm5, %v1989_v52, %v1985_v59  ;;  %v2093_v54 = vand.u32 2147483648, %v1796_v15  ;;  %v2091_v1 = vand.u32 2147483647, %v1796_v15 }
 0x326   : > { %9841 = vrcp.f32 %v1796_v15  ;;  %v1991_v35 = vmul.f32 %v11523_v41, %v1990_v16  ;;  %vm2087_vm7 = vweird.f32 %v1796_v15  ;;  %vm2207_vm12 = vweird.f32 %v11662_v56 }
 0x327   : > { %v11667_v20 = vpop.eup %9837  ;;  %v2094_v33 = vor.u32 1.1754944e-38, %v2093_v54  ;;  %vm2092_vm9 = vcmp.eq.f32.partialorder %v2091_v1, 8.507059e+37  ;;  %v2213_v54 = vand.u32 2147483648, %v11662_v56 }
 0x328   : > { %v1836_v39 = vsel %vm1553_vm1, %v11667_v20, 0.0  ;;  %9167 = vmatmul.msk.f32.gmra.mxu0 %vm1553_vm1, %v1991_v35 }
 0x329   : > { %1816 = vadd.xlane.f32.xlu1 %v1815_v37  ;;  %1837 = vadd.xlane.f32.xlu2 %v1836_v39 }
 0x32b   : > { %v11675_v36 = vpop.eup %9839 }
 0x32c   : > { %v9842_v58 = vpop.eup %9841  ;;  %v1799_v29 = vpop.xlane.xlu0 %1798  ;;  %v2203_v41 = vmul.f32 %v11675_v36, %v11662_v56  ;;  %vm2208_vm11 = vweird.f32 %v11675_v36 }
 0x32d   : > { %v2083_v27 = vmul.f32 %v9842_v58, %v1796_v15  ;;  %9843 = vrcp.f32 %v1799_v29  ;;  %v11677_v4 = vpop.xlane.xlu2 %1822  ;;  %vm2088_vm6 = vweird.f32 %v9842_v58  ;;  %v2108_v35 = vand.u32 2147483648, %v1799_v29  ;;  %vm11711_vm15 = vmor %vm2207_vm12, %vm2208_vm11 }
 0x32e   : > { %3315 = vrot.lane.b32.xlu0 %v11156_v42, %s10410_s18  ;;  %9845 = vrcp.f32 %v11677_v4  ;;  %v2204_v7 = vsub.f32 1.0, %v2203_v41  ;;  %vm2089_vm8 = vmor %vm2087_vm7, %vm2088_vm6  ;;  %v2106_v39 = vand.u32 2147483647, %v1799_v29  ;;  %vm2102_vm13 = vweird.f32 %v1799_v29 }
 0x32f   : > { %v2084_v19 = vsub.f32 1.0, %v2083_v27 }
 0x330   : > { %v2205_v52 = vmul.f32 %v11675_v36, %v2204_v7  ;;  %vm2107_vm2 = vcmp.eq.f32.partialorder %v2106_v39, 8.507059e+37 }
 0x331   : > { %v2085_v62 = vmul.f32 %v9842_v58, %v2084_v19 }
 0x333   : > { %v9844_v51 = vpop.eup %9843  ;;  %v2086_v10 = vadd.f32 %v9842_v58, %v2085_v62  ;;  %v2109_v62 = vor.u32 1.1754944e-38, %v2108_v35 }
 0x334   : > { %v2098_v2 = vmul.f32 %v9844_v51, %v1799_v29  ;;  %v11684_v18 = vpop.xlane.xlu0 %1801  ;;  %v11689_v59 = vpop.eup %9845  ;;  %vm2103_vm10 = vweird.f32 %v9844_v51 }
 0x335   : > { %v2090_v42 = vsel %vm2089_vm8, %v9842_v58, %v2086_v10  ;;  %v11686_v11 = vpop.xlane.xlu2 %1825  ;;  %9847 = vrcp.f32 %v11684_v18  ;;  %v2218_v37 = vmul.f32 %v11689_v59, %v11677_v4  ;;  %v2206_v58 = vadd.f32 %v11675_v36, %v2205_v52  ;;  %v11701_v27 = vpop.xlane.xlu1 %1828  ;;  %vm2104_vm14 = vmor %vm2102_vm13, %vm2103_vm10 }
 0x336   : > { %v2095_v48 = vsel %vm2092_vm9, %v2094_v33, %v2090_v42  ;;  %v2099_v6 = vsub.f32 1.0, %v2098_v2  ;;  %9849 = vrcp.f32 %v11686_v11  ;;  %v2211_v10 = vand.u32 2147483647, %v11662_v56 }
 0x337   : > { %v2096_v16 = vmul.f32 %v11532_v24, %v2095_v48  ;;  %v2219_v33 = vsub.f32 1.0, %v2218_v37  ;;  %v1681_v2 = vsub.f32 %v11506_v25, %v11655_v26  ;;  %v2210_v42 = vsel %vm11711_vm15, %v11675_v36, %v2206_v58 }
 0x338   : > { %v2100_v15 = vmul.f32 %v9844_v51, %v2099_v6  ;;  %v2123_v52 = vand.u32 2147483648, %v11684_v18  ;;  %v2121_v25 = vand.u32 2147483647, %v11684_v18  ;;  %v9520_v26 = vpack.i.bf16 %v11203_v60, %v11168_v47 }
 0x339   : > { %9174 = vmatmul.msk.f32.vlgmr.msrb.gmra.mxu0 %vm1553_vm1, %v2096_v16  ;;  %v9525_v36 = vpack.i.bf16 %v11237_v40, %v11183_v23  ;;  %vm2212_vm4 = vcmp.eq.f32.partialorder %v2211_v10, 8.507059e+37  ;;  %v2220_v35 = vmul.f32 %v11689_v59, %v2219_v33  ;;  %v1744_v37 = vmul.f32 1.442695, %v1681_v2 }
 0x33a   : > { %9190 = vmatpush.xpose.msk.msrb.mxu0 %vm378_vm0, %v11337_v8  ;;  %v2101_v24 = vadd.f32 %v9844_v51, %v2100_v15  ;;  %vm2117_vm5 = vweird.f32 %v11684_v18  ;;  %v2124_v60 = vor.u32 1.1754944e-38, %v2123_v52  ;;  %vm2122_vm7 = vcmp.eq.f32.partialorder %v2121_v25, 8.507059e+37 }
 0x33b   : > { %v9848_v41 = vpop.eup %9847  ;;  %vm2223_vm8 = vweird.f32 %v11689_v59  ;;  %vm2222_vm9 = vweird.f32 %v11677_v4 }
 0x33c   : > { %v11704_v19 = vpop.xlane.xlu0 %1804  ;;  %v2113_v8 = vmul.f32 %v9848_v41, %v11684_v18  ;;  %v11709_v1 = vpop.eup %9849  ;;  %v2105_v29 = vsel %vm2104_vm14, %v9844_v51, %v2101_v24  ;;  %v2214_v51 = vor.u32 1.1754944e-38, %v2213_v54  ;;  %vm2118_vm3 = vweird.f32 %v9848_v41  ;;  %vm11762_vm11 = vmor %vm2222_vm9, %vm2223_vm8 }
 0x33d   : > { %9851 = vrcp.f32 %v11704_v19  ;;  %v2110_v6 = vsel %vm2107_vm2, %v2109_v62, %v2105_v29  ;;  %v2233_v16 = vmul.f32 %v11709_v1, %v11686_v11  ;;  %vm2119_vm6 = vmor %vm2117_vm5, %vm2118_vm3  ;;  %v2226_v24 = vand.u32 2147483647, %v11677_v4 }
 0x33e   : > { %v2114_v48 = vsub.f32 1.0, %v2113_v8  ;;  %9853 = vrcp.f32 %v11701_v27  ;;  %v2111_v56 = vmul.f32 %v11543_v45, %v2110_v6  ;;  %v2215_v39 = vsel %vm2212_vm4, %v2214_v51, %v2210_v42 }
 0x33f   : > { %v2234_v47 = vsub.f32 1.0, %v2233_v16  ;;  %v2221_v8 = vadd.f32 %v11689_v59, %v2220_v35  ;;  %v2216_v7 = vmul.f32 %v11535_v34, %v2215_v39  ;;  %v2138_v33 = vand.u32 2147483648, %v11704_v19  ;;  %v15236_v34 = vld [vmem:[#allocation122_spill] sm:$0xff] }
 0x340   : > { %v2115_v15 = vmul.f32 %v9848_v41, %v2114_v48  ;;  %v2136_v2 = vand.u32 2147483647, %v11704_v19  ;;  %v9540_v42 = vpack.i.bf16 %v11339_v14, %v11298_v31  ;;  %vm2132_vm12 = vweird.f32 %v11704_v19 }
 0x341   : > { %3243 = vrot.lane.b32.xlu2 %v10915_v61, %s10410_s18  ;;  %9175 = vmatmul.msk.f32.gmra.mxu0 %vm1553_vm1, %v2111_v56  ;;  %v2225_v6 = vsel %vm11762_vm11, %v11689_v59, %v2221_v8  ;;  %vm11778_vm13 = vcmp.eq.f32.partialorder %v2226_v24, 8.507059e+37  ;;  %vm2238_vm14 = vweird.f32 %v11709_v1  ;;  %v2243_v16 = vand.u32 2147483648, %v11686_v11 }
 0x342   : > { %3311 = vrot.lane.b32.xlu1 %v10962_v0, %s10410_s18  ;;  %v2116_v58 = vadd.f32 %v9848_v41, %v2115_v15  ;;  %v2228_v0 = vand.u32 2147483648, %v11677_v4  ;;  %vm2137_vm2 = vcmp.eq.f32.partialorder %v2136_v2, 8.507059e+37  ;;  %vm2237_vm3 = vweird.f32 %v11686_v11 }
 0x343   : > { %v11737_v45 = vpop.eup %9851  ;;  %v11740_v61 = vpop.xlane.xlu1 %1759  ;;  %vm11813_vm4 = vmor %vm2237_vm3, %vm2238_vm14  ;;  %v2244_v24 = vor.u32 1.1754944e-38, %v2243_v16 }
 0x344   : > { %v2128_v23 = vmul.f32 %v11737_v45, %v11704_v19  ;;  %9855 = vrcp.f32 %v11740_v61  ;;  %v2120_v40 = vsel %vm2119_vm6, %v9848_v41, %v2116_v58  ;;  %v11748_v54 = vpop.eup %9853  ;;  %v2235_v41 = vmul.f32 %v11709_v1, %v2234_v47 }
 0x345   : > { %v2125_v18 = vsel %vm2122_vm7, %v2124_v60, %v2120_v40  ;;  %vm2133_vm10 = vweird.f32 %v11737_v45  ;;  %9857 = vpow2.f32 %v1744_v37  ;;  %v2229_v4 = vor.u32 1.1754944e-38, %v2228_v0 }
 0x346   : > { %v2129_v62 = vsub.f32 1.0, %v2128_v23  ;;  %v2126_v10 = vmul.f32 %v11553_v44, %v2125_v18  ;;  %v2248_v44 = vmul.f32 %v11748_v54, %v11701_v27  ;;  %vm11786_vm15 = vmor %vm2132_vm12, %vm2133_vm10  ;;  %v2236_v51 = vadd.f32 %v11709_v1, %v2235_v41  ;;  %v15235_v41 = vld [vmem:[#allocation124_spill] sm:$0xff] }
 0x347   : > { %v1913_v37 = vand.u32 2147483648, %v11740_v61  ;;  %v1911_v47 = vand.u32 2147483647, %v11740_v61  ;;  %vm1907_vm6 = vweird.f32 %v11740_v61  ;;  %vm2252_vm10 = vweird.f32 %v11701_v27 }
 0x348   : > { %v2130_v29 = vmul.f32 %v11737_v45, %v2129_v62  ;;  %9176 = vmatmul.msk.f32.vlgmr.msrb.gmra.mxu1 %vm1553_vm1, %v2126_v10  ;;  %v2240_v0 = vsel %vm11813_vm4, %v11709_v1, %v2236_v51  ;;  %vm2253_vm11 = vweird.f32 %v11748_v54 }
 0x349   : > { %9526 = vrot.lane.b32.xlu2 %v9525_v36, %s10410_s18  ;;  %9182 = vmatmul.msk.f32.vlgmr.msra.gmra.mxu0 %vm1553_vm1, %v2216_v7  ;;  %v2249_v36 = vsub.f32 1.0, %v2248_v44  ;;  %vm1912_vm9 = vcmp.eq.f32.partialorder %v1911_v47, 8.507059e+37 }
 0x34a   : > { %v9856_v48 = vpop.eup %9855  ;;  %9193 = vmatpush.xpose.msk.msrb.mxu1 %vm378_vm0, %v11349_v3  ;;  %v2131_v31 = vadd.f32 %v11737_v45, %v2130_v29  ;;  %v2139_v3 = vor.u32 1.1754944e-38, %v2138_v33  ;;  %9202 = vmatpush.xpose.msk.msra.mxu0 %vm378_vm0, %v11438_v53  ;;  %v2230_v53 = vsel %vm11778_vm13, %v2229_v4, %v2225_v6  ;;  %vm11848_vm13 = vmor %vm2252_vm10, %vm2253_vm11 }
 0x34b   : > { %v1903_v56 = vmul.f32 %v9856_v48, %v11740_v61  ;;  %9521 = vrot.lane.b32.xlu1 %v9520_v26, %s10410_s18  ;;  %v11794_v59 = vpop.xlane.xlu0 %1762  ;;  %v2241_v26 = vand.u32 2147483647, %v11686_v11  ;;  %v11809_v58 = vpop.eup %9857  ;;  %vm1908_vm5 = vweird.f32 %v9856_v48  ;;  %v9535_v11 = vpack.i.bf16 %v11309_v46, %v11258_v28 }
 0x34c   : > { %9859 = vrcp.f32 %v11794_v59  ;;  %v11798_v15 = vpop.xlane.xlu2 %1765  ;;  %v2135_v25 = vsel %vm11786_vm15, %v11737_v45, %v2131_v31  ;;  %v2231_v40 = vmul.f32 %v11547_v55, %v2230_v53  ;;  %v2250_v18 = vmul.f32 %v11748_v54, %v2249_v36  ;;  %vm1909_vm8 = vmor %vm1907_vm6, %vm1908_vm5  ;;  %v15239_v53 = vld [vmem:[#allocation61_spill] sm:$0xff] }
 0x34d   : > { %v1904_v35 = vsub.f32 1.0, %v1903_v56  ;;  %9861 = vrcp.f32 %v11798_v15  ;;  %v2140_v39 = vsel %vm2137_vm2, %v2139_v3, %v2135_v25  ;;  %vm2242_vm7 = vcmp.eq.f32.partialorder %v2241_v26, 8.507059e+37  ;;  %v15241_v26 = vld [vmem:[#allocation108_spill] sm:$0xff] }
 0x34e   : > { %v2141_v23 = vmul.f32 %v11566_v17, %v2140_v39  ;;  %v1914_v28 = vor.u32 1.1754944e-38, %v1913_v37  ;;  %v1839_v46 = vsel %vm1553_vm1, %v11809_v58, 0.0  ;;  %v2245_v1 = vsel %vm2242_vm7, %v2244_v24, %v2240_v0  ;;  %v15244_v0 = vld [vmem:[#allocation123_spill] sm:$0xff]  ;;  %v15245_v24 = vld [vmem:[#allocation98_spill] sm:$0xff] }
 0x34f   : > { %v1905_v60 = vmul.f32 %v9856_v48, %v1904_v35  ;;  %v2258_v61 = vand.u32 2147483648, %v11701_v27  ;;  %v2246_v4 = vmul.f32 %v15236_v34, %v2245_v1  ;;  %v1928_v44 = vand.u32 2147483648, %v11794_v59  ;;  %v15250_v1 = vld [vmem:[#allocation118_spill] sm:$0xff] }
 0x350   : > { %9177 = vmatmul.msk.f32.gmra.mxu1 %vm1553_vm1, %v2141_v23  ;;  %v2256_v31 = vand.u32 2147483647, %v11701_v27  ;;  %v1943_v52 = vand.u32 2147483648, %v11798_v15  ;;  %v1926_v16 = vand.u32 2147483647, %v11794_v59  ;;  %vm1922_vm15 = vweird.f32 %v11794_v59  ;;  %v15243_v23 = vld [vmem:[#allocation126_spill] sm:$0xff] }
 0x351   : > { %v1906_v62 = vadd.f32 %v9856_v48, %v1905_v60  ;;  %9541 = vrot.lane.b32.xlu2 %v9540_v42, %s10410_s18  ;;  %9183 = vmatmul.msk.f32.gmra.mxu0 %vm1553_vm1, %v2231_v40  ;;  %v2251_v42 = vadd.f32 %v11748_v54, %v2250_v18  ;;  %v1941_v56 = vand.u32 2147483647, %v11798_v15  ;;  %v2259_v25 = vor.u32 1.1754944e-38, %v2258_v61  ;;  %v15242_v60 = vld [vmem:[#allocation125_spill] sm:$0xff]  ;;  %v15246_v18 = vld [vmem:[#allocation71_spill] sm:$0xff] }
 0x352   : > { %v9860_v17 = vpop.eup %9859  ;;  %v1929_v36 = vor.u32 1.1754944e-38, %v1928_v44  ;;  %vm1937_vm3 = vweird.f32 %v11798_v15  ;;  %vm1927_vm5 = vcmp.eq.f32.partialorder %v1926_v16, 8.507059e+37  ;;  %vm2257_vm6 = vcmp.eq.f32.partialorder %v2256_v31, 8.507059e+37 }
 0x353   : > { %v9862_v55 = vpop.eup %9861  ;;  %v1910_v8 = vsel %vm1909_vm8, %v9856_v48, %v1906_v62  ;;  %v1918_v7 = vmul.f32 %v9860_v17, %v11794_v59  ;;  %9536 = vrot.lane.b32.xlu1 %v9535_v11, %s10410_s18  ;;  %vm1923_vm12 = vweird.f32 %v9860_v17  ;;  %v2255_v27 = vsel %vm11848_vm13, %v11748_v54, %v2251_v42  ;;  %v15254_v42 = vld [vmem:[#allocation81_spill] sm:$0xff] }
 0x354   : > { %v1915_v10 = vsel %vm1912_vm9, %v1914_v28, %v1910_v8  ;;  %v1933_v33 = vmul.f32 %v9862_v55, %v11798_v15  ;;  %vm1938_vm14 = vweird.f32 %v9862_v55  ;;  %vm1924_vm2 = vmor %vm1922_vm15, %vm1923_vm12  ;;  %v1944_v59 = vor.u32 1.1754944e-38, %v1943_v52  ;;  %v15248_v28 = vld [vmem:[#allocation96_spill] sm:$0xff] }
 0x355   : > { %v1916_v29 = vmul.f32 %v15235_v41, %v1915_v10  ;;  %v1919_v2 = vsub.f32 1.0, %v1918_v7  ;;  %vm1939_vm4 = vmor %vm1937_vm3, %vm1938_vm14  ;;  %vm1942_vm7 = vcmp.eq.f32.partialorder %v1941_v56, 8.507059e+37  ;;  %v2260_v45 = vsel %vm2257_vm6, %v2259_v25, %v2255_v27  ;;  %v15251_v7 = vld [vmem:[#allocation27_spill] sm:$0xff] }
 0x356   : > { %v1934_v48 = vsub.f32 1.0, %v1933_v33  ;;  %v2261_v40 = vmul.f32 %v15244_v0, %v2260_v45 }
 0x357   : > { %v1920_v6 = vmul.f32 %v9860_v17, %v1919_v2  ;;  %9162 = vmatmul.msk.f32.vlgmr.msrb.gmra.mxu2 %vm1553_vm1, %v1916_v29  ;;  %v15252_v29 = vld [vmem:[#allocation80_spill] sm:$0xff]  ;;  %v15253_v2 = vld [vmem:[#allocation69_spill] sm:$0xff] }
 0x358   : > { %v1935_v3 = vmul.f32 %v9862_v55, %v1934_v48  ;;  %1840 = vadd.xlane.f32.xlu0 %v1839_v46  ;;  %2633 = vmatpush.msrb.mxu2 %v11339_v14  ;;  %v15240_v14 = vld [vmem:[#allocation101_spill] sm:$0xff]  ;;  %v9530_v34 = vpack.i.bf16 %v15254_v42, %v15253_v2  ;;  %v15262_v2 = vld [vmem:[#allocation64_spill] sm:$0xff] }
 0x359   : > { %9184 = vmatmul.msk.f32.vlgmr.msra.gmra.mxu1 %vm1553_vm1, %v2246_v4  ;;  %v1921_v51 = vadd.f32 %v9860_v17, %v1920_v6  ;;  %9191 = vmatmul.msk.f32.vlgmr.msrb.gmra.mxu0 %vm378_vm0, %v15239_v53  ;;  %v15249_v46 = vld [vmem:[#allocation109_spill] sm:$0xff]  ;;  %v15255_v4 = vld [vmem:[#allocation84_spill] sm:$0xff]  ;;  %v15256_v53 = vld [vmem:[#allocation83_spill] sm:$0xff] }
 0x35a   : > { %v1936_v35 = vadd.f32 %v9862_v55, %v1935_v3  ;;  %9205 = vmatpush.xpose.msk.msra.mxu1 %vm378_vm0, %v15240_v14  ;;  %9214 = vmatpush.xpose.msk.msrb.mxu0 %vm378_vm0, %v15241_v26 }
 0x35b   : > { %v1925_v54 = vsel %vm1924_vm2, %v9860_v17, %v1921_v51  ;;  %v15247_v17 = vld [vmem:[#allocation60_spill] sm:$0xff] }
 0x35c   : > { %v1940_v37 = vsel %vm1939_vm4, %v9862_v55, %v1936_v35  ;;  %v1930_v39 = vsel %vm1927_vm5, %v1929_v36, %v1925_v54  ;;  %v15258_v54 = vld [vmem:[#allocation119_spill] sm:$0xff] }
 0x35d   : > { %v1945_v15 = vsel %vm1942_vm7, %v1944_v59, %v1940_v37  ;;  %v1931_v47 = vmul.f32 %v15242_v60, %v1930_v39  ;;  %v15257_v59 = vld [vmem:[#allocation75_spill] sm:$0xff] }
 0x35e   : > { %v1946_v11 = vmul.f32 %v15243_v23, %v1945_v15 }
 0x35f   : > { %9163 = vmatmul.msk.f32.gmra.mxu2 %vm1553_vm1, %v1931_v47 }
 0x360   : > { %9164 = vmatmul.msk.f32.vlgmr.msrb.gmra.mxu3 %vm1553_vm1, %v1946_v11 }
 0x361   : > { %2662 = vmatpush.msrb.mxu3 %v15245_v24  ;;  %9185 = vmatmul.msk.f32.gmra.mxu1 %vm1553_vm1, %v2261_v40 }
 0x362   : > { %9192 = vmatmul.msk.f32.gmra.mxu0 %vm378_vm0, %v15246_v18  ;;  %v15259_v18 = vld [vmem:[#allocation110_spill] sm:$0xff] }
 0x364   : > { %v1769_v62 = vpop.xlane.xlu0 %1768 }
 0x365   : > { %9863 = vrcp.f32 %v1769_v62  ;;  %v1958_v41 = vand.u32 2147483648, %v1769_v62  ;;  %vm1952_vm9 = vweird.f32 %v1769_v62  ;;  %v1956_v48 = vand.u32 2147483647, %v1769_v62 }
 0x367   : > { %v1959_v16 = vor.u32 1.1754944e-38, %v1958_v41  ;;  %vm1957_vm11 = vcmp.eq.f32.partialorder %v1956_v48, 8.507059e+37 }
 0x369   : > { %9194 = vmatmul.msk.f32.vlgmr.msrb.gmra.mxu1 %vm378_vm0, %v15247_v17  ;;  %v15261_v17 = vld [vmem:[#allocation67_spill] sm:$0xff] }
 0x36a   : > { %9203 = vmatmul.msk.f32.vlgmr.msra.gmra.mxu0 %vm378_vm0, %v15248_v28  ;;  %9217 = vmatpush.xpose.msk.msrb.mxu1 %vm378_vm0, %v15249_v46 }
 0x36b   : > { %v9864_v55 = vpop.eup %9863  ;;  %9226 = vmatpush.xpose.msk.msra.mxu0 %vm378_vm0, %v15250_v1 }
 0x36c   : > { %v1948_v8 = vmul.f32 %v9864_v55, %v1769_v62  ;;  %3313 = vrot.lane.b32.xlu0 %v15251_v7, %s10410_s18  ;;  %v1784_v61 = vpop.xlane.xlu1 %1783  ;;  %vm1953_vm8 = vweird.f32 %v9864_v55  ;;  %v15260_v62 = vld [vmem:[#allocation106_spill] sm:$0xff] }
 0x36d   : > { %9865 = vrcp.f32 %v1784_v61  ;;  %vm1954_vm10 = vmor %vm1952_vm9, %vm1953_vm8  ;;  %v2033_v56 = vand.u32 2147483648, %v1784_v61  ;;  %v2031_v36 = vand.u32 2147483647, %v1784_v61  ;;  %vm2027_vm13 = vweird.f32 %v1784_v61 }
 0x36e   : > { %v1949_v10 = vsub.f32 1.0, %v1948_v8 }
 0x36f   : > { %v2034_v26 = vor.u32 1.1754944e-38, %v2033_v56  ;;  %vm2032_vm15 = vcmp.eq.f32.partialorder %v2031_v36, 8.507059e+37 }
 0x370   : > { %v1950_v33 = vmul.f32 %v9864_v55, %v1949_v10 }
 0x371   : > { %9195 = vmatmul.msk.f32.gmra.mxu1 %vm378_vm0, %v15252_v29 }
 0x372   : > { %9204 = vmatmul.msk.f32.gmra.mxu0 %vm378_vm0, %v15255_v4  ;;  %v1951_v44 = vadd.f32 %v9864_v55, %v1950_v33  ;;  %v15263_v4 = vld [vmem:[#allocation115_spill] sm:$0xff] }
 0x373   : > { %v9866_v31 = vpop.eup %9865 }
 0x374   : > { %v2023_v6 = vmul.f32 %v9866_v31, %v1784_v61  ;;  %9531 = vrot.lane.b32.xlu0 %v9530_v34, %s10410_s18  ;;  %v1955_v52 = vsel %vm1954_vm10, %v9864_v55, %v1951_v44  ;;  %v1790_v19 = vpop.xlane.xlu2 %1789  ;;  %v11894_v51 = vpop.xlane.xlu1 %1807  ;;  %vm2028_vm12 = vweird.f32 %v9866_v31  ;;  %v15264_v44 = vld [vmem:[#allocation102_spill] sm:$0xff] }
 0x375   : > { %9867 = vrcp.f32 %v1790_v19  ;;  %v1960_v27 = vsel %vm1957_vm11, %v1959_v16, %v1955_v52  ;;  %vm2029_vm14 = vmor %vm2027_vm13, %vm2028_vm12  ;;  %v2063_v11 = vand.u32 2147483648, %v1790_v19  ;;  %v2061_v40 = vand.u32 2147483647, %v1790_v19 }
 0x376   : > { %v2024_v3 = vsub.f32 1.0, %v2023_v6  ;;  %v1961_v35 = vmul.f32 %v11592_v13, %v1960_v27  ;;  %9869 = vrcp.f32 %v11894_v51  ;;  %vm2057_vm3 = vweird.f32 %v1790_v19 }
 0x377   : > { %v2064_v46 = vor.u32 1.1754944e-38, %v2063_v11  ;;  %vm2062_vm5 = vcmp.eq.f32.partialorder %v2061_v40, 8.507059e+37  ;;  %v2153_v27 = vand.u32 2147483648, %v11894_v51  ;;  %vm2147_vm11 = vweird.f32 %v11894_v51 }
 0x378   : > { %v2025_v25 = vmul.f32 %v9866_v31, %v2024_v3  ;;  %9165 = vmatmul.msk.f32.gmra.mxu3 %vm1553_vm1, %v1961_v35  ;;  %v2151_v35 = vand.u32 2147483647, %v11894_v51 }
 0x379   : > { %9206 = vmatmul.msk.f32.vlgmr.msra.gmra.mxu1 %vm378_vm0, %v15256_v53 }
 0x37a   : > { %v2026_v14 = vadd.f32 %v9866_v31, %v2025_v25  ;;  %9215 = vmatmul.msk.f32.vlgmr.msrb.gmra.mxu0 %vm378_vm0, %v15257_v59  ;;  %9229 = vmatpush.xpose.msk.msra.mxu1 %vm378_vm0, %v15258_v54  ;;  %v15265_v59 = vld [vmem:[#allocation86_spill] sm:$0xff] }
 0x37b   : > { %v9868_v37 = vpop.eup %9867  ;;  %v11920_v29 = vpop.xlane.xlu0 %1831 }
 0x37c   : > { %v2030_v39 = vsel %vm2029_vm14, %v9866_v31, %v2026_v14  ;;  %v2053_v45 = vmul.f32 %v9868_v37, %v1790_v19  ;;  %v1787_v15 = vpop.xlane.xlu2 %1786  ;;  %v11906_v23 = vpop.eup %9869  ;;  %vm2058_vm2 = vweird.f32 %v9868_v37 }
 0x37d   : > { %v2035_v13 = vsel %vm2032_vm15, %v2034_v26, %v2030_v39  ;;  %9871 = vrcp.f32 %v1787_v15  ;;  %vm2059_vm4 = vmor %vm2057_vm3, %vm2058_vm2  ;;  %v2048_v34 = vand.u32 2147483648, %v1787_v15  ;;  %v2046_v48 = vand.u32 2147483647, %v1787_v15  ;;  %v15268_v39 = vld [vmem:[#allocation89_spill] sm:$0xff] }
 0x37e   : > { %v2036_v60 = vmul.f32 %v11602_v12, %v2035_v13  ;;  %v2054_v47 = vsub.f32 1.0, %v2053_v45  ;;  %v2143_v12 = vmul.f32 %v11906_v23, %v11894_v51  ;;  %vm2042_vm7 = vweird.f32 %v1787_v15  ;;  %v11952_v45 = vpop.f32.mrf.mxu0 }
 0x37f   : > { %v2049_v16 = vor.u32 1.1754944e-38, %v2048_v34  ;;  %vm2148_vm9 = vweird.f32 %v11906_v23  ;;  %vm2047_vm10 = vcmp.eq.f32.partialorder %v2046_v48, 8.507059e+37  ;;  %15269 = vst [vmem:[#allocation124_spill] sm:$0xff] %v11952_v45  ;;  %vm2152_vm15 = vcmp.eq.f32.partialorder %v2151_v35, 8.507059e+37  ;;  %v15271_v34 = vld [vmem:[#allocation100_spill] sm:$0xff] }
 0x380   : > { %9170 = vmatmul.msk.f32.vlgmr.msra.gmra.mxu2 %vm1553_vm1, %v2036_v60  ;;  %v2055_v0 = vmul.f32 %v9868_v37, %v2054_v47  ;;  %v2144_v33 = vsub.f32 1.0, %v2143_v12  ;;  %vm11945_vm12 = vmor %vm2147_vm11, %vm2148_vm9  ;;  %vm2267_vm11 = vweird.f32 %v11920_v29 }
 0x381   : > { %2749 = vmatpush.msra.mxu2 %v15259_v18  ;;  %9207 = vmatmul.msk.f32.gmra.mxu1 %vm378_vm0, %v15260_v62 }
 0x382   : > { %9216 = vmatmul.msk.f32.gmra.mxu0 %vm378_vm0, %v15261_v17  ;;  %v2056_v28 = vadd.f32 %v9868_v37, %v2055_v0 }
 0x383   : > { %v9872_v55 = vpop.eup %9871 }
 0x384   : > { %v2060_v1 = vsel %vm2059_vm4, %v9868_v37, %v2056_v28  ;;  %v11916_v8 = vpop.xlane.xlu2 %1792  ;;  %v2038_v61 = vmul.f32 %v9872_v55, %v1787_v15  ;;  %vm2043_vm6 = vweird.f32 %v9872_v55  ;;  %v2154_v15 = vor.u32 1.1754944e-38, %v2153_v27 }
 0x385   : > { %v2065_v7 = vsel %vm2062_vm5, %v2064_v46, %v2060_v1  ;;  %9873 = vrcp.f32 %v11916_v8  ;;  %vm2044_vm8 = vmor %vm2042_vm7, %vm2043_vm6  ;;  %v2078_v53 = vand.u32 2147483648, %v11916_v8  ;;  %v2076_v51 = vand.u32 2147483647, %v11916_v8 }
 0x386   : > { %v2066_v10 = vmul.f32 %v11614_v43, %v2065_v7  ;;  %v2039_v41 = vsub.f32 1.0, %v2038_v61  ;;  %v2145_v43 = vmul.f32 %v11906_v23, %v2144_v33  ;;  %9875 = vrcp.f32 %v11920_v29 }
 0x387   : > { %vm2072_vm14 = vweird.f32 %v11916_v8  ;;  %v2079_v62 = vor.u32 1.1754944e-38, %v2078_v53  ;;  %vm2077_vm3 = vcmp.eq.f32.partialorder %v2076_v51, 8.507059e+37  ;;  %v2271_v53 = vand.u32 2147483647, %v11920_v29 }
 0x388   : > { %9172 = vmatmul.msk.f32.vlgmr.msra.gmra.mxu3 %vm1553_vm1, %v2066_v10  ;;  %v2040_v42 = vmul.f32 %v9872_v55, %v2039_v41  ;;  %v2146_v3 = vadd.f32 %v11906_v23, %v2145_v43  ;;  %v15270_v10 = vld [vmem:[#allocation112_spill] sm:$0xff] }
 0x389   : > { %9218 = vmatmul.msk.f32.vlgmr.msrb.gmra.mxu1 %vm378_vm0, %v15262_v2  ;;  %2778 = vmatpush.msra.mxu3 %v15263_v4 }
 0x38a   : > { %9227 = vmatmul.msk.f32.vlgmr.msra.gmra.mxu0 %vm378_vm0, %v15264_v44  ;;  %v2041_v6 = vadd.f32 %v9872_v55, %v2040_v42 }
 0x38b   : > { %v9874_v52 = vpop.eup %9873 }
 0x38c   : > { %v11930_v31 = vpop.xlane.xlu1 %1813  ;;  %v2068_v19 = vmul.f32 %v9874_v52, %v11916_v8  ;;  %v2045_v56 = vsel %vm2044_vm8, %v9872_v55, %v2041_v6  ;;  %v11943_v26 = vpop.eup %9875  ;;  %vm2073_vm13 = vweird.f32 %v9874_v52 }
 0x38d   : > { %9877 = vrcp.f32 %v11930_v31  ;;  %v2050_v36 = vsel %vm2047_vm10, %v2049_v16, %v2045_v56  ;;  %v11959_v60 = vpop.xlane.xlu0 %1834  ;;  %v2263_v40 = vmul.f32 %v11943_v26, %v11920_v29  ;;  %vm2074_vm2 = vmor %vm2072_vm14, %vm2073_vm13  ;;  %v2183_v12 = vand.u32 2147483648, %v11930_v31  ;;  %v11987_v6 = vpop.f32.mrf.mxu0 }
 0x38e   : > { %v2069_v25 = vsub.f32 1.0, %v2068_v19  ;;  %v2051_v14 = vmul.f32 %v11624_v22, %v2050_v36  ;;  %v2150_v22 = vsel %vm11945_vm12, %v11906_v23, %v2146_v3  ;;  %v2181_v1 = vand.u32 2147483647, %v11930_v31  ;;  %15272 = vst [vmem:[#allocation122_spill] sm:$0xff] %v11987_v6 }
 0x38f   : > { %v2155_v23 = vsel %vm2152_vm15, %v2154_v15, %v2150_v22  ;;  %v2264_v61 = vsub.f32 1.0, %v2263_v40  ;;  %vm2177_vm5 = vweird.f32 %v11930_v31  ;;  %v2184_v2 = vor.u32 1.1754944e-38, %v2183_v12 }
 0x390   : > { %v2070_v37 = vmul.f32 %v9874_v52, %v2069_v25  ;;  %9171 = vmatmul.msk.f32.gmra.mxu2 %vm1553_vm1, %v2051_v14  ;;  %v2156_v7 = vmul.f32 %v11608_v50, %v2155_v23  ;;  %vm2182_vm7 = vcmp.eq.f32.partialorder %v2181_v1, 8.507059e+37  ;;  %vm2268_vm9 = vweird.f32 %v11943_v26 }
 0x391   : > { %9219 = vmatmul.msk.f32.gmra.mxu1 %vm378_vm0, %v15265_v59  ;;  %v2265_v48 = vmul.f32 %v11943_v26, %v2264_v61  ;;  %v2273_v36 = vand.u32 2147483648, %v11920_v29  ;;  %v15273_v59 = vld [vmem:[#allocation97_spill] sm:$0xff]  ;;  %vm12007_vm13 = vmor %vm2267_vm11, %vm2268_vm9  ;;  %vm2272_vm15 = vcmp.eq.f32.partialorder %v2271_v53, 8.507059e+37 }
 0x392   : > { %9228 = vmatmul.msk.f32.gmra.mxu0 %vm378_vm0, %v15268_v39  ;;  %v2071_v0 = vadd.f32 %v9874_v52, %v2070_v37  ;;  %v12005_v37 = vpop.f32.mrf.mxu1  ;;  %v15285_v53 = vld [vmem:[#allocation105_spill] sm:$0xff] }
 0x393   : > { %v9878_v13 = vpop.eup %9877  ;;  %v2266_v25 = vadd.f32 %v11943_v26, %v2265_v48  ;;  %15274 = vst [vmem:[#allocation61_spill] sm:$0xff] %v12005_v37  ;;  %v2286_v48 = vand.u32 2147483647, %v11959_v60 }
 0x394   : > { %v2173_v47 = vmul.f32 %v9878_v13, %v11930_v31  ;;  %v11962_v11 = vpop.xlane.xlu1 %1810  ;;  %v2075_v28 = vsel %vm2074_vm2, %v9874_v52, %v2071_v0  ;;  %vm2178_vm4 = vweird.f32 %v9878_v13  ;;  %v2274_v0 = vor.u32 1.1754944e-38, %v2273_v36 }
 0x395   : > { %9879 = vrcp.f32 %v11962_v11  ;;  %v2080_v46 = vsel %vm2077_vm3, %v2079_v62, %v2075_v28  ;;  %vm2179_vm6 = vmor %vm2177_vm5, %vm2178_vm4  ;;  %v2168_v19 = vand.u32 2147483648, %v11962_v11  ;;  %v2166_v27 = vand.u32 2147483647, %v11962_v11  ;;  %v12017_v40 = vpop.f32.mrf.mxu0 }
 0x396   : > { %v2174_v17 = vsub.f32 1.0, %v2173_v47  ;;  %9881 = vrcp.f32 %v11959_v60  ;;  %v2081_v8 = vmul.f32 %v11635_v57, %v2080_v46  ;;  %vm2162_vm10 = vweird.f32 %v11962_v11  ;;  %15277 = vst [vmem:[#allocation101_spill] sm:$0xff] %v12017_v40 }
 0x397   : > { %v2169_v14 = vor.u32 1.1754944e-38, %v2168_v19  ;;  %vm2167_vm14 = vcmp.eq.f32.partialorder %v2166_v27, 8.507059e+37  ;;  %v2270_v29 = vsel %vm12007_vm13, %v11943_v26, %v2266_v25 }
 0x398   : > { %v2175_v55 = vmul.f32 %v9878_v13, %v2174_v17  ;;  %9173 = vmatmul.msk.f32.gmra.mxu3 %vm1553_vm1, %v2081_v8  ;;  %9178 = vmatmul.msk.f32.vlgmr.msrb.gmra.mxu2 %vm1553_vm1, %v2156_v7  ;;  %v2275_v28 = vsel %vm2272_vm15, %v2274_v0, %v2270_v29  ;;  %v2288_v7 = vand.u32 2147483648, %v11959_v60 }
 0x399   : > { %9230 = vmatmul.msk.f32.vlgmr.msra.gmra.mxu1 %vm378_vm0, %v15270_v10  ;;  %9196 = vmatpush.xpose.msk.msrb.mxu2 %vm378_vm0, %v15271_v34  ;;  %v2276_v8 = vmul.f32 %v11621_v32, %v2275_v28  ;;  %v15296_v28 = vld [vmem:[#allocation121_spill] sm:$0xff] }
 0x39a   : > { %v2176_v33 = vadd.f32 %v9878_v13, %v2175_v55  ;;  %v2289_v19 = vor.u32 1.1754944e-38, %v2288_v7 }
 0x39b   : > { %v9880_v41 = vpop.eup %9879 }
 0x39c   : > { %v2180_v42 = vsel %vm2179_vm6, %v9878_v13, %v2176_v33  ;;  %v2158_v57 = vmul.f32 %v9880_v41, %v11962_v11  ;;  %v11981_v50 = vpop.xlane.xlu2 %1837  ;;  %v1817_v44 = vpop.xlane.xlu1 %1816  ;;  %vm2163_vm8 = vweird.f32 %v9880_v41 }
 0x39d   : > { %v11983_v43 = vpop.eup %9881  ;;  %v2185_v31 = vsel %vm2182_vm7, %v2184_v2, %v2180_v42  ;;  %9883 = vrcp.f32 %v11981_v50  ;;  %vm2164_vm12 = vmor %vm2162_vm10, %vm2163_vm8  ;;  %v2198_v46 = vand.u32 2147483648, %v1817_v44  ;;  %v2196_v55 = vand.u32 2147483647, %v1817_v44 }
 0x39e   : > { %v2186_v52 = vmul.f32 %v11644_v38, %v2185_v31  ;;  %v2159_v16 = vsub.f32 1.0, %v2158_v57  ;;  %9885 = vrcp.f32 %v1817_v44  ;;  %v2278_v3 = vmul.f32 %v11983_v43, %v11959_v60 }
 0x39f   : > { %vm2192_vm3 = vweird.f32 %v1817_v44  ;;  %vm2283_vm4 = vweird.f32 %v11983_v43  ;;  %v2199_v10 = vor.u32 1.1754944e-38, %v2198_v46  ;;  %vm2197_vm6 = vcmp.eq.f32.partialorder %v2196_v55, 8.507059e+37 }
 0x3a0   : > { %v2160_v56 = vmul.f32 %v9880_v41, %v2159_v16  ;;  %9180 = vmatmul.msk.f32.vlgmr.msrb.gmra.mxu3 %vm1553_vm1, %v2186_v52  ;;  %v2279_v51 = vsub.f32 1.0, %v2278_v3  ;;  %vm2282_vm8 = vweird.f32 %v11959_v60  ;;  %v2303_v57 = vand.u32 2147483648, %v11981_v50 }
 0x3a1   : > { %9199 = vmatpush.xpose.msk.msrb.mxu3 %vm378_vm0, %v15273_v59  ;;  %vm12038_vm9 = vmor %vm2282_vm8, %vm2283_vm4  ;;  %vm2297_vm10 = vweird.f32 %v11981_v50  ;;  %v2301_v52 = vand.u32 2147483647, %v11981_v50 }
 0x3a2   : > { %v2161_v38 = vadd.f32 %v9880_v41, %v2160_v56  ;;  %v2280_v12 = vmul.f32 %v11983_v43, %v2279_v51  ;;  %v15282_v56 = vld [vmem:[#allocation104_spill] sm:$0xff]  ;;  %v2304_v27 = vor.u32 1.1754944e-38, %v2303_v57 }
 0x3a3   : > { %v11999_v35 = vpop.eup %9883  ;;  %vm2302_vm13 = vcmp.eq.f32.partialorder %v2301_v52, 8.507059e+37 }
 0x3a4   : > { %v9886_v54 = vpop.eup %9885  ;;  %v2293_v13 = vmul.f32 %v11999_v35, %v11981_v50  ;;  %v3244_v22 = vpop.permute.xlu2 %3243  ;;  %v2165_v15 = vsel %vm2164_vm12, %v9880_v41, %v2161_v38  ;;  %v2281_v41 = vadd.f32 %v11983_v43, %v2280_v12  ;;  %vm2298_vm7 = vweird.f32 %v11999_v35 }
 0x3a5   : > { %v2188_v47 = vmul.f32 %v9886_v54, %v1817_v44  ;;  %9231 = vmatmul.msk.f32.gmra.mxu1 %vm378_vm0, %v3244_v22  ;;  %v2170_v11 = vsel %vm2167_vm14, %v2169_v14, %v2165_v15  ;;  %vm2193_vm2 = vweird.f32 %v9886_v54  ;;  %v12033_v34 = vpop.f32.mrf.mxu0  ;;  %vm2299_vm11 = vmor %vm2297_vm10, %vm2298_vm7  ;;  %vm2287_vm12 = vcmp.eq.f32.partialorder %v2286_v48, 8.507059e+37 }
 0x3a6   : > { %v2294_v62 = vsub.f32 1.0, %v2293_v13  ;;  %v2171_v23 = vmul.f32 %v11657_v9, %v2170_v11  ;;  %v12025_v9 = vpop.f32.mrf.mxu1  ;;  %vm2194_vm5 = vmor %vm2192_vm3, %vm2193_vm2  ;;  %15279 = vst [vmem:[#allocation125_spill] sm:$0xff] %v12033_v34  ;;  %v2285_v60 = vsel %vm12038_vm9, %v11983_v43, %v2281_v41  ;;  %v15288_v13 = vld [vmem:[#allocation68_spill] sm:$0xff] }
 0x3a7   : > { %v2189_v17 = vsub.f32 1.0, %v2188_v47  ;;  %15278 = vst [vmem:[#allocation108_spill] sm:$0xff] %v12025_v9  ;;  %v2290_v50 = vsel %vm2287_vm12, %v2289_v19, %v2285_v60  ;;  %v15292_v11 = vld [vmem:[#allocation72_spill] sm:$0xff] }
 0x3a8   : > { %9179 = vmatmul.msk.f32.gmra.mxu2 %vm1553_vm1, %v2171_v23  ;;  %v2295_v26 = vmul.f32 %v11999_v35, %v2294_v62  ;;  %v2291_v43 = vmul.f32 %v11648_v49, %v2290_v50  ;;  %v15289_v49 = vld [vmem:[#allocation113_spill] sm:$0xff] }
 0x3a9   : > { %v2190_v1 = vmul.f32 %v9886_v54, %v2189_v17  ;;  %v15295_v17 = vld [vmem:[#allocation117_spill] sm:$0xff] }
 0x3aa   : > { %v2296_v2 = vadd.f32 %v11999_v35, %v2295_v26 }
 0x3ab   : > { %v2191_v61 = vadd.f32 %v9886_v54, %v2190_v1 }
 0x3ac   : > { %v9527_v33 = vpop.permute.xlu2 %9526  ;;  %v2300_v3 = vsel %vm2299_vm11, %v11999_v35, %v2296_v2 }
 0x3ad   : > { %v9528_v42 = vunpack.i.l.bf16 %v9527_v33  ;;  %v2195_v32 = vsel %vm2194_vm5, %v9886_v54, %v2191_v61  ;;  %v2305_v25 = vsel %vm2302_vm13, %v2304_v27, %v2300_v3  ;;  %v9529_v39 = vunpack.i.h.bf16 %v9527_v33  ;;  %v15298_v33 = vld [vmem:[#allocation93_spill] sm:$0xff]  ;;  %v15302_v27 = vld [vmem:[#allocation114_spill] sm:$0xff] }
 0x3ae   : > { %v2200_v44 = vsel %vm2197_vm6, %v2199_v10, %v2195_v32  ;;  %v2306_v35 = vmul.f32 %v11667_v20, %v2305_v25  ;;  %v12073_v20 = vpop.permute.xlu0 %3315  ;;  %v15301_v3 = vld [vmem:[#allocation73_spill] sm:$0xff]  ;;  %v15303_v25 = vld [vmem:[#allocation76_spill] sm:$0xff] }
 0x3af   : > { %4172 = vmatpush.msrb.mxu1 %v9528_v42  ;;  %v2201_v16 = vmul.f32 %v11664_v5, %v2200_v44  ;;  %v12053_v5 = vpop.f32.mrf.mxu1 }
 0x3b0   : > { %9186 = vmatmul.msk.f32.vlgmr.msra.gmra.mxu2 %vm1553_vm1, %v2276_v8  ;;  %15283 = vst [vmem:[#allocation126_spill] sm:$0xff] %v12053_v5 }
 0x3b1   : > { %9181 = vmatmul.msk.f32.gmra.mxu3 %vm1553_vm1, %v2201_v16  ;;  %9208 = vmatpush.xpose.msk.msra.mxu2 %vm378_vm0, %v15282_v56  ;;  %v15300_v16 = vld [vmem:[#allocation90_spill] sm:$0xff] }
 0x3b4   : > { %v12055_v36 = vpop.permute.xlu1 %3311 }
 0x3b6   : > { %v12057_v38 = vpop.f32.mrf.mxu0 }
 0x3b7   : > { %15284 = vst [vmem:[#allocation123_spill] sm:$0xff] %v12057_v38  ;;  %v12065_v59 = vpop.f32.mrf.mxu1 }
 0x3b8   : > { %9187 = vmatmul.msk.f32.gmra.mxu2 %vm1553_vm1, %v2291_v43  ;;  %15286 = vst [vmem:[#allocation98_spill] sm:$0xff] %v12065_v59 }
 0x3b9   : > { %9188 = vmatmul.msk.f32.vlgmr.msra.gmra.mxu3 %vm1553_vm1, %v2306_v35 }
 0x3ba   : > { %9211 = vmatpush.xpose.msk.msra.mxu3 %vm378_vm0, %v15285_v53 }
 0x3bd   : > { %v9522_v14 = vpop.permute.xlu1 %9521 }
 0x3be   : > { %v9523_v54 = vunpack.i.l.bf16 %v9522_v14  ;;  %v12067_v51 = vpop.f32.mrf.mxu0  ;;  %v9524_v48 = vunpack.i.h.bf16 %v9522_v14  ;;  %v15304_v14 = vld [vmem:[#allocation94_spill] sm:$0xff] }
 0x3bf   : > { %15287 = vst [vmem:[#allocation71_spill] sm:$0xff] %v12067_v51 }
 0x3c0   : > { %4139 = vmatpush.msrb.mxu0 %v9523_v54  ;;  %9197 = vmatmul.msk.f32.vlgmr.msrb.gmra.mxu2 %vm378_vm0, %v15288_v13 }
 0x3c1   : > { %9220 = vmatpush.xpose.msk.msrb.mxu2 %vm378_vm0, %v15289_v49  ;;  %v15305_v49 = vld [vmem:[#allocation120_spill] sm:$0xff] }
 0x3c2   : > { %4271 = vmatpush.msra.mxu0 %v9529_v39 }
 0x3c5   : > { %v12075_v22 = vpop.permute.xlu1 %9536  ;;  %v12078_v29 = vpop.f32.mrf.mxu1 }
 0x3c6   : > { %v9538_v15 = vunpack.i.l.bf16 %v12075_v22  ;;  %15290 = vst [vmem:[#allocation60_spill] sm:$0xff] %v12078_v29  ;;  %v12080_v47 = vpop.f32.mrf.mxu0 }
 0x3c7   : > { %15291 = vst [vmem:[#allocation96_spill] sm:$0xff] %v12080_v47 }
 0x3c8   : > { %4304 = vmatpush.msra.mxu1 %v9538_v15  ;;  %9198 = vmatmul.msk.f32.gmra.mxu2 %vm378_vm0, %v15292_v11 }
 0x3cb   : > { %v1841_v0 = vpop.xlane.xlu0 %1840 }
 0x3cc   : > { %9887 = vrcp.f32 %v1841_v0  ;;  %v2318_v26 = vand.u32 2147483648, %v1841_v0  ;;  %v2316_v61 = vand.u32 2147483647, %v1841_v0  ;;  %vm2312_vm15 = vweird.f32 %v1841_v0 }
 0x3cd   : > { %v12084_v62 = vpop.f32.mrf.mxu1 }
 0x3ce   : > { %15293 = vst [vmem:[#allocation109_spill] sm:$0xff] %v12084_v62  ;;  %v12086_v23 = vpop.f32.mrf.mxu0  ;;  %v2319_v2 = vor.u32 1.1754944e-38, %v2318_v26  ;;  %vm2317_vm3 = vcmp.eq.f32.partialorder %v2316_v61, 8.507059e+37 }
 0x3cf   : > { %15294 = vst [vmem:[#allocation118_spill] sm:$0xff] %v12086_v23 }
 0x3d0   : > { %9209 = vmatmul.msk.f32.vlgmr.msra.gmra.mxu2 %vm378_vm0, %v15295_v17 }
 0x3d1   : > { %9232 = vmatpush.xpose.msk.msra.mxu2 %vm378_vm0, %v15296_v28 }
 0x3d2   : > { %v9888_v12 = vpop.eup %9887 }
 0x3d3   : > { %v2308_v46 = vmul.f32 %v9888_v12, %v1841_v0  ;;  %vm2313_vm14 = vweird.f32 %v9888_v12  ;;  %v15306_v0 = vld [vmem:[#allocation87_spill] sm:$0xff] }
 0x3d4   : > { %vm2314_vm2 = vmor %vm2312_vm15, %vm2313_vm14 }
 0x3d5   : > { %v2309_v55 = vsub.f32 1.0, %v2308_v46 }
 0x3d6   : > { %v12092_v1 = vpop.f32.mrf.mxu1  ;;  %v12094_v7 = vpop.f32.mrf.mxu0 }
 0x3d7   : > { %15297 = vst [vmem:[#allocation27_spill] sm:$0xff] %v12092_v1  ;;  %v2310_v8 = vmul.f32 %v9888_v12, %v2309_v55  ;;  %v3346_v10 = vsel %vm1553_vm1, %v12094_v7, -inf }
 0x3d8   : > { %9210 = vmatmul.msk.f32.gmra.mxu2 %vm378_vm0, %v15298_v33  ;;  %3347 = vmax.xlane.f32.xlu2 %v3346_v10 }
 0x3d9   : > { %v2311_v41 = vadd.f32 %v9888_v12, %v2310_v8  ;;  %v15309_v8 = vld [vmem:[#allocation65_spill] sm:$0xff] }
 0x3da   : > { %v12154_v55 = vpop.f32.mrf.mxu2 }
 0x3db   : > { %v2315_v42 = vsel %vm2314_vm2, %v9888_v12, %v2311_v41  ;;  %v15307_v12 = vld [vmem:[#allocation91_spill] sm:$0xff]  ;;  %15308 = vst [vmem:[#allocation69_spill] sm:$0xff] %v12154_v55 }
 0x3dc   : > { %v2320_v32 = vsel %vm2317_vm3, %v2319_v2, %v2315_v42  ;;  %v15310_v2 = vld [vmem:[#allocation78_spill] sm:$0xff] }
 0x3dd   : > { %v2321_v57 = vmul.f32 %v11809_v58, %v2320_v32 }
 0x3de   : > { %v12101_v44 = vpop.f32.mrf.mxu1  ;;  %v12110_v60 = vpop.permute.xlu0 %3313 }
 0x3df   : > { %15299 = vst [vmem:[#allocation80_spill] sm:$0xff] %v12101_v44  ;;  %v12103_v31 = vpop.f32.mrf.mxu0  ;;  %9189 = vmatmul.msk.f32.gmra.mxu3 %vm1553_vm1, %v2321_v57 }
 0x3e0   : > { %v3349_v52 = vsel %vm1553_vm1, %v12103_v31, -inf  ;;  %9221 = vmatmul.msk.f32.vlgmr.msrb.gmra.mxu2 %vm378_vm0, %v15300_v16  ;;  %v15312_v16 = vld [vmem:[#allocation79_spill] sm:$0xff] }
 0x3e1   : > { %3350 = vmax.xlane.f32.xlu1 %v3349_v52  ;;  %4205 = vmatpush.msrb.mxu2 %v9524_v48 }
 0x3e2   : > { %v12174_v57 = vpop.f32.mrf.mxu2 }
 0x3e3   : > { %15311 = vst [vmem:[#allocation81_spill] sm:$0xff] %v12174_v57  ;;  %v15329_v57 = vld [vmem:[#allocation31_spill] sm:$0xff] }
 0x3e6   : > { %v12112_v19 = vpop.f32.mrf.mxu1  ;;  %v9532_v43 = vpop.permute.xlu0 %9531 }
 0x3e7   : > { %v12114_v58 = vpop.f32.mrf.mxu0  ;;  %9200 = vmatmul.msk.f32.vlgmr.msrb.gmra.mxu3 %vm378_vm0, %v15301_v3  ;;  %v3352_v56 = vsel %vm1553_vm1, %v12112_v19, -inf  ;;  %v9534_v39 = vunpack.i.h.bf16 %v9532_v43  ;;  %v9533_v10 = vunpack.i.l.bf16 %v9532_v43 }
 0x3e8   : > { %9223 = vmatpush.xpose.msk.msrb.mxu3 %vm378_vm0, %v15302_v27  ;;  %v3370_v50 = vsel %vm1553_vm1, %v12114_v58, -inf  ;;  %3353 = vmax.xlane.f32.xlu2 %v3352_v56 }
 0x3e9   : > { %3371 = vmax.xlane.f32.xlu1 %v3370_v50  ;;  %9222 = vmatmul.msk.f32.gmra.mxu2 %vm378_vm0, %v15303_v25  ;;  %v12188_v50 = vpop.permute.xlu2 %9541 }
 0x3ea   : > { %v9543_v25 = vunpack.i.l.bf16 %v12188_v50 }
 0x3ee   : > { %v12126_v35 = vpop.f32.mrf.mxu1 }
 0x3ef   : > { %v12128_v53 = vpop.f32.mrf.mxu0  ;;  %9201 = vmatmul.msk.f32.gmra.mxu3 %vm378_vm0, %v15304_v14  ;;  %v3355_v54 = vsel %vm1553_vm1, %v12126_v35, -inf }
 0x3f0   : > { %v3373_v13 = vsel %vm1553_vm1, %v12128_v53, -inf  ;;  %3356 = vmax.xlane.f32.xlu2 %v3355_v54 }
 0x3f1   : > { %3374 = vmax.xlane.f32.xlu1 %v3373_v13  ;;  %9233 = vmatmul.msk.f32.vlgmr.msra.gmra.mxu2 %vm378_vm0, %v15305_v49 }
 0x3f2   : > { %4337 = vmatpush.msra.mxu2 %v9534_v39 }
 0x3f6   : > { %v12138_v15 = vpop.f32.mrf.mxu1 }
 0x3f7   : > { %v12140_v11 = vpop.f32.mrf.mxu0  ;;  %9212 = vmatmul.msk.f32.vlgmr.msra.gmra.mxu3 %vm378_vm0, %v15306_v0  ;;  %v3376_v17 = vsel %vm1553_vm1, %v12138_v15, -inf  ;;  %v12207_v0 = vpop.f32.mrf.mxu3 }
 0x3f8   : > { %9235 = vmatpush.xpose.msk.msra.mxu3 %vm378_vm0, %v12073_v20  ;;  %v3394_v28 = vsel %vm1553_vm1, %v12140_v11, -inf  ;;  %15316 = vst [vmem:[#allocation119_spill] sm:$0xff] %v12207_v0 }
 0x3f9   : > { %3395 = vmax.xlane.f32.xlu0 %v3394_v28  ;;  %3377 = vmax.xlane.f32.xlu1 %v3376_v17 }
 0x3fa   : > { %9234 = vmatmul.msk.f32.gmra.mxu2 %vm378_vm0, %v15307_v12 }
 0x3fe   : > { %v12152_v46 = vpop.f32.mrf.mxu1 }
 0x3ff   : > { %v12156_v26 = vpop.f32.mrf.mxu0  ;;  %9213 = vmatmul.msk.f32.gmra.mxu3 %vm378_vm0, %v15309_v8  ;;  %v3379_v20 = vsel %vm1553_vm1, %v12152_v46, -inf  ;;  %v12211_v17 = vpop.f32.mrf.mxu3 }
 0x400   : > { %v3397_v61 = vsel %vm1553_vm1, %v12156_v26, -inf  ;;  %15318 = vst [vmem:[#allocation106_spill] sm:$0xff] %v12211_v17 }
 0x401   : > { %3398 = vmax.xlane.f32.xlu2 %v3397_v61  ;;  %3380 = vmax.xlane.f32.xlu0 %v3379_v20 }
 0x403   : > { %v12186_v27 = vpop.f32.mrf.mxu2 }
 0x404   : > { %15313 = vst [vmem:[#allocation84_spill] sm:$0xff] %v12186_v27 }
 0x406   : > { %v12164_v33 = vpop.f32.mrf.mxu1 }
 0x407   : > { %v12166_v41 = vpop.f32.mrf.mxu0  ;;  %9224 = vmatmul.msk.f32.vlgmr.msrb.gmra.mxu3 %vm378_vm0, %v15310_v2  ;;  %v3400_v42 = vsel %vm1553_vm1, %v12164_v33, -inf }
 0x408   : > { %4238 = vmatpush.msrb.mxu3 %v9533_v10  ;;  %v3418_v32 = vsel %vm1553_vm1, %v12166_v41, -inf }
 0x409   : > { %3419 = vmax.xlane.f32.xlu1 %v3418_v32  ;;  %3401 = vmax.xlane.f32.xlu2 %v3400_v42 }
 0x40b   : > { %v12215_v12 = vpop.f32.mrf.mxu3 }
 0x40c   : > { %15320 = vst [vmem:[#allocation64_spill] sm:$0xff] %v12215_v12 }
 0x40e   : > { %v12176_v48 = vpop.f32.mrf.mxu1 }
 0x40f   : > { %v12178_v52 = vpop.f32.mrf.mxu0  ;;  %9225 = vmatmul.msk.f32.gmra.mxu3 %vm378_vm0, %v15312_v16  ;;  %v3403_v3 = vsel %vm1553_vm1, %v12176_v48, -inf }
 0x410   : > { %v3421_v56 = vsel %vm1553_vm1, %v12178_v52, -inf  ;;  %3404 = vmax.xlane.f32.xlu0 %v3403_v3 }
 0x411   : > { %3422 = vmax.xlane.f32.xlu2 %v3421_v56 }
 0x413   : > { %v12197_v54 = vpop.f32.mrf.mxu2 }
 0x414   : > { %15314 = vst [vmem:[#allocation83_spill] sm:$0xff] %v12197_v54 }
 0x416   : > { %v12191_v43 = vpop.f32.mrf.mxu1 }
 0x417   : > { %9236 = vmatmul.msk.f32.vlgmr.msra.gmra.mxu3 %vm378_vm0, %v12055_v36  ;;  %v3424_v14 = vsel %vm1553_vm1, %v12191_v43, -inf }
 0x418   : > { %4370 = vmatpush.msra.mxu3 %v9543_v25  ;;  %3425 = vmax.xlane.f32.xlu1 %v3424_v14 }
 0x41b   : > { %v12203_v13 = vpop.f32.mrf.mxu2 }
 0x41c   : > { %15315 = vst [vmem:[#allocation75_spill] sm:$0xff] %v12203_v13 }
 0x41f   : > { %9237 = vmatmul.msk.f32.gmra.mxu3 %vm378_vm0, %v12110_v60  ;;  %v12219_v60 = vpop.f32.mrf.mxu3 }
 0x420   : > { %15322 = vst [vmem:[#allocation102_spill] sm:$0xff] %v12219_v60 }
 0x422   : > { %v12201_v39 = vpop.f32.mrf.mxu1 }
 0x423   : > { %v3427_v49 = vsel %vm1553_vm1, %v12201_v39, -inf }
 0x424   : > { %3428 = vmax.xlane.f32.xlu0 %v3427_v49 }
 0x427   : > { %v12225_v10 = vpop.f32.mrf.mxu3 }
 0x428   : > { %15323 = vst [vmem:[#allocation86_spill] sm:$0xff] %v12225_v10 }
 0x42b   : > { %v12209_v36 = vpop.f32.mrf.mxu2 }
 0x42c   : > { %15317 = vst [vmem:[#allocation110_spill] sm:$0xff] %v12209_v36 }
 0x433   : > { %v12213_v28 = vpop.f32.mrf.mxu2 }
 0x434   : > { %15319 = vst [vmem:[#allocation67_spill] sm:$0xff] %v12213_v28  ;;  %v12227_v2 = vpop.f32.mrf.mxu3 }
 0x435   : > { %15324 = vst [vmem:[#allocation89_spill] sm:$0xff] %v12227_v2 }
 0x43b   : > { %v12217_v8 = vpop.f32.mrf.mxu2 }
 0x43c   : > { %15321 = vst [vmem:[#allocation115_spill] sm:$0xff] %v12217_v8  ;;  %v12231_v32 = vpop.f32.mrf.mxu3 }
 0x43d   : > { %15325 = vst [vmem:[#allocation112_spill] sm:$0xff] %v12231_v32 }
 0x443   : > { %v12221_v20 = vpop.f32.mrf.mxu2 }
 0x444   : > { %v3358_v61 = vsel %vm1553_vm1, %v12221_v20, -inf }
 0x445   : > { %3359 = vmax.xlane.f32.xlu0 %v3358_v61 }
 0x44b   : > { %v12229_v42 = vpop.f32.mrf.mxu2 }
 0x44c   : > { %v3361_v8 = vsel %vm1553_vm1, %v12229_v42, -inf }
 0x453   : > { %v12233_v16 = vpop.f32.mrf.mxu2 }
 0x454   : > { %v3351_v56 = vpop.xlane.xlu1 %3350 }
 0x455   : > { %v3443_v13 = vsub.f32 %v12103_v31, %v3351_v56 }
 0x45b   : > { %v12237_v25 = vpop.f32.mrf.mxu2 }
 0x45c   : > { %v3372_v28 = vpop.xlane.xlu1 %3371  ;;  %v3385_v29 = vsel %vm1553_vm1, %v12237_v25, -inf }
 0x45d   : > { %v3450_v31 = vsub.f32 %v12114_v58, %v3372_v28 }
 0x462   : > { %v12235_v3 = vpop.f32.mrf.mxu3 }
 0x463   : > { %15326 = vst [vmem:[#allocation100_spill] sm:$0xff] %v12235_v3  ;;  %v12249_v44 = vpop.f32.mrf.mxu2  ;;  %v3348_v3 = vpop.xlane.xlu2 %3347 }
 0x464   : > { %v3406_v23 = vsel %vm1553_vm1, %v12249_v44, -inf  ;;  %v3375_v2 = vpop.xlane.xlu1 %3374 }
 0x46a   : > { %v12239_v14 = vpop.f32.mrf.mxu3 }
 0x46b   : > { %v3364_v49 = vsel %vm1553_vm1, %v12239_v14, -inf }
 0x46c   : > { %3365 = vmax.xlane.f32.xlu0 %v3364_v49  ;;  %v3382_v49 = vsel %vm1553_vm1, %v12233_v16, -inf  ;;  %v12259_v10 = vpop.f32.mrf.mxu2  ;;  %v12269_v51 = vpop.xlane.xlu1 %3377 }
 0x472   : > { %v12243_v61 = vpop.f32.mrf.mxu3 }
 0x473   : > { %v3367_v32 = vsel %vm1553_vm1, %v12243_v61, -inf }
 0x474   : > { %3362 = vmax.xlane.f32.xlu0 %v3361_v8  ;;  %3368 = vmax.xlane.f32.xlu2 %v3367_v32  ;;  %v3354_v8 = vpop.xlane.xlu2 %3353  ;;  %v12271_v38 = vpop.f32.mrf.mxu2 }
 0x475   : > { %v3444_v32 = vsub.f32 %v12112_v19, %v3354_v8  ;;  %v3442_v19 = vsub.f32 %v12094_v7, %v3348_v3  ;;  %v3490_v3 = vmul.f32 1.442695, %v3450_v31 }
 0x477   : > { %v3474_v7 = vmul.f32 1.442695, %v3442_v19 }
 0x47a   : > { %v12251_v1 = vpop.f32.mrf.mxu3 }
 0x47b   : > { %v3388_v47 = vsel %vm1553_vm1, %v12251_v1, -inf }
 0x47c   : > { %3407 = vmax.xlane.f32.xlu0 %v3406_v23  ;;  %3383 = vmax.xlane.f32.xlu2 %v3382_v49  ;;  %v3478_v23 = vmul.f32 1.442695, %v3444_v32  ;;  %v3476_v49 = vmul.f32 1.442695, %v3443_v13  ;;  %v3357_v56 = vpop.xlane.xlu2 %3356  ;;  %v3409_v13 = vsel %vm1553_vm1, %v12259_v10, -inf  ;;  %v3420_v58 = vpop.xlane.xlu1 %3419 }
 0x47d   : > { %3389 = vmax.xlane.f32.xlu1 %v3388_v47  ;;  %v3396_v47 = vpop.xlane.xlu0 %3395 }
 0x47e   : > { %9889 = vpow2.f32 %v3478_v23 }
 0x47f   : > { %9891 = vpow2.f32 %v3476_v49  ;;  %v3451_v49 = vsub.f32 %v12128_v53, %v3375_v2 }
 0x480   : > { %9893 = vpow2.f32 %v3474_v7  ;;  %v12301_v7 = vpop.f32.mrf.mxu2 }
 0x481   : > { %9895 = vpow2.f32 %v3490_v3 }
 0x482   : > { %v12262_v36 = vpop.f32.mrf.mxu3 }
 0x483   : > { %v3391_v62 = vsel %vm1553_vm1, %v12262_v36, -inf }
 0x484   : > { %3392 = vmax.xlane.f32.xlu2 %v3391_v62  ;;  %v3430_v62 = vsel %vm1553_vm1, %v12271_v38, -inf  ;;  %v12283_v32 = vpop.eup %9889  ;;  %v3399_v12 = vpop.xlane.xlu2 %3398 }
 0x485   : > { %3386 = vmax.xlane.f32.xlu1 %v3385_v29  ;;  %v12285_v23 = vpop.xlane.xlu0 %3380  ;;  %v12287_v28 = vpop.eup %9891  ;;  %v3544_v19 = vsel %vm1553_vm1, %v12283_v32, 0.0 }
 0x486   : > { %v12299_v2 = vpop.eup %9893 }
 0x48a   : > { %v12274_v8 = vpop.f32.mrf.mxu3 }
 0x48b   : > { %v3412_v29 = vsel %vm1553_vm1, %v12274_v8, -inf }
 0x48c   : > { %3431 = vmax.xlane.f32.xlu2 %v3430_v62  ;;  %3413 = vmax.xlane.f32.xlu0 %v3412_v29  ;;  %v3466_v62 = vsub.f32 %v12166_v41, %v3420_v58  ;;  %v3541_v29 = vsel %vm1553_vm1, %v12287_v28, 0.0  ;;  %v12303_v41 = vpop.eup %9895  ;;  %v3458_v58 = vsub.f32 %v12140_v11, %v3396_v47 }
 0x48d   : > { %3410 = vmax.xlane.f32.xlu1 %v3409_v13  ;;  %v3492_v13 = vmul.f32 1.442695, %v3451_v49  ;;  %v3405_v3 = vpop.xlane.xlu0 %3404  ;;  %v3538_v49 = vsel %vm1553_vm1, %v12299_v2, 0.0 }
 0x48e   : > { %v3522_v53 = vmul.f32 1.442695, %v3466_v62  ;;  %v3562_v62 = vsel %vm1553_vm1, %v12303_v41, 0.0  ;;  %v3506_v54 = vmul.f32 1.442695, %v3458_v58 }
 0x48f   : > { %9897 = vpow2.f32 %v3492_v13 }
 0x490   : > { %9899 = vpow2.f32 %v3522_v53  ;;  %v3445_v53 = vsub.f32 %v12126_v35, %v3357_v56 }
 0x491   : > { %9901 = vpow2.f32 %v3506_v54 }
 0x492   : > { %v12290_v60 = vpop.f32.mrf.mxu3 }
 0x493   : > { %v3415_v31 = vsel %vm1553_vm1, %v12290_v60, -inf }
 0x494   : > { %3545 = vadd.xlane.f32.xlu2 %v3544_v19  ;;  %3416 = vmax.xlane.f32.xlu0 %v3415_v31  ;;  %v3461_v19 = vsub.f32 %v12176_v48, %v3405_v3  ;;  %v3433_v31 = vsel %vm1553_vm1, %v12301_v7, -inf  ;;  %v3459_v3 = vsub.f32 %v12156_v26, %v3399_v12  ;;  %v3452_v12 = vsub.f32 %v12138_v15, %v12269_v51  ;;  %v3426_v51 = vpop.xlane.xlu1 %3425 }
 0x495   : > { %3542 = vadd.xlane.f32.xlu1 %v3541_v29  ;;  %v3402_v29 = vpop.xlane.xlu2 %3401  ;;  %v12315_v47 = vpop.eup %9897 }
 0x496   : > { %v3512_v11 = vmul.f32 1.442695, %v3461_v19  ;;  %v12317_v48 = vpop.eup %9899  ;;  %v3480_v19 = vmul.f32 1.442695, %v3445_v53 }
 0x497   : > { %v3610_v58 = vsel %vm1553_vm1, %v12317_v48, 0.0  ;;  %v12327_v35 = vpop.eup %9901 }
 0x498   : > { %9903 = vpow2.f32 %v3512_v11  ;;  %v3586_v53 = vsel %vm1553_vm1, %v12327_v35, 0.0 }
 0x499   : > { %9905 = vpow2.f32 %v3480_v19 }
 0x49a   : > { %v12313_v13 = vpop.f32.mrf.mxu3 }
 0x49c   : > { %3434 = vmax.xlane.f32.xlu2 %v3433_v31  ;;  %3539 = vadd.xlane.f32.xlu0 %v3538_v49  ;;  %v3436_v31 = vsel %vm1553_vm1, %v12313_v13, -inf  ;;  %v3565_v49 = vsel %vm1553_vm1, %v12315_v47, 0.0 }
 0x49d   : > { %3563 = vadd.xlane.f32.xlu1 %v3562_v62  ;;  %v3508_v62 = vmul.f32 1.442695, %v3459_v3  ;;  %v3423_v27 = vpop.xlane.xlu2 %3422 }
 0x49e   : > { %v12331_v26 = vpop.eup %9903  ;;  %v3467_v56 = vsub.f32 %v12178_v52, %v3423_v27  ;;  %v3453_v52 = vsub.f32 %v12152_v46, %v12285_v23  ;;  %v3468_v27 = vsub.f32 %v12191_v43, %v3426_v51  ;;  %v3460_v46 = vsub.f32 %v12164_v33, %v3402_v29 }
 0x49f   : > { %9907 = vpow2.f32 %v3508_v62  ;;  %v3595_v3 = vsel %vm1553_vm1, %v12331_v26, 0.0 }
 0x4a2   : > { %v12329_v54 = vpop.f32.mrf.mxu3 }
 0x4a3   : > { %v3439_v11 = vsel %vm1553_vm1, %v12329_v54, -inf }
 0x4a4   : > { %3437 = vmax.xlane.f32.xlu0 %v3436_v31  ;;  %3566 = vadd.xlane.f32.xlu2 %v3565_v49  ;;  %v3494_v31 = vmul.f32 1.442695, %v3452_v12  ;;  %v3524_v49 = vmul.f32 1.442695, %v3467_v56  ;;  %v3496_v12 = vmul.f32 1.442695, %v3453_v52 }
 0x4a5   : > { %3611 = vadd.xlane.f32.xlu1 %v3610_v58  ;;  %v12342_v58 = vpop.eup %9905  ;;  %v3526_v56 = vmul.f32 1.442695, %v3468_v27 }
 0x4a6   : > { %v12344_v15 = vpop.eup %9907  ;;  %9909 = vpow2.f32 %v3494_v31  ;;  %v3547_v19 = vsel %vm1553_vm1, %v12342_v58, 0.0  ;;  %v3510_v31 = vmul.f32 1.442695, %v3460_v46 }
 0x4a7   : > { %9911 = vpow2.f32 %v3524_v49  ;;  %v3589_v62 = vsel %vm1553_vm1, %v12344_v15, 0.0 }
 0x4a8   : > { %9913 = vpow2.f32 %v3496_v12 }
 0x4a9   : > { %9915 = vpow2.f32 %v3526_v56 }
 0x4aa   : > { %9917 = vpow2.f32 %v3510_v31 }
 0x4ac   : > { %3440 = vmax.xlane.f32.xlu0 %v3439_v11  ;;  %3587 = vadd.xlane.f32.xlu2 %v3586_v53  ;;  %v12353_v11 = vpop.eup %9909  ;;  %v12355_v53 = vpop.xlane.xlu0 %3428 }
 0x4ad   : > { %3596 = vadd.xlane.f32.xlu1 %v3595_v3  ;;  %v12357_v3 = vpop.eup %9911  ;;  %v3568_v23 = vsel %vm1553_vm1, %v12353_v11, 0.0 }
 0x4ae   : > { %15327 = vst [vmem:[#allocation97_spill] sm:$0xff] %v12357_v3  ;;  %v3613_v43 = vsel %vm1553_vm1, %v12357_v3, 0.0  ;;  %v12364_v49 = vpop.eup %9913 }
 0x4af   : > { %v12366_v52 = vpop.eup %9915  ;;  %v3571_v33 = vsel %vm1553_vm1, %v12364_v49, 0.0 }
 0x4b0   : > { %15328 = vst [vmem:[#allocation104_spill] sm:$0xff] %v12366_v52  ;;  %v3616_v29 = vsel %vm1553_vm1, %v12366_v52, 0.0 }
 0x4b4   : > { %3548 = vadd.xlane.f32.xlu0 %v3547_v19  ;;  %3590 = vadd.xlane.f32.xlu2 %v3589_v62  ;;  %v12373_v62 = vpop.eup %9917 }
 0x4b5   : > { %v3592_v12 = vsel %vm1553_vm1, %v12373_v62, 0.0 }
 0x4b8   : > { %v3360_v51 = vpop.xlane.xlu0 %3359 }
 0x4b9   : > { %v3446_v27 = vsub.f32 %v12221_v20, %v3360_v51 }
 0x4bb   : > { %v3482_v19 = vmul.f32 1.442695, %v3446_v27 }
 0x4bc   : > { %3614 = vadd.xlane.f32.xlu2 %v3613_v43  ;;  %3569 = vadd.xlane.f32.xlu0 %v3568_v23 }
 0x4bd   : > { %9919 = vpow2.f32 %v3482_v19 }
 0x4c3   : > { %v12377_v56 = vpop.eup %9919 }
 0x4c4   : > { %3572 = vadd.xlane.f32.xlu0 %v3571_v33  ;;  %3617 = vadd.xlane.f32.xlu2 %v3616_v29  ;;  %v3550_v20 = vsel %vm1553_vm1, %v12377_v56, 0.0 }
 0x4cc   : > { %3593 = vadd.xlane.f32.xlu0 %v3592_v12 }
 0x4d4   : > { %3551 = vadd.xlane.f32.xlu0 %v3550_v20 }
 0x4df   : > { %v3366_v46 = vpop.xlane.xlu0 %3365 }
 0x4e0   : > { %v3448_v43 = vsub.f32 %v12239_v14, %v3366_v46 }
 0x4e2   : > { %v3486_v23 = vmul.f32 1.442695, %v3448_v43 }
 0x4e4   : > { %9921 = vpow2.f32 %v3486_v23 }
 0x4e7   : > { %v3363_v31 = vpop.xlane.xlu0 %3362  ;;  %v3369_v51 = vpop.xlane.xlu2 %3368 }
 0x4e8   : > { %v3447_v27 = vsub.f32 %v12229_v42, %v3363_v31  ;;  %v3449_v33 = vsub.f32 %v12243_v61, %v3369_v51 }
 0x4ea   : > { %v12384_v29 = vpop.eup %9921  ;;  %v3484_v19 = vmul.f32 1.442695, %v3447_v27  ;;  %v3488_v12 = vmul.f32 1.442695, %v3449_v33 }
 0x4eb   : > { %v3556_v59 = vsel %vm1553_vm1, %v12384_v29, 0.0 }
 0x4ec   : > { %9923 = vpow2.f32 %v3484_v19  ;;  %3557 = vadd.xlane.f32.xlu2 %v3556_v59 }
 0x4ed   : > { %9925 = vpow2.f32 %v3488_v12 }
 0x4ef   : > { %v3384_v20 = vpop.xlane.xlu2 %3383  ;;  %v12398_v59 = vpop.xlane.xlu0 %3407 }
 0x4f0   : > { %v3454_v14 = vsub.f32 %v12233_v16, %v3384_v20  ;;  %v3390_v46 = vpop.xlane.xlu1 %3389 }
 0x4f1   : > { %v3456_v43 = vsub.f32 %v12251_v1, %v3390_v46 }
 0x4f2   : > { %v12390_v23 = vpop.eup %9923  ;;  %v3498_v42 = vmul.f32 1.442695, %v3454_v14 }
 0x4f3   : > { %v12392_v61 = vpop.eup %9925  ;;  %v3502_v31 = vmul.f32 1.442695, %v3456_v43  ;;  %v3553_v51 = vsel %vm1553_vm1, %v12390_v23, 0.0 }
 0x4f4   : > { %v3559_v27 = vsel %vm1553_vm1, %v12392_v61, 0.0  ;;  %3554 = vadd.xlane.f32.xlu2 %v3553_v51  ;;  %9927 = vpow2.f32 %v3498_v42 }
 0x4f5   : > { %3560 = vadd.xlane.f32.xlu0 %v3559_v27  ;;  %9929 = vpow2.f32 %v3502_v31 }
 0x4f7   : > { %v3393_v16 = vpop.xlane.xlu2 %3392 }
 0x4f8   : > { %v3387_v1 = vpop.xlane.xlu1 %3386  ;;  %v3457_v14 = vsub.f32 %v12262_v36, %v3393_v16 }
 0x4f9   : > { %v3455_v33 = vsub.f32 %v12237_v25, %v3387_v1 }
 0x4fa   : > { %v12401_v19 = vpop.eup %9927  ;;  %v3504_v25 = vmul.f32 1.442695, %v3457_v14  ;;  %v9550_v14 = vpack.i.bf16 %v15259_v18, %v15245_v24 }
 0x4fb   : > { %v3500_v12 = vmul.f32 1.442695, %v3455_v33  ;;  %v12403_v20 = vpop.eup %9929  ;;  %v3574_v46 = vsel %vm1553_vm1, %v12401_v19, 0.0 }
 0x4fc   : > { %3575 = vadd.xlane.f32.xlu1 %v3574_v46  ;;  %v3580_v43 = vsel %vm1553_vm1, %v12403_v20, 0.0 }
 0x4fd   : > { %9931 = vpow2.f32 %v3500_v12  ;;  %3581 = vadd.xlane.f32.xlu0 %v3580_v43 }
 0x4fe   : > { %9933 = vpow2.f32 %v3504_v25 }
 0x4ff   : > { %v12410_v42 = vpop.xlane.xlu2 %3431  ;;  %v12412_v31 = vpop.xlane.xlu0 %3413 }
 0x500   : > { %v12414_v51 = vpop.xlane.xlu1 %3410 }
 0x503   : > { %v12416_v27 = vpop.eup %9931 }
 0x504   : > { %v3577_v36 = vsel %vm1553_vm1, %v12416_v27, 0.0  ;;  %v12424_v12 = vpop.eup %9933 }
 0x505   : > { %3578 = vadd.xlane.f32.xlu0 %v3577_v36  ;;  %v3583_v46 = vsel %vm1553_vm1, %v12424_v12, 0.0 }
 0x507   : > { %v3546_v16 = vpop.xlane.xlu2 %3545  ;;  %v12420_v1 = vpop.xlane.xlu0 %3416 }
 0x508   : > { %9935 = vrcp.f32 %v3546_v16  ;;  %v12422_v33 = vpop.xlane.xlu1 %3542  ;;  %v3675_v24 = vand.u32 2147483648, %v3546_v16  ;;  %vm3669_vm5 = vweird.f32 %v3546_v16 }
 0x509   : > { %9937 = vrcp.f32 %v12422_v33  ;;  %vm3654_vm13 = vweird.f32 %v12422_v33 }
 0x50c   : > { %9551 = vrot.lane.b32.xlu2 %v9550_v14, %s10410_s18  ;;  %v3673_v14 = vand.u32 2147483647, %v3546_v16 }
 0x50d   : > { %3584 = vadd.xlane.f32.xlu0 %v3583_v46  ;;  %v9555_v46 = vpack.i.bf16 %v15263_v4, %v11379_v21 }
 0x50e   : > { %v9936_v43 = vpop.eup %9935  ;;  %vm3674_vm7 = vcmp.eq.f32.partialorder %v3673_v14, 8.507059e+37 }
 0x50f   : > { %v3665_v25 = vmul.f32 %v9936_v43, %v3546_v16  ;;  %v12432_v36 = vpop.xlane.xlu2 %3434  ;;  %v3540_v5 = vpop.xlane.xlu0 %3539  ;;  %vm3670_vm4 = vweird.f32 %v9936_v43 }
 0x510   : > { %v12434_v34 = vpop.eup %9937  ;;  %9939 = vrcp.f32 %v3540_v5  ;;  %v12436_v40 = vpop.xlane.xlu1 %3563  ;;  %vm3671_vm6 = vmor %vm3669_vm5, %vm3670_vm4  ;;  %v3643_v16 = vand.u32 2147483647, %v3540_v5  ;;  %vm3639_vm9 = vweird.f32 %v3540_v5 }
 0x511   : > { %v3666_v17 = vsub.f32 1.0, %v3665_v25  ;;  %9941 = vrcp.f32 %v12436_v40  ;;  %v3650_v0 = vmul.f32 %v12434_v34, %v12422_v33  ;;  %v3676_v25 = vor.u32 1.1754944e-38, %v3675_v24 }
 0x512   : > { %vm3655_vm10 = vweird.f32 %v12434_v34  ;;  %vm3644_vm12 = vcmp.eq.f32.partialorder %v3643_v16, 8.507059e+37  ;;  %v9539_v16 = vunpack.i.h.bf16 %v12075_v22  ;;  %v15331_v22 = vld [vmem:[#allocation33_spill] sm:$0xff]  ;;  %vm3759_vm3 = vweird.f32 %v12436_v40 }
 0x513   : > { %v3667_v18 = vmul.f32 %v9936_v43, %v3666_v17  ;;  %v3651_v17 = vsub.f32 1.0, %v3650_v0  ;;  %vm3656_vm14 = vmor %vm3654_vm13, %vm3655_vm10 }
 0x514   : > { %6388 = vrot.lane.b32.xlu2 %v15329_v57, %s10410_s18  ;;  %v3645_v57 = vand.u32 2147483648, %v3540_v5 }
 0x515   : > { %v3668_v55 = vadd.f32 %v9936_v43, %v3667_v18  ;;  %9556 = vrot.lane.b32.xlu1 %v9555_v46, %s10410_s18  ;;  %v3652_v24 = vmul.f32 %v12434_v34, %v3651_v17 }
 0x516   : > { %v9940_v9 = vpop.eup %9939 }
 0x517   : > { %v3672_v37 = vsel %vm3671_vm6, %v9936_v43, %v3668_v55  ;;  %v3635_v6 = vmul.f32 %v9940_v9, %v3540_v5  ;;  %v12446_v45 = vpop.xlane.xlu0 %3437  ;;  %v12448_v52 = vpop.xlane.xlu2 %3566  ;;  %vm3640_vm8 = vweird.f32 %v9940_v9  ;;  %v3653_v17 = vadd.f32 %v12434_v34, %v3652_v24 }
 0x518   : > { %v12450_v3 = vpop.eup %9941  ;;  %v3677_v21 = vsel %vm3674_vm7, %v3676_v25, %v3672_v37  ;;  %9943 = vrcp.f32 %v12448_v52  ;;  %vm3641_vm11 = vmor %vm3639_vm9, %vm3640_vm8  ;;  %v3646_v37 = vor.u32 1.1754944e-38, %v3645_v57  ;;  %v9545_v5 = vpack.i.bf16 %v11365_v63, %v11323_v30 }
 0x519   : > { %v3678_v4 = vmul.f32 %v12283_v32, %v3677_v21  ;;  %v3636_v18 = vsub.f32 1.0, %v3635_v6  ;;  %v3755_v0 = vmul.f32 %v12450_v3, %v12436_v40  ;;  %v15330_v6 = vld [vmem:[#allocation29_spill] sm:$0xff]  ;;  %vm3760_vm2 = vweird.f32 %v12450_v3 }
 0x51a   : > { %vm3761_vm4 = vmor %vm3759_vm3, %vm3760_vm2  ;;  %vm3774_vm7 = vweird.f32 %v12448_v52 }
 0x51b   : > { %v3637_v55 = vmul.f32 %v9940_v9, %v3636_v18  ;;  %9240 = vmatmul.msk.f32.vlgmr.msrb.gmra.mxu1 %vm1553_vm1, %v3678_v4  ;;  %v3756_v14 = vsub.f32 1.0, %v3755_v0  ;;  %v3660_v4 = vand.u32 2147483648, %v12422_v33  ;;  %v3658_v18 = vand.u32 2147483647, %v12422_v33 }
 0x51d   : > { %v3638_v43 = vadd.f32 %v9940_v9, %v3637_v55  ;;  %6386 = vrot.lane.b32.xlu1 %v15330_v6, %s10410_s18  ;;  %v3757_v30 = vmul.f32 %v12450_v3, %v3756_v14  ;;  %v3661_v24 = vor.u32 1.1754944e-38, %v3660_v4  ;;  %vm3659_vm15 = vcmp.eq.f32.partialorder %v3658_v18, 8.507059e+37 }
 0x51e   : > { %v12466_v21 = vpop.eup %9943  ;;  %v3765_v14 = vand.u32 2147483648, %v12436_v40 }
 0x51f   : > { %v3642_v32 = vsel %vm3641_vm11, %v9940_v9, %v3638_v43  ;;  %v12461_v46 = vpop.xlane.xlu0 %3440  ;;  %v12463_v25 = vpop.xlane.xlu2 %3587  ;;  %v3770_v63 = vmul.f32 %v12466_v21, %v12448_v52  ;;  %v3758_v55 = vadd.f32 %v12450_v3, %v3757_v30  ;;  %vm3775_vm6 = vweird.f32 %v12466_v21 }
 0x520   : > { %v3647_v57 = vsel %vm3644_vm12, %v3646_v37, %v3642_v32  ;;  %9945 = vrcp.f32 %v12463_v25  ;;  %vm12522_vm8 = vmor %vm3774_vm7, %vm3775_vm6 }
 0x521   : > { %v3648_v9 = vmul.f32 %v12299_v2, %v3647_v57  ;;  %9546 = vrot.lane.b32.xlu0 %v9545_v5, %s10410_s18  ;;  %v3657_v2 = vsel %vm3656_vm14, %v12434_v34, %v3653_v17  ;;  %v3771_v0 = vsub.f32 1.0, %v3770_v63  ;;  %v3464_v34 = vsub.f32 %v12274_v8, %v12412_v31 }
 0x522   : > { %v3662_v33 = vsel %vm3659_vm15, %v3661_v24, %v3657_v2  ;;  %v3763_v17 = vand.u32 2147483647, %v12436_v40  ;;  %v3762_v4 = vsel %vm3761_vm4, %v12450_v3, %v3758_v55  ;;  %v15332_v40 = vld [vmem:[#allocation38_spill] sm:$0xff]  ;;  %v3780_v24 = vand.u32 2147483648, %v12448_v52 }
 0x523   : > { %9238 = vmatmul.msk.f32.vlgmr.msrb.gmra.mxu0 %vm1553_vm1, %v3648_v9  ;;  %v3663_v5 = vmul.f32 %v12287_v28, %v3662_v33  ;;  %v3772_v57 = vmul.f32 %v12466_v21, %v3771_v0  ;;  %v3518_v31 = vmul.f32 1.442695, %v3464_v34  ;;  %v3766_v9 = vor.u32 1.1754944e-38, %v3765_v14 }
 0x524   : > { %4403 = vmatpush.msrb.mxu0 %v9539_v16  ;;  %vm3764_vm5 = vcmp.eq.f32.partialorder %v3763_v17, 8.507059e+37  ;;  %v3778_v0 = vand.u32 2147483647, %v12448_v52  ;;  %v3463_v34 = vsub.f32 %v12259_v10, %v12414_v51  ;;  %v3469_v10 = vsub.f32 %v12201_v39, %v12355_v53 }
 0x525   : > { %6421 = vrot.lane.b32.xlu1 %v15331_v22, %s10410_s18  ;;  %v3767_v16 = vsel %vm3764_vm5, %v3766_v9, %v3762_v4  ;;  %v3773_v63 = vadd.f32 %v12466_v21, %v3772_v57  ;;  %v3781_v4 = vor.u32 1.1754944e-38, %v3780_v24  ;;  %vm3879_vm14 = vweird.f32 %v12463_v25 }
 0x526   : > { %v12492_v32 = vpop.eup %9945  ;;  %v3768_v33 = vmul.f32 %v12303_v41, %v3767_v16  ;;  %vm3779_vm10 = vcmp.eq.f32.partialorder %v3778_v0, 8.507059e+37  ;;  %v3883_v24 = vand.u32 2147483647, %v12463_v25  ;;  %v3470_v14 = vsub.f32 %v12271_v38, %v12410_v42 }
 0x527   : > { %v12488_v43 = vpop.xlane.xlu0 %3548  ;;  %v12490_v37 = vpop.xlane.xlu2 %3590  ;;  %v3875_v8 = vmul.f32 %v12492_v32, %v12463_v25  ;;  %v3777_v52 = vsel %vm12522_vm8, %v12466_v21, %v3773_v63  ;;  %vm3880_vm12 = vweird.f32 %v12492_v32  ;;  %v3885_v63 = vand.u32 2147483648, %v12463_v25 }
 0x528   : > { %9947 = vrcp.f32 %v12488_v43  ;;  %v3690_v51 = vand.u32 2147483648, %v12488_v43  ;;  %vm3684_vm11 = vweird.f32 %v12488_v43  ;;  %v3688_v9 = vand.u32 2147483647, %v12488_v43  ;;  %vm12561_vm15 = vmor %vm3879_vm14, %vm3880_vm12 }
 0x529   : > { %9949 = vrcp.f32 %v12490_v37  ;;  %v3876_v28 = vsub.f32 1.0, %v3875_v8  ;;  %v3782_v16 = vsel %vm3779_vm10, %v3781_v4, %v3777_v52  ;;  %vm3884_vm3 = vcmp.eq.f32.partialorder %v3883_v24, 8.507059e+37 }
 0x52a   : > { %9951 = vpow2.f32 %v3518_v31  ;;  %v3516_v31 = vmul.f32 1.442695, %v3463_v34  ;;  %v3783_v0 = vmul.f32 %v12315_v47, %v3782_v16  ;;  %v3528_v34 = vmul.f32 1.442695, %v3469_v10 }
 0x52b   : > { %9239 = vmatmul.msk.f32.gmra.mxu0 %vm1553_vm1, %v3663_v5  ;;  %v3877_v17 = vmul.f32 %v12492_v32, %v3876_v28  ;;  %vm3689_vm2 = vcmp.eq.f32.partialorder %v3688_v9, 8.507059e+37  ;;  %vm3894_vm7 = vweird.f32 %v12490_v37  ;;  %v3900_v21 = vand.u32 2147483648, %v12490_v37 }
 0x52d   : > { %6456 = vrot.lane.b32.xlu1 %v15332_v40, %s10410_s18  ;;  %v3878_v28 = vadd.f32 %v12492_v32, %v3877_v17 }
 0x52e   : > { %v9948_v18 = vpop.eup %9947 }
 0x52f   : > { %v3680_v3 = vmul.f32 %v9948_v18, %v12488_v43  ;;  %v12511_v30 = vpop.xlane.xlu0 %3569  ;;  %v12514_v2 = vpop.eup %9949  ;;  %vm3685_vm9 = vweird.f32 %v9948_v18  ;;  %v3882_v25 = vsel %vm12561_vm15, %v12492_v32, %v3878_v28 }
 0x530   : > { %9953 = vrcp.f32 %v12511_v30  ;;  %v3890_v41 = vmul.f32 %v12514_v2, %v12490_v37  ;;  %v12537_v8 = vpop.eup %9951  ;;  %vm12543_vm13 = vmor %vm3684_vm11, %vm3685_vm9  ;;  %v3795_v38 = vand.u32 2147483648, %v12511_v30  ;;  %v3793_v10 = vand.u32 2147483647, %v12511_v30 }
 0x531   : > { %v3681_v55 = vsub.f32 1.0, %v3680_v3  ;;  %v3604_v52 = vsel %vm1553_vm1, %v12537_v8, 0.0  ;;  %vm3895_vm5 = vweird.f32 %v12514_v2  ;;  %vm3789_vm6 = vweird.f32 %v12511_v30 }
 0x532   : > { %v3891_v39 = vsub.f32 1.0, %v3890_v41  ;;  %v3886_v41 = vor.u32 1.1754944e-38, %v3885_v63  ;;  %v3898_v63 = vand.u32 2147483647, %v12490_v37  ;;  %vm3794_vm9 = vcmp.eq.f32.partialorder %v3793_v10, 8.507059e+37  ;;  %vm12591_vm10 = vmor %vm3894_vm7, %vm3895_vm5  ;;  %v12619_v10 = vpop.xlane.xlu2 %3614 }
 0x533   : > { %v3682_v5 = vmul.f32 %v9948_v18, %v3681_v55  ;;  %9246 = vmatmul.msk.f32.vlgmr.msra.gmra.mxu0 %vm1553_vm1, %v3768_v33  ;;  %v3691_v33 = vor.u32 1.1754944e-38, %v3690_v51  ;;  %v3530_v51 = vmul.f32 1.442695, %v3470_v14 }
 0x535   : > { %v3683_v57 = vadd.f32 %v9948_v18, %v3682_v5 }
 0x536   : > { %v9954_v3 = vpop.eup %9953 }
 0x537   : > { %v12547_v53 = vpop.xlane.xlu0 %3572  ;;  %v3687_v43 = vsel %vm12543_vm13, %v9948_v18, %v3683_v57  ;;  %v3785_v55 = vmul.f32 %v9954_v3, %v12511_v30  ;;  %v3892_v18 = vmul.f32 %v12514_v2, %v3891_v39  ;;  %vm3790_vm4 = vweird.f32 %v9954_v3 }
 0x538   : > { %9955 = vrcp.f32 %v12547_v53  ;;  %v3692_v47 = vsel %vm3689_vm2, %v3691_v33, %v3687_v43  ;;  %v3887_v57 = vsel %vm3884_vm3, %v3886_v41, %v3882_v25  ;;  %vm3791_vm8 = vmor %vm3789_vm6, %vm3790_vm4  ;;  %v3796_v39 = vor.u32 1.1754944e-38, %v3795_v38 }
 0x539   : > { %9957 = vpow2.f32 %v3516_v31  ;;  %v3786_v5 = vsub.f32 1.0, %v3785_v55  ;;  %v3693_v42 = vmul.f32 %v12342_v58, %v3692_v47  ;;  %v3893_v16 = vadd.f32 %v12514_v2, %v3892_v18 }
 0x53a   : > { %9959 = vpow2.f32 %v3528_v34  ;;  %v3888_v43 = vmul.f32 %v12327_v35, %v3887_v57  ;;  %v3808_v25 = vand.u32 2147483647, %v12547_v53  ;;  %vm3804_vm12 = vweird.f32 %v12547_v53 }
 0x53b   : > { %9247 = vmatmul.msk.f32.gmra.mxu0 %vm1553_vm1, %v3783_v0  ;;  %v3787_v4 = vmul.f32 %v9954_v3, %v3786_v5  ;;  %9241 = vmatmul.msk.f32.gmra.mxu1 %vm1553_vm1, %v3693_v42  ;;  %9961 = vpow2.f32 %v3530_v51  ;;  %v3810_v0 = vand.u32 2147483648, %v12547_v53  ;;  %v3897_v35 = vsel %vm12591_vm10, %v12514_v2, %v3893_v16 }
 0x53c   : > { %vm3899_vm13 = vcmp.eq.f32.partialorder %v3898_v63, 8.507059e+37  ;;  %v3462_v18 = vsub.f32 %v12249_v44, %v12398_v59  ;;  %vm3809_vm15 = vcmp.eq.f32.partialorder %v3808_v25, 8.507059e+37  ;;  %v9544_v33 = vunpack.i.h.bf16 %v12188_v50 }
 0x53d   : > { %3605 = vadd.xlane.f32.xlu2 %v3604_v52  ;;  %v3788_v31 = vadd.f32 %v9954_v3, %v3787_v4  ;;  %v3811_v5 = vor.u32 1.1754944e-38, %v3810_v0  ;;  %v12635_v0 = vpop.xlane.xlu1 %3611 }
 0x53e   : > { %v9956_v32 = vpop.eup %9955  ;;  %v3514_v52 = vmul.f32 1.442695, %v3462_v18 }
 0x53f   : > { %v3800_v58 = vmul.f32 %v9956_v32, %v12547_v53  ;;  %v12579_v9 = vpop.xlane.xlu0 %3593  ;;  %v12582_v28 = vpop.eup %9957  ;;  %v3792_v30 = vsel %vm3791_vm8, %v9954_v3, %v3788_v31  ;;  %vm3805_vm11 = vweird.f32 %v9956_v32  ;;  %v3901_v3 = vor.u32 1.1754944e-38, %v3900_v21 }
 0x540   : > { %v3797_v55 = vsel %vm3794_vm9, %v3796_v39, %v3792_v30  ;;  %v12601_v37 = vpop.eup %9959  ;;  %v3601_v17 = vsel %vm1553_vm1, %v12582_v28, 0.0  ;;  %vm3806_vm14 = vmor %vm3804_vm12, %vm3805_vm11 }
 0x541   : > { %v3801_v24 = vsub.f32 1.0, %v3800_v58  ;;  %v3798_v34 = vmul.f32 %v12353_v11, %v3797_v55  ;;  %v3902_v2 = vsel %vm3899_vm13, %v3901_v3, %v3897_v35  ;;  %v12610_v38 = vpop.eup %9961  ;;  %v3619_v44 = vsel %vm1553_vm1, %v12601_v37, 0.0  ;;  %v15341_v35 = vld [vmem:[#allocation30_spill] sm:$0xff] }
 0x542   : > { %v3903_v53 = vmul.f32 %v12344_v15, %v3902_v2  ;;  %v3622_v59 = vsel %vm1553_vm1, %v12610_v38, 0.0  ;;  %v3465_v15 = vsub.f32 %v12290_v60, %v12420_v1 }
 0x543   : > { %v3802_v14 = vmul.f32 %v9956_v32, %v3801_v24  ;;  %9254 = vmatmul.msk.f32.vlgmr.msrb.gmra.mxu0 %vm1553_vm1, %v3888_v43  ;;  %9248 = vmatmul.msk.f32.vlgmr.msra.gmra.mxu1 %vm1553_vm1, %v3798_v34  ;;  %v12626_v43 = vpop.xlane.xlu2 %3617 }
 0x544   : > { %v3520_v57 = vmul.f32 1.442695, %v3465_v15 }
 0x545   : > { %3602 = vadd.xlane.f32.xlu2 %v3601_v17  ;;  %v3803_v11 = vadd.f32 %v9956_v32, %v3802_v14  ;;  %v12643_v25 = vpop.xlane.xlu1 %3596 }
 0x547   : > { %v3552_v47 = vpop.xlane.xlu0 %3551  ;;  %v3807_v41 = vsel %vm3806_vm14, %v9956_v32, %v3803_v11  ;;  %v15343_v11 = vld [vmem:[#allocation32_spill] sm:$0xff] }
 0x548   : > { %9963 = vrcp.f32 %v3552_v47  ;;  %v3812_v42 = vsel %vm3809_vm15, %v3811_v5, %v3807_v41  ;;  %v3705_v31 = vand.u32 2147483648, %v3552_v47  ;;  %v3703_v16 = vand.u32 2147483647, %v3552_v47 }
 0x549   : > { %v3813_v4 = vmul.f32 %v12364_v49, %v3812_v42  ;;  %9965 = vpow2.f32 %v3514_v52  ;;  %vm3699_vm3 = vweird.f32 %v3552_v47 }
 0x54a   : > { %9967 = vpow2.f32 %v3520_v57  ;;  %v3706_v63 = vor.u32 1.1754944e-38, %v3705_v31  ;;  %vm3704_vm5 = vcmp.eq.f32.partialorder %v3703_v16, 8.507059e+37 }
 0x54b   : > { %9255 = vmatmul.msk.f32.gmra.mxu0 %vm1553_vm1, %v3903_v53  ;;  %3620 = vadd.xlane.f32.xlu0 %v3619_v44 }
 0x54c   : > { %9249 = vmatmul.msk.f32.gmra.mxu1 %vm1553_vm1, %v3813_v4 }
 0x54d   : > { %3623 = vadd.xlane.f32.xlu2 %v3622_v59 }
 0x54e   : > { %v9964_v32 = vpop.eup %9963 }
 0x54f   : > { %v3695_v49 = vmul.f32 %v9964_v32, %v3552_v47  ;;  %vm3700_vm2 = vweird.f32 %v9964_v32  ;;  %v12624_v21 = vpop.eup %9965 }
 0x550   : > { %vm3701_vm4 = vmor %vm3699_vm3, %vm3700_vm2  ;;  %v3598_v60 = vsel %vm1553_vm1, %v12624_v21, 0.0  ;;  %v12633_v55 = vpop.eup %9967 }
 0x551   : > { %v3696_v51 = vsub.f32 1.0, %v3695_v49  ;;  %v3607_v34 = vsel %vm1553_vm1, %v12633_v55, 0.0 }
 0x553   : > { %v3697_v58 = vmul.f32 %v9964_v32, %v3696_v51  ;;  %v15344_v51 = vld [vmem:[#allocation34_spill] sm:$0xff] }
 0x555   : > { %v3698_v39 = vadd.f32 %v9964_v32, %v3697_v58 }
 0x557   : > { %v3702_v30 = vsel %vm3701_vm4, %v9964_v32, %v3698_v39  ;;  %3599 = vadd.xlane.f32.xlu1 %v3598_v60 }
 0x558   : > { %v3707_v1 = vsel %vm3704_vm5, %v3706_v63, %v3702_v30 }
 0x559   : > { %v3708_v24 = vmul.f32 %v12377_v56, %v3707_v1  ;;  %v15342_v56 = vld [vmem:[#allocation40_spill] sm:$0xff] }
 0x55b   : > { %9242 = vmatmul.msk.f32.vlgmr.msrb.gmra.mxu2 %vm1553_vm1, %v3708_v24 }
 0x55c   : > { %4469 = vmatpush.msrb.mxu2 %v9544_v33 }
 0x55f   : > { %v3558_v14 = vpop.xlane.xlu2 %3557  ;;  %6390 = vrot.lane.b32.xlu0 %v15341_v35, %s10410_s18  ;;  %3608 = vadd.xlane.f32.xlu1 %v3607_v34 }
 0x560   : > { %9969 = vrcp.f32 %v3558_v14  ;;  %v3735_v5 = vand.u32 2147483648, %v3558_v14  ;;  %v3733_v41 = vand.u32 2147483647, %v3558_v14  ;;  %vm3729_vm7 = vweird.f32 %v3558_v14 }
 0x562   : > { %v3736_v52 = vor.u32 1.1754944e-38, %v3735_v5  ;;  %vm3734_vm9 = vcmp.eq.f32.partialorder %v3733_v41, 8.507059e+37 }
 0x565   : > { %6458 = vrot.lane.b32.xlu2 %v15342_v56, %s10410_s18 }
 0x566   : > { %v9970_v50 = vpop.eup %9969 }
 0x567   : > { %v3725_v3 = vmul.f32 %v9970_v50, %v3558_v14  ;;  %v3555_v17 = vpop.xlane.xlu2 %3554  ;;  %6425 = vrot.lane.b32.xlu0 %v15343_v11, %s10410_s18  ;;  %vm3730_vm6 = vweird.f32 %v9970_v50  ;;  %v3473_v14 = vsub.f32 %v12329_v54, %v12461_v46 }
 0x568   : > { %v3561_v18 = vpop.xlane.xlu0 %3560  ;;  %9971 = vrcp.f32 %v3555_v17  ;;  %vm3731_vm8 = vmor %vm3729_vm7, %vm3730_vm6  ;;  %v3720_v30 = vand.u32 2147483648, %v3555_v17  ;;  %v3718_v24 = vand.u32 2147483647, %v3555_v17  ;;  %vm3714_vm12 = vweird.f32 %v3555_v17 }
 0x569   : > { %v3726_v2 = vsub.f32 1.0, %v3725_v3  ;;  %9973 = vrcp.f32 %v3561_v18  ;;  %v3750_v60 = vand.u32 2147483648, %v3561_v18  ;;  %vm3744_vm13 = vweird.f32 %v3561_v18 }
 0x56a   : > { %vm3719_vm2 = vcmp.eq.f32.partialorder %v3718_v24, 8.507059e+37 }
 0x56b   : > { %v3727_v47 = vmul.f32 %v9970_v50, %v3726_v2  ;;  %v3751_v5 = vor.u32 1.1754944e-38, %v3750_v60 }
 0x56d   : > { %v3728_v42 = vadd.f32 %v9970_v50, %v3727_v47 }
 0x56e   : > { %v9972_v53 = vpop.eup %9971 }
 0x56f   : > { %v9974_v4 = vpop.eup %9973  ;;  %v3732_v44 = vsel %vm3731_vm8, %v9970_v50, %v3728_v42  ;;  %v3710_v59 = vmul.f32 %v9972_v53, %v3555_v17  ;;  %v12647_v32 = vpop.permute.xlu2 %9551  ;;  %6460 = vrot.lane.b32.xlu0 %v15344_v51, %s10410_s18  ;;  %vm3715_vm10 = vweird.f32 %v9972_v53  ;;  %v3721_v50 = vor.u32 1.1754944e-38, %v3720_v30  ;;  %v15345_v17 = vld [vmem:[#allocation35_spill] sm:$0xff] }
 0x570   : > { %v3737_v15 = vsel %vm3734_vm9, %v3736_v52, %v3732_v44  ;;  %v3740_v49 = vmul.f32 %v9974_v4, %v3561_v18  ;;  %v12651_v57 = vpop.xlane.xlu1 %3575  ;;  %v9553_v16 = vunpack.i.l.bf16 %v12647_v32  ;;  %v12655_v39 = vpop.xlane.xlu0 %3581  ;;  %vm3745_vm11 = vweird.f32 %v9974_v4  ;;  %vm3716_vm14 = vmor %vm3714_vm12, %vm3715_vm10 }
 0x571   : > { %v3738_v31 = vmul.f32 %v12384_v29, %v3737_v15  ;;  %v3711_v58 = vsub.f32 1.0, %v3710_v59  ;;  %9975 = vrcp.f32 %v12651_v57  ;;  %v3748_v29 = vand.u32 2147483647, %v3561_v18  ;;  %vm3746_vm15 = vmor %vm3744_vm13, %vm3745_vm11  ;;  %v15346_v18 = vld [vmem:[#allocation36_spill] sm:$0xff] }
 0x572   : > { %v3741_v63 = vsub.f32 1.0, %v3740_v49  ;;  %9977 = vrcp.f32 %v12655_v39  ;;  %v3853_v24 = vand.u32 2147483647, %v12655_v39  ;;  %vm3819_vm6 = vweird.f32 %v12651_v57 }
 0x573   : > { %v3712_v1 = vmul.f32 %v9972_v53, %v3711_v58  ;;  %9244 = vmatmul.msk.f32.vlgmr.msrb.gmra.mxu3 %vm1553_vm1, %v3738_v31  ;;  %9979 = vrcp.f32 %v12635_v0  ;;  %vm3749_vm3 = vcmp.eq.f32.partialorder %v3748_v29, 8.507059e+37  ;;  %v3536_v31 = vmul.f32 1.442695, %v3473_v14 }
 0x574   : > { %v3742_v33 = vmul.f32 %v9974_v4, %v3741_v63  ;;  %4502 = vmatpush.msrb.mxu3 %v9553_v16  ;;  %9981 = vrcp.f32 %v12579_v9  ;;  %v3855_v63 = vand.u32 2147483648, %v12655_v39  ;;  %vm3849_vm7 = vweird.f32 %v12655_v39 }
 0x575   : > { %v3713_v34 = vadd.f32 %v9972_v53, %v3712_v1  ;;  %vm3854_vm11 = vcmp.eq.f32.partialorder %v3853_v24, 8.507059e+37  ;;  %vm3999_vm12 = vweird.f32 %v12635_v0 }
 0x576   : > { %v3743_v3 = vadd.f32 %v9974_v4, %v3742_v33 }
 0x577   : > { %v9976_v2 = vpop.eup %9975  ;;  %v3717_v47 = vsel %vm3716_vm14, %v9972_v53, %v3713_v34  ;;  %6423 = vrot.lane.b32.xlu0 %v15345_v17, %s10410_s18 }
 0x578   : > { %v9978_v41 = vpop.eup %9977  ;;  %v3815_v42 = vmul.f32 %v9976_v2, %v12651_v57  ;;  %v3722_v52 = vsel %vm3719_vm2, %v3721_v50, %v3717_v47  ;;  %v3747_v44 = vsel %vm3746_vm15, %v9974_v4, %v3743_v3  ;;  %v12668_v46 = vpop.xlane.xlu0 %3578  ;;  %6495 = vrot.lane.b32.xlu1 %v15346_v18, %s10410_s18  ;;  %v3825_v4 = vand.u32 2147483648, %v12651_v57 }
 0x579   : > { %v3845_v54 = vmul.f32 %v9978_v41, %v12655_v39  ;;  %v3723_v59 = vmul.f32 %v12390_v23, %v3722_v52  ;;  %v3752_v53 = vsel %vm3749_vm3, %v3751_v5, %v3747_v44  ;;  %9983 = vrcp.f32 %v12668_v46  ;;  %v12674_v49 = vpop.eup %9979 }
 0x57a   : > { %v3816_v15 = vsub.f32 1.0, %v3815_v42  ;;  %v3753_v16 = vmul.f32 %v12392_v61, %v3752_v53  ;;  %vm3820_vm4 = vweird.f32 %v9976_v2  ;;  %v3823_v23 = vand.u32 2147483647, %v12651_v57  ;;  %v12681_v60 = vpop.eup %9981 }
 0x57b   : > { %v3846_v58 = vsub.f32 1.0, %v3845_v54  ;;  %9243 = vmatmul.msk.f32.gmra.mxu2 %vm1553_vm1, %v3723_v59  ;;  %9985 = vrcp.f32 %v12643_v25  ;;  %vm3850_vm5 = vweird.f32 %v9978_v41  ;;  %v3995_v33 = vmul.f32 %v12674_v49, %v12635_v0  ;;  %vm3821_vm8 = vmor %vm3819_vm6, %vm3820_vm4 }
 0x57c   : > { %v3817_v30 = vmul.f32 %v9976_v2, %v3816_v15  ;;  %9245 = vmatmul.msk.f32.gmra.mxu3 %vm1553_vm1, %v3753_v16  ;;  %9987 = vrcp.f32 %v12619_v10  ;;  %v3826_v34 = vor.u32 1.1754944e-38, %v3825_v4  ;;  %v3905_v50 = vmul.f32 %v12681_v60, %v12579_v9  ;;  %vm3851_vm9 = vmor %vm3849_vm7, %vm3850_vm5 }
 0x57d   : > { %v3847_v1 = vmul.f32 %v9978_v41, %v3846_v58  ;;  %9989 = vpow2.f32 %v3536_v31  ;;  %v3856_v3 = vor.u32 1.1754944e-38, %v3855_v63  ;;  %vm3824_vm10 = vcmp.eq.f32.partialorder %v3823_v23, 8.507059e+37 }
 0x57e   : > { %v3818_v61 = vadd.f32 %v9976_v2, %v3817_v30  ;;  %v3996_v44 = vsub.f32 1.0, %v3995_v33  ;;  %v9554_v53 = vunpack.i.h.bf16 %v12647_v32  ;;  %v3906_v31 = vsub.f32 1.0, %v3905_v50 }
 0x57f   : > { %v3848_v29 = vadd.f32 %v9978_v41, %v3847_v1  ;;  %v9984_v14 = vpop.eup %9983  ;;  %v3472_v4 = vsub.f32 %v12313_v13, %v12446_v45  ;;  %v3840_v16 = vand.u32 2147483648, %v12668_v46  ;;  %v4003_v23 = vand.u32 2147483647, %v12635_v0 }
 0x580   : > { %v3822_v5 = vsel %vm3821_vm8, %v9976_v2, %v3818_v61  ;;  %v3830_v57 = vmul.f32 %v9984_v14, %v12668_v46  ;;  %v12695_v52 = vpop.xlane.xlu0 %3584  ;;  %v3997_v32 = vmul.f32 %v12674_v49, %v3996_v44  ;;  %vm3835_vm13 = vweird.f32 %v9984_v14 }
 0x581   : > { %v3852_v47 = vsel %vm3851_vm9, %v9978_v41, %v3848_v29  ;;  %v3827_v42 = vsel %vm3824_vm10, %v3826_v34, %v3822_v5  ;;  %9991 = vrcp.f32 %v12695_v52  ;;  %v12699_v59 = vpop.eup %9985  ;;  %v4005_v1 = vand.u32 2147483648, %v12635_v0 }
 0x582   : > { %v3857_v39 = vsel %vm3854_vm11, %v3856_v3, %v3852_v47  ;;  %v3828_v54 = vmul.f32 %v12401_v19, %v3827_v42  ;;  %v3831_v15 = vsub.f32 1.0, %v3830_v57  ;;  %v12703_v41 = vpop.eup %9987  ;;  %v3920_v63 = vmul.f32 %v12699_v59, %v12643_v25 }
 0x583   : > { %v3858_v2 = vmul.f32 %v12403_v20, %v3857_v39  ;;  %v12706_v58 = vpop.eup %9989  ;;  %v3838_v20 = vand.u32 2147483647, %v12668_v46  ;;  %v4010_v30 = vmul.f32 %v12703_v41, %v12619_v10  ;;  %9993 = vrcp.f32 %v12626_v43 }
 0x584   : > { %9250 = vmatmul.msk.f32.vlgmr.msra.gmra.mxu2 %vm1553_vm1, %v3828_v54  ;;  %v3832_v19 = vmul.f32 %v9984_v14, %v3831_v15  ;;  %v3907_v24 = vmul.f32 %v12681_v60, %v3906_v31  ;;  %vm3834_vm14 = vweird.f32 %v12668_v46  ;;  %vm4000_vm15 = vweird.f32 %v12674_v49 }
 0x585   : > { %9252 = vmatmul.msk.f32.vlgmr.msra.gmra.mxu3 %vm1553_vm1, %v3858_v2  ;;  %4601 = vmatpush.msra.mxu2 %v9554_v53  ;;  %vm3836_vm2 = vmor %vm3834_vm14, %vm3835_vm13  ;;  %v3841_v61 = vor.u32 1.1754944e-38, %v3840_v16  ;;  %v3998_v50 = vadd.f32 %v12674_v49, %v3997_v32  ;;  %vm3839_vm3 = vcmp.eq.f32.partialorder %v3838_v20, 8.507059e+37  ;;  %v3631_v5 = vsel %vm1553_vm1, %v12706_v58, 0.0 }
 0x586   : > { %v3833_v45 = vadd.f32 %v9984_v14, %v3832_v19  ;;  %v3921_v47 = vsub.f32 1.0, %v3920_v63  ;;  %v4011_v42 = vsub.f32 1.0, %v4010_v30  ;;  %v3908_v44 = vadd.f32 %v12681_v60, %v3907_v24  ;;  %vm12744_vm6 = vmor %vm3999_vm12, %vm4000_vm15 }
 0x587   : > { %v9992_v13 = vpop.eup %9991  ;;  %v12724_v33 = vpop.permute.xlu1 %9556  ;;  %vm3910_vm4 = vweird.f32 %v12681_v60  ;;  %v3870_v39 = vand.u32 2147483648, %v12695_v52  ;;  %v3868_v15 = vand.u32 2147483647, %v12695_v52  ;;  %v3534_v31 = vmul.f32 1.442695, %v3472_v4 }
 0x588   : > { %v3860_v29 = vmul.f32 %v9992_v13, %v12695_v52  ;;  %v9559_v34 = vunpack.i.h.bf16 %v12724_v33  ;;  %v3837_v3 = vsel %vm3836_vm2, %v9984_v14, %v3833_v45  ;;  %v3915_v14 = vand.u32 2147483648, %v12579_v9 }
 0x589   : > { %v3842_v57 = vsel %vm3839_vm3, %v3841_v61, %v3837_v3  ;;  %v12736_v53 = vpop.eup %9993  ;;  %vm3865_vm5 = vweird.f32 %v9992_v13  ;;  %vm12748_vm7 = vcmp.eq.f32.partialorder %v4003_v23, 8.507059e+37  ;;  %vm3909_vm8 = vweird.f32 %v12579_v9 }
 0x58a   : > { %v3861_v46 = vsub.f32 1.0, %v3860_v29  ;;  %4634 = vmatpush.msra.mxu3 %v9559_v34  ;;  %v3843_v54 = vmul.f32 %v12416_v27, %v3842_v57  ;;  %v3913_v27 = vand.u32 2147483647, %v12579_v9  ;;  %v4002_v4 = vsel %vm12744_vm6, %v12674_v49, %v3998_v50  ;;  %vm12761_vm9 = vmor %vm3909_vm8, %vm3910_vm4 }
 0x58b   : > { %v3922_v0 = vmul.f32 %v12699_v59, %v3921_v47  ;;  %vm3864_vm10 = vweird.f32 %v12695_v52  ;;  %v4012_v9 = vmul.f32 %v12703_v41, %v4011_v42  ;;  %v4025_v63 = vmul.f32 %v12736_v53, %v12626_v43 }
 0x58c   : > { %v3862_v2 = vmul.f32 %v9992_v13, %v3861_v46  ;;  %9251 = vmatmul.msk.f32.gmra.mxu2 %vm1553_vm1, %v3843_v54  ;;  %v3912_v49 = vsel %vm12761_vm9, %v12681_v60, %v3908_v44  ;;  %vm3866_vm11 = vmor %vm3864_vm10, %vm3865_vm5  ;;  %v3871_v30 = vor.u32 1.1754944e-38, %v3870_v39  ;;  %v4006_v45 = vor.u32 1.1754944e-38, %v4005_v1 }
 0x58d   : > { %v3916_v23 = vor.u32 1.1754944e-38, %v3915_v14  ;;  %vm3869_vm12 = vcmp.eq.f32.partialorder %v3868_v15, 8.507059e+37  ;;  %vm3924_vm13 = vweird.f32 %v12643_v25  ;;  %v3930_v52 = vand.u32 2147483648, %v12643_v25  ;;  %v15357_v15 = vld [vmem:[#allocation37_spill] sm:$0xff] }
 0x58e   : > { %3632 = vadd.xlane.f32.xlu2 %v3631_v5  ;;  %v3863_v20 = vadd.f32 %v9992_v13, %v3862_v2  ;;  %vm3914_vm14 = vcmp.eq.f32.partialorder %v3913_v27, 8.507059e+37  ;;  %v4007_v29 = vsel %vm12748_vm7, %v4006_v45, %v4002_v4  ;;  %vm3925_vm15 = vweird.f32 %v12699_v59 }
 0x58f   : > { %v3917_v34 = vsel %vm3914_vm14, %v3916_v23, %v3912_v49  ;;  %vm4015_vm2 = vweird.f32 %v12703_v41  ;;  %v4026_v1 = vsub.f32 1.0, %v4025_v63  ;;  %v4013_v3 = vadd.f32 %v12703_v41, %v4012_v9  ;;  %vm12788_vm3 = vmor %vm3924_vm13, %vm3925_vm15  ;;  %v12836_v63 = vpop.permute.xlu2 %6388  ;;  %v15362_v49 = vld [vmem:[#allocation45_spill] sm:$0xff]  ;;  %v12847_v45 = vpop.permute.xlu1 %6386  ;;  %v15363_v23 = vld [vmem:[#allocation31_spill] sm:$0xff] }
 0x590   : > { %v3867_v24 = vsel %vm3866_vm11, %v9992_v13, %v3863_v20  ;;  %v3923_v13 = vadd.f32 %v12699_v59, %v3922_v0  ;;  %v4020_v5 = vand.u32 2147483648, %v12619_v10  ;;  %v3928_v46 = vand.u32 2147483647, %v12643_v25  ;;  %15360 = vst [vmem:[#allocation105_spill] sm:$0xff] %v12836_v63 }
 0x591   : > { %v3872_v61 = vsel %vm3869_vm12, %v3871_v30, %v3867_v24  ;;  %v4008_v57 = vmul.f32 %v12317_v48, %v4007_v29  ;;  %vm4014_vm4 = vweird.f32 %v12619_v10  ;;  %v3918_v44 = vmul.f32 %v12373_v62, %v3917_v34  ;;  %v15366_v34 = vld [vmem:[#allocation52_spill] sm:$0xff] }
 0x592   : > { %v3873_v60 = vmul.f32 %v12424_v12, %v3872_v61  ;;  %v4018_v39 = vand.u32 2147483647, %v12619_v10  ;;  %vm12797_vm5 = vmor %vm4014_vm4, %vm4015_vm2  ;;  %v9558_v48 = vunpack.i.l.bf16 %v12724_v33  ;;  %v4027_v25 = vmul.f32 %v12736_v53, %v4026_v1 }
 0x593   : > { %v9547_v50 = vpop.permute.xlu0 %9546  ;;  %v3927_v62 = vsel %vm12788_vm3, %v12699_v59, %v3923_v13  ;;  %v4017_v10 = vsel %vm12797_vm5, %v12703_v41, %v4013_v3  ;;  %v3471_v14 = vsub.f32 %v12301_v7, %v12432_v36  ;;  %9995 = vpow2.f32 %v3534_v31  ;;  %v15358_v31 = vld [vmem:[#allocation97_spill] sm:$0xff] }
 0x594   : > { %v9549_v47 = vunpack.i.h.bf16 %v9547_v50  ;;  %v9548_v42 = vunpack.i.l.bf16 %v9547_v50  ;;  %9253 = vmatmul.msk.f32.gmra.mxu3 %vm1553_vm1, %v3873_v60  ;;  %v3931_v33 = vor.u32 1.1754944e-38, %v3930_v52  ;;  %v4021_v2 = vor.u32 1.1754944e-38, %v4020_v5 }
 0x595   : > { %vm3929_vm6 = vcmp.eq.f32.partialorder %v3928_v46, 8.507059e+37  ;;  %vm4019_vm7 = vcmp.eq.f32.partialorder %v4018_v39, 8.507059e+37  ;;  %v4028_v19 = vadd.f32 %v12736_v53, %v4027_v25  ;;  %vm4030_vm8 = vweird.f32 %v12736_v53  ;;  %v15367_v46 = vld [vmem:[#allocation49_spill] sm:$0xff]  ;;  %v15369_v25 = vld [vmem:[#allocation12_spill] sm:$0xff] }
 0x596   : > { %4436 = vmatpush.msrb.mxu1 %v9548_v42  ;;  %4535 = vmatpush.msra.mxu0 %v9549_v47  ;;  %v3932_v59 = vsel %vm3929_vm6, %v3931_v33, %v3927_v62  ;;  %v4022_v41 = vsel %vm4019_vm7, %v4021_v2, %v4017_v10  ;;  %v3532_v7 = vmul.f32 1.442695, %v3471_v14  ;;  %v4035_v36 = vand.u32 2147483648, %v12626_v43  ;;  %v15370_v10 = vld [vmem:[#allocation59_spill] sm:$0xff] }
 0x597   : > { %9256 = vmatmul.msk.f32.vlgmr.msrb.gmra.mxu1 %vm1553_vm1, %v3918_v44  ;;  %9262 = vmatmul.msk.f32.vlgmr.msra.gmra.mxu0 %vm1553_vm1, %v4008_v57  ;;  %vm4029_vm9 = vweird.f32 %v12626_v43  ;;  %v4023_v16 = vmul.f32 %v15358_v31, %v4022_v41  ;;  %v12853_v29 = vpop.permute.xlu1 %6421 }
 0x598   : > { %4568 = vmatpush.msra.mxu1 %v9558_v48  ;;  %9270 = vmatpush.xpose.msk.msrb.mxu0 %vm378_vm0, %v15341_v35  ;;  %v4033_v35 = vand.u32 2147483647, %v12626_v43  ;;  %vm4031_vm10 = vmor %vm4029_vm9, %vm4030_vm8  ;;  %9997 = vpow2.f32 %v3532_v7  ;;  %v4036_v0 = vor.u32 1.1754944e-38, %v4035_v36  ;;  %15365 = vst [vmem:[#allocation68_spill] sm:$0xff] %v12853_v29 }
 0x599   : > { %v12826_v27 = vpop.eup %9995  ;;  %v4032_v4 = vsel %vm4031_vm10, %v12736_v53, %v4028_v19  ;;  %v15361_v53 = vld [vmem:[#allocation39_spill] sm:$0xff] }
 0x59a   : > { %9273 = vmatpush.xpose.msk.msrb.mxu1 %vm378_vm0, %v15343_v11  ;;  %v3933_v11 = vmul.f32 %v12331_v26, %v3932_v59  ;;  %vm4034_vm11 = vcmp.eq.f32.partialorder %v4033_v35, 8.507059e+37  ;;  %v3628_v32 = vsel %vm1553_vm1, %v12826_v27, 0.0  ;;  %v15359_v26 = vld [vmem:[#allocation104_spill] sm:$0xff]  ;;  %v15371_v35 = vld [vmem:[#allocation13_spill] sm:$0xff] }
 0x59b   : > { %v4037_v43 = vsel %vm4034_vm11, %v4036_v0, %v4032_v4 }
 0x59c   : > { %9282 = vmatpush.xpose.msk.msra.mxu0 %vm378_vm0, %v15357_v15  ;;  %v4038_v20 = vmul.f32 %v15359_v26, %v4037_v43 }
 0x59e   : > { %v12834_v9 = vpop.eup %9997 }
 0x59f   : > { %9257 = vmatmul.msk.f32.gmra.mxu1 %vm1553_vm1, %v3933_v11  ;;  %9263 = vmatmul.msk.f32.gmra.mxu0 %vm1553_vm1, %v4023_v16  ;;  %v3625_v30 = vsel %vm1553_vm1, %v12834_v9, 0.0  ;;  %v12862_v39 = vpop.permute.xlu1 %6456 }
 0x5a0   : > { %15368 = vst [vmem:[#allocation113_spill] sm:$0xff] %v12862_v39 }
 0x5a2   : > { %3629 = vadd.xlane.f32.xlu1 %v3628_v32 }
 0x5a7   : > { %9264 = vmatmul.msk.f32.vlgmr.msra.gmra.mxu1 %vm1553_vm1, %v4038_v20  ;;  %9271 = vmatmul.msk.f32.vlgmr.msrb.gmra.mxu0 %vm378_vm0, %v15330_v6  ;;  %v15364_v6 = vld [vmem:[#allocation47_spill] sm:$0xff] }
 0x5a8   : > { %9285 = vmatpush.xpose.msk.msra.mxu1 %vm378_vm0, %v15361_v53  ;;  %9294 = vmatpush.xpose.msk.msrb.mxu0 %vm378_vm0, %v15362_v49 }
 0x5aa   : > { %3626 = vadd.xlane.f32.xlu1 %v3625_v30 }
 0x5af   : > { %9272 = vmatmul.msk.f32.gmra.mxu0 %vm378_vm0, %v15363_v23 }
 0x5b0   : > { %v3606_v24 = vpop.xlane.xlu2 %3605 }
 0x5b1   : > { %9999 = vrcp.f32 %v3606_v24  ;;  %v3975_v1 = vand.u32 2147483648, %v3606_v24  ;;  %v3973_v13 = vand.u32 2147483647, %v3606_v24  ;;  %vm3969_vm13 = vweird.f32 %v3606_v24 }
 0x5b3   : > { %v3976_v5 = vor.u32 1.1754944e-38, %v3975_v1  ;;  %vm3974_vm15 = vcmp.eq.f32.partialorder %v3973_v13, 8.507059e+37 }
 0x5b7   : > { %v10000_v52 = vpop.eup %9999  ;;  %9283 = vmatmul.msk.f32.vlgmr.msra.gmra.mxu0 %vm378_vm0, %v15364_v6 }
 0x5b8   : > { %v3965_v61 = vmul.f32 %v10000_v52, %v3606_v24  ;;  %9306 = vmatpush.xpose.msk.msra.mxu0 %vm378_vm0, %v15366_v34  ;;  %vm3970_vm12 = vweird.f32 %v10000_v52  ;;  %v12859_v12 = vpop.xlane.xlu2 %3602 }
 0x5b9   : > { %vm3971_vm14 = vmor %vm3969_vm13, %vm3970_vm12  ;;  %vm3954_vm11 = vweird.f32 %v12859_v12 }
 0x5ba   : > { %v3966_v60 = vsub.f32 1.0, %v3965_v61 }
 0x5bc   : > { %v3967_v50 = vmul.f32 %v10000_v52, %v3966_v60  ;;  %v15373_v60 = vld [vmem:[#allocation74_spill] sm:$0xff] }
 0x5be   : > { %v3968_v3 = vadd.f32 %v10000_v52, %v3967_v50  ;;  %v3621_v47 = vpop.xlane.xlu0 %3620 }
 0x5bf   : > { %10001 = vrcp.f32 %v3621_v47  ;;  %9284 = vmatmul.msk.f32.gmra.mxu0 %vm378_vm0, %v15367_v46  ;;  %v4050_v14 = vand.u32 2147483648, %v3621_v47  ;;  %v4048_v41 = vand.u32 2147483647, %v3621_v47  ;;  %vm4044_vm3 = vweird.f32 %v3621_v47 }
 0x5c0   : > { %v3972_v42 = vsel %vm3971_vm14, %v10000_v52, %v3968_v3  ;;  %10003 = vrcp.f32 %v12859_v12  ;;  %v12873_v2 = vpop.xlane.xlu2 %3623  ;;  %v12892_v3 = vpop.f32.mrf.mxu0 }
 0x5c1   : > { %v3977_v57 = vsel %vm3974_vm15, %v3976_v5, %v3972_v42  ;;  %v4051_v7 = vor.u32 1.1754944e-38, %v4050_v14  ;;  %vm4049_vm5 = vcmp.eq.f32.partialorder %v4048_v41, 8.507059e+37  ;;  %15374 = vst [vmem:[#allocation72_spill] sm:$0xff] %v12892_v3 }
 0x5c2   : > { %v3978_v44 = vmul.f32 %v12537_v8, %v3977_v57  ;;  %v3960_v57 = vand.u32 2147483648, %v12859_v12 }
 0x5c4   : > { %9260 = vmatmul.msk.f32.vlgmr.msrb.gmra.mxu3 %vm1553_vm1, %v3978_v44 }
 0x5c5   : > { %9279 = vmatpush.xpose.msk.msrb.mxu3 %vm378_vm0, %v15346_v18  ;;  %v10002_v54 = vpop.eup %10001 }
 0x5c6   : > { %v4040_v48 = vmul.f32 %v10002_v54, %v3621_v47  ;;  %v12871_v33 = vpop.eup %10003  ;;  %vm4045_vm2 = vweird.f32 %v10002_v54 }
 0x5c7   : > { %9295 = vmatmul.msk.f32.vlgmr.msrb.gmra.mxu0 %vm378_vm0, %v15369_v25  ;;  %v3950_v19 = vmul.f32 %v12871_v33, %v12859_v12  ;;  %vm4046_vm4 = vmor %vm4044_vm3, %vm4045_vm2  ;;  %vm3955_vm8 = vweird.f32 %v12871_v33 }
 0x5c8   : > { %v4041_v62 = vsub.f32 1.0, %v4040_v48  ;;  %5943 = vmatpush.msrb.mxu0 %v15370_v10  ;;  %vm12900_vm12 = vmor %vm3954_vm11, %vm3955_vm8  ;;  %v12959_v48 = vpop.f32.mrf.mxu1 }
 0x5c9   : > { %v3951_v4 = vsub.f32 1.0, %v3950_v19  ;;  %15395 = vst [vmem:[#allocation94_spill] sm:$0xff] %v12959_v48 }
 0x5ca   : > { %v4042_v8 = vmul.f32 %v10002_v54, %v4041_v62  ;;  %v3600_v59 = vpop.xlane.xlu1 %3599 }
 0x5cb   : > { %10005 = vrcp.f32 %v3600_v59  ;;  %v3952_v20 = vmul.f32 %v12871_v33, %v3951_v4  ;;  %v3945_v30 = vand.u32 2147483648, %v3600_v59  ;;  %v3943_v52 = vand.u32 2147483647, %v3600_v59  ;;  %v12920_v4 = vpop.f32.mrf.mxu0 }
 0x5cc   : > { %v4043_v18 = vadd.f32 %v10002_v54, %v4042_v8  ;;  %10007 = vrcp.f32 %v12873_v2  ;;  %vm3939_vm7 = vweird.f32 %v3600_v59  ;;  %v3958_v8 = vand.u32 2147483647, %v12859_v12  ;;  %15379 = vst [vmem:[#allocation117_spill] sm:$0xff] %v12920_v4  ;;  %v15425_v4 = vld [vmem:[#allocation24_spill] sm:$0xff] }
 0x5cd   : > { %v3946_v50 = vor.u32 1.1754944e-38, %v3945_v30  ;;  %v3953_v13 = vadd.f32 %v12871_v33, %v3952_v20  ;;  %vm3944_vm10 = vcmp.eq.f32.partialorder %v3943_v52, 8.507059e+37 }
 0x5ce   : > { %v4047_v36 = vsel %vm4046_vm4, %v10002_v54, %v4043_v18  ;;  %v15375_v54 = vld [vmem:[#allocation46_spill] sm:$0xff]  ;;  %vm3959_vm15 = vcmp.eq.f32.partialorder %v3958_v8, 8.507059e+37 }
 0x5cf   : > { %9296 = vmatmul.msk.f32.gmra.mxu0 %vm378_vm0, %v15371_v35  ;;  %v4052_v11 = vsel %vm4049_vm5, %v4051_v7, %v4047_v36  ;;  %v3961_v7 = vor.u32 1.1754944e-38, %v3960_v57  ;;  %vm4059_vm5 = vweird.f32 %v12873_v2 }
 0x5d0   : > { %v4053_v31 = vmul.f32 %v12601_v37, %v4052_v11  ;;  %v15372_v37 = vld [vmem:[#allocation20_spill] sm:$0xff] }
 0x5d1   : > { %v10006_v16 = vpop.eup %10005  ;;  %v13126_v39 = vpop.permute.xlu0 %6390 }
 0x5d2   : > { %v3935_v0 = vmul.f32 %v10006_v16, %v3600_v59  ;;  %9265 = vmatmul.msk.f32.gmra.mxu1 %vm1553_vm1, %v4053_v31  ;;  %v3609_v32 = vpop.xlane.xlu1 %3608  ;;  %v12882_v43 = vpop.eup %10007  ;;  %vm3940_vm6 = vweird.f32 %v10006_v16 }
 0x5d3   : > { %10009 = vrcp.f32 %v3609_v32  ;;  %v4055_v23 = vmul.f32 %v12882_v43, %v12873_v2  ;;  %vm3941_vm9 = vmor %vm3939_vm7, %vm3940_vm6  ;;  %v3990_v59 = vand.u32 2147483648, %v3609_v32  ;;  %v3988_v19 = vand.u32 2147483647, %v3609_v32 }
 0x5d4   : > { %v3936_v26 = vsub.f32 1.0, %v3935_v0  ;;  %vm3984_vm14 = vweird.f32 %v3609_v32  ;;  %vm4060_vm3 = vweird.f32 %v12882_v43  ;;  %v4063_v0 = vand.u32 2147483647, %v12873_v2 }
 0x5d5   : > { %v4056_v5 = vsub.f32 1.0, %v4055_v23  ;;  %v3991_v36 = vor.u32 1.1754944e-38, %v3990_v59  ;;  %vm3989_vm4 = vcmp.eq.f32.partialorder %v3988_v19, 8.507059e+37  ;;  %vm4061_vm6 = vmor %vm4059_vm5, %vm4060_vm3  ;;  %v15380_v23 = vld [vmem:[#allocation51_spill] sm:$0xff] }
 0x5d6   : > { %v3937_v24 = vmul.f32 %v10006_v16, %v3936_v26  ;;  %vm4064_vm7 = vcmp.eq.f32.partialorder %v4063_v0, 8.507059e+37 }
 0x5d7   : > { %9307 = vmatmul.msk.f32.vlgmr.msra.gmra.mxu0 %vm378_vm0, %v15372_v37  ;;  %v4057_v41 = vmul.f32 %v12882_v43, %v4056_v5  ;;  %v15391_v5 = vld [vmem:[#allocation22_spill] sm:$0xff] }
 0x5d8   : > { %v3938_v61 = vadd.f32 %v10006_v16, %v3937_v24  ;;  %6059 = vmatpush.msra.mxu0 %v15373_v60  ;;  %v15381_v24 = vld [vmem:[#allocation54_spill] sm:$0xff] }
 0x5d9   : > { %v10010_v1 = vpop.eup %10009  ;;  %v4058_v11 = vadd.f32 %v12882_v43, %v4057_v41 }
 0x5da   : > { %v3942_v47 = vsel %vm3941_vm9, %v10006_v16, %v3938_v61  ;;  %v3980_v42 = vmul.f32 %v10010_v1, %v3609_v32  ;;  %9274 = vmatmul.msk.f32.vlgmr.msrb.gmra.mxu1 %vm378_vm0, %v15331_v22  ;;  %v3957_v22 = vsel %vm12900_vm12, %v12871_v33, %v3953_v13  ;;  %vm3985_vm13 = vweird.f32 %v10010_v1  ;;  %v15386_v61 = vld [vmem:[#allocation14_spill] sm:$0xff]  ;;  %v12950_v13 = vpop.permute.xlu2 %6458 }
 0x5db   : > { %v3947_v44 = vsel %vm3944_vm10, %v3946_v50, %v3942_v47  ;;  %9297 = vmatpush.xpose.msk.msrb.mxu1 %vm378_vm0, %v15375_v54  ;;  %vm3986_vm2 = vmor %vm3984_vm14, %vm3985_vm13  ;;  %v3962_v33 = vsel %vm3959_vm15, %v3961_v7, %v3957_v22  ;;  %v4062_v20 = vsel %vm4061_vm6, %v12882_v43, %v4058_v11  ;;  %v15384_v43 = vld [vmem:[#allocation53_spill] sm:$0xff]  ;;  %15390 = vst [vmem:[#allocation73_spill] sm:$0xff] %v12950_v13  ;;  %v12965_v22 = vpop.f32.mrf.mxu1 }
 0x5dc   : > { %v3948_v62 = vmul.f32 %v12624_v21, %v3947_v44  ;;  %v3981_v14 = vsub.f32 1.0, %v3980_v42  ;;  %v15378_v21 = vld [vmem:[#allocation21_spill] sm:$0xff]  ;;  %v3963_v32 = vmul.f32 %v12582_v28, %v3962_v33  ;;  %15398 = vst [vmem:[#allocation87_spill] sm:$0xff] %v12965_v22 }
 0x5dd   : > { %v15392_v47 = vld [vmem:[#allocation77_spill] sm:$0xff] }
 0x5de   : > { %v3982_v18 = vmul.f32 %v10010_v1, %v3981_v14  ;;  %9258 = vmatmul.msk.f32.vlgmr.msrb.gmra.mxu2 %vm1553_vm1, %v3948_v62  ;;  %v15396_v62 = vld [vmem:[#allocation23_spill] sm:$0xff] }
 0x5df   : > { %9276 = vmatpush.xpose.msk.msrb.mxu2 %vm378_vm0, %v15344_v51  ;;  %9308 = vmatmul.msk.f32.gmra.mxu0 %vm378_vm0, %v15378_v21  ;;  %v4065_v51 = vand.u32 2147483648, %v12873_v2  ;;  %v12934_v2 = vpop.f32.mrf.mxu0 }
 0x5e0   : > { %v3983_v12 = vadd.f32 %v10010_v1, %v3982_v18  ;;  %15382 = vst [vmem:[#allocation121_spill] sm:$0xff] %v12934_v2 }
 0x5e2   : > { %9275 = vmatmul.msk.f32.gmra.mxu1 %vm378_vm0, %v15345_v17  ;;  %v3987_v31 = vsel %vm3986_vm2, %v10010_v1, %v3983_v12  ;;  %v4066_v17 = vor.u32 1.1754944e-38, %v4065_v51  ;;  %v15387_v1 = vld [vmem:[#allocation63_spill] sm:$0xff] }
 0x5e3   : > { %v3992_v16 = vsel %vm3989_vm4, %v3991_v36, %v3987_v31  ;;  %v12969_v51 = vpop.f32.mrf.mxu1 }
 0x5e4   : > { %v3993_v26 = vmul.f32 %v12633_v55, %v3992_v16  ;;  %v4067_v30 = vsel %vm4064_vm7, %v4066_v17, %v4062_v20  ;;  %v15383_v55 = vld [vmem:[#allocation41_spill] sm:$0xff]  ;;  %15400 = vst [vmem:[#allocation65_spill] sm:$0xff] %v12969_v51 }
 0x5e5   : > { %v4068_v28 = vmul.f32 %v12610_v38, %v4067_v30  ;;  %v15389_v38 = vld [vmem:[#allocation15_spill] sm:$0xff] }
 0x5e6   : > { %9259 = vmatmul.msk.f32.gmra.mxu2 %vm1553_vm1, %v3963_v32  ;;  %9261 = vmatmul.msk.f32.gmra.mxu3 %vm1553_vm1, %v3993_v26 }
 0x5e7   : > { %v12941_v52 = vpop.f32.mrf.mxu0 }
 0x5e8   : > { %15385 = vst [vmem:[#allocation93_spill] sm:$0xff] %v12941_v52 }
 0x5ea   : > { %9286 = vmatmul.msk.f32.vlgmr.msra.gmra.mxu1 %vm378_vm0, %v15380_v23  ;;  %v12957_v44 = vpop.permute.xlu1 %6495 }
 0x5eb   : > { %9309 = vmatpush.xpose.msk.msra.mxu1 %vm378_vm0, %v15381_v24  ;;  %15394 = vst [vmem:[#allocation76_spill] sm:$0xff] %v12957_v44 }
 0x5ee   : > { %9266 = vmatmul.msk.f32.vlgmr.msra.gmra.mxu2 %vm1553_vm1, %v4068_v28 }
 0x5ef   : > { %9288 = vmatpush.xpose.msk.msra.mxu2 %vm378_vm0, %v15383_v55  ;;  %v12946_v50 = vpop.f32.mrf.mxu0 }
 0x5f0   : > { %15388 = vst [vmem:[#allocation90_spill] sm:$0xff] %v12946_v50 }
 0x5f2   : > { %9287 = vmatmul.msk.f32.gmra.mxu1 %vm378_vm0, %v15384_v43 }
 0x5f7   : > { %v12955_v42 = vpop.f32.mrf.mxu0 }
 0x5f8   : > { %15393 = vst [vmem:[#allocation114_spill] sm:$0xff] %v12955_v42 }
 0x5fa   : > { %9298 = vmatmul.msk.f32.vlgmr.msrb.gmra.mxu1 %vm378_vm0, %v15386_v61 }
 0x5fb   : > { %5972 = vmatpush.msrb.mxu1 %v15387_v1 }
 0x601   : > { %v3633_v57 = vpop.xlane.xlu2 %3632 }
 0x602   : > { %9299 = vmatmul.msk.f32.gmra.mxu1 %vm378_vm0, %v15389_v38  ;;  %10011 = vrcp.f32 %v3633_v57  ;;  %vm4104_vm13 = vweird.f32 %v3633_v57 }
 0x608   : > { %v10012_v8 = vpop.eup %10011 }
 0x609   : > { %v4100_v41 = vmul.f32 %v10012_v8, %v3633_v57  ;;  %vm4105_vm10 = vweird.f32 %v10012_v8 }
 0x60a   : > { %9310 = vmatmul.msk.f32.vlgmr.msra.gmra.mxu1 %vm378_vm0, %v15391_v5  ;;  %vm12977_vm14 = vmor %vm4104_vm13, %vm4105_vm10 }
 0x60b   : > { %6088 = vmatpush.msra.mxu1 %v15392_v47  ;;  %v4101_v19 = vsub.f32 1.0, %v4100_v41 }
 0x60d   : > { %v4102_v11 = vmul.f32 %v10012_v8, %v4101_v19 }
 0x60f   : > { %v4103_v30 = vadd.f32 %v10012_v8, %v4102_v11 }
 0x612   : > { %9311 = vmatmul.msk.f32.gmra.mxu1 %vm378_vm0, %v15396_v62 }
 0x614   : > { %v12963_v14 = vpop.f32.mrf.mxu0 }
 0x615   : > { %15397 = vst [vmem:[#allocation120_spill] sm:$0xff] %v12963_v14  ;;  %v3630_v59 = vpop.xlane.xlu1 %3629  ;;  %v15420_v14 = vld [vmem:[#allocation18_spill] sm:$0xff] }
 0x616   : > { %10013 = vrcp.f32 %v3630_v59  ;;  %v4095_v31 = vand.u32 2147483648, %v3630_v59  ;;  %v4093_v0 = vand.u32 2147483647, %v3630_v59  ;;  %vm4089_vm9 = vweird.f32 %v3630_v59 }
 0x618   : > { %v4096_v20 = vor.u32 1.1754944e-38, %v4095_v31  ;;  %vm4094_vm12 = vcmp.eq.f32.partialorder %v4093_v0, 8.507059e+37 }
 0x61c   : > { %v10014_v18 = vpop.eup %10013  ;;  %v12967_v7 = vpop.f32.mrf.mxu0 }
 0x61d   : > { %15399 = vst [vmem:[#allocation91_spill] sm:$0xff] %v12967_v7  ;;  %v4085_v12 = vmul.f32 %v10014_v18, %v3630_v59  ;;  %v3627_v36 = vpop.xlane.xlu1 %3626  ;;  %vm4090_vm8 = vweird.f32 %v10014_v18 }
 0x61e   : > { %10015 = vrcp.f32 %v3627_v36  ;;  %vm4091_vm11 = vmor %vm4089_vm9, %vm4090_vm8  ;;  %v4080_v11 = vand.u32 2147483648, %v3627_v36  ;;  %v4078_v0 = vand.u32 2147483647, %v3627_v36  ;;  %vm4074_vm2 = vweird.f32 %v3627_v36 }
 0x61f   : > { %v4086_v33 = vsub.f32 1.0, %v4085_v12  ;;  %v4110_v12 = vand.u32 2147483648, %v3633_v57 }
 0x620   : > { %vm4079_vm5 = vcmp.eq.f32.partialorder %v4078_v0, 8.507059e+37  ;;  %v15410_v0 = vld [vmem:[#allocation44_spill] sm:$0xff] }
 0x621   : > { %v4087_v16 = vmul.f32 %v10014_v18, %v4086_v33 }
 0x623   : > { %v4088_v32 = vadd.f32 %v10014_v18, %v4087_v16  ;;  %v4108_v16 = vand.u32 2147483647, %v3633_v57 }
 0x624   : > { %v10016_v26 = vpop.eup %10015  ;;  %v12971_v17 = vpop.f32.mrf.mxu0 }
 0x625   : > { %v4092_v28 = vsel %vm4091_vm11, %v10014_v18, %v4088_v32  ;;  %v4070_v41 = vmul.f32 %v10016_v26, %v3627_v36  ;;  %v5154_v19 = vsel %vm1553_vm1, %v12971_v17, -inf  ;;  %vm4075_vm15 = vweird.f32 %v10016_v26 }
 0x626   : > { %v4097_v7 = vsel %vm4094_vm12, %v4096_v20, %v4092_v28  ;;  %5155 = vmax.xlane.f32.xlu1 %v5154_v19  ;;  %v4107_v32 = vsel %vm12977_vm14, %v10012_v8, %v4103_v30  ;;  %v4111_v20 = vor.u32 1.1754944e-38, %v4110_v12  ;;  %v15403_v28 = vld [vmem:[#allocation43_spill] sm:$0xff]  ;;  %vm4109_vm3 = vcmp.eq.f32.partialorder %v4108_v16, 8.507059e+37  ;;  %vm4076_vm4 = vmor %vm4074_vm2, %vm4075_vm15 }
 0x627   : > { %v4098_v33 = vmul.f32 %v12826_v27, %v4097_v7  ;;  %v4071_v59 = vsub.f32 1.0, %v4070_v41  ;;  %v12986_v27 = vpop.f32.mrf.mxu1  ;;  %v4081_v7 = vor.u32 1.1754944e-38, %v4080_v11 }
 0x628   : > { %15404 = vst [vmem:[#allocation78_spill] sm:$0xff] %v12986_v27  ;;  %v4112_v19 = vsel %vm4109_vm3, %v4111_v20, %v4107_v32  ;;  %v15412_v20 = vld [vmem:[#allocation56_spill] sm:$0xff]  ;;  %v15428_v27 = vld [vmem:[#allocation85_spill] sm:$0xff] }
 0x629   : > { %v4072_v18 = vmul.f32 %v10016_v26, %v4071_v59  ;;  %9268 = vmatmul.msk.f32.vlgmr.msra.gmra.mxu3 %vm1553_vm1, %v4098_v33  ;;  %v4113_v12 = vmul.f32 %v12706_v58, %v4112_v19  ;;  %v15408_v58 = vld [vmem:[#allocation50_spill] sm:$0xff]  ;;  %v15415_v19 = vld [vmem:[#allocation57_spill] sm:$0xff] }
 0x62a   : > { %9291 = vmatpush.xpose.msk.msra.mxu3 %vm378_vm0, %v15403_v28 }
 0x62b   : > { %v4073_v57 = vadd.f32 %v10016_v26, %v4072_v18 }
 0x62c   : > { %v12988_v41 = vpop.f32.mrf.mxu0 }
 0x62d   : > { %v5157_v33 = vsel %vm1553_vm1, %v12988_v41, -inf  ;;  %v4077_v59 = vsel %vm4076_vm4, %v10016_v26, %v4073_v57  ;;  %v15406_v26 = vld [vmem:[#allocation42_spill] sm:$0xff] }
 0x62e   : > { %5158 = vmax.xlane.f32.xlu0 %v5157_v33  ;;  %v4082_v8 = vsel %vm4079_vm5, %v4081_v7, %v4077_v59  ;;  %v15413_v57 = vld [vmem:[#allocation62_spill] sm:$0xff]  ;;  %v15414_v7 = vld [vmem:[#allocation55_spill] sm:$0xff] }
 0x62f   : > { %v4083_v30 = vmul.f32 %v12834_v9, %v4082_v8  ;;  %v12996_v36 = vpop.f32.mrf.mxu1  ;;  %v15407_v9 = vld [vmem:[#allocation48_spill] sm:$0xff]  ;;  %v15417_v8 = vld [vmem:[#allocation58_spill] sm:$0xff] }
 0x630   : > { %15405 = vst [vmem:[#allocation79_spill] sm:$0xff] %v12996_v36  ;;  %v15424_v36 = vld [vmem:[#allocation19_spill] sm:$0xff] }
 0x631   : > { %9267 = vmatmul.msk.f32.gmra.mxu2 %vm1553_vm1, %v4083_v30  ;;  %9269 = vmatmul.msk.f32.gmra.mxu3 %vm1553_vm1, %v4113_v12  ;;  %v15418_v30 = vld [vmem:[#allocation11_spill] sm:$0xff] }
 0x634   : > { %v12998_v16 = vpop.f32.mrf.mxu0 }
 0x635   : > { %v5178_v31 = vsel %vm1553_vm1, %v12998_v16, -inf }
 0x636   : > { %5179 = vmax.xlane.f32.xlu2 %v5178_v31 }
 0x637   : > { %v13012_v18 = vpop.f32.mrf.mxu1 }
 0x638   : > { %15409 = vst [vmem:[#allocation29_spill] sm:$0xff] %v13012_v18 }
 0x639   : > { %9277 = vmatmul.msk.f32.vlgmr.msrb.gmra.mxu2 %vm378_vm0, %v15332_v40  ;;  %9280 = vmatmul.msk.f32.vlgmr.msrb.gmra.mxu3 %vm378_vm0, %v15406_v26 }
 0x63a   : > { %9300 = vmatpush.xpose.msk.msrb.mxu2 %vm378_vm0, %v15407_v9  ;;  %9303 = vmatpush.xpose.msk.msrb.mxu3 %vm378_vm0, %v15408_v58 }
 0x63c   : > { %v13010_v11 = vpop.f32.mrf.mxu0 }
 0x63d   : > { %v5181_v51 = vsel %vm1553_vm1, %v13010_v11, -inf }
 0x63f   : > { %v13020_v32 = vpop.f32.mrf.mxu1 }
 0x640   : > { %15411 = vst [vmem:[#allocation33_spill] sm:$0xff] %v13020_v32  ;;  %v15419_v32 = vld [vmem:[#allocation16_spill] sm:$0xff] }
 0x641   : > { %9278 = vmatmul.msk.f32.gmra.mxu2 %vm378_vm0, %v15342_v56  ;;  %9281 = vmatmul.msk.f32.gmra.mxu3 %vm378_vm0, %v15410_v0 }
 0x644   : > { %v13018_v40 = vpop.f32.mrf.mxu0 }
 0x645   : > { %v5202_v22 = vsel %vm1553_vm1, %v13018_v40, -inf }
 0x649   : > { %9289 = vmatmul.msk.f32.vlgmr.msra.gmra.mxu2 %vm378_vm0, %v15412_v20  ;;  %9292 = vmatmul.msk.f32.vlgmr.msra.gmra.mxu3 %vm378_vm0, %v15413_v57 }
 0x64a   : > { %9312 = vmatpush.xpose.msk.msra.mxu2 %vm378_vm0, %v15414_v7  ;;  %9315 = vmatpush.xpose.msk.msra.mxu3 %vm378_vm0, %v15415_v19 }
 0x64c   : > { %v13030_v56 = vpop.f32.mrf.mxu0 }
 0x64d   : > { %v5205_v33 = vsel %vm1553_vm1, %v13030_v56, -inf }
 0x64e   : > { %5206 = vmax.xlane.f32.xlu1 %v5205_v33  ;;  %v15421_v33 = vld [vmem:[#allocation66_spill] sm:$0xff] }
 0x64f   : > { %v13034_v59 = vpop.f32.mrf.mxu1 }
 0x650   : > { %15416 = vst [vmem:[#allocation38_spill] sm:$0xff] %v13034_v59  ;;  %v15422_v59 = vld [vmem:[#allocation70_spill] sm:$0xff] }
 0x651   : > { %9290 = vmatmul.msk.f32.gmra.mxu2 %vm378_vm0, %v15417_v8  ;;  %9293 = vmatmul.msk.f32.gmra.mxu3 %vm378_vm0, %v15418_v30 }
 0x654   : > { %v13072_v2 = vpop.f32.mrf.mxu0 }
 0x657   : > { %v13040_v12 = vpop.f32.mrf.mxu1 }
 0x658   : > { %v5160_v31 = vsel %vm1553_vm1, %v13040_v12, -inf }
 0x659   : > { %5161 = vmax.xlane.f32.xlu0 %v5160_v31  ;;  %9301 = vmatmul.msk.f32.vlgmr.msrb.gmra.mxu2 %vm378_vm0, %v15419_v32  ;;  %v15423_v31 = vld [vmem:[#allocation17_spill] sm:$0xff] }
 0x65a   : > { %9304 = vmatmul.msk.f32.vlgmr.msrb.gmra.mxu3 %vm378_vm0, %v15420_v14  ;;  %6001 = vmatpush.msrb.mxu2 %v15421_v33  ;;  %v13088_v33 = vpop.f32.mrf.mxu3 }
 0x65b   : > { %6030 = vmatpush.msrb.mxu3 %v15422_v59  ;;  %v15430_v59 = vld [vmem:[#allocation28_spill] sm:$0xff]  ;;  %15432 = vst [vmem:[#allocation40_spill] sm:$0xff] %v13088_v33 }
 0x65f   : > { %v13050_v18 = vpop.f32.mrf.mxu1 }
 0x660   : > { %v5163_v50 = vsel %vm1553_vm1, %v13050_v18, -inf }
 0x661   : > { %5164 = vmax.xlane.f32.xlu2 %v5163_v50  ;;  %5182 = vmax.xlane.f32.xlu0 %v5181_v51  ;;  %v15426_v50 = vld [vmem:[#allocation26_spill] sm:$0xff] }
 0x662   : > { %9302 = vmatmul.msk.f32.gmra.mxu2 %vm378_vm0, %v15423_v31  ;;  %9305 = vmatmul.msk.f32.gmra.mxu3 %vm378_vm0, %v15424_v36  ;;  %v15427_v51 = vld [vmem:[#allocation82_spill] sm:$0xff]  ;;  %v13102_v1 = vpop.f32.mrf.mxu3 }
 0x663   : > { %15434 = vst [vmem:[#allocation34_spill] sm:$0xff] %v13102_v1 }
 0x667   : > { %v13060_v42 = vpop.f32.mrf.mxu1 }
 0x668   : > { %v5184_v52 = vsel %vm1553_vm1, %v13060_v42, -inf }
 0x669   : > { %5185 = vmax.xlane.f32.xlu0 %v5184_v52  ;;  %5203 = vmax.xlane.f32.xlu2 %v5202_v22  ;;  %v5226_v52 = vsel %vm1553_vm1, %v13072_v2, -inf  ;;  %v15429_v22 = vld [vmem:[#allocation25_spill] sm:$0xff] }
 0x66a   : > { %9313 = vmatmul.msk.f32.vlgmr.msra.gmra.mxu2 %vm378_vm0, %v15425_v4  ;;  %9316 = vmatmul.msk.f32.vlgmr.msra.gmra.mxu3 %vm378_vm0, %v15426_v50 }
 0x66b   : > { %6117 = vmatpush.msra.mxu2 %v15427_v51  ;;  %6146 = vmatpush.msra.mxu3 %v15428_v27  ;;  %v13084_v51 = vpop.f32.mrf.mxu2 }
 0x66c   : > { %15431 = vst [vmem:[#allocation30_spill] sm:$0xff] %v13084_v51 }
 0x66f   : > { %v13074_v48 = vpop.f32.mrf.mxu1 }
 0x670   : > { %v5187_v3 = vsel %vm1553_vm1, %v13074_v48, -inf }
 0x671   : > { %5188 = vmax.xlane.f32.xlu2 %v5187_v3  ;;  %5227 = vmax.xlane.f32.xlu0 %v5226_v52  ;;  %v13094_v3 = vpop.f32.mrf.mxu0 }
 0x672   : > { %9314 = vmatmul.msk.f32.gmra.mxu2 %vm378_vm0, %v15429_v22  ;;  %9317 = vmatmul.msk.f32.gmra.mxu3 %vm378_vm0, %v15430_v59  ;;  %v5229_v51 = vsel %vm1553_vm1, %v13094_v3, -inf }
 0x673   : > { %v13092_v60 = vpop.f32.mrf.mxu2 }
 0x674   : > { %15433 = vst [vmem:[#allocation32_spill] sm:$0xff] %v13092_v60  ;;  %v13110_v60 = vpop.f32.mrf.mxu3 }
 0x675   : > { %15436 = vst [vmem:[#allocation36_spill] sm:$0xff] %v13110_v60 }
 0x677   : > { %v13086_v27 = vpop.f32.mrf.mxu1 }
 0x678   : > { %v5208_v47 = vsel %vm1553_vm1, %v13086_v27, -inf }
 0x679   : > { %5209 = vmax.xlane.f32.xlu1 %v5208_v47 }
 0x67b   : > { %v13104_v33 = vpop.f32.mrf.mxu2 }
 0x67c   : > { %15435 = vst [vmem:[#allocation35_spill] sm:$0xff] %v13104_v33 }
 0x67f   : > { %v13096_v52 = vpop.f32.mrf.mxu1 }
 0x680   : > { %v5211_v44 = vsel %vm1553_vm1, %v13096_v52, -inf }
 0x681   : > { %5212 = vmax.xlane.f32.xlu2 %v5211_v44  ;;  %5230 = vmax.xlane.f32.xlu1 %v5229_v51  ;;  %v13118_v51 = vpop.f32.mrf.mxu3 }
 0x682   : > { %15438 = vst [vmem:[#allocation97_spill] sm:$0xff] %v13118_v51 }
 0x683   : > { %v13114_v13 = vpop.f32.mrf.mxu2 }
 0x684   : > { %15437 = vst [vmem:[#allocation37_spill] sm:$0xff] %v13114_v13  ;;  %v13134_v13 = vpop.permute.xlu0 %6425 }
 0x687   : > { %v13106_v10 = vpop.f32.mrf.mxu1 }
 0x688   : > { %v5232_v47 = vsel %vm1553_vm1, %v13106_v10, -inf }
 0x689   : > { %5233 = vmax.xlane.f32.xlu0 %v5232_v47  ;;  %v13122_v33 = vpop.f32.mrf.mxu3 }
 0x68a   : > { %15440 = vst [vmem:[#allocation39_spill] sm:$0xff] %v13122_v33 }
 0x68b   : > { %v13120_v1 = vpop.f32.mrf.mxu2 }
 0x68c   : > { %15439 = vst [vmem:[#allocation104_spill] sm:$0xff] %v13120_v1  ;;  %v13140_v51 = vpop.permute.xlu0 %6460 }
 0x68d   : > { %15447 = vst [vmem:[#allocation20_spill] sm:$0xff] %v13140_v51 }
 0x68f   : > { %v13112_v50 = vpop.f32.mrf.mxu1 }
 0x690   : > { %v5235_v44 = vsel %vm1553_vm1, %v13112_v50, -inf }
 0x691   : > { %5236 = vmax.xlane.f32.xlu1 %v5235_v44  ;;  %v13128_v47 = vpop.f32.mrf.mxu3 }
 0x692   : > { %15442 = vst [vmem:[#allocation47_spill] sm:$0xff] %v13128_v47 }
 0x693   : > { %v13124_v4 = vpop.f32.mrf.mxu2 }
 0x694   : > { %15441 = vst [vmem:[#allocation31_spill] sm:$0xff] %v13124_v4 }
 0x699   : > { %v5156_v38 = vpop.xlane.xlu1 %5155 }
 0x69b   : > { %v13130_v60 = vpop.f32.mrf.mxu2 }
 0x69c   : > { %15443 = vst [vmem:[#allocation52_spill] sm:$0xff] %v13130_v60 }
 0x6a9   : > { %v5180_v8 = vpop.xlane.xlu2 %5179 }
 0x6ac   : > { %v13132_v62 = vpop.f32.mrf.mxu3 }
 0x6ad   : > { %15444 = vst [vmem:[#allocation49_spill] sm:$0xff] %v13132_v62  ;;  %v13150_v62 = vpop.permute.xlu0 %6423 }
 0x6ae   : > { %15448 = vst [vmem:[#allocation21_spill] sm:$0xff] %v13150_v62 }
 0x6b4   : > { %v13136_v5 = vpop.f32.mrf.mxu2  ;;  %v13138_v44 = vpop.f32.mrf.mxu3 }
 0x6b5   : > { %15445 = vst [vmem:[#allocation12_spill] sm:$0xff] %v13136_v5  ;;  %v5159_v51 = vpop.xlane.xlu0 %5158 }
 0x6b6   : > { %15446 = vst [vmem:[#allocation13_spill] sm:$0xff] %v13138_v44 }
 0x6bc   : > { %v13142_v1 = vpop.f32.mrf.mxu2  ;;  %v13144_v33 = vpop.f32.mrf.mxu3 }
 0x6bd   : > { %v5166_v4 = vsel %vm1553_vm1, %v13142_v1, -inf  ;;  %v5172_v60 = vsel %vm1553_vm1, %v13144_v33, -inf }
 0x6be   : > { %5167 = vmax.xlane.f32.xlu0 %v5166_v4  ;;  %5173 = vmax.xlane.f32.xlu1 %v5172_v60  ;;  %v5250_v60 = vsub.f32 %v12971_v17, %v5156_v38  ;;  %v5251_v38 = vsub.f32 %v12988_v41, %v5159_v51 }
 0x6c0   : > { %v5282_v36 = vmul.f32 1.442695, %v5250_v60 }
 0x6c2   : > { %10017 = vpow2.f32 %v5282_v36 }
 0x6c4   : > { %v13152_v47 = vpop.f32.mrf.mxu2  ;;  %v13154_v5 = vpop.f32.mrf.mxu3 }
 0x6c5   : > { %v5169_v44 = vsel %vm1553_vm1, %v13152_v47, -inf  ;;  %v5175_v24 = vsel %vm1553_vm1, %v13154_v5, -inf }
 0x6c6   : > { %5170 = vmax.xlane.f32.xlu2 %v5169_v44  ;;  %5176 = vmax.xlane.f32.xlu0 %v5175_v24 }
 0x6c8   : > { %v13179_v36 = vpop.eup %10017 }
 0x6c9   : > { %v5346_v51 = vsel %vm1553_vm1, %v13179_v36, 0.0 }
 0x6cc   : > { %v13160_v54 = vpop.f32.mrf.mxu2  ;;  %v13163_v4 = vpop.f32.mrf.mxu3 }
 0x6cd   : > { %v5190_v30 = vsel %vm1553_vm1, %v13160_v54, -inf  ;;  %v5196_v19 = vsel %vm1553_vm1, %v13163_v4, -inf  ;;  %v5162_v44 = vpop.xlane.xlu0 %5161 }
 0x6ce   : > { %5191 = vmax.xlane.f32.xlu0 %v5190_v30  ;;  %5197 = vmax.xlane.f32.xlu2 %v5196_v19  ;;  %v5252_v24 = vsub.f32 %v13040_v12, %v5162_v44  ;;  %v5284_v30 = vmul.f32 1.442695, %v5251_v38 }
 0x6d0   : > { %v5286_v19 = vmul.f32 1.442695, %v5252_v24 }
 0x6d2   : > { %10019 = vpow2.f32 %v5286_v19  ;;  %v5258_v19 = vsub.f32 %v12998_v16, %v5180_v8 }
 0x6d3   : > { %10021 = vpow2.f32 %v5284_v30  ;;  %v13196_v30 = vpop.xlane.xlu1 %5206 }
 0x6d4   : > { %v13170_v58 = vpop.f32.mrf.mxu2  ;;  %v13172_v31 = vpop.f32.mrf.mxu3  ;;  %v5298_v16 = vmul.f32 1.442695, %v5258_v19 }
 0x6d5   : > { %v5165_v17 = vpop.xlane.xlu2 %5164  ;;  %v5193_v32 = vsel %vm1553_vm1, %v13170_v58, -inf  ;;  %v5199_v9 = vsel %vm1553_vm1, %v13172_v31, -inf }
 0x6d6   : > { %5194 = vmax.xlane.f32.xlu2 %v5193_v32  ;;  %5200 = vmax.xlane.f32.xlu0 %v5199_v9  ;;  %v5183_v9 = vpop.xlane.xlu0 %5182  ;;  %v5253_v61 = vsub.f32 %v13050_v18, %v5165_v17  ;;  %10023 = vpow2.f32 %v5298_v16 }
 0x6d7   : > { %v5259_v17 = vsub.f32 %v13010_v11, %v5183_v9 }
 0x6d8   : > { %v13191_v24 = vpop.eup %10019  ;;  %v5288_v8 = vmul.f32 1.442695, %v5253_v61 }
 0x6d9   : > { %v13193_v38 = vpop.eup %10021  ;;  %v5300_v11 = vmul.f32 1.442695, %v5259_v17 }
 0x6da   : > { %10025 = vpow2.f32 %v5288_v8 }
 0x6db   : > { %10027 = vpow2.f32 %v5300_v11 }
 0x6dc   : > { %v13181_v12 = vpop.f32.mrf.mxu2 }
 0x6dd   : > { %v13183_v60 = vpop.f32.mrf.mxu3  ;;  %v5214_v32 = vsel %vm1553_vm1, %v13181_v12, -inf  ;;  %v5204_v44 = vpop.xlane.xlu2 %5203 }
 0x6de   : > { %15449 = vst [vmem:[#allocation51_spill] sm:$0xff] %v13183_v60  ;;  %v5220_v41 = vsel %vm1553_vm1, %v13183_v60, -inf  ;;  %5347 = vadd.xlane.f32.xlu0 %v5346_v51  ;;  %5215 = vmax.xlane.f32.xlu1 %v5214_v32  ;;  %v5352_v51 = vsel %vm1553_vm1, %v13191_v24, 0.0  ;;  %v5349_v32 = vsel %vm1553_vm1, %v13193_v38, 0.0  ;;  %v5186_v22 = vpop.xlane.xlu0 %5185 }
 0x6df   : > { %5221 = vmax.xlane.f32.xlu2 %v5220_v41  ;;  %v5260_v16 = vsub.f32 %v13060_v42, %v5186_v22 }
 0x6e1   : > { %v5302_v42 = vmul.f32 1.442695, %v5260_v16 }
 0x6e5   : > { %v13199_v59 = vpop.f32.mrf.mxu2  ;;  %v13201_v49 = vpop.f32.mrf.mxu3 }
 0x6e6   : > { %15450 = vst [vmem:[#allocation41_spill] sm:$0xff] %v13201_v49  ;;  %v5217_v41 = vsel %vm1553_vm1, %v13199_v59, -inf  ;;  %5353 = vadd.xlane.f32.xlu0 %v5352_v51  ;;  %5350 = vadd.xlane.f32.xlu1 %v5349_v32  ;;  %v5189_v18 = vpop.xlane.xlu2 %5188  ;;  %v5223_v51 = vsel %vm1553_vm1, %v13201_v49, -inf  ;;  %v13223_v32 = vpop.eup %10023 }
 0x6e7   : > { %5218 = vmax.xlane.f32.xlu2 %v5217_v41  ;;  %v5261_v60 = vsub.f32 %v13074_v48, %v5189_v18  ;;  %v13225_v48 = vpop.eup %10025  ;;  %v5228_v8 = vpop.xlane.xlu0 %5227  ;;  %v5370_v17 = vsel %vm1553_vm1, %v13223_v32, 0.0 }
 0x6e8   : > { %v5274_v16 = vsub.f32 %v13072_v2, %v5228_v8 }
 0x6e9   : > { %v5304_v9 = vmul.f32 1.442695, %v5261_v60  ;;  %v5355_v60 = vsel %vm1553_vm1, %v13225_v48, 0.0 }
 0x6eb   : > { %10029 = vpow2.f32 %v5304_v9 }
 0x6ec   : > { %v13210_v28 = vpop.xlane.xlu1 %5209  ;;  %10031 = vpow2.f32 %v5302_v42 }
 0x6ed   : > { %v13213_v62 = vpop.f32.mrf.mxu2  ;;  %v13215_v41 = vpop.f32.mrf.mxu3  ;;  %v5268_v42 = vsub.f32 %v13086_v27, %v13210_v28 }
 0x6ee   : > { %15451 = vst [vmem:[#allocation53_spill] sm:$0xff] %v13215_v41  ;;  %v5244_v61 = vsel %vm1553_vm1, %v13215_v41, -inf  ;;  %v5238_v19 = vsel %vm1553_vm1, %v13213_v62, -inf }
 0x6ef   : > { %5224 = vmax.xlane.f32.xlu2 %v5223_v51  ;;  %5245 = vmax.xlane.f32.xlu0 %v5244_v61  ;;  %v5266_v51 = vsub.f32 %v13018_v40, %v5204_v44  ;;  %v5267_v40 = vsub.f32 %v13030_v56, %v13196_v30 }
 0x6f0   : > { %5239 = vmax.xlane.f32.xlu1 %v5238_v19  ;;  %v13238_v19 = vpop.eup %10027 }
 0x6f1   : > { %v13240_v11 = vpop.eup %10029  ;;  %v5316_v30 = vmul.f32 1.442695, %v5267_v40 }
 0x6f4   : > { %v5231_v18 = vpop.xlane.xlu1 %5230  ;;  %v5213_v2 = vpop.xlane.xlu2 %5212 }
 0x6f5   : > { %v5275_v41 = vsub.f32 %v13094_v3, %v5231_v18  ;;  %v13229_v49 = vpop.f32.mrf.mxu2  ;;  %v5314_v3 = vmul.f32 1.442695, %v5266_v51  ;;  %v13244_v44 = vpop.f32.mrf.mxu3  ;;  %v5379_v51 = vsel %vm1553_vm1, %v13240_v11, 0.0  ;;  %v5269_v40 = vsub.f32 %v13096_v52, %v5213_v2 }
 0x6f6   : > { %v5241_v61 = vsel %vm1553_vm1, %v13229_v49, -inf  ;;  %15452 = vst [vmem:[#allocation42_spill] sm:$0xff] %v13244_v44  ;;  %v5247_v56 = vsel %vm1553_vm1, %v13244_v44, -inf }
 0x6f7   : > { %5371 = vadd.xlane.f32.xlu2 %v5370_v17  ;;  %5356 = vadd.xlane.f32.xlu0 %v5355_v60  ;;  %v5332_v22 = vmul.f32 1.442695, %v5275_v41  ;;  %v5373_v41 = vsel %vm1553_vm1, %v13238_v19, 0.0  ;;  %v13254_v60 = vpop.eup %10031 }
 0x6f8   : > { %5242 = vmax.xlane.f32.xlu1 %v5241_v61 }
 0x6f9   : > { %10033 = vpow2.f32 %v5332_v22 }
 0x6fa   : > { %10035 = vpow2.f32 %v5314_v3 }
 0x6fb   : > { %10037 = vpow2.f32 %v5316_v30 }
 0x6fc   : > { %v5234_v9 = vpop.xlane.xlu0 %5233 }
 0x6fd   : > { %v5276_v18 = vsub.f32 %v13106_v10, %v5234_v9  ;;  %v5330_v10 = vmul.f32 1.442695, %v5274_v16  ;;  %v5376_v9 = vsel %vm1553_vm1, %v13254_v60, 0.0 }
 0x6ff   : > { %5374 = vadd.xlane.f32.xlu2 %v5373_v41  ;;  %5380 = vadd.xlane.f32.xlu0 %v5379_v51  ;;  %v5334_v17 = vmul.f32 1.442695, %v5276_v18  ;;  %v13256_v61 = vpop.eup %10033  ;;  %v5318_v41 = vmul.f32 1.442695, %v5268_v42 }
 0x700   : > { %5248 = vmax.xlane.f32.xlu1 %v5247_v56  ;;  %v13258_v8 = vpop.eup %10035  ;;  %v5421_v18 = vsel %vm1553_vm1, %v13256_v61, 0.0 }
 0x701   : > { %10039 = vpow2.f32 %v5334_v17  ;;  %v5394_v16 = vsel %vm1553_vm1, %v13258_v8, 0.0  ;;  %v13270_v27 = vpop.eup %10037 }
 0x702   : > { %10041 = vpow2.f32 %v5330_v10  ;;  %v5397_v56 = vsel %vm1553_vm1, %v13270_v27, 0.0 }
 0x703   : > { %10043 = vpow2.f32 %v5318_v41 }
 0x704   : > { %v5237_v22 = vpop.xlane.xlu1 %5236 }
 0x705   : > { %v5277_v3 = vsub.f32 %v13112_v50, %v5237_v22  ;;  %v5320_v50 = vmul.f32 1.442695, %v5269_v40 }
 0x707   : > { %5377 = vadd.xlane.f32.xlu2 %v5376_v9  ;;  %5422 = vadd.xlane.f32.xlu0 %v5421_v18  ;;  %v5336_v28 = vmul.f32 1.442695, %v5277_v3  ;;  %v13272_v51 = vpop.eup %10039 }
 0x708   : > { %5395 = vadd.xlane.f32.xlu1 %v5394_v16  ;;  %v13274_v52 = vpop.eup %10041  ;;  %v5424_v30 = vsel %vm1553_vm1, %v13272_v51, 0.0 }
 0x709   : > { %10045 = vpow2.f32 %v5336_v28  ;;  %v5418_v17 = vsel %vm1553_vm1, %v13274_v52, 0.0  ;;  %v13282_v10 = vpop.eup %10043 }
 0x70a   : > { %10047 = vpow2.f32 %v5320_v50  ;;  %v5400_v22 = vsel %vm1553_vm1, %v13282_v10, 0.0 }
 0x70f   : > { %5398 = vadd.xlane.f32.xlu2 %v5397_v56  ;;  %5425 = vadd.xlane.f32.xlu0 %v5424_v30  ;;  %v13284_v2 = vpop.eup %10045 }
 0x710   : > { %5419 = vadd.xlane.f32.xlu1 %v5418_v17  ;;  %v13286_v42 = vpop.eup %10047  ;;  %v5427_v3 = vsel %vm1553_vm1, %v13284_v2, 0.0 }
 0x711   : > { %v5403_v40 = vsel %vm1553_vm1, %v13286_v42, 0.0 }
 0x717   : > { %5401 = vadd.xlane.f32.xlu2 %v5400_v22  ;;  %5428 = vadd.xlane.f32.xlu0 %v5427_v3 }
 0x718   : > { %5404 = vadd.xlane.f32.xlu1 %v5403_v40 }
 0x731   : > { %v5168_v9 = vpop.xlane.xlu0 %5167  ;;  %v5174_v18 = vpop.xlane.xlu1 %5173 }
 0x732   : > { %v5254_v16 = vsub.f32 %v13142_v1, %v5168_v9  ;;  %v5256_v28 = vsub.f32 %v13144_v33, %v5174_v18 }
 0x734   : > { %v5290_v41 = vmul.f32 1.442695, %v5254_v16  ;;  %v5294_v50 = vmul.f32 1.442695, %v5256_v28 }
 0x736   : > { %10049 = vpow2.f32 %v5290_v41 }
 0x737   : > { %10051 = vpow2.f32 %v5294_v50 }
 0x739   : > { %v5171_v56 = vpop.xlane.xlu2 %5170  ;;  %v5177_v30 = vpop.xlane.xlu0 %5176 }
 0x73a   : > { %v5255_v17 = vsub.f32 %v13152_v47, %v5171_v56  ;;  %v5257_v3 = vsub.f32 %v13154_v5, %v5177_v30 }
 0x73c   : > { %v13297_v44 = vpop.eup %10049  ;;  %v5292_v22 = vmul.f32 1.442695, %v5255_v17  ;;  %v5296_v1 = vmul.f32 1.442695, %v5257_v3 }
 0x73d   : > { %15453 = vst [vmem:[#allocation44_spill] sm:$0xff] %v13297_v44  ;;  %v5358_v40 = vsel %vm1553_vm1, %v13297_v44, 0.0  ;;  %v13302_v33 = vpop.eup %10051 }
 0x73e   : > { %10053 = vpow2.f32 %v5292_v22  ;;  %5359 = vadd.xlane.f32.xlu0 %v5358_v40  ;;  %15454 = vst [vmem:[#allocation56_spill] sm:$0xff] %v13302_v33  ;;  %v5364_v56 = vsel %vm1553_vm1, %v13302_v33, 0.0 }
 0x73f   : > { %10055 = vpow2.f32 %v5296_v1 }
 0x741   : > { %v5192_v9 = vpop.xlane.xlu0 %5191  ;;  %v5198_v18 = vpop.xlane.xlu2 %5197 }
 0x742   : > { %v5262_v16 = vsub.f32 %v13160_v54, %v5192_v9  ;;  %v5264_v47 = vsub.f32 %v13163_v4, %v5198_v18 }
 0x744   : > { %v13306_v41 = vpop.eup %10053  ;;  %v5306_v28 = vmul.f32 1.442695, %v5262_v16  ;;  %v5310_v50 = vmul.f32 1.442695, %v5264_v47 }
 0x745   : > { %15455 = vst [vmem:[#allocation62_spill] sm:$0xff] %v13306_v41  ;;  %v5361_v5 = vsel %vm1553_vm1, %v13306_v41, 0.0  ;;  %v13312_v30 = vpop.eup %10055 }
 0x746   : > { %10057 = vpow2.f32 %v5306_v28  ;;  %5362 = vadd.xlane.f32.xlu1 %v5361_v5  ;;  %5365 = vadd.xlane.f32.xlu0 %v5364_v56  ;;  %15456 = vst [vmem:[#allocation127_spill] sm:$0xff] %v13312_v30  ;;  %v5367_v9 = vsel %vm1553_vm1, %v13312_v30, 0.0 }
 0x747   : > { %10059 = vpow2.f32 %v5310_v50 }
 0x749   : > { %v5195_v54 = vpop.xlane.xlu2 %5194  ;;  %v13314_v17 = vpop.xlane.xlu0 %5200 }
 0x74a   : > { %v5263_v4 = vsub.f32 %v13170_v58, %v5195_v54 }
 0x74c   : > { %v13317_v22 = vpop.eup %10057  ;;  %v5308_v40 = vmul.f32 1.442695, %v5263_v4 }
 0x74d   : > { %15457 = vst [vmem:[#allocation128_spill] sm:$0xff] %v13317_v22  ;;  %v13319_v3 = vpop.eup %10059  ;;  %v5382_v1 = vsel %vm1553_vm1, %v13317_v22, 0.0 }
 0x74e   : > { %15458 = vst [vmem:[#allocation129_spill] sm:$0xff] %v13319_v3  ;;  %5383 = vadd.xlane.f32.xlu2 %v5382_v1  ;;  %5368 = vadd.xlane.f32.xlu1 %v5367_v9  ;;  %v5388_v18 = vsel %vm1553_vm1, %v13319_v3, 0.0  ;;  %10061 = vpow2.f32 %v5308_v40 }
 0x74f   : > { %5389 = vadd.xlane.f32.xlu0 %v5388_v18 }
 0x751   : > { %v5348_v58 = vpop.xlane.xlu0 %5347  ;;  %v13329_v47 = vpop.xlane.xlu1 %5215 }
 0x752   : > { %v13327_v16 = vpop.xlane.xlu2 %5221  ;;  %10063 = vrcp.f32 %v5348_v58  ;;  %v5453_v9 = vand.u32 2147483648, %v5348_v58  ;;  %v5451_v3 = vand.u32 2147483647, %v5348_v58  ;;  %vm5447_vm7 = vweird.f32 %v5348_v58 }
 0x753   : > { %15459 = vst [vmem:[#allocation130_spill] sm:$0xff] %v13327_v16 }
 0x754   : > { %v13331_v28 = vpop.eup %10061  ;;  %v5454_v41 = vor.u32 1.1754944e-38, %v5453_v9  ;;  %vm5452_vm9 = vcmp.eq.f32.partialorder %v5451_v3, 8.507059e+37  ;;  %v15461_v3 = vld [vmem:[#allocation88_spill] sm:$0xff] }
 0x755   : > { %15460 = vst [vmem:[#allocation131_spill] sm:$0xff] %v13331_v28  ;;  %v5385_v50 = vsel %vm1553_vm1, %v13331_v28, 0.0 }
 0x757   : > { %5386 = vadd.xlane.f32.xlu0 %v5385_v50 }
 0x758   : > { %v10064_v5 = vpop.eup %10063 }
 0x759   : > { %v5443_v56 = vmul.f32 %v10064_v5, %v5348_v58  ;;  %v5354_v4 = vpop.xlane.xlu0 %5353  ;;  %v5351_v40 = vpop.xlane.xlu1 %5350  ;;  %vm5448_vm6 = vweird.f32 %v10064_v5 }
 0x75a   : > { %v13335_v54 = vpop.xlane.xlu2 %5218  ;;  %10065 = vrcp.f32 %v5354_v4  ;;  %vm5449_vm8 = vmor %vm5447_vm7, %vm5448_vm6  ;;  %v5481_v9 = vand.u32 2147483647, %v5354_v4  ;;  %vm5477_vm11 = vweird.f32 %v5354_v4  ;;  %vm5462_vm15 = vweird.f32 %v5351_v40 }
 0x75b   : > { %v5444_v1 = vsub.f32 1.0, %v5443_v56  ;;  %10067 = vrcp.f32 %v5351_v40 }
 0x75c   : > { %vm5482_vm14 = vcmp.eq.f32.partialorder %v5481_v9, 8.507059e+37 }
 0x75d   : > { %v5445_v18 = vmul.f32 %v10064_v5, %v5444_v1 }
 0x75f   : > { %v5446_v30 = vadd.f32 %v10064_v5, %v5445_v18  ;;  %v5483_v18 = vand.u32 2147483648, %v5354_v4 }
 0x760   : > { %v10066_v22 = vpop.eup %10065 }
 0x761   : > { %v10068_v28 = vpop.eup %10067  ;;  %v5450_v50 = vsel %vm5449_vm8, %v10064_v5, %v5446_v30  ;;  %v5473_v33 = vmul.f32 %v10066_v22, %v5354_v4  ;;  %vm5478_vm10 = vweird.f32 %v10066_v22 }
 0x762   : > { %v13337_v16 = vpop.xlane.xlu2 %5224  ;;  %v13339_v7 = vpop.xlane.xlu0 %5245  ;;  %v5455_v44 = vsel %vm5452_vm9, %v5454_v41, %v5450_v50  ;;  %v5458_v56 = vmul.f32 %v10068_v28, %v5351_v40  ;;  %vm5479_vm12 = vmor %vm5477_vm11, %vm5478_vm10  ;;  %vm5463_vm13 = vweird.f32 %v10068_v28 }
 0x763   : > { %v13341_v63 = vpop.xlane.xlu1 %5239  ;;  %v5456_v1 = vmul.f32 %v13179_v36, %v5455_v44  ;;  %v5474_v29 = vsub.f32 1.0, %v5473_v33  ;;  %v5468_v36 = vand.u32 2147483648, %v5351_v40  ;;  %v5484_v44 = vor.u32 1.1754944e-38, %v5483_v18  ;;  %vm5464_vm2 = vmor %vm5462_vm15, %vm5463_vm13  ;;  %v15462_v18 = vld [vmem:[#allocation92_spill] sm:$0xff] }
 0x764   : > { %v5459_v58 = vsub.f32 1.0, %v5458_v56  ;;  %v5466_v33 = vand.u32 2147483647, %v5351_v40 }
 0x765   : > { %v5475_v14 = vmul.f32 %v10066_v22, %v5474_v29  ;;  %9318 = vmatmul.msk.f32.vlgmr.msrb.gmra.mxu0 %vm1553_vm1, %v5456_v1 }
 0x766   : > { %6493 = vrot.lane.b32.xlu2 %v15410_v0, %s10410_s18  ;;  %v5460_v30 = vmul.f32 %v10068_v28, %v5459_v58  ;;  %6175 = vmatpush.msrb.mxu0 %v15461_v3  ;;  %vm5467_vm3 = vcmp.eq.f32.partialorder %v5466_v33, 8.507059e+37 }
 0x767   : > { %6530 = vrot.lane.b32.xlu1 %v15357_v15, %s10410_s18  ;;  %v5476_v41 = vadd.f32 %v10066_v22, %v5475_v14  ;;  %v5469_v14 = vor.u32 1.1754944e-38, %v5468_v36 }
 0x768   : > { %v5461_v29 = vadd.f32 %v10068_v28, %v5460_v30 }
 0x769   : > { %v5480_v5 = vsel %vm5479_vm12, %v10066_v22, %v5476_v41 }
 0x76a   : > { %v5372_v50 = vpop.xlane.xlu2 %5371  ;;  %v13350_v56 = vpop.xlane.xlu0 %5356  ;;  %v5485_v0 = vsel %vm5482_vm14, %v5484_v44, %v5480_v5  ;;  %v5465_v4 = vsel %vm5464_vm2, %v10068_v28, %v5461_v29 }
 0x76b   : > { %10069 = vrcp.f32 %v5372_v50  ;;  %v13352_v1 = vpop.xlane.xlu1 %5242  ;;  %6491 = vrot.lane.b32.xlu0 %v15406_v26, %s10410_s18  ;;  %v5486_v15 = vmul.f32 %v13191_v24, %v5485_v0  ;;  %v5470_v22 = vsel %vm5467_vm3, %v5469_v14, %v5465_v4  ;;  %v5571_v44 = vand.u32 2147483647, %v5372_v50 }
 0x76c   : > { %10071 = vrcp.f32 %v13350_v56  ;;  %v5471_v40 = vmul.f32 %v13193_v38, %v5470_v22  ;;  %vm5567_vm5 = vweird.f32 %v5372_v50  ;;  %v5265_v0 = vsub.f32 %v13172_v31, %v13314_v17 }
 0x76d   : > { %9320 = vmatmul.msk.f32.vlgmr.msrb.gmra.mxu1 %vm1553_vm1, %v5486_v15  ;;  %vm5572_vm7 = vcmp.eq.f32.partialorder %v5571_v44, 8.507059e+37  ;;  %v5498_v22 = vand.u32 2147483648, %v13350_v56  ;;  %vm5492_vm9 = vweird.f32 %v13350_v56 }
 0x76e   : > { %6528 = vrot.lane.b32.xlu2 %v15367_v46, %s10410_s18  ;;  %6204 = vmatpush.msrb.mxu1 %v15462_v18 }
 0x76f   : > { %6565 = vrot.lane.b32.xlu1 %v15361_v53, %s10410_s18  ;;  %9319 = vmatmul.msk.f32.gmra.mxu0 %vm1553_vm1, %v5471_v40  ;;  %v5573_v53 = vand.u32 2147483648, %v5372_v50 }
 0x771   : > { %v10070_v26 = vpop.eup %10069 }
 0x772   : > { %v10072_v24 = vpop.eup %10071  ;;  %v5563_v58 = vmul.f32 %v10070_v26, %v5372_v50  ;;  %v13366_v28 = vpop.xlane.xlu2 %5374  ;;  %vm5568_vm4 = vweird.f32 %v10070_v26 }
 0x773   : > { %v5488_v9 = vmul.f32 %v10072_v24, %v13350_v56  ;;  %10073 = vrcp.f32 %v13366_v28  ;;  %v13370_v30 = vpop.xlane.xlu1 %5248  ;;  %6526 = vrot.lane.b32.xlu0 %v15364_v6, %s10410_s18  ;;  %v13374_v38 = vpop.xlane.xlu0 %5380  ;;  %vm5569_vm6 = vmor %vm5567_vm5, %vm5568_vm4  ;;  %v5574_v6 = vor.u32 1.1754944e-38, %v5573_v53  ;;  %vm5493_vm8 = vweird.f32 %v10072_v24 }
 0x774   : > { %v5564_v46 = vsub.f32 1.0, %v5563_v58  ;;  %10075 = vrcp.f32 %v13374_v38  ;;  %vm5494_vm10 = vmor %vm5492_vm9, %vm5493_vm8  ;;  %vm5582_vm13 = vweird.f32 %v13366_v28 }
 0x775   : > { %v5489_v41 = vsub.f32 1.0, %v5488_v9 }
 0x776   : > { %v5565_v36 = vmul.f32 %v10070_v26, %v5564_v46  ;;  %v15463_v46 = vld [vmem:[#allocation103_spill] sm:$0xff] }
 0x777   : > { %6596 = vrot.lane.b32.xlu1 %v15412_v20, %s10410_s18  ;;  %v5490_v33 = vmul.f32 %v10072_v24, %v5489_v41  ;;  %v5270_v20 = vsub.f32 %v13181_v12, %v13329_v47  ;;  %v5312_v12 = vmul.f32 1.442695, %v5265_v0  ;;  %v5588_v0 = vand.u32 2147483648, %v13366_v28 }
 0x778   : > { %v5566_v29 = vadd.f32 %v10070_v26, %v5565_v36 }
 0x779   : > { %v13379_v5 = vpop.eup %10073  ;;  %v5491_v17 = vadd.f32 %v10072_v24, %v5490_v33 }
 0x77a   : > { %v5570_v15 = vsel %vm5569_vm6, %v10070_v26, %v5566_v29  ;;  %v5578_v14 = vmul.f32 %v13379_v5, %v13366_v28  ;;  %v13385_v4 = vpop.xlane.xlu2 %5377  ;;  %v5496_v26 = vand.u32 2147483647, %v13350_v56  ;;  %v13397_v9 = vpop.eup %10075  ;;  %vm5583_vm12 = vweird.f32 %v13379_v5 }
 0x77b   : > { %v5575_v50 = vsel %vm5572_vm7, %v5574_v6, %v5570_v15  ;;  %10077 = vrcp.f32 %v13385_v4  ;;  %v13391_v40 = vpop.xlane.xlu1 %5395  ;;  %6561 = vrot.lane.b32.xlu0 %v15380_v23, %s10410_s18  ;;  %v13400_v47 = vpop.xlane.xlu0 %5422  ;;  %v5499_v23 = vor.u32 1.1754944e-38, %v5498_v22  ;;  %v5495_v53 = vsel %vm5494_vm10, %v10072_v24, %v5491_v17  ;;  %vm13440_vm2 = vmor %vm5582_vm13, %vm5583_vm12 }
 0x77c   : > { %v5576_v31 = vmul.f32 %v13223_v32, %v5575_v50  ;;  %v5579_v58 = vsub.f32 1.0, %v5578_v14  ;;  %10079 = vrcp.f32 %v13391_v40  ;;  %v5322_v32 = vmul.f32 1.442695, %v5270_v20 }
 0x77d   : > { %vm5497_vm11 = vcmp.eq.f32.partialorder %v5496_v26, 8.507059e+37  ;;  %v5608_v44 = vmul.f32 %v13397_v9, %v13374_v38  ;;  %10081 = vpow2.f32 %v5312_v12  ;;  %v5586_v24 = vand.u32 2147483647, %v13366_v28 }
 0x77e   : > { %9326 = vmatmul.msk.f32.vlgmr.msra.gmra.mxu0 %vm1553_vm1, %v5576_v31  ;;  %v5580_v36 = vmul.f32 %v13379_v5, %v5579_v58  ;;  %v5500_v56 = vsel %vm5497_vm11, %v5499_v23, %v5495_v53  ;;  %v5601_v20 = vand.u32 2147483647, %v13385_v4  ;;  %v5603_v22 = vand.u32 2147483648, %v13385_v4 }
 0x77f   : > { %6291 = vmatpush.msra.mxu0 %v15463_v46  ;;  %v5501_v33 = vmul.f32 %v13225_v48, %v5500_v56  ;;  %v5609_v50 = vsub.f32 1.0, %v5608_v44  ;;  %v5271_v17 = vsub.f32 %v13199_v59, %v13335_v54  ;;  %v5589_v58 = vor.u32 1.1754944e-38, %v5588_v0 }
 0x780   : > { %v5581_v31 = vadd.f32 %v13379_v5, %v5580_v36  ;;  %vm13432_vm15 = vcmp.eq.f32.partialorder %v5586_v24, 8.507059e+37  ;;  %vm5597_vm3 = vweird.f32 %v13385_v4  ;;  %vm5602_vm4 = vcmp.eq.f32.partialorder %v5601_v20, 8.507059e+37 }
 0x781   : > { %v10078_v41 = vpop.eup %10077  ;;  %9321 = vmatmul.msk.f32.gmra.mxu1 %vm1553_vm1, %v5501_v33  ;;  %v5610_v36 = vmul.f32 %v13397_v9, %v5609_v50  ;;  %v5604_v44 = vor.u32 1.1754944e-38, %v5603_v22  ;;  %vm5687_vm6 = vweird.f32 %v13391_v40  ;;  %v5693_v50 = vand.u32 2147483648, %v13391_v40 }
 0x782   : > { %v5593_v29 = vmul.f32 %v10078_v41, %v13385_v4  ;;  %v13410_v6 = vpop.xlane.xlu2 %5398  ;;  %v13417_v15 = vpop.eup %10079  ;;  %vm5598_vm14 = vweird.f32 %v10078_v41  ;;  %vm5613_vm8 = vweird.f32 %v13397_v9  ;;  %vm5612_vm10 = vweird.f32 %v13374_v38 }
 0x783   : > { %10083 = vrcp.f32 %v13410_v6  ;;  %6563 = vrot.lane.b32.xlu0 %v15384_v43, %s10410_s18  ;;  %v13422_v48 = vpop.xlane.xlu1 %5419  ;;  %v5683_v43 = vmul.f32 %v13417_v15, %v13391_v40  ;;  %v13446_v54 = vpop.xlane.xlu0 %5425  ;;  %vm5599_vm5 = vmor %vm5597_vm3, %vm5598_vm14  ;;  %vm5688_vm7 = vweird.f32 %v13417_v15 }
 0x784   : > { %10085 = vpow2.f32 %v5322_v32  ;;  %v5594_v14 = vsub.f32 1.0, %v5593_v29  ;;  %v13436_v32 = vpop.eup %10081  ;;  %v5585_v29 = vsel %vm13440_vm2, %v13379_v5, %v5581_v31  ;;  %v5324_v31 = vmul.f32 1.442695, %v5271_v17  ;;  %vm13480_vm9 = vmor %vm5687_vm6, %vm5688_vm7 }
 0x785   : > { %v5684_v12 = vsub.f32 1.0, %v5683_v43  ;;  %10087 = vrcp.f32 %v13422_v48  ;;  %v5590_v22 = vsel %vm13432_vm15, %v5589_v58, %v5585_v29  ;;  %v5618_v58 = vand.u32 2147483648, %v13374_v38  ;;  %vm13498_vm11 = vmor %vm5612_vm10, %vm5613_vm8 }
 0x786   : > { %v5595_v26 = vmul.f32 %v10078_v41, %v5594_v14  ;;  %10089 = vrcp.f32 %v13400_v47  ;;  %v5591_v23 = vmul.f32 %v13238_v19, %v5590_v22  ;;  %v5391_v19 = vsel %vm1553_vm1, %v13436_v32, 0.0 }
 0x787   : > { %v5685_v56 = vmul.f32 %v13417_v15, %v5684_v12  ;;  %10091 = vrcp.f32 %v13446_v54  ;;  %vm5702_vm15 = vweird.f32 %v13410_v6  ;;  %vm5807_vm10 = vweird.f32 %v13422_v48 }
 0x788   : > { %v5596_v59 = vadd.f32 %v10078_v41, %v5595_v26  ;;  %9327 = vmatmul.msk.f32.gmra.mxu0 %vm1553_vm1, %v5591_v23 }
 0x789   : > { %v13448_v28 = vpop.eup %10083  ;;  %v5686_v20 = vadd.f32 %v13417_v15, %v5685_v56 }
 0x78a   : > { %v13455_v33 = vpop.eup %10085  ;;  %v5600_v4 = vsel %vm5599_vm5, %v10078_v41, %v5596_v59  ;;  %v5698_v0 = vmul.f32 %v13448_v28, %v13410_v6  ;;  %v13461_v24 = vpop.xlane.xlu2 %5401  ;;  %v5691_v41 = vand.u32 2147483647, %v13391_v40  ;;  %v5694_v40 = vor.u32 1.1754944e-38, %v5693_v50  ;;  %v15470_v59 = vld [vmem:[#allocation107_spill] sm:$0xff] }
 0x78b   : > { %v5605_v14 = vsel %vm5602_vm4, %v5604_v44, %v5600_v4  ;;  %6631 = vrot.lane.b32.xlu0 %v15413_v57, %s10410_s18  ;;  %10093 = vrcp.f32 %v13461_v24  ;;  %v13473_v43 = vpop.eup %10087  ;;  %v5690_v17 = vsel %vm13480_vm9, %v13417_v15, %v5686_v20  ;;  %v13494_v53 = vpop.xlane.xlu1 %5404  ;;  %v13514_v4 = vsel %vm1553_vm1, %v13455_v33, 0.0 }
 0x78c   : > { %v5606_v5 = vmul.f32 %v13254_v60, %v5605_v14  ;;  %v5611_v60 = vadd.f32 %v13397_v9, %v5610_v36  ;;  %v13485_v26 = vpop.eup %10089  ;;  %v5699_v12 = vsub.f32 1.0, %v5698_v0  ;;  %v5616_v36 = vand.u32 2147483647, %v13374_v38  ;;  %v13526_v22 = vpop.xlane.xlu0 %5428 }
 0x78d   : > { %vm5692_vm12 = vcmp.eq.f32.partialorder %v5691_v41, 8.507059e+37  ;;  %v5803_v15 = vmul.f32 %v13473_v43, %v13422_v48  ;;  %v13507_v56 = vpop.eup %10091  ;;  %10095 = vpow2.f32 %v5324_v31  ;;  %v5278_v14 = vsub.f32 %v13213_v62, %v13341_v63 }
 0x78e   : > { %9328 = vmatmul.msk.f32.vlgmr.msra.gmra.mxu1 %vm1553_vm1, %v5606_v5  ;;  %v5695_v29 = vsel %vm5692_vm12, %v5694_v40, %v5690_v17  ;;  %v5615_v38 = vsel %vm13498_vm11, %v13397_v9, %v5611_v60  ;;  %v5619_v20 = vor.u32 1.1754944e-38, %v5618_v58  ;;  %v5700_v50 = vmul.f32 %v13448_v28, %v5699_v12 }
 0x78f   : > { %6320 = vmatpush.msra.mxu1 %v15470_v59  ;;  %10097 = vrcp.f32 %v13494_v53  ;;  %v13522_v5 = vmul.f32 %v13485_v26, %v13400_v47  ;;  %v5708_v41 = vand.u32 2147483648, %v13410_v6  ;;  %vm5617_vm13 = vcmp.eq.f32.partialorder %v5616_v36, 8.507059e+37 }
 0x790   : > { %v5696_v63 = vmul.f32 %v13258_v8, %v5695_v29  ;;  %vm5703_vm14 = vweird.f32 %v13448_v28  ;;  %v5804_v62 = vsub.f32 1.0, %v5803_v15  ;;  %v5620_v31 = vsel %vm5617_vm13, %v5619_v20, %v5615_v38 }
 0x791   : > { %v10094_v0 = vpop.eup %10093  ;;  %v5833_v57 = vmul.f32 %v13507_v56, %v13446_v54  ;;  %v5621_v58 = vmul.f32 %v13240_v11, %v5620_v31  ;;  %v5723_v17 = vand.u32 2147483648, %v13461_v24  ;;  %10099 = vrcp.f32 %v13526_v22  ;;  %vm13542_vm2 = vmor %vm5702_vm15, %vm5703_vm14 }
 0x792   : > { %v5713_v9 = vmul.f32 %v10094_v0, %v13461_v24  ;;  %v5706_v8 = vand.u32 2147483647, %v13410_v6  ;;  %v5338_v23 = vmul.f32 1.442695, %v5278_v14  ;;  %vm5718_vm3 = vweird.f32 %v10094_v0  ;;  %9334 = vmatmul.msk.f32.vlgmr.msrb.gmra.mxu0 %vm1553_vm1, %v5696_v63 }
 0x793   : > { %6666 = vrot.lane.b32.xlu0 %v15369_v25, %s10410_s18  ;;  %v5701_v25 = vadd.f32 %v13448_v28, %v5700_v50  ;;  %v13540_v12 = vpop.eup %10095  ;;  %v5721_v44 = vand.u32 2147483647, %v13461_v24  ;;  %v5819_v15 = vsub.f32 1.0, %v13522_v5  ;;  %v5709_v29 = vor.u32 1.1754944e-38, %v5708_v41  ;;  %9350 = vmatpush.xpose.msk.msrb.mxu0 %vm378_vm0, %v13126_v39 }
 0x794   : > { %v5714_v60 = vsub.f32 1.0, %v5713_v9  ;;  %v5805_v6 = vmul.f32 %v13473_v43, %v5804_v62  ;;  %vm5717_vm4 = vweird.f32 %v13461_v24  ;;  %vm5707_vm5 = vcmp.eq.f32.partialorder %v5706_v8, 8.507059e+37 }
 0x795   : > { %v10098_v11 = vpop.eup %10097  ;;  %v5705_v38 = vsel %vm13542_vm2, %v13448_v28, %v5701_v25  ;;  %v5813_v50 = vand.u32 2147483648, %v13422_v48  ;;  %vm5719_vm6 = vmor %vm5717_vm4, %vm5718_vm3  ;;  %v5724_v5 = vor.u32 1.1754944e-38, %v5723_v17  ;;  %vm5808_vm7 = vweird.f32 %v13473_v43 }
 0x796   : > { %v5715_v36 = vmul.f32 %v10094_v0, %v5714_v60  ;;  %9329 = vmatmul.msk.f32.gmra.mxu1 %vm1553_vm1, %v5621_v58  ;;  %v5728_v20 = vmul.f32 %v10098_v11, %v13494_v53  ;;  %v5710_v41 = vsel %vm5707_vm5, %v5709_v29, %v5705_v38  ;;  %vm5722_vm8 = vcmp.eq.f32.partialorder %v5721_v44, 8.507059e+37  ;;  %vm13577_vm11 = vmor %vm5807_vm10, %vm5808_vm7 }
 0x797   : > { %5392 = vadd.xlane.f32.xlu2 %v5391_v19  ;;  %v5834_v19 = vsub.f32 1.0, %v5833_v57  ;;  %v13563_v24 = vpop.eup %10099  ;;  %v5806_v39 = vadd.f32 %v13473_v43, %v5805_v6  ;;  %v5738_v62 = vand.u32 2147483648, %v13494_v53  ;;  %v5711_v31 = vmul.f32 %v13270_v27, %v5710_v41 }
 0x798   : > { %v5716_v14 = vadd.f32 %v10094_v0, %v5715_v36  ;;  %v5729_v28 = vsub.f32 1.0, %v5728_v20  ;;  %vm5733_vm9 = vweird.f32 %v10098_v11  ;;  %10101 = vpow2.f32 %v5338_v23 }
 0x799   : > { %v5279_v58 = vsub.f32 %v13229_v49, %v13352_v1  ;;  %v5835_v17 = vmul.f32 %v13507_v56, %v5834_v19  ;;  %vm5732_vm12 = vweird.f32 %v13494_v53  ;;  %v5820_v1 = vmul.f32 %v13485_v26, %v5819_v15 }
 0x79a   : > { %v5720_v9 = vsel %vm5719_vm6, %v10094_v0, %v5716_v14  ;;  %v5730_v60 = vmul.f32 %v10098_v11, %v5729_v28  ;;  %v5736_v0 = vand.u32 2147483647, %v13494_v53  ;;  %vm5734_vm13 = vmor %vm5732_vm12, %vm5733_vm9  ;;  %v5739_v25 = vor.u32 1.1754944e-38, %v5738_v62  ;;  %9335 = vmatmul.msk.f32.gmra.mxu0 %vm1553_vm1, %v5711_v31 }
 0x79b   : > { %6668 = vrot.lane.b32.xlu0 %v15371_v35, %s10410_s18  ;;  %v5725_v63 = vsel %vm5722_vm8, %v5724_v5, %v5720_v9  ;;  %v5811_v35 = vand.u32 2147483647, %v13422_v48  ;;  %v5810_v48 = vsel %vm13577_vm11, %v13473_v43, %v5806_v39  ;;  %v5409_v53 = vsel %vm1553_vm1, %v13540_v12, 0.0 }
 0x79c   : > { %v5726_v57 = vmul.f32 %v13282_v10, %v5725_v63  ;;  %v5848_v10 = vmul.f32 %v13563_v24, %v13526_v22  ;;  %v5731_v49 = vadd.f32 %v10098_v11, %v5730_v60  ;;  %v5814_v8 = vor.u32 1.1754944e-38, %v5813_v50 }
 0x79d   : > { %vm5737_vm14 = vcmp.eq.f32.partialorder %v5736_v0, 8.507059e+37  ;;  %v5340_v23 = vmul.f32 1.442695, %v5279_v58  ;;  %vm5812_vm15 = vcmp.eq.f32.partialorder %v5811_v35, 8.507059e+37  ;;  %v5836_v43 = vadd.f32 %v13507_v56, %v5835_v17 }
 0x79e   : > { %9336 = vmatmul.msk.f32.vlgmr.msrb.gmra.mxu1 %vm1553_vm1, %v5726_v57  ;;  %vm5838_vm2 = vweird.f32 %v13507_v56  ;;  %v5815_v36 = vsel %vm5812_vm15, %v5814_v8, %v5810_v48  ;;  %v5849_v44 = vsub.f32 1.0, %v5848_v10  ;;  %vm5823_vm3 = vweird.f32 %v13485_v26  ;;  %v15482_v10 = vld [vmem:[#allocation68_spill] sm:$0xff] }
 0x79f   : > { %5407 = vadd.xlane.f32.xlu2 %v13514_v4  ;;  %9353 = vmatpush.xpose.msk.msrb.mxu1 %vm378_vm0, %v13134_v13  ;;  %v5735_v4 = vsel %vm5734_vm13, %v10098_v11, %v5731_v49  ;;  %v13600_v13 = vpop.eup %10101  ;;  %v5843_v15 = vand.u32 2147483648, %v13446_v54  ;;  %v5821_v11 = vadd.f32 %v13485_v26, %v5820_v1  ;;  %v5828_v29 = vand.u32 2147483648, %v13400_v47  ;;  %v15483_v1 = vld [vmem:[#allocation105_spill] sm:$0xff] }
 0x7a0   : > { %v5740_v40 = vsel %vm5737_vm14, %v5739_v25, %v5735_v4  ;;  %vm5837_vm4 = vweird.f32 %v13446_v54  ;;  %v5841_v6 = vand.u32 2147483647, %v13446_v54  ;;  %vm5822_vm5 = vweird.f32 %v13400_v47 }
 0x7a1   : > { %5410 = vadd.xlane.f32.xlu1 %v5409_v53  ;;  %v5741_v38 = vmul.f32 %v13286_v42, %v5740_v40  ;;  %vm13610_vm6 = vmor %vm5837_vm4, %vm5838_vm2  ;;  %v5816_v14 = vmul.f32 %v13274_v52, %v5815_v36  ;;  %v5826_v20 = vand.u32 2147483647, %v13400_v47  ;;  %10103 = vpow2.f32 %v5340_v23 }
 0x7a2   : > { %vm13616_vm7 = vmor %vm5822_vm5, %vm5823_vm3  ;;  %v5840_v54 = vsel %vm13610_vm6, %v13507_v56, %v5836_v43  ;;  %v5850_v42 = vmul.f32 %v13563_v24, %v5849_v44  ;;  %v5844_v50 = vor.u32 1.1754944e-38, %v5843_v15  ;;  %v5430_v47 = vsel %vm1553_vm1, %v13600_v13, 0.0  ;;  %v15484_v43 = vld [vmem:[#allocation44_spill] sm:$0xff] }
 0x7a3   : > { %6810 = vrot.lane.b32.xlu0 %v15366_v34, %s10410_s18  ;;  %9342 = vmatmul.msk.f32.vlgmr.msra.gmra.mxu0 %vm1553_vm1, %v5816_v14  ;;  %v5825_v52 = vsel %vm13616_vm7, %v13485_v26, %v5821_v11  ;;  %v5829_v5 = vor.u32 1.1754944e-38, %v5828_v29  ;;  %vm5842_vm8 = vcmp.eq.f32.partialorder %v5841_v6, 8.507059e+37  ;;  %vm5827_vm9 = vcmp.eq.f32.partialorder %v5826_v20, 8.507059e+37  ;;  %v15485_v11 = vld [vmem:[#allocation55_spill] sm:$0xff] }
 0x7a4   : > { %v5845_v41 = vsel %vm5842_vm8, %v5844_v50, %v5840_v54  ;;  %v5851_v56 = vadd.f32 %v13563_v24, %v5850_v42  ;;  %vm5853_vm10 = vweird.f32 %v13563_v24  ;;  %v5858_v28 = vand.u32 2147483648, %v13526_v22  ;;  %v15486_v20 = vld [vmem:[#allocation95_spill] sm:$0xff]  ;;  %v15487_v54 = vld [vmem:[#allocation21_spill] sm:$0xff] }
 0x7a5   : > { %v5830_v9 = vsel %vm5827_vm9, %v5829_v5, %v5825_v52  ;;  %v5846_v26 = vmul.f32 %v13272_v51, %v5845_v41  ;;  %vm5852_vm11 = vweird.f32 %v13526_v22  ;;  %v5856_v63 = vand.u32 2147483647, %v13526_v22 }
 0x7a6   : > { %9337 = vmatmul.msk.f32.gmra.mxu1 %vm1553_vm1, %v5741_v38  ;;  %vm5854_vm12 = vmor %vm5852_vm11, %vm5853_vm10  ;;  %v5831_v62 = vmul.f32 %v13256_v61, %v5830_v9  ;;  %v5859_v57 = vor.u32 1.1754944e-38, %v5858_v28  ;;  %v15488_v28 = vld [vmem:[#allocation130_spill] sm:$0xff] }
 0x7a7   : > { %v13636_v39 = vpop.eup %10103  ;;  %v5855_v31 = vsel %vm5854_vm12, %v13563_v24, %v5851_v56  ;;  %vm5857_vm13 = vcmp.eq.f32.partialorder %v5856_v63, 8.507059e+37 }
 0x7a8   : > { %v5860_v51 = vsel %vm5857_vm13, %v5859_v57, %v5855_v31 }
 0x7a9   : > { %5431 = vadd.xlane.f32.xlu1 %v5430_v47  ;;  %v5861_v61 = vmul.f32 %v13284_v2, %v5860_v51 }
 0x7ab   : > { %6806 = vrot.lane.b32.xlu0 %v15372_v37, %s10410_s18  ;;  %9343 = vmatmul.msk.f32.gmra.mxu0 %vm1553_vm1, %v5831_v62  ;;  %v5433_v37 = vsel %vm1553_vm1, %v13636_v39, 0.0 }
 0x7ae   : > { %9344 = vmatmul.msk.f32.vlgmr.msra.gmra.mxu1 %vm1553_vm1, %v5846_v26  ;;  %v15489_v26 = vld [vmem:[#allocation51_spill] sm:$0xff] }
 0x7af   : > { %v5272_v63 = vsub.f32 %v15489_v26, %v15488_v28 }
 0x7b1   : > { %v5360_v60 = vpop.xlane.xlu0 %5359  ;;  %5434 = vadd.xlane.f32.xlu1 %v5433_v37  ;;  %v15492_v37 = vld [vmem:[#allocation43_spill] sm:$0xff] }
 0x7b2   : > { %10105 = vrcp.f32 %v5360_v60  ;;  %v5513_v2 = vand.u32 2147483648, %v5360_v60  ;;  %v5511_v27 = vand.u32 2147483647, %v5360_v60  ;;  %vm5507_vm15 = vweird.f32 %v5360_v60 }
 0x7b3   : > { %6808 = vrot.lane.b32.xlu0 %v15378_v21, %s10410_s18  ;;  %9351 = vmatmul.msk.f32.vlgmr.msrb.gmra.mxu0 %vm378_vm0, %v12847_v45  ;;  %v15481_v21 = vld [vmem:[#allocation18_spill] sm:$0xff] }
 0x7b4   : > { %v5514_v49 = vor.u32 1.1754944e-38, %v5513_v2  ;;  %vm5512_vm3 = vcmp.eq.f32.partialorder %v5511_v27, 8.507059e+37 }
 0x7b6   : > { %9345 = vmatmul.msk.f32.gmra.mxu1 %vm1553_vm1, %v5861_v61 }
 0x7b7   : > { %6600 = vrot.lane.b32.xlu2 %v15383_v55, %s10410_s18 }
 0x7b8   : > { %v10106_v22 = vpop.eup %10105 }
 0x7b9   : > { %v5503_v24 = vmul.f32 %v10106_v22, %v5360_v60  ;;  %v5366_v0 = vpop.xlane.xlu0 %5365  ;;  %v13655_v58 = vpop.xlane.xlu1 %5362  ;;  %vm5508_vm14 = vweird.f32 %v10106_v22  ;;  %v15493_v60 = vld [vmem:[#allocation56_spill] sm:$0xff] }
 0x7ba   : > { %10107 = vrcp.f32 %v5366_v0  ;;  %vm5509_vm2 = vmor %vm5507_vm15, %vm5508_vm14  ;;  %v5543_v29 = vand.u32 2147483648, %v5366_v0  ;;  %v5541_v34 = vand.u32 2147483647, %v5366_v0  ;;  %vm5537_vm5 = vweird.f32 %v5366_v0 }
 0x7bb   : > { %v5504_v35 = vsub.f32 1.0, %v5503_v24  ;;  %10109 = vrcp.f32 %v13655_v58  ;;  %6771 = vrot.lane.b32.xlu0 %v15481_v21, %s10410_s18  ;;  %9352 = vmatmul.msk.f32.gmra.mxu0 %vm378_vm0, %v15483_v1  ;;  %vm5522_vm8 = vweird.f32 %v13655_v58  ;;  %v5528_v52 = vand.u32 2147483648, %v13655_v58  ;;  %v15494_v24 = vld [vmem:[#allocation25_spill] sm:$0xff] }
 0x7bc   : > { %v5544_v50 = vor.u32 1.1754944e-38, %v5543_v29  ;;  %vm5542_vm9 = vcmp.eq.f32.partialorder %v5541_v34, 8.507059e+37  ;;  %v5526_v56 = vand.u32 2147483647, %v13655_v58  ;;  %v15498_v34 = vld [vmem:[#allocation28_spill] sm:$0xff] }
 0x7bd   : > { %v5505_v17 = vmul.f32 %v10106_v22, %v5504_v35  ;;  %v5529_v35 = vor.u32 1.1754944e-38, %v5528_v52 }
 0x7be   : > { %9354 = vmatmul.msk.f32.vlgmr.msrb.gmra.mxu1 %vm378_vm0, %v15482_v10  ;;  %vm5527_vm12 = vcmp.eq.f32.partialorder %v5526_v56, 8.507059e+37 }
 0x7bf   : > { %v5506_v55 = vadd.f32 %v10106_v22, %v5505_v17 }
 0x7c0   : > { %v10108_v45 = vpop.eup %10107 }
 0x7c1   : > { %v10110_v48 = vpop.eup %10109  ;;  %v5510_v25 = vsel %vm5509_vm2, %v10106_v22, %v5506_v55  ;;  %v5533_v53 = vmul.f32 %v10108_v45, %v5366_v0  ;;  %v13664_v8 = vpop.xlane.xlu2 %5383  ;;  %vm5538_vm4 = vweird.f32 %v10108_v45  ;;  %v5326_v55 = vmul.f32 1.442695, %v5272_v63 }
 0x7c2   : > { %v5515_v4 = vsel %vm5512_vm3, %v5514_v49, %v5510_v25  ;;  %v5518_v23 = vmul.f32 %v10110_v48, %v13655_v58  ;;  %10111 = vrcp.f32 %v13664_v8  ;;  %v13668_v40 = vpop.xlane.xlu0 %5389  ;;  %v13671_v15 = vpop.xlane.xlu1 %5368  ;;  %vm5523_vm6 = vweird.f32 %v10110_v48  ;;  %vm5539_vm7 = vmor %vm5537_vm5, %vm5538_vm4  ;;  %v15495_v49 = vld [vmem:[#allocation99_spill] sm:$0xff]  ;;  %v15496_v25 = vld [vmem:[#allocation62_spill] sm:$0xff] }
 0x7c3   : > { %v5516_v36 = vmul.f32 %v15484_v43, %v5515_v4  ;;  %v5534_v44 = vsub.f32 1.0, %v5533_v53  ;;  %6880 = vrot.lane.b32.xlu0 %v15485_v11, %s10410_s18  ;;  %10113 = vrcp.f32 %v13668_v40  ;;  %vm13690_vm10 = vmor %vm5522_vm8, %vm5523_vm6  ;;  %v5631_v21 = vand.u32 2147483647, %v13664_v8 }
 0x7c4   : > { %v5519_v6 = vsub.f32 1.0, %v5518_v23  ;;  %10115 = vrcp.f32 %v13671_v15  ;;  %v5633_v2 = vand.u32 2147483648, %v13664_v8  ;;  %vm5627_vm13 = vweird.f32 %v13664_v8 }
 0x7c5   : > { %v5535_v38 = vmul.f32 %v10108_v45, %v5534_v44  ;;  %9322 = vmatmul.msk.f32.vlgmr.msrb.gmra.mxu2 %vm1553_vm1, %v5516_v36  ;;  %vm5632_vm15 = vcmp.eq.f32.partialorder %v5631_v21, 8.507059e+37  ;;  %v5558_v36 = vand.u32 2147483648, %v13671_v15  ;;  %v5556_v44 = vand.u32 2147483647, %v13671_v15 }
 0x7c6   : > { %v5520_v14 = vmul.f32 %v10110_v48, %v5519_v6  ;;  %6233 = vmatpush.msrb.mxu2 %v15486_v20  ;;  %9355 = vmatmul.msk.f32.gmra.mxu1 %vm378_vm0, %v15487_v54  ;;  %v5634_v4 = vor.u32 1.1754944e-38, %v5633_v2  ;;  %v5663_v54 = vand.u32 2147483648, %v13668_v40  ;;  %vm5552_vm3 = vweird.f32 %v13671_v15 }
 0x7c7   : > { %v5536_v19 = vadd.f32 %v10108_v45, %v5535_v38  ;;  %vm5557_vm5 = vcmp.eq.f32.partialorder %v5556_v44, 8.507059e+37  ;;  %vm5657_vm8 = vweird.f32 %v13668_v40  ;;  %v15511_v44 = vld [vmem:[#allocation42_spill] sm:$0xff] }
 0x7c8   : > { %v10112_v42 = vpop.eup %10111  ;;  %v5521_v47 = vadd.f32 %v10110_v48, %v5520_v14  ;;  %v15499_v14 = vld [vmem:[#allocation41_spill] sm:$0xff] }
 0x7c9   : > { %v5540_v5 = vsel %vm5539_vm7, %v10108_v45, %v5536_v19  ;;  %v5623_v41 = vmul.f32 %v10112_v42, %v13664_v8  ;;  %v13685_v9 = vpop.eup %10113  ;;  %vm5628_vm11 = vweird.f32 %v10112_v42  ;;  %v15497_v8 = vld [vmem:[#allocation45_spill] sm:$0xff]  ;;  %v5273_v19 = vsub.f32 %v15499_v14, %v13337_v16 }
 0x7ca   : > { %v5545_v62 = vsel %vm5542_vm9, %v5544_v50, %v5540_v5  ;;  %v13694_v57 = vpop.xlane.xlu0 %5386  ;;  %6635 = vrot.lane.b32.xlu1 %v15492_v37, %s10410_s18  ;;  %v5653_v22 = vmul.f32 %v13685_v9, %v13668_v40  ;;  %v5525_v0 = vsel %vm13690_vm10, %v10110_v48, %v5521_v47  ;;  %v10116_v58 = vpop.eup %10115  ;;  %vm5629_vm14 = vmor %vm5627_vm13, %vm5628_vm11  ;;  %v15500_v50 = vld [vmem:[#allocation128_spill] sm:$0xff]  ;;  %v5559_v47 = vor.u32 1.1754944e-38, %v5558_v36 }
 0x7cb   : > { %v5546_v51 = vmul.f32 %v15493_v60, %v5545_v62  ;;  %v5624_v61 = vsub.f32 1.0, %v5623_v41  ;;  %6878 = vrot.lane.b32.xlu0 %v15494_v24, %s10410_s18  ;;  %10117 = vrcp.f32 %v13694_v57  ;;  %v5548_v27 = vmul.f32 %v10116_v58, %v13671_v15  ;;  %v15501_v62 = vld [vmem:[#allocation127_spill] sm:$0xff]  ;;  %v15522_v60 = vld [vmem:[#allocation58_spill] sm:$0xff] }
 0x7cc   : > { %v5654_v10 = vsub.f32 1.0, %v5653_v22  ;;  %v5530_v45 = vsel %vm5527_vm12, %v5529_v35, %v5525_v0  ;;  %vm5553_vm2 = vweird.f32 %v10116_v58  ;;  %10119 = vpow2.f32 %v5326_v55  ;;  %v15504_v0 = vld [vmem:[#allocation111_spill] sm:$0xff]  ;;  %v15505_v35 = vld [vmem:[#allocation14_spill] sm:$0xff]  ;;  %v15507_v55 = vld [vmem:[#allocation53_spill] sm:$0xff] }
 0x7cd   : > { %v5625_v17 = vmul.f32 %v10112_v42, %v5624_v61  ;;  %9324 = vmatmul.msk.f32.vlgmr.msrb.gmra.mxu3 %vm1553_vm1, %v5546_v51  ;;  %v5549_v48 = vsub.f32 1.0, %v5548_v27  ;;  %v5531_v53 = vmul.f32 %v15496_v25, %v5530_v45  ;;  %vm5554_vm4 = vmor %vm5552_vm3, %vm5553_vm2  ;;  %vm5658_vm6 = vweird.f32 %v13685_v9 }
 0x7ce   : > { %6262 = vmatpush.msrb.mxu3 %v15495_v49  ;;  %v5655_v6 = vmul.f32 %v13685_v9, %v5654_v10  ;;  %v5648_v56 = vand.u32 2147483648, %v13694_v57  ;;  %v5646_v16 = vand.u32 2147483647, %v13694_v57  ;;  %v5661_v15 = vand.u32 2147483647, %v13668_v40  ;;  %vm13736_vm9 = vmor %vm5657_vm8, %vm5658_vm6 }
 0x7cf   : > { %v5626_v1 = vadd.f32 %v10112_v42, %v5625_v17  ;;  %v5550_v43 = vmul.f32 %v10116_v58, %v5549_v48  ;;  %9323 = vmatmul.msk.f32.gmra.mxu2 %vm1553_vm1, %v5531_v53  ;;  %vm5642_vm10 = vweird.f32 %v13694_v57  ;;  %v5328_v22 = vmul.f32 1.442695, %v5273_v19 }
 0x7d0   : > { %v5656_v41 = vadd.f32 %v13685_v9, %v5655_v6  ;;  %v5649_v40 = vor.u32 1.1754944e-38, %v5648_v56  ;;  %vm5647_vm12 = vcmp.eq.f32.partialorder %v5646_v16, 8.507059e+37  ;;  %vm5662_vm13 = vcmp.eq.f32.partialorder %v5661_v15, 8.507059e+37  ;;  %v15520_v15 = vld [vmem:[#allocation57_spill] sm:$0xff] }
 0x7d1   : > { %v5630_v23 = vsel %vm5629_vm14, %v10112_v42, %v5626_v1  ;;  %v10118_v11 = vpop.eup %10117  ;;  %v5551_v42 = vadd.f32 %v10116_v58, %v5550_v43  ;;  %10121 = vpow2.f32 %v5328_v22  ;;  %v5280_v10 = vsub.f32 %v15507_v55, %v13339_v7  ;;  %v15508_v1 = vld [vmem:[#allocation129_spill] sm:$0xff]  ;;  %v15510_v7 = vld [vmem:[#allocation48_spill] sm:$0xff] }
 0x7d2   : > { %v5635_v29 = vsel %vm5632_vm15, %v5634_v4, %v5630_v23  ;;  %6670 = vrot.lane.b32.xlu1 %v15497_v8, %s10410_s18  ;;  %v5638_v38 = vmul.f32 %v10118_v11, %v13694_v57  ;;  %vm5643_vm7 = vweird.f32 %v10118_v11  ;;  %v13734_v37 = vpop.eup %10119  ;;  %v5660_v24 = vsel %vm13736_vm9, %v13685_v9, %v5656_v41  ;;  %v15506_v9 = vld [vmem:[#allocation131_spill] sm:$0xff]  ;;  %v13761_v4 = vpop.permute.xlu2 %6493  ;;  %v15509_v23 = vld [vmem:[#allocation116_spill] sm:$0xff]  ;;  %v15515_v41 = vld [vmem:[#allocation50_spill] sm:$0xff] }
 0x7d3   : > { %6913 = vrot.lane.b32.xlu0 %v15498_v34, %s10410_s18  ;;  %v5636_v52 = vmul.f32 %v15500_v50, %v5635_v29  ;;  %v5555_v28 = vsel %vm5554_vm4, %v10116_v58, %v5551_v42  ;;  %vm5644_vm11 = vmor %vm5642_vm10, %vm5643_vm7  ;;  %v5664_v58 = vor.u32 1.1754944e-38, %v5663_v54  ;;  %v5412_v45 = vsel %vm1553_vm1, %v13734_v37, 0.0  ;;  %v15512_v8 = vld [vmem:[#allocation16_spill] sm:$0xff]  ;;  %v15513_v54 = vld [vmem:[#allocation17_spill] sm:$0xff] }
 0x7d4   : > { %v5639_v5 = vsub.f32 1.0, %v5638_v38  ;;  %v5560_v63 = vsel %vm5557_vm5, %v5559_v47, %v5555_v28  ;;  %v5342_v53 = vmul.f32 1.442695, %v5280_v10 }
 0x7d5   : > { %v5561_v31 = vmul.f32 %v15501_v62, %v5560_v63  ;;  %v5665_v2 = vsel %vm5662_vm13, %v5664_v58, %v5660_v24 }
 0x7d6   : > { %v5640_v26 = vmul.f32 %v10118_v11, %v5639_v5  ;;  %v5666_v48 = vmul.f32 %v15508_v1, %v5665_v2  ;;  %10123 = vpow2.f32 %v5342_v53 }
 0x7d7   : > { %9330 = vmatmul.msk.f32.vlgmr.msra.gmra.mxu2 %vm1553_vm1, %v5636_v52  ;;  %9325 = vmatmul.msk.f32.gmra.mxu3 %vm1553_vm1, %v5561_v31  ;;  %v13766_v43 = vpop.eup %10121 }
 0x7d8   : > { %v5641_v51 = vadd.f32 %v10118_v11, %v5640_v26  ;;  %6349 = vmatpush.msra.mxu2 %v15504_v0  ;;  %v5415_v29 = vsel %vm1553_vm1, %v13766_v43, 0.0  ;;  %v15518_v26 = vld [vmem:[#allocation19_spill] sm:$0xff] }
 0x7d9   : > { %v6531_v61 = vpop.permute.xlu1 %6530 }
 0x7da   : > { %6701 = vrot.lane.b32.xlu1 %v15505_v35, %s10410_s18  ;;  %9362 = vmatpush.xpose.msk.msra.mxu0 %vm378_vm0, %v6531_v61  ;;  %v5645_v57 = vsel %vm5644_vm11, %v10118_v11, %v5641_v51  ;;  %v5281_v11 = vsub.f32 %v15511_v44, %v13370_v30  ;;  %v6529_v34 = vpop.permute.xlu2 %6528 }
 0x7db   : > { %v5650_v21 = vsel %vm5647_vm12, %v5649_v40, %v5645_v57 }
 0x7dc   : > { %v5651_v27 = vmul.f32 %v15506_v9, %v5650_v21  ;;  %v5344_v6 = vmul.f32 1.442695, %v5281_v11  ;;  %v13775_v38 = vpop.eup %10123 }
 0x7dd   : > { %v13750_v17 = vpop.permute.xlu0 %6491  ;;  %v5436_v30 = vsel %vm1553_vm1, %v13775_v38, 0.0 }
 0x7de   : > { %10125 = vpow2.f32 %v5344_v6 }
 0x7df   : > { %9331 = vmatmul.msk.f32.gmra.mxu2 %vm1553_vm1, %v5651_v27  ;;  %9332 = vmatmul.msk.f32.vlgmr.msra.gmra.mxu3 %vm1553_vm1, %v5666_v48  ;;  %v15525_v27 = vld [vmem:[#allocation11_spill] sm:$0xff] }
 0x7e0   : > { %5413 = vadd.xlane.f32.xlu2 %v5412_v45  ;;  %6378 = vmatpush.msra.mxu3 %v15509_v23 }
 0x7e1   : > { %v6566_v25 = vpop.permute.xlu1 %6565 }
 0x7e2   : > { %9365 = vmatpush.xpose.msk.msra.mxu1 %vm378_vm0, %v6566_v25  ;;  %6740 = vrot.lane.b32.xlu1 %v15510_v7, %s10410_s18  ;;  %v13781_v19 = vpop.f32.mrf.mxu0 }
 0x7e4   : > { %v13785_v42 = vpop.eup %10125 }
 0x7e5   : > { %v6527_v36 = vpop.permute.xlu0 %6526  ;;  %v5439_v52 = vsel %vm1553_vm1, %v13785_v42, 0.0 }
 0x7e6   : > { %9363 = vmatmul.msk.f32.vlgmr.msra.gmra.mxu0 %vm378_vm0, %v6527_v36 }
 0x7e8   : > { %5416 = vadd.xlane.f32.xlu2 %v5415_v29 }
 0x7e9   : > { %v13806_v62 = vpop.permute.xlu1 %6596 }
 0x7ea   : > { %6736 = vrot.lane.b32.xlu1 %v15512_v8, %s10410_s18  ;;  %v13792_v5 = vpop.f32.mrf.mxu1 }
 0x7eb   : > { %15514 = vst [vmem:[#allocation88_spill] sm:$0xff] %v13792_v5 }
 0x7ec   : > { %v13790_v47 = vpop.f32.mrf.mxu0 }
 0x7ed   : > { %v6562_v14 = vpop.permute.xlu0 %6561 }
 0x7ee   : > { %9364 = vmatmul.msk.f32.gmra.mxu0 %vm378_vm0, %v6529_v34  ;;  %9366 = vmatmul.msk.f32.vlgmr.msra.gmra.mxu1 %vm378_vm0, %v6562_v14 }
 0x7f0   : > { %5437 = vadd.xlane.f32.xlu2 %v5436_v30 }
 0x7f2   : > { %6738 = vrot.lane.b32.xlu1 %v15513_v54, %s10410_s18 }
 0x7f5   : > { %v6564_v50 = vpop.permute.xlu0 %6563 }
 0x7f6   : > { %9367 = vmatmul.msk.f32.gmra.mxu1 %vm378_vm0, %v6564_v50 }
 0x7f8   : > { %5440 = vadd.xlane.f32.xlu2 %v5439_v52 }
 0x7fa   : > { %6775 = vrot.lane.b32.xlu1 %v15515_v41, %s10410_s18  ;;  %v15528_v41 = vld [vmem:[#allocation46_spill] sm:$0xff] }
 0x7fb   : > { %v13798_v28 = vpop.f32.mrf.mxu0 }
 0x7fc   : > { %15517 = vst [vmem:[#allocation103_spill] sm:$0xff] %v13798_v28 }
 0x7fd   : > { %v13812_v61 = vpop.permute.xlu0 %6631 }
 0x7fe   : > { %v13796_v56 = vpop.f32.mrf.mxu1 }
 0x7ff   : > { %15516 = vst [vmem:[#allocation92_spill] sm:$0xff] %v13796_v56 }
 0x802   : > { %6773 = vrot.lane.b32.xlu1 %v15518_v26, %s10410_s18 }
 0x805   : > { %v13808_v31 = vpop.f32.mrf.mxu0  ;;  %v13820_v53 = vpop.permute.xlu0 %6666 }
 0x806   : > { %15521 = vst [vmem:[#allocation18_spill] sm:$0xff] %v13808_v31 }
 0x80a   : > { %v5393_v16 = vpop.xlane.xlu2 %5392  ;;  %6915 = vrot.lane.b32.xlu1 %v15520_v15, %s10410_s18 }
 0x80b   : > { %10127 = vrcp.f32 %v5393_v16  ;;  %v13802_v63 = vpop.f32.mrf.mxu1  ;;  %v5678_v57 = vand.u32 2147483648, %v5393_v16  ;;  %v5676_v9 = vand.u32 2147483647, %v5393_v16  ;;  %vm5672_vm15 = vweird.f32 %v5393_v16 }
 0x80c   : > { %15519 = vst [vmem:[#allocation107_spill] sm:$0xff] %v13802_v63 }
 0x80d   : > { %v5679_v45 = vor.u32 1.1754944e-38, %v5678_v57  ;;  %vm5677_vm3 = vcmp.eq.f32.partialorder %v5676_v9, 8.507059e+37  ;;  %v13833_v9 = vpop.permute.xlu0 %6668 }
 0x80f   : > { %v13816_v21 = vpop.f32.mrf.mxu0 }
 0x810   : > { %6598 = vrot.lane.b32.xlu2 %v15522_v60, %s10410_s18  ;;  %15524 = vst [vmem:[#allocation105_spill] sm:$0xff] %v13816_v21 }
 0x811   : > { %v10128_v51 = vpop.eup %10127 }
 0x812   : > { %v5668_v22 = vmul.f32 %v10128_v51, %v5393_v16  ;;  %v5408_v24 = vpop.xlane.xlu2 %5407  ;;  %vm5673_vm14 = vweird.f32 %v10128_v51 }
 0x813   : > { %10129 = vrcp.f32 %v5408_v24  ;;  %v13814_v58 = vpop.f32.mrf.mxu1  ;;  %vm5674_vm2 = vmor %vm5672_vm15, %vm5673_vm14  ;;  %v5753_v8 = vand.u32 2147483648, %v5408_v24  ;;  %v5751_v30 = vand.u32 2147483647, %v5408_v24  ;;  %vm5747_vm5 = vweird.f32 %v5408_v24 }
 0x814   : > { %v5669_v40 = vsub.f32 1.0, %v5668_v22  ;;  %15523 = vst [vmem:[#allocation68_spill] sm:$0xff] %v13814_v58  ;;  %v5411_v35 = vpop.xlane.xlu1 %5410 }
 0x815   : > { %10131 = vrcp.f32 %v5411_v35  ;;  %v5754_v26 = vor.u32 1.1754944e-38, %v5753_v8  ;;  %vm5752_vm7 = vcmp.eq.f32.partialorder %v5751_v30, 8.507059e+37  ;;  %vm5762_vm9 = vweird.f32 %v5411_v35 }
 0x816   : > { %v5670_v2 = vmul.f32 %v10128_v51, %v5669_v40 }
 0x817   : > { %v13825_v34 = vpop.f32.mrf.mxu0 }
 0x818   : > { %6633 = vrot.lane.b32.xlu2 %v15525_v27, %s10410_s18  ;;  %v5671_v55 = vadd.f32 %v10128_v51, %v5670_v2  ;;  %15527 = vst [vmem:[#allocation55_spill] sm:$0xff] %v13825_v34  ;;  %v5766_v2 = vand.u32 2147483647, %v5411_v35 }
 0x819   : > { %v10130_v10 = vpop.eup %10129 }
 0x81a   : > { %v5743_v1 = vmul.f32 %v10130_v10, %v5408_v24  ;;  %v5675_v48 = vsel %vm5674_vm2, %v10128_v51, %v5671_v55  ;;  %vm5748_vm4 = vweird.f32 %v10130_v10  ;;  %v5768_v51 = vand.u32 2147483648, %v5411_v35 }
 0x81b   : > { %v10132_v25 = vpop.eup %10131  ;;  %v5680_v7 = vsel %vm5677_vm3, %v5679_v45, %v5675_v48  ;;  %v13822_v11 = vpop.f32.mrf.mxu1  ;;  %vm5749_vm6 = vmor %vm5747_vm5, %vm5748_vm4  ;;  %v15532_v48 = vld [vmem:[#allocation15_spill] sm:$0xff]  ;;  %vm5767_vm11 = vcmp.eq.f32.partialorder %v5766_v2, 8.507059e+37 }
 0x81c   : > { %v5744_v36 = vsub.f32 1.0, %v5743_v1  ;;  %v5758_v44 = vmul.f32 %v10132_v25, %v5411_v35  ;;  %15526 = vst [vmem:[#allocation44_spill] sm:$0xff] %v13822_v11  ;;  %v5432_v29 = vpop.xlane.xlu1 %5431  ;;  %v5681_v6 = vmul.f32 %v13436_v32, %v5680_v7  ;;  %vm5763_vm8 = vweird.f32 %v10132_v25  ;;  %v15531_v1 = vld [vmem:[#allocation20_spill] sm:$0xff] }
 0x81d   : > { %10133 = vrcp.f32 %v5432_v29  ;;  %vm5764_vm10 = vmor %vm5762_vm9, %vm5763_vm8  ;;  %v5769_v45 = vor.u32 1.1754944e-38, %v5768_v51  ;;  %vm5867_vm13 = vweird.f32 %v5432_v29 }
 0x81e   : > { %v5745_v14 = vmul.f32 %v10130_v10, %v5744_v36  ;;  %v5759_v54 = vsub.f32 1.0, %v5758_v44  ;;  %9333 = vmatmul.msk.f32.gmra.mxu3 %vm1553_vm1, %v5681_v6  ;;  %v5873_v44 = vand.u32 2147483648, %v5432_v29  ;;  %v5871_v6 = vand.u32 2147483647, %v5432_v29 }
 0x820   : > { %v5746_v50 = vadd.f32 %v10130_v10, %v5745_v14  ;;  %v5760_v52 = vmul.f32 %v10132_v25, %v5759_v54  ;;  %6705 = vrot.lane.b32.xlu2 %v15528_v41, %s10410_s18  ;;  %v13835_v27 = vpop.f32.mrf.mxu0  ;;  %v5874_v41 = vor.u32 1.1754944e-38, %v5873_v44  ;;  %vm5872_vm15 = vcmp.eq.f32.partialorder %v5871_v6, 8.507059e+37 }
 0x821   : > { %15530 = vst [vmem:[#allocation21_spill] sm:$0xff] %v13835_v27 }
 0x822   : > { %v5750_v16 = vsel %vm5749_vm6, %v10130_v10, %v5746_v50  ;;  %v5761_v32 = vadd.f32 %v10132_v25, %v5760_v52  ;;  %v6811_v52 = vpop.permute.xlu0 %6810 }
 0x823   : > { %v10134_v15 = vpop.eup %10133  ;;  %v5755_v60 = vsel %vm5752_vm7, %v5754_v26, %v5750_v16  ;;  %v13831_v57 = vpop.f32.mrf.mxu1  ;;  %v15535_v16 = vld [vmem:[#allocation54_spill] sm:$0xff] }
 0x824   : > { %v5756_v22 = vmul.f32 %v13455_v33, %v5755_v60  ;;  %v5863_v40 = vmul.f32 %v10134_v15, %v5432_v29  ;;  %15529 = vst [vmem:[#allocation95_spill] sm:$0xff] %v13831_v57  ;;  %v5435_v24 = vpop.xlane.xlu1 %5434  ;;  %v5765_v10 = vsel %vm5764_vm10, %v10132_v25, %v5761_v32  ;;  %vm5868_vm12 = vweird.f32 %v10134_v15 }
 0x825   : > { %10135 = vrcp.f32 %v5435_v24  ;;  %v5770_v35 = vsel %vm5767_vm11, %v5769_v45, %v5765_v10  ;;  %vm5869_vm14 = vmor %vm5867_vm13, %vm5868_vm12  ;;  %v5888_v60 = vand.u32 2147483648, %v5435_v24  ;;  %vm5882_vm3 = vweird.f32 %v5435_v24  ;;  %v15537_v10 = vld [vmem:[#allocation22_spill] sm:$0xff] }
 0x826   : > { %v5864_v55 = vsub.f32 1.0, %v5863_v40  ;;  %9338 = vmatmul.msk.f32.vlgmr.msrb.gmra.mxu2 %vm1553_vm1, %v5756_v22  ;;  %v5771_v25 = vmul.f32 %v13540_v12, %v5770_v35  ;;  %v6601_v40 = vpop.permute.xlu2 %6600 }
 0x827   : > { %9356 = vmatpush.xpose.msk.msrb.mxu2 %vm378_vm0, %v15531_v1 }
 0x828   : > { %v5865_v33 = vmul.f32 %v10134_v15, %v5864_v55  ;;  %6703 = vrot.lane.b32.xlu2 %v15532_v48, %s10410_s18  ;;  %v13845_v30 = vpop.f32.mrf.mxu0  ;;  %v5889_v55 = vor.u32 1.1754944e-38, %v5888_v60 }
 0x829   : > { %15534 = vst [vmem:[#allocation51_spill] sm:$0xff] %v13845_v30 }
 0x82a   : > { %v5866_v7 = vadd.f32 %v10134_v15, %v5865_v33  ;;  %v6807_v45 = vpop.permute.xlu0 %6806 }
 0x82b   : > { %v10136_v36 = vpop.eup %10135  ;;  %v13842_v14 = vpop.f32.mrf.mxu1 }
 0x82c   : > { %v5878_v8 = vmul.f32 %v10136_v36, %v5435_v24  ;;  %15533 = vst [vmem:[#allocation130_spill] sm:$0xff] %v13842_v14  ;;  %v5870_v54 = vsel %vm5869_vm14, %v10134_v15, %v5866_v7  ;;  %vm5883_vm2 = vweird.f32 %v10136_v36  ;;  %v5886_v15 = vand.u32 2147483647, %v5435_v24 }
 0x82d   : > { %v5875_v29 = vsel %vm5872_vm15, %v5874_v41, %v5870_v54  ;;  %vm5884_vm4 = vmor %vm5882_vm3, %vm5883_vm2  ;;  %v15542_v41 = vld [vmem:[#allocation26_spill] sm:$0xff] }
 0x82e   : > { %v5879_v50 = vsub.f32 1.0, %v5878_v8  ;;  %9339 = vmatmul.msk.f32.gmra.mxu2 %vm1553_vm1, %v5771_v25  ;;  %v5876_v12 = vmul.f32 %v13600_v13, %v5875_v29  ;;  %vm5887_vm5 = vcmp.eq.f32.partialorder %v5886_v15, 8.507059e+37  ;;  %v15540_v8 = vld [vmem:[#allocation24_spill] sm:$0xff]  ;;  %v15544_v29 = vld [vmem:[#allocation63_spill] sm:$0xff] }
 0x830   : > { %v5880_v26 = vmul.f32 %v10136_v36, %v5879_v50  ;;  %6845 = vrot.lane.b32.xlu2 %v15535_v16, %s10410_s18  ;;  %v13853_v22 = vpop.f32.mrf.mxu0  ;;  %v15541_v50 = vld [vmem:[#allocation73_spill] sm:$0xff]  ;;  %v15543_v16 = vld [vmem:[#allocation59_spill] sm:$0xff] }
 0x832   : > { %v5881_v32 = vadd.f32 %v10136_v36, %v5880_v26  ;;  %v6809_v44 = vpop.permute.xlu0 %6808 }
 0x833   : > { %v13851_v51 = vpop.f32.mrf.mxu1 }
 0x834   : > { %15536 = vst [vmem:[#allocation43_spill] sm:$0xff] %v13851_v51  ;;  %v5885_v2 = vsel %vm5884_vm4, %v10136_v36, %v5881_v32  ;;  %v15538_v36 = vld [vmem:[#allocation23_spill] sm:$0xff]  ;;  %v9560_v32 = vpack.i.bf16 %v15544_v29, %v15543_v16 }
 0x835   : > { %v5890_v13 = vsel %vm5887_vm5, %v5889_v55, %v5885_v2 }
 0x836   : > { %9346 = vmatmul.msk.f32.vlgmr.msra.gmra.mxu2 %vm1553_vm1, %v5876_v12  ;;  %v5891_v24 = vmul.f32 %v13636_v39, %v5890_v13  ;;  %v15539_v39 = vld [vmem:[#allocation113_spill] sm:$0xff] }
 0x837   : > { %9368 = vmatpush.xpose.msk.msra.mxu2 %vm378_vm0, %v6601_v40 }
 0x838   : > { %6841 = vrot.lane.b32.xlu2 %v15537_v10, %s10410_s18  ;;  %v13864_v48 = vpop.f32.mrf.mxu0 }
 0x839   : > { %v6949_v7 = vsel %vm1553_vm1, %v13864_v48, -inf }
 0x83a   : > { %6950 = vmax.xlane.f32.xlu0 %v6949_v7  ;;  %v13881_v25 = vpop.permute.xlu0 %6771 }
 0x83b   : > { %v13859_v1 = vpop.f32.mrf.mxu1 }
 0x83c   : > { %v13861_v33 = vpop.permute.xlu1 %6635  ;;  %v6952_v35 = vsel %vm1553_vm1, %v13859_v1, -inf }
 0x83d   : > { %6953 = vmax.xlane.f32.xlu1 %v6952_v35 }
 0x83e   : > { %9347 = vmatmul.msk.f32.gmra.mxu2 %vm1553_vm1, %v5891_v24 }
 0x840   : > { %6843 = vrot.lane.b32.xlu2 %v15538_v36, %s10410_s18 }
 0x843   : > { %v13900_v13 = vpop.f32.mrf.mxu1 }
 0x844   : > { %v6671_v6 = vpop.permute.xlu1 %6670 }
 0x845   : > { %9374 = vmatpush.xpose.msk.msrb.mxu0 %vm378_vm0, %v6671_v6 }
 0x846   : > { %9357 = vmatmul.msk.f32.vlgmr.msrb.gmra.mxu2 %vm378_vm0, %v15539_v39 }
 0x848   : > { %6876 = vrot.lane.b32.xlu2 %v15540_v8, %s10410_s18  ;;  %9375 = vmatmul.msk.f32.vlgmr.msrb.gmra.mxu0 %vm378_vm0, %v13820_v53  ;;  %v6881_v53 = vpop.permute.xlu0 %6880 }
 0x849   : > { %9386 = vmatpush.xpose.msk.msra.mxu0 %vm378_vm0, %v6811_v52 }
 0x84c   : > { %v13883_v54 = vpop.permute.xlu1 %6701 }
 0x84e   : > { %9358 = vmatmul.msk.f32.gmra.mxu2 %vm378_vm0, %v15541_v50 }
 0x850   : > { %6911 = vrot.lane.b32.xlu2 %v15542_v41, %s10410_s18  ;;  %9376 = vmatmul.msk.f32.gmra.mxu0 %vm378_vm0, %v13833_v9 }
 0x853   : > { %v5414_v52 = vpop.xlane.xlu2 %5413 }
 0x854   : > { %10137 = vrcp.f32 %v5414_v52  ;;  %v6741_v26 = vpop.permute.xlu1 %6740  ;;  %v5783_v40 = vand.u32 2147483648, %v5414_v52  ;;  %v5781_v55 = vand.u32 2147483647, %v5414_v52  ;;  %vm5777_vm7 = vweird.f32 %v5414_v52 }
 0x855   : > { %9380 = vmatpush.xpose.msk.msrb.mxu2 %vm378_vm0, %v6741_v26 }
 0x856   : > { %9369 = vmatmul.msk.f32.vlgmr.msra.gmra.mxu2 %vm378_vm0, %v13806_v62  ;;  %v5784_v24 = vor.u32 1.1754944e-38, %v5783_v40  ;;  %vm5782_vm9 = vcmp.eq.f32.partialorder %v5781_v55, 8.507059e+37 }
 0x858   : > { %9561 = vrot.lane.b32.xlu2 %v9560_v32, %s10410_s18  ;;  %9387 = vmatmul.msk.f32.vlgmr.msra.gmra.mxu0 %vm378_vm0, %v6807_v45 }
 0x859   : > { %9392 = vmatpush.xpose.msk.msra.mxu2 %vm378_vm0, %v6881_v53 }
 0x85a   : > { %v10138_v60 = vpop.eup %10137 }
 0x85b   : > { %v5773_v9 = vmul.f32 %v10138_v60, %v5414_v52  ;;  %v5417_v12 = vpop.xlane.xlu2 %5416  ;;  %vm5778_vm6 = vweird.f32 %v10138_v60  ;;  %v15545_v52 = vld [vmem:[#allocation76_spill] sm:$0xff] }
 0x85c   : > { %10139 = vrcp.f32 %v5417_v12  ;;  %vm5779_vm8 = vmor %vm5777_vm7, %vm5778_vm6  ;;  %v5798_v50 = vand.u32 2147483648, %v5417_v12  ;;  %vm5792_vm11 = vweird.f32 %v5417_v12 }
 0x85d   : > { %v5774_v15 = vsub.f32 1.0, %v5773_v9 }
 0x85e   : > { %v5799_v29 = vor.u32 1.1754944e-38, %v5798_v50 }
 0x85f   : > { %v5775_v2 = vmul.f32 %v10138_v60, %v5774_v15 }
 0x860   : > { %9388 = vmatmul.msk.f32.gmra.mxu0 %vm378_vm0, %v6809_v44  ;;  %v5796_v44 = vand.u32 2147483647, %v5417_v12 }
 0x861   : > { %v5776_v10 = vadd.f32 %v10138_v60, %v5775_v2 }
 0x862   : > { %v10140_v62 = vpop.eup %10139  ;;  %vm5797_vm13 = vcmp.eq.f32.partialorder %v5796_v44, 8.507059e+37 }
 0x863   : > { %v5780_v35 = vsel %vm5779_vm8, %v10138_v60, %v5776_v10  ;;  %v5788_v45 = vmul.f32 %v10140_v62, %v5417_v12  ;;  %v13902_v7 = vpop.f32.mrf.mxu0  ;;  %v5438_v36 = vpop.xlane.xlu2 %5437  ;;  %vm5793_vm10 = vweird.f32 %v10140_v62 }
 0x864   : > { %v5785_v6 = vsel %vm5782_vm9, %v5784_v24, %v5780_v35  ;;  %10141 = vrcp.f32 %v5438_v36  ;;  %vm5794_vm12 = vmor %vm5792_vm11, %vm5793_vm10  ;;  %v5903_v55 = vand.u32 2147483648, %v5438_v36  ;;  %v5901_v24 = vand.u32 2147483647, %v5438_v36  ;;  %v6737_v35 = vpop.permute.xlu1 %6736 }
 0x865   : > { %v5786_v39 = vmul.f32 %v13734_v37, %v5785_v6  ;;  %v5789_v8 = vsub.f32 1.0, %v5788_v45  ;;  %vm5897_vm15 = vweird.f32 %v5438_v36 }
 0x866   : > { %vm5902_vm3 = vcmp.eq.f32.partialorder %v5901_v24, 8.507059e+37  ;;  %v15547_v24 = vld [vmem:[#allocation74_spill] sm:$0xff] }
 0x867   : > { %v5790_v41 = vmul.f32 %v10140_v62, %v5789_v8  ;;  %9340 = vmatmul.msk.f32.vlgmr.msrb.gmra.mxu3 %vm1553_vm1, %v5786_v39 }
 0x868   : > { %9359 = vmatpush.xpose.msk.msrb.mxu3 %vm378_vm0, %v15545_v52 }
 0x869   : > { %v5791_v26 = vadd.f32 %v10140_v62, %v5790_v41 }
 0x86a   : > { %v10142_v16 = vpop.eup %10141 }
 0x86b   : > { %v5893_v32 = vmul.f32 %v10142_v16, %v5438_v36  ;;  %v13908_v53 = vpop.f32.mrf.mxu0  ;;  %v13910_v37 = vpop.f32.mrf.mxu1  ;;  %v5795_v60 = vsel %vm5794_vm12, %v10140_v62, %v5791_v26  ;;  %vm5898_vm14 = vweird.f32 %v10142_v16  ;;  %v5904_v62 = vor.u32 1.1754944e-38, %v5903_v55 }
 0x86c   : > { %v5441_v9 = vpop.xlane.xlu2 %5440  ;;  %v6973_v15 = vsel %vm1553_vm1, %v13908_v53, -inf  ;;  %v5800_v40 = vsel %vm5797_vm13, %v5799_v29, %v5795_v60  ;;  %vm5899_vm2 = vmor %vm5897_vm15, %vm5898_vm14 }
 0x86d   : > { %v5894_v2 = vsub.f32 1.0, %v5893_v32  ;;  %10143 = vrcp.f32 %v5441_v9  ;;  %6974 = vmax.xlane.f32.xlu0 %v6973_v15  ;;  %v5801_v12 = vmul.f32 %v13766_v43, %v5800_v40  ;;  %v5918_v36 = vand.u32 2147483648, %v5441_v9 }
 0x86e   : > { %v5916_v32 = vand.u32 2147483647, %v5441_v9  ;;  %vm5912_vm5 = vweird.f32 %v5441_v9 }
 0x86f   : > { %v5895_v10 = vmul.f32 %v10142_v16, %v5894_v2  ;;  %9341 = vmatmul.msk.f32.gmra.mxu3 %vm1553_vm1, %v5801_v12  ;;  %v5919_v15 = vor.u32 1.1754944e-38, %v5918_v36  ;;  %v6946_v12 = vsel %vm1553_vm1, %v13853_v22, -inf }
 0x870   : > { %vm5917_vm7 = vcmp.eq.f32.partialorder %v5916_v32, 8.507059e+37 }
 0x871   : > { %v5896_v45 = vadd.f32 %v10142_v16, %v5895_v10 }
 0x873   : > { %v10144_v6 = vpop.eup %10143  ;;  %v5900_v39 = vsel %vm5899_vm2, %v10142_v16, %v5896_v45  ;;  %v13916_v8 = vpop.f32.mrf.mxu1 }
 0x874   : > { %v5905_v50 = vsel %vm5902_vm3, %v5904_v62, %v5900_v39  ;;  %v5908_v41 = vmul.f32 %v10144_v6, %v5441_v9  ;;  %v6599_v44 = vpop.permute.xlu2 %6598  ;;  %v6979_v43 = vsel %vm1553_vm1, %v13916_v8, -inf  ;;  %vm5913_vm4 = vweird.f32 %v10144_v6  ;;  %v6739_v16 = vpop.permute.xlu1 %6738 }
 0x875   : > { %v5906_v52 = vmul.f32 %v13775_v38, %v5905_v50  ;;  %6980 = vmax.xlane.f32.xlu1 %v6979_v43  ;;  %9370 = vmatmul.msk.f32.gmra.mxu2 %vm378_vm0, %v6599_v44  ;;  %vm5914_vm6 = vmor %vm5912_vm5, %vm5913_vm4  ;;  %v6976_v44 = vsel %vm1553_vm1, %v13910_v37, -inf }
 0x876   : > { %v5909_v26 = vsub.f32 1.0, %v5908_v41 }
 0x877   : > { %9348 = vmatmul.msk.f32.vlgmr.msra.gmra.mxu3 %vm1553_vm1, %v5906_v52 }
 0x878   : > { %v5910_v29 = vmul.f32 %v10144_v6, %v5909_v26  ;;  %9371 = vmatpush.xpose.msk.msra.mxu3 %vm378_vm0, %v13861_v33  ;;  %v13930_v33 = vpop.f32.mrf.mxu2 }
 0x879   : > { %15546 = vst [vmem:[#allocation56_spill] sm:$0xff] %v13930_v33 }
 0x87a   : > { %v5911_v60 = vadd.f32 %v10144_v6, %v5910_v29  ;;  %v6879_v29 = vpop.permute.xlu0 %6878 }
 0x87c   : > { %v6634_v38 = vpop.permute.xlu2 %6633  ;;  %v5915_v40 = vsel %vm5914_vm6, %v10144_v6, %v5911_v60  ;;  %v6776_v10 = vpop.permute.xlu1 %6775 }
 0x87d   : > { %9381 = vmatmul.msk.f32.vlgmr.msrb.gmra.mxu2 %vm378_vm0, %v6737_v35  ;;  %v5920_v2 = vsel %vm5917_vm7, %v5919_v15, %v5915_v40  ;;  %v15548_v35 = vld [vmem:[#allocation77_spill] sm:$0xff] }
 0x87e   : > { %v5921_v55 = vmul.f32 %v13785_v42, %v5920_v2  ;;  %v6955_v42 = vsel %vm1553_vm1, %v13900_v13, -inf  ;;  %v9570_v45 = vpack.i.bf16 %v15548_v35, %v15547_v24  ;;  %v15559_v35 = vld [vmem:[#allocation66_spill] sm:$0xff] }
 0x880   : > { %9349 = vmatmul.msk.f32.gmra.mxu3 %vm1553_vm1, %v5921_v55  ;;  %v13943_v6 = vpop.f32.mrf.mxu2  ;;  %v13981_v55 = vpop.f32.mrf.mxu3 }
 0x881   : > { %6947 = vmax.xlane.f32.xlu2 %v6946_v12  ;;  %15549 = vst [vmem:[#allocation25_spill] sm:$0xff] %v13943_v6 }
 0x882   : > { %15556 = vst [vmem:[#allocation127_spill] sm:$0xff] %v13981_v55 }
 0x884   : > { %v6706_v9 = vpop.permute.xlu2 %6705  ;;  %v6774_v39 = vpop.permute.xlu1 %6773 }
 0x885   : > { %9377 = vmatpush.xpose.msk.msrb.mxu1 %vm378_vm0, %v6706_v9  ;;  %9382 = vmatmul.msk.f32.gmra.mxu2 %vm378_vm0, %v6739_v16 }
 0x888   : > { %9360 = vmatmul.msk.f32.vlgmr.msrb.gmra.mxu3 %vm378_vm0, %v13750_v17  ;;  %9378 = vmatmul.msk.f32.vlgmr.msrb.gmra.mxu1 %vm378_vm0, %v13883_v54  ;;  %v6970_v17 = vsel %vm1553_vm1, %v13902_v7, -inf  ;;  %v13952_v50 = vpop.f32.mrf.mxu2 }
 0x889   : > { %9383 = vmatpush.xpose.msk.msrb.mxu3 %vm378_vm0, %v6776_v10  ;;  %6956 = vmax.xlane.f32.xlu2 %v6955_v42  ;;  %15550 = vst [vmem:[#allocation99_spill] sm:$0xff] %v13952_v50  ;;  %v13989_v42 = vpop.f32.mrf.mxu3 }
 0x88a   : > { %15557 = vst [vmem:[#allocation111_spill] sm:$0xff] %v13989_v42 }
 0x88c   : > { %v6704_v62 = vpop.permute.xlu2 %6703  ;;  %v6916_v41 = vpop.permute.xlu1 %6915 }
 0x88e   : > { %9571 = vrot.lane.b32.xlu1 %v9570_v45, %s10410_s18  ;;  %v15560_v45 = vld [vmem:[#allocation70_spill] sm:$0xff] }
 0x890   : > { %9361 = vmatmul.msk.f32.gmra.mxu3 %vm378_vm0, %v13761_v4  ;;  %9379 = vmatmul.msk.f32.gmra.mxu1 %vm378_vm0, %v6704_v62  ;;  %v13961_v43 = vpop.f32.mrf.mxu2  ;;  %v9565_v62 = vpack.i.bf16 %v15560_v45, %v15559_v35 }
 0x891   : > { %6971 = vmax.xlane.f32.xlu2 %v6970_v17  ;;  %15551 = vst [vmem:[#allocation62_spill] sm:$0xff] %v13961_v43  ;;  %v13991_v24 = vpop.f32.mrf.mxu3 }
 0x892   : > { %15558 = vst [vmem:[#allocation14_spill] sm:$0xff] %v13991_v24 }
 0x894   : > { %v6846_v54 = vpop.permute.xlu2 %6845 }
 0x895   : > { %9389 = vmatpush.xpose.msk.msra.mxu1 %vm378_vm0, %v6846_v54 }
 0x898   : > { %9372 = vmatmul.msk.f32.vlgmr.msra.gmra.mxu3 %vm378_vm0, %v13812_v61 }
 0x899   : > { %9395 = vmatpush.xpose.msk.msra.mxu3 %vm378_vm0, %v6916_v41  ;;  %6977 = vmax.xlane.f32.xlu2 %v6976_v44 }
 0x89c   : > { %v6842_v4 = vpop.permute.xlu2 %6841 }
 0x89d   : > { %9390 = vmatmul.msk.f32.vlgmr.msra.gmra.mxu1 %vm378_vm0, %v6842_v4 }
 0x8a0   : > { %9373 = vmatmul.msk.f32.gmra.mxu3 %vm378_vm0, %v6634_v38  ;;  %v6914_v38 = vpop.permute.xlu0 %6913 }
 0x8a4   : > { %v6844_v52 = vpop.permute.xlu2 %6843 }
 0x8a5   : > { %9391 = vmatmul.msk.f32.gmra.mxu1 %vm378_vm0, %v6844_v52 }
 0x8a8   : > { %9384 = vmatmul.msk.f32.vlgmr.msrb.gmra.mxu3 %vm378_vm0, %v13881_v25 }
 0x8a9   : > { %v13966_v61 = vpop.f32.mrf.mxu2 }
 0x8aa   : > { %15552 = vst [vmem:[#allocation45_spill] sm:$0xff] %v13966_v61 }
 0x8ac   : > { %v6877_v26 = vpop.permute.xlu2 %6876 }
 0x8ad   : > { %9393 = vmatmul.msk.f32.vlgmr.msra.gmra.mxu2 %vm378_vm0, %v6877_v26 }
 0x8b0   : > { %9385 = vmatmul.msk.f32.gmra.mxu3 %vm378_vm0, %v6774_v39  ;;  %v13996_v39 = vpop.f32.mrf.mxu3  ;;  %v14000_v54 = vpop.xlane.xlu1 %6953 }
 0x8b1   : > { %v13970_v36 = vpop.f32.mrf.mxu2  ;;  %15561 = vst [vmem:[#allocation131_spill] sm:$0xff] %v13996_v39 }
 0x8b2   : > { %15553 = vst [vmem:[#allocation28_spill] sm:$0xff] %v13970_v36 }
 0x8b4   : > { %v6912_v32 = vpop.permute.xlu2 %6911 }
 0x8b5   : > { %9394 = vmatmul.msk.f32.gmra.mxu2 %vm378_vm0, %v6879_v29 }
 0x8b8   : > { %9396 = vmatmul.msk.f32.vlgmr.msra.gmra.mxu3 %vm378_vm0, %v6912_v32 }
 0x8b9   : > { %v13974_v16 = vpop.f32.mrf.mxu2 }
 0x8ba   : > { %15554 = vst [vmem:[#allocation41_spill] sm:$0xff] %v13974_v16 }
 0x8bc   : > { %v9562_v60 = vpop.permute.xlu2 %9561 }
 0x8bd   : > { %v9564_v15 = vunpack.i.h.bf16 %v9562_v60  ;;  %v9563_v25 = vunpack.i.l.bf16 %v9562_v60  ;;  %v6951_v60 = vpop.xlane.xlu0 %6950 }
 0x8bf   : > { %7739 = vmatpush.msrb.mxu0 %v9563_v25  ;;  %7772 = vmatpush.msrb.mxu1 %v9564_v15  ;;  %v7043_v25 = vsub.f32 %v13864_v48, %v6951_v60 }
 0x8c0   : > { %9397 = vmatmul.msk.f32.gmra.mxu3 %vm378_vm0, %v6914_v38 }
 0x8c1   : > { %v13977_v40 = vpop.f32.mrf.mxu2  ;;  %v7076_v45 = vmul.f32 1.442695, %v7043_v25 }
 0x8c2   : > { %15555 = vst [vmem:[#allocation128_spill] sm:$0xff] %v13977_v40 }
 0x8c3   : > { %10145 = vpow2.f32 %v7076_v45 }
 0x8c5   : > { %v13979_v2 = vpop.f32.mrf.mxu0 }
 0x8c6   : > { %v6994_v12 = vsel %vm1553_vm1, %v13979_v2, -inf }
 0x8c7   : > { %6995 = vmax.xlane.f32.xlu2 %v6994_v12 }
 0x8c9   : > { %v13985_v10 = vpop.f32.mrf.mxu2 }
 0x8ca   : > { %v6958_v9 = vsel %vm1553_vm1, %v13985_v10, -inf }
 0x8cb   : > { %6959 = vmax.xlane.f32.xlu0 %v6958_v9 }
 0x8cd   : > { %v14002_v41 = vpop.f32.mrf.mxu0 }
 0x8ce   : > { %v6997_v45 = vsel %vm1553_vm1, %v14002_v41, -inf }
 0x8d1   : > { %v14008_v52 = vpop.f32.mrf.mxu2 }
 0x8d5   : > { %v14012_v29 = vpop.f32.mrf.mxu0 }
 0x8d9   : > { %v14019_v12 = vpop.f32.mrf.mxu2 }
 0x8dd   : > { %v14023_v16 = vpop.f32.mrf.mxu0 }
 0x8de   : > { %v7021_v60 = vsel %vm1553_vm1, %v14023_v16, -inf }
 0x8df   : > { %9566 = vrot.lane.b32.xlu0 %v9565_v62, %s10410_s18 }
 0x8e8   : > { %v14010_v26 = vpop.xlane.xlu1 %6980 }
 0x8ea   : > { %v13998_v17 = vpop.f32.mrf.mxu3 }
 0x8eb   : > { %15562 = vst [vmem:[#allocation53_spill] sm:$0xff] %v13998_v17 }
 0x8f2   : > { %v14004_v44 = vpop.f32.mrf.mxu3 }
 0x8f3   : > { %15563 = vst [vmem:[#allocation129_spill] sm:$0xff] %v14004_v44 }
 0x8f4   : > { %v14006_v4 = vpop.xlane.xlu2 %6947 }
 0x8f8   : > { %v14032_v25 = vpop.f32.mrf.mxu2 }
 0x8fa   : > { %v14014_v32 = vpop.f32.mrf.mxu3 }
 0x8fb   : > { %15564 = vst [vmem:[#allocation116_spill] sm:$0xff] %v14014_v32 }
 0x8fc   : > { %v14016_v15 = vpop.xlane.xlu2 %6956 }
 0x900   : > { %v9572_v38 = vpop.permute.xlu1 %9571 }
 0x901   : > { %v9574_v9 = vunpack.i.h.bf16 %v9572_v38  ;;  %v9573_v35 = vunpack.i.l.bf16 %v9572_v38 }
 0x903   : > { %v14021_v62 = vpop.f32.mrf.mxu3  ;;  %7871 = vmatpush.msra.mxu0 %v9573_v35  ;;  %7904 = vmatpush.msra.mxu1 %v9574_v9 }
 0x904   : > { %15565 = vst [vmem:[#allocation48_spill] sm:$0xff] %v14021_v62  ;;  %v6972_v40 = vpop.xlane.xlu2 %6971  ;;  %v14038_v62 = vpop.eup %10145 }
 0x905   : > { %v14025_v51 = vpop.f32.mrf.mxu1  ;;  %v7050_v48 = vsub.f32 %v13902_v7, %v6972_v40  ;;  %v7141_v7 = vsel %vm1553_vm1, %v14038_v62, 0.0  ;;  %v14044_v40 = vpop.f32.mrf.mxu2 }
 0x906   : > { %v7000_v32 = vsel %vm1553_vm1, %v14025_v51, -inf }
 0x907   : > { %7001 = vmax.xlane.f32.xlu2 %v7000_v32  ;;  %v7090_v38 = vmul.f32 1.442695, %v7050_v48  ;;  %v7018_v48 = vsel %vm1553_vm1, %v14012_v29, -inf }
 0x909   : > { %7022 = vmax.xlane.f32.xlu0 %v7021_v60  ;;  %10147 = vpow2.f32 %v7090_v38 }
 0x90b   : > { %v14034_v9 = vpop.f32.mrf.mxu3 }
 0x90c   : > { %v6964_v35 = vsel %vm1553_vm1, %v14034_v9, -inf }
 0x90d   : > { %6965 = vmax.xlane.f32.xlu1 %v6964_v35  ;;  %v6961_v35 = vsel %vm1553_vm1, %v14008_v52, -inf  ;;  %v14062_v30 = vpop.f32.mrf.mxu2 }
 0x90f   : > { %6998 = vmax.xlane.f32.xlu2 %v6997_v45  ;;  %v14050_v60 = vpop.eup %10147  ;;  %v14056_v45 = vpop.f32.mrf.mxu1 }
 0x910   : > { %v7162_v38 = vsel %vm1553_vm1, %v14050_v60, 0.0 }
 0x911   : > { %7142 = vadd.xlane.f32.xlu0 %v7141_v7 }
 0x913   : > { %v14046_v32 = vpop.f32.mrf.mxu3 }
 0x914   : > { %v6967_v14 = vsel %vm1553_vm1, %v14046_v32, -inf }
 0x915   : > { %7019 = vmax.xlane.f32.xlu1 %v7018_v48  ;;  %v7003_v48 = vsel %vm1553_vm1, %v14056_v45, -inf }
 0x917   : > { %6962 = vmax.xlane.f32.xlu2 %v6961_v35  ;;  %v7009_v35 = vsel %vm1553_vm1, %v14062_v30, -inf }
 0x919   : > { %7163 = vadd.xlane.f32.xlu0 %v7162_v38  ;;  %v6982_v38 = vsel %vm1553_vm1, %v14019_v12, -inf }
 0x91a   : > { %v14068_v27 = vpop.f32.mrf.mxu1 }
 0x91b   : > { %v14058_v7 = vpop.f32.mrf.mxu3  ;;  %v7024_v17 = vsel %vm1553_vm1, %v14068_v27, -inf }
 0x91d   : > { %6968 = vmax.xlane.f32.xlu1 %v6967_v14  ;;  %v7042_v14 = vsub.f32 %v13853_v22, %v14006_v4  ;;  %v6985_v22 = vsel %vm1553_vm1, %v14032_v25, -inf }
 0x91f   : > { %7004 = vmax.xlane.f32.xlu2 %v7003_v48  ;;  %v7074_v57 = vmul.f32 1.442695, %v7042_v14 }
 0x921   : > { %7010 = vmax.xlane.f32.xlu0 %v7009_v35  ;;  %v6988_v35 = vsel %vm1553_vm1, %v14058_v7, -inf  ;;  %10149 = vpow2.f32 %v7074_v57 }
 0x922   : > { %v14078_v48 = vpop.f32.mrf.mxu1 }
 0x923   : > { %v14070_v44 = vpop.f32.mrf.mxu3  ;;  %v7027_v61 = vsel %vm1553_vm1, %v14078_v48, -inf }
 0x925   : > { %6983 = vmax.xlane.f32.xlu1 %v6982_v38  ;;  %v7044_v38 = vsub.f32 %v13859_v1, %v14000_v54  ;;  %v7045_v54 = vsub.f32 %v13900_v13, %v14016_v15 }
 0x927   : > { %7025 = vmax.xlane.f32.xlu2 %v7024_v17  ;;  %v7078_v14 = vmul.f32 1.442695, %v7044_v38  ;;  %v14098_v1 = vpop.eup %10149 }
 0x928   : > { %v7138_v11 = vsel %vm1553_vm1, %v14098_v1, 0.0 }
 0x929   : > { %10151 = vpow2.f32 %v7078_v14 }
 0x92b   : > { %v14080_v36 = vpop.f32.mrf.mxu3 }
 0x92d   : > { %6989 = vmax.xlane.f32.xlu1 %v6988_v35  ;;  %v7053_v35 = vsub.f32 %v13916_v8, %v14010_v26  ;;  %v7006_v8 = vsel %vm1553_vm1, %v14044_v40, -inf  ;;  %v7080_v26 = vmul.f32 1.442695, %v7045_v54 }
 0x92f   : > { %7028 = vmax.xlane.f32.xlu2 %v7027_v61  ;;  %v6991_v61 = vsel %vm1553_vm1, %v14070_v44, -inf  ;;  %v7096_v57 = vmul.f32 1.442695, %v7053_v35  ;;  %v14106_v38 = vpop.eup %10151 }
 0x930   : > { %v7144_v13 = vsel %vm1553_vm1, %v14106_v38, 0.0 }
 0x931   : > { %10153 = vpow2.f32 %v7096_v57 }
 0x932   : > { %10155 = vpow2.f32 %v7080_v26 }
 0x933   : > { %v14088_v17 = vpop.f32.mrf.mxu3 }
 0x934   : > { %v7015_v4 = vsel %vm1553_vm1, %v14088_v17, -inf }
 0x935   : > { %6986 = vmax.xlane.f32.xlu1 %v6985_v22  ;;  %7016 = vmax.xlane.f32.xlu0 %v7015_v4  ;;  %v6975_v22 = vpop.xlane.xlu0 %6974 }
 0x936   : > { %v7051_v35 = vsub.f32 %v13908_v53, %v6975_v22 }
 0x937   : > { %6992 = vmax.xlane.f32.xlu2 %v6991_v61  ;;  %v14108_v4 = vpop.eup %10153  ;;  %v6978_v61 = vpop.xlane.xlu2 %6977 }
 0x938   : > { %v7092_v15 = vmul.f32 1.442695, %v7051_v35  ;;  %v14115_v14 = vpop.eup %10155  ;;  %v7052_v54 = vsub.f32 %v13910_v37, %v6978_v61 }
 0x939   : > { %v7147_v53 = vsel %vm1553_vm1, %v14115_v14, 0.0 }
 0x93a   : > { %10157 = vpow2.f32 %v7092_v15 }
 0x93d   : > { %7139 = vadd.xlane.f32.xlu1 %v7138_v11  ;;  %v7171_v11 = vsel %vm1553_vm1, %v14108_v4, 0.0 }
 0x93e   : > { %v6960_v57 = vpop.xlane.xlu0 %6959 }
 0x93f   : > { %7007 = vmax.xlane.f32.xlu2 %v7006_v8  ;;  %v7094_v8 = vmul.f32 1.442695, %v7052_v54  ;;  %v7046_v35 = vsub.f32 %v13985_v10, %v6960_v57 }
 0x940   : > { %v14120_v26 = vpop.eup %10157 }
 0x941   : > { %10159 = vpow2.f32 %v7094_v8  ;;  %v7082_v37 = vmul.f32 1.442695, %v7046_v35 }
 0x943   : > { %10161 = vpow2.f32 %v7082_v37 }
 0x945   : > { %7145 = vadd.xlane.f32.xlu1 %v7144_v13 }
 0x947   : > { %7172 = vadd.xlane.f32.xlu2 %v7171_v11  ;;  %v7165_v11 = vsel %vm1553_vm1, %v14120_v26, 0.0  ;;  %v14125_v15 = vpop.eup %10159 }
 0x948   : > { %v7168_v61 = vsel %vm1553_vm1, %v14125_v15, 0.0 }
 0x949   : > { %v14129_v54 = vpop.eup %10161 }
 0x94d   : > { %7148 = vadd.xlane.f32.xlu1 %v7147_v53  ;;  %v7150_v53 = vsel %vm1553_vm1, %v14129_v54, 0.0 }
 0x951   : > { %v9567_v22 = vpop.permute.xlu0 %9566 }
 0x952   : > { %v9569_v13 = vunpack.i.h.bf16 %v9567_v22  ;;  %v9568_v34 = vunpack.i.l.bf16 %v9567_v22 }
 0x954   : > { %7805 = vmatpush.msrb.mxu2 %v9568_v34  ;;  %7838 = vmatpush.msrb.mxu3 %v9569_v13  ;;  %v6996_v34 = vpop.xlane.xlu2 %6995 }
 0x955   : > { %7166 = vadd.xlane.f32.xlu1 %v7165_v11 }
 0x95d   : > { %7169 = vadd.xlane.f32.xlu1 %v7168_v61 }
 0x965   : > { %7151 = vadd.xlane.f32.xlu1 %v7150_v53 }
 0x97a   : > { %v14133_v10 = vpop.xlane.xlu2 %7001 }
 0x980   : > { %v6966_v57 = vpop.xlane.xlu1 %6965 }
 0x981   : > { %v7048_v8 = vsub.f32 %v14034_v9, %v6966_v57 }
 0x982   : > { %v6999_v22 = vpop.xlane.xlu2 %6998 }
 0x983   : > { %v7086_v13 = vmul.f32 1.442695, %v7048_v8  ;;  %v7059_v35 = vsub.f32 %v14002_v41, %v6999_v22  ;;  %v7058_v22 = vsub.f32 %v13979_v2, %v6996_v34 }
 0x985   : > { %10163 = vpow2.f32 %v7086_v13  ;;  %v7108_v11 = vmul.f32 1.442695, %v7059_v35 }
 0x987   : > { %10165 = vpow2.f32 %v7108_v11 }
 0x988   : > { %v7020_v37 = vpop.xlane.xlu1 %7019 }
 0x98a   : > { %v6963_v61 = vpop.xlane.xlu2 %6962 }
 0x98b   : > { %v14137_v21 = vpop.eup %10163  ;;  %v7047_v39 = vsub.f32 %v14008_v52, %v6963_v61 }
 0x98c   : > { %v7156_v53 = vsel %vm1553_vm1, %v14137_v21, 0.0 }
 0x98d   : > { %v14142_v24 = vpop.eup %10165  ;;  %v7084_v43 = vmul.f32 1.442695, %v7047_v39  ;;  %7157 = vadd.xlane.f32.xlu1 %v7156_v53  ;;  %v7106_v39 = vmul.f32 1.442695, %v7058_v22 }
 0x98e   : > { %v7189_v41 = vsel %vm1553_vm1, %v14142_v24, 0.0 }
 0x98f   : > { %10167 = vpow2.f32 %v7084_v43  ;;  %7190 = vadd.xlane.f32.xlu0 %v7189_v41  ;;  %v7012_v41 = vsel %vm1553_vm1, %v14080_v36, -inf }
 0x990   : > { %v6969_v9 = vpop.xlane.xlu1 %6968 }
 0x991   : > { %v7049_v57 = vsub.f32 %v14046_v32, %v6969_v9  ;;  %v14155_v32 = vpop.xlane.xlu0 %7022 }
 0x992   : > { %v7005_v52 = vpop.xlane.xlu2 %7004 }
 0x993   : > { %v7088_v8 = vmul.f32 1.442695, %v7049_v57  ;;  %v7061_v2 = vsub.f32 %v14056_v45, %v7005_v52  ;;  %v7066_v52 = vsub.f32 %v14012_v29, %v7020_v37 }
 0x995   : > { %v14148_v13 = vpop.eup %10167  ;;  %10169 = vpow2.f32 %v7088_v8  ;;  %v7112_v9 = vmul.f32 1.442695, %v7061_v2 }
 0x996   : > { %v7153_v35 = vsel %vm1553_vm1, %v14148_v13, 0.0  ;;  %10171 = vpow2.f32 %v7106_v39 }
 0x997   : > { %7154 = vadd.xlane.f32.xlu1 %v7153_v35 }
 0x998   : > { %v6984_v43 = vpop.xlane.xlu1 %6983 }
 0x999   : > { %v7054_v11 = vsub.f32 %v14019_v12, %v6984_v43  ;;  %v14170_v43 = vpop.xlane.xlu0 %7142 }
 0x99a   : > { %v7026_v57 = vpop.xlane.xlu2 %7025  ;;  %vm7254_vm13 = vweird.f32 %v14170_v43 }
 0x99b   : > { %v14153_v61 = vpop.eup %10169  ;;  %v7098_v53 = vmul.f32 1.442695, %v7054_v11 }
 0x99c   : > { %v7159_v34 = vsel %vm1553_vm1, %v14153_v61, 0.0  ;;  %v14163_v22 = vpop.eup %10171 }
 0x99d   : > { %10173 = vpow2.f32 %v7098_v53  ;;  %7160 = vadd.xlane.f32.xlu2 %v7159_v34  ;;  %v7186_v11 = vsel %vm1553_vm1, %v14163_v22, 0.0  ;;  %v7122_v53 = vmul.f32 1.442695, %v7066_v52 }
 0x99e   : > { %10175 = vpow2.f32 %v7112_v9 }
 0x99f   : > { %7013 = vmax.xlane.f32.xlu1 %v7012_v41 }
 0x9a0   : > { %v6990_v12 = vpop.xlane.xlu1 %6989 }
 0x9a1   : > { %v7056_v8 = vsub.f32 %v14058_v7, %v6990_v12  ;;  %v7068_v12 = vsub.f32 %v14068_v27, %v7026_v57 }
 0x9a2   : > { %v7029_v41 = vpop.xlane.xlu2 %7028 }
 0x9a3   : > { %v14165_v35 = vpop.eup %10173  ;;  %v7102_v39 = vmul.f32 1.442695, %v7056_v8  ;;  %v7126_v52 = vmul.f32 1.442695, %v7068_v12 }
 0x9a4   : > { %v7174_v45 = vsel %vm1553_vm1, %v14165_v35, 0.0  ;;  %v14175_v34 = vpop.eup %10175 }
 0x9a5   : > { %10177 = vpow2.f32 %v7102_v39  ;;  %7175 = vadd.xlane.f32.xlu0 %v7174_v45  ;;  %v7195_v8 = vsel %vm1553_vm1, %v14175_v34, 0.0  ;;  %v14187_v39 = vpop.xlane.xlu0 %7163 }
 0x9a6   : > { %10179 = vrcp.f32 %v14170_v43  ;;  %vm7359_vm4 = vweird.f32 %v14187_v39 }
 0x9a7   : > { %7187 = vadd.xlane.f32.xlu1 %v7186_v11  ;;  %10181 = vpow2.f32 %v7122_v53 }
 0x9a8   : > { %v6987_v7 = vpop.xlane.xlu1 %6986 }
 0x9a9   : > { %v7055_v2 = vsub.f32 %v14032_v25, %v6987_v7  ;;  %v15566_v7 = vld [vmem:[#allocation82_spill] sm:$0xff] }
 0x9ab   : > { %v14178_v9 = vpop.eup %10177  ;;  %v7100_v29 = vmul.f32 1.442695, %v7055_v2  ;;  %v15567_v2 = vld [vmem:[#allocation85_spill] sm:$0xff] }
 0x9ac   : > { %v7180_v37 = vsel %vm1553_vm1, %v14178_v9, 0.0  ;;  %v14185_v25 = vpop.eup %10179  ;;  %v9575_v53 = vpack.i.bf16 %v15567_v2, %v15566_v7 }
 0x9ad   : > { %7181 = vadd.xlane.f32.xlu0 %v7180_v37  ;;  %10183 = vpow2.f32 %v7100_v29  ;;  %v14189_v11 = vpop.eup %10181  ;;  %v7250_v27 = vmul.f32 %v14185_v25, %v14170_v43  ;;  %v14198_v29 = vpop.xlane.xlu2 %6992  ;;  %v7069_v37 = vsub.f32 %v14078_v48, %v7029_v41  ;;  %vm7255_vm10 = vweird.f32 %v14185_v25 }
 0x9ae   : > { %vm14222_vm14 = vmor %vm7254_vm13, %vm7255_vm10 }
 0x9af   : > { %7196 = vadd.xlane.f32.xlu1 %v7195_v8  ;;  %v7210_v8 = vsel %vm1553_vm1, %v14189_v11, 0.0  ;;  %v7251_v2 = vsub.f32 1.0, %v7250_v27  ;;  %v7128_v31 = vmul.f32 1.442695, %v7069_v37 }
 0x9b0   : > { %v7140_v45 = vpop.xlane.xlu1 %7139 }
 0x9b1   : > { %10185 = vrcp.f32 %v7140_v45  ;;  %v7252_v41 = vmul.f32 %v14185_v25, %v7251_v2  ;;  %v7243_v42 = vand.u32 2147483647, %v7140_v45  ;;  %vm7239_vm9 = vweird.f32 %v7140_v45 }
 0x9b2   : > { %10187 = vrcp.f32 %v14187_v39 }
 0x9b3   : > { %v14196_v57 = vpop.eup %10183  ;;  %10189 = vpow2.f32 %v7126_v52  ;;  %vm7244_vm12 = vcmp.eq.f32.partialorder %v7243_v42, 8.507059e+37 }
 0x9b4   : > { %v7177_v12 = vsel %vm1553_vm1, %v14196_v57, 0.0 }
 0x9b5   : > { %9576 = vrot.lane.b32.xlu2 %v9575_v53, %s10410_s18  ;;  %7178 = vadd.xlane.f32.xlu0 %v7177_v12  ;;  %v7245_v53 = vand.u32 2147483648, %v7140_v45 }
 0x9b7   : > { %v10186_v7 = vpop.eup %10185  ;;  %7211 = vadd.xlane.f32.xlu1 %v7210_v8  ;;  %v7008_v8 = vpop.xlane.xlu2 %7007  ;;  %v7246_v2 = vor.u32 1.1754944e-38, %v7245_v53 }
 0x9b8   : > { %v7235_v50 = vmul.f32 %v10186_v7, %v7140_v45  ;;  %v7146_v58 = vpop.xlane.xlu1 %7145  ;;  %v14206_v63 = vpop.eup %10187  ;;  %vm7240_vm8 = vweird.f32 %v10186_v7 }
 0x9b9   : > { %10191 = vrcp.f32 %v7146_v58  ;;  %v14208_v48 = vpop.eup %10189  ;;  %v7355_v12 = vmul.f32 %v14206_v63, %v14187_v39  ;;  %vm7241_vm11 = vmor %vm7239_vm9, %vm7240_vm8  ;;  %vm7269_vm3 = vweird.f32 %v7146_v58  ;;  %vm7360_vm5 = vweird.f32 %v14206_v63 }
 0x9ba   : > { %v7236_v52 = vsub.f32 1.0, %v7235_v50  ;;  %10193 = vpow2.f32 %v7128_v31  ;;  %v7216_v37 = vsel %vm1553_vm1, %v14208_v48, 0.0  ;;  %v7253_v50 = vadd.f32 %v14185_v25, %v7252_v41  ;;  %vm14262_vm8 = vmor %vm7359_vm4, %vm7360_vm5 }
 0x9bb   : > { %v7356_v6 = vsub.f32 1.0, %v7355_v12  ;;  %v7258_v41 = vand.u32 2147483647, %v14170_v43  ;;  %v7275_v12 = vand.u32 2147483648, %v7146_v58 }
 0x9bc   : > { %v7237_v28 = vmul.f32 %v10186_v7, %v7236_v52 }
 0x9bd   : > { %vm7259_vm2 = vcmp.eq.f32.partialorder %v7258_v41, 8.507059e+37 }
 0x9be   : > { %v7238_v27 = vadd.f32 %v10186_v7, %v7237_v28  ;;  %v7260_v28 = vand.u32 2147483648, %v14170_v43  ;;  %v9580_v43 = vpack.i.bf16 %v15462_v18, %v15461_v3 }
 0x9bf   : > { %v10192_v55 = vpop.eup %10191  ;;  %7217 = vadd.xlane.f32.xlu1 %v7216_v37 }
 0x9c0   : > { %v7242_v33 = vsel %vm7241_vm11, %v10186_v7, %v7238_v27  ;;  %v7265_v52 = vmul.f32 %v10192_v55, %v7146_v58  ;;  %v14217_v56 = vpop.xlane.xlu1 %7148  ;;  %v14228_v42 = vpop.eup %10193  ;;  %v7257_v27 = vsel %vm14222_vm14, %v14185_v25, %v7253_v50  ;;  %vm7270_vm15 = vweird.f32 %v10192_v55 }
 0x9c1   : > { %v7247_v31 = vsel %vm7244_vm12, %v7246_v2, %v7242_v33  ;;  %10195 = vrcp.f32 %v14217_v56  ;;  %v7357_v33 = vmul.f32 %v14206_v63, %v7356_v6  ;;  %v7273_v2 = vand.u32 2147483647, %v7146_v58  ;;  %vm7271_vm6 = vmor %vm7269_vm3, %vm7270_vm15 }
 0x9c2   : > { %v7248_v53 = vmul.f32 %v14098_v1, %v7247_v31  ;;  %v7266_v7 = vsub.f32 1.0, %v7265_v52  ;;  %v7261_v5 = vor.u32 1.1754944e-38, %v7260_v28  ;;  %v7062_v1 = vsub.f32 %v14044_v40, %v7008_v8  ;;  %v14243_v40 = vpop.xlane.xlu2 %7172 }
 0x9c3   : > { %v7219_v31 = vsel %vm1553_vm1, %v14228_v42, 0.0  ;;  %v7276_v6 = vor.u32 1.1754944e-38, %v7275_v12  ;;  %v7358_v3 = vadd.f32 %v14206_v63, %v7357_v33  ;;  %vm7274_vm7 = vcmp.eq.f32.partialorder %v7273_v2, 8.507059e+37  ;;  %v14254_v12 = vpop.f32.mrf.mxu2 }
 0x9c4   : > { %v7267_v37 = vmul.f32 %v10192_v55, %v7266_v7  ;;  %9398 = vmatmul.msk.f32.vlgmr.msrb.gmra.mxu0 %vm1553_vm1, %v7248_v53  ;;  %v7262_v50 = vsel %vm7259_vm2, %v7261_v5, %v7257_v27  ;;  %v7365_v28 = vand.u32 2147483648, %v14187_v39  ;;  %v7114_v45 = vmul.f32 1.442695, %v7062_v1 }
 0x9c5   : > { %v7363_v53 = vand.u32 2147483647, %v14187_v39  ;;  %v7060_v27 = vsub.f32 %v14025_v51, %v14133_v10  ;;  %v7288_v10 = vand.u32 2147483647, %v14217_v56  ;;  %vm7284_vm11 = vweird.f32 %v14217_v56 }
 0x9c6   : > { %v7268_v52 = vadd.f32 %v10192_v55, %v7267_v37  ;;  %v7290_v37 = vand.u32 2147483648, %v14217_v56  ;;  %v7366_v51 = vor.u32 1.1754944e-38, %v7365_v28  ;;  %v7030_v2 = vsel %vm1553_vm1, %v14254_v12, -inf }
 0x9c7   : > { %v10196_v25 = vpop.eup %10195  ;;  %7220 = vadd.xlane.f32.xlu1 %v7219_v31  ;;  %vm7364_vm10 = vcmp.eq.f32.partialorder %v7363_v53, 8.507059e+37  ;;  %vm7289_vm13 = vcmp.eq.f32.partialorder %v7288_v10, 8.507059e+37 }
 0x9c8   : > { %v7272_v18 = vsel %vm7271_vm6, %v10192_v55, %v7268_v52  ;;  %v7280_v58 = vmul.f32 %v10196_v25, %v14217_v56  ;;  %v14246_v8 = vpop.xlane.xlu1 %7166  ;;  %v7263_v55 = vmul.f32 %v14038_v62, %v7262_v50  ;;  %vm7285_vm9 = vweird.f32 %v10196_v25  ;;  %v7011_v52 = vpop.xlane.xlu0 %7010 }
 0x9c9   : > { %v7277_v41 = vsel %vm7274_vm7, %v7276_v6, %v7272_v18  ;;  %10197 = vrcp.f32 %v14246_v8  ;;  %9581 = vrot.lane.b32.xlu0 %v9580_v43, %s10410_s18  ;;  %v7110_v43 = vmul.f32 1.442695, %v7060_v27  ;;  %vm7286_vm12 = vmor %vm7284_vm11, %vm7285_vm9  ;;  %v7291_v31 = vor.u32 1.1754944e-38, %v7290_v37 }
 0x9ca   : > { %v7278_v5 = vmul.f32 %v14106_v38, %v7277_v41  ;;  %v7281_v7 = vsub.f32 1.0, %v7280_v58  ;;  %10199 = vrcp.f32 %v14243_v40  ;;  %v7362_v38 = vsel %vm14262_vm8, %v14206_v63, %v7358_v3 }
 0x9cb   : > { %10201 = vpow2.f32 %v7114_v45  ;;  %v7367_v1 = vsel %vm7364_vm10, %v7366_v51, %v7362_v38  ;;  %v7063_v41 = vsub.f32 %v14062_v30, %v7011_v52  ;;  %vm7374_vm15 = vweird.f32 %v14246_v8 }
 0x9cc   : > { %v7282_v62 = vmul.f32 %v10196_v25, %v7281_v7  ;;  %9399 = vmatmul.msk.f32.gmra.mxu0 %vm1553_vm1, %v7263_v55  ;;  %9400 = vmatmul.msk.f32.vlgmr.msrb.gmra.mxu1 %vm1553_vm1, %v7278_v5  ;;  %v7368_v56 = vmul.f32 %v14050_v60, %v7367_v1  ;;  %v7378_v60 = vand.u32 2147483647, %v14246_v8  ;;  %vm7404_vm9 = vweird.f32 %v14243_v40 }
 0x9cd   : > { %v7116_v27 = vmul.f32 1.442695, %v7063_v41 }
 0x9ce   : > { %v7283_v39 = vadd.f32 %v10196_v25, %v7282_v62  ;;  %vm7379_vm3 = vcmp.eq.f32.partialorder %v7378_v60, 8.507059e+37 }
 0x9cf   : > { %v10198_v63 = vpop.eup %10197  ;;  %7031 = vmax.xlane.f32.xlu1 %v7030_v2 }
 0x9d0   : > { %v7370_v6 = vmul.f32 %v10198_v63, %v14246_v8  ;;  %v7170_v50 = vpop.xlane.xlu1 %7169  ;;  %v7287_v3 = vsel %vm7286_vm12, %v10196_v25, %v7283_v39  ;;  %v14278_v18 = vpop.eup %10199  ;;  %vm7375_vm14 = vweird.f32 %v10198_v63  ;;  %v7380_v25 = vand.u32 2147483648, %v14246_v8 }
 0x9d1   : > { %10203 = vrcp.f32 %v7170_v50  ;;  %v7292_v28 = vsel %vm7289_vm13, %v7291_v31, %v7287_v3  ;;  %v14281_v45 = vpop.eup %10201  ;;  %v7400_v5 = vmul.f32 %v14278_v18, %v14243_v40  ;;  %vm7376_vm2 = vmor %vm7374_vm15, %vm7375_vm14  ;;  %v7395_v8 = vand.u32 2147483648, %v7170_v50 }
 0x9d2   : > { %v7371_v58 = vsub.f32 1.0, %v7370_v6  ;;  %10205 = vpow2.f32 %v7110_v43  ;;  %v7293_v53 = vmul.f32 %v14115_v14, %v7292_v28  ;;  %v7198_v30 = vsel %vm1553_vm1, %v14281_v45, 0.0 }
 0x9d3   : > { %v7401_v33 = vsub.f32 1.0, %v7400_v5  ;;  %v7381_v38 = vor.u32 1.1754944e-38, %v7380_v25  ;;  %v7393_v31 = vand.u32 2147483647, %v7170_v50  ;;  %vm7389_vm5 = vweird.f32 %v7170_v50 }
 0x9d4   : > { %v7372_v7 = vmul.f32 %v10198_v63, %v7371_v58  ;;  %9406 = vmatmul.msk.f32.vlgmr.msra.gmra.mxu0 %vm1553_vm1, %v7368_v56  ;;  %9401 = vmatmul.msk.f32.gmra.mxu1 %vm1553_vm1, %v7293_v53  ;;  %vm7405_vm6 = vweird.f32 %v14278_v18  ;;  %v7396_v56 = vor.u32 1.1754944e-38, %v7395_v8  ;;  %v7057_v53 = vsub.f32 %v14070_v44, %v14198_v29 }
 0x9d5   : > { %v7402_v1 = vmul.f32 %v14278_v18, %v7401_v33  ;;  %vm7394_vm8 = vcmp.eq.f32.partialorder %v7393_v31, 8.507059e+37  ;;  %v7410_v5 = vand.u32 2147483648, %v14243_v40  ;;  %vm14313_vm10 = vmor %vm7404_vm9, %vm7405_vm6 }
 0x9d6   : > { %v7373_v55 = vadd.f32 %v10198_v63, %v7372_v7 }
 0x9d7   : > { %v10204_v14 = vpop.eup %10203  ;;  %7199 = vadd.xlane.f32.xlu1 %v7198_v30 }
 0x9d8   : > { %v7385_v62 = vmul.f32 %v10204_v14, %v7170_v50  ;;  %v7152_v37 = vpop.xlane.xlu1 %7151  ;;  %v7377_v51 = vsel %vm7376_vm2, %v10198_v63, %v7373_v55  ;;  %v14294_v10 = vpop.eup %10205  ;;  %vm7390_vm4 = vweird.f32 %v10204_v14  ;;  %v7408_v50 = vand.u32 2147483647, %v14243_v40 }
 0x9d9   : > { %10207 = vrcp.f32 %v7152_v37  ;;  %v7382_v2 = vsel %vm7379_vm3, %v7381_v38, %v7377_v51  ;;  %v7192_v63 = vsel %vm1553_vm1, %v14294_v10, 0.0  ;;  %vm7391_vm7 = vmor %vm7389_vm5, %vm7390_vm4  ;;  %v7305_v30 = vand.u32 2147483648, %v7152_v37 }
 0x9da   : > { %v7386_v39 = vsub.f32 1.0, %v7385_v62  ;;  %10209 = vpow2.f32 %v7116_v27  ;;  %v7383_v43 = vmul.f32 %v14120_v26, %v7382_v2  ;;  %v7403_v26 = vadd.f32 %v14278_v18, %v7402_v1 }
 0x9db   : > { %v7303_v44 = vand.u32 2147483647, %v7152_v37  ;;  %v7411_v40 = vor.u32 1.1754944e-38, %v7410_v5  ;;  %v7104_v27 = vmul.f32 1.442695, %v7057_v53  ;;  %vm7409_vm12 = vcmp.eq.f32.partialorder %v7408_v50, 8.507059e+37 }
 0x9dc   : > { %v7387_v52 = vmul.f32 %v10204_v14, %v7386_v39  ;;  %9407 = vmatmul.msk.f32.gmra.mxu0 %vm1553_vm1, %v7383_v43  ;;  %v7407_v29 = vsel %vm14313_vm10, %v14278_v18, %v7403_v26  ;;  %vm7299_vm13 = vweird.f32 %v7152_v37  ;;  %v7306_v38 = vor.u32 1.1754944e-38, %v7305_v30 }
 0x9dd   : > { %v7412_v62 = vsel %vm7409_vm12, %v7411_v40, %v7407_v29  ;;  %vm7304_vm15 = vcmp.eq.f32.partialorder %v7303_v44, 8.507059e+37  ;;  %v7067_v2 = vsub.f32 %v14023_v16, %v14155_v32  ;;  %10211 = vpow2.f32 %v7104_v27  ;;  %v7017_v32 = vpop.xlane.xlu0 %7016 }
 0x9de   : > { %v7388_v6 = vadd.f32 %v10204_v14, %v7387_v52  ;;  %7193 = vadd.xlane.f32.xlu2 %v7192_v63  ;;  %v7413_v8 = vmul.f32 %v14108_v4, %v7412_v62  ;;  %v9585_v4 = vpack.i.bf16 %v15470_v59, %v15463_v46  ;;  %v7065_v63 = vsub.f32 %v14088_v17, %v7017_v32 }
 0x9df   : > { %v10208_v3 = vpop.eup %10207 }
 0x9e0   : > { %v7392_v58 = vsel %vm7391_vm7, %v10204_v14, %v7388_v6  ;;  %v7295_v28 = vmul.f32 %v10208_v3, %v7152_v37  ;;  %v14303_v41 = vpop.eup %10209  ;;  %vm7300_vm11 = vweird.f32 %v10208_v3  ;;  %v7124_v37 = vmul.f32 1.442695, %v7067_v2 }
 0x9e1   : > { %v7397_v7 = vsel %vm7394_vm8, %v7396_v56, %v7392_v58  ;;  %vm7301_vm14 = vmor %vm7299_vm13, %vm7300_vm11 }
 0x9e2   : > { %v7398_v25 = vmul.f32 %v14125_v15, %v7397_v7  ;;  %v7296_v60 = vsub.f32 1.0, %v7295_v28  ;;  %v7201_v15 = vsel %vm1553_vm1, %v14303_v41, 0.0  ;;  %10213 = vpow2.f32 %v7124_v37 }
 0x9e3   : > { %v14329_v43 = vpop.eup %10211 }
 0x9e4   : > { %v7297_v14 = vmul.f32 %v10208_v3, %v7296_v60  ;;  %9408 = vmatmul.msk.f32.vlgmr.msra.gmra.mxu1 %vm1553_vm1, %v7398_v25  ;;  %v7183_v1 = vsel %vm1553_vm1, %v14329_v43, 0.0 }
 0x9e6   : > { %v7298_v33 = vadd.f32 %v10208_v3, %v7297_v14  ;;  %7202 = vadd.xlane.f32.xlu2 %v7201_v15 }
 0x9e8   : > { %v7302_v51 = vsel %vm7301_vm14, %v10208_v3, %v7298_v33  ;;  %v14333_v52 = vpop.eup %10213  ;;  %v7120_v3 = vmul.f32 1.442695, %v7065_v63 }
 0x9e9   : > { %v7307_v39 = vsel %vm7304_vm15, %v7306_v38, %v7302_v51  ;;  %v7213_v16 = vsel %vm1553_vm1, %v14333_v52, 0.0 }
 0x9ea   : > { %v7308_v18 = vmul.f32 %v14129_v54, %v7307_v39  ;;  %v14339_v54 = vpop.f32.mrf.mxu3 }
 0x9eb   : > { %v7036_v6 = vsel %vm1553_vm1, %v14339_v54, -inf }
 0x9ec   : > { %9402 = vmatmul.msk.f32.vlgmr.msrb.gmra.mxu2 %vm1553_vm1, %v7308_v18  ;;  %9409 = vmatmul.msk.f32.gmra.mxu1 %vm1553_vm1, %v7413_v8 }
 0x9f2   : > { %v14345_v26 = vpop.f32.mrf.mxu3 }
 0x9f3   : > { %7184 = vadd.xlane.f32.xlu0 %v7183_v1  ;;  %v7039_v53 = vsel %vm1553_vm1, %v14345_v26, -inf }
 0x9fb   : > { %7214 = vadd.xlane.f32.xlu0 %v7213_v16 }
 0x9fe   : > { %9586 = vrot.lane.b32.xlu2 %v9585_v4, %s10410_s18 }
 0xa00   : > { %v7158_v31 = vpop.xlane.xlu1 %7157 }
 0xa01   : > { %10215 = vrcp.f32 %v7158_v31  ;;  %v7335_v28 = vand.u32 2147483648, %v7158_v31  ;;  %v7333_v17 = vand.u32 2147483647, %v7158_v31  ;;  %vm7329_vm3 = vweird.f32 %v7158_v31 }
 0xa02   : > { %10217 = vpow2.f32 %v7120_v3  ;;  %v14351_v55 = vpop.xlane.xlu0 %7190 }
 0xa03   : > { %7037 = vmax.xlane.f32.xlu0 %v7036_v6  ;;  %v7336_v50 = vor.u32 1.1754944e-38, %v7335_v28  ;;  %vm7334_vm5 = vcmp.eq.f32.partialorder %v7333_v17, 8.507059e+37 }
 0xa07   : > { %v10216_v56 = vpop.eup %10215 }
 0xa08   : > { %v7325_v58 = vmul.f32 %v10216_v56, %v7158_v31  ;;  %vm7330_vm2 = vweird.f32 %v10216_v56  ;;  %v14349_v25 = vpop.eup %10217 }
 0xa09   : > { %vm7331_vm4 = vmor %vm7329_vm3, %vm7330_vm2  ;;  %v7207_v33 = vsel %vm1553_vm1, %v14349_v25, 0.0 }
 0xa0a   : > { %v7326_v46 = vsub.f32 1.0, %v7325_v58  ;;  %v7155_v59 = vpop.xlane.xlu1 %7154 }
 0xa0b   : > { %10219 = vrcp.f32 %v7155_v59  ;;  %7040 = vmax.xlane.f32.xlu0 %v7039_v53  ;;  %v7320_v39 = vand.u32 2147483648, %v7155_v59  ;;  %v7318_v18 = vand.u32 2147483647, %v7155_v59  ;;  %vm7314_vm7 = vweird.f32 %v7155_v59 }
 0xa0c   : > { %v7327_v5 = vmul.f32 %v10216_v56, %v7326_v46 }
 0xa0d   : > { %v7321_v4 = vor.u32 1.1754944e-38, %v7320_v39  ;;  %vm7319_vm9 = vcmp.eq.f32.partialorder %v7318_v18, 8.507059e+37 }
 0xa0e   : > { %v7328_v7 = vadd.f32 %v10216_v56, %v7327_v5 }
 0xa10   : > { %v7332_v60 = vsel %vm7331_vm4, %v10216_v56, %v7328_v7  ;;  %v7161_v30 = vpop.xlane.xlu2 %7160 }
 0xa11   : > { %v10220_v14 = vpop.eup %10219  ;;  %v7337_v44 = vsel %vm7334_vm5, %v7336_v50, %v7332_v60  ;;  %10221 = vrcp.f32 %v7161_v30  ;;  %v7350_v3 = vand.u32 2147483648, %v7161_v30  ;;  %v7348_v46 = vand.u32 2147483647, %v7161_v30 }
 0xa12   : > { %v7338_v29 = vmul.f32 %v14137_v21, %v7337_v44  ;;  %v7310_v40 = vmul.f32 %v10220_v14, %v7155_v59  ;;  %v7014_v15 = vpop.xlane.xlu1 %7013  ;;  %vm7315_vm6 = vweird.f32 %v10220_v14  ;;  %vm7344_vm11 = vweird.f32 %v7161_v30  ;;  %v14369_v44 = vpop.f32.mrf.mxu2 }
 0xa13   : > { %v7064_v27 = vsub.f32 %v14080_v36, %v7014_v15  ;;  %7208 = vadd.xlane.f32.xlu0 %v7207_v33  ;;  %vm7316_vm8 = vmor %vm7314_vm7, %vm7315_vm6  ;;  %v7351_v17 = vor.u32 1.1754944e-38, %v7350_v3  ;;  %vm7349_vm13 = vcmp.eq.f32.partialorder %v7348_v46, 8.507059e+37 }
 0xa14   : > { %v7311_v38 = vsub.f32 1.0, %v7310_v40  ;;  %9404 = vmatmul.msk.f32.vlgmr.msrb.gmra.mxu3 %vm1553_vm1, %v7338_v29 }
 0xa15   : > { %v7118_v62 = vmul.f32 1.442695, %v7064_v27 }
 0xa16   : > { %v7312_v51 = vmul.f32 %v10220_v14, %v7311_v38 }
 0xa17   : > { %v10222_v2 = vpop.eup %10221  ;;  %10223 = vpow2.f32 %v7118_v62  ;;  %v7033_v62 = vsel %vm1553_vm1, %v14369_v44, -inf }
 0xa18   : > { %v7313_v8 = vadd.f32 %v10220_v14, %v7312_v51  ;;  %v7340_v21 = vmul.f32 %v10222_v2, %v7161_v30  ;;  %v9577_v37 = vpop.permute.xlu2 %9576  ;;  %v7176_v1 = vpop.xlane.xlu0 %7175  ;;  %vm7345_vm10 = vweird.f32 %v10222_v2 }
 0xa19   : > { %v9579_v36 = vunpack.i.h.bf16 %v9577_v37  ;;  %v9578_v16 = vunpack.i.l.bf16 %v9577_v37  ;;  %10225 = vrcp.f32 %v7176_v1  ;;  %vm7346_vm12 = vmor %vm7344_vm11, %vm7345_vm10  ;;  %v7425_v29 = vand.u32 2147483648, %v7176_v1 }
 0xa1a   : > { %v7341_v32 = vsub.f32 1.0, %v7340_v21  ;;  %v14358_v31 = vpop.xlane.xlu1 %7187  ;;  %v7317_v63 = vsel %vm7316_vm8, %v10220_v14, %v7313_v8  ;;  %v7423_v15 = vand.u32 2147483647, %v7176_v1  ;;  %vm7419_vm15 = vweird.f32 %v7176_v1 }
 0xa1b   : > { %7937 = vmatpush.msra.mxu2 %v9578_v16  ;;  %7970 = vmatpush.msra.mxu3 %v9579_v36  ;;  %v7322_v56 = vsel %vm7319_vm9, %v7321_v4, %v7317_v63  ;;  %10227 = vrcp.f32 %v14358_v31  ;;  %v7426_v39 = vor.u32 1.1754944e-38, %v7425_v29  ;;  %vm7479_vm10 = vweird.f32 %v14358_v31 }
 0xa1c   : > { %v7342_v6 = vmul.f32 %v10222_v2, %v7341_v32  ;;  %v7323_v59 = vmul.f32 %v14148_v13, %v7322_v56  ;;  %vm7424_vm3 = vcmp.eq.f32.partialorder %v7423_v15, 8.507059e+37 }
 0xa1d   : > { %v14360_v58 = vpop.eup %10223 }
 0xa1e   : > { %v7343_v28 = vadd.f32 %v10222_v2, %v7342_v6  ;;  %v7204_v53 = vsel %vm1553_vm1, %v14360_v58, 0.0  ;;  %9403 = vmatmul.msk.f32.gmra.mxu2 %vm1553_vm1, %v7323_v59 }
 0xa1f   : > { %v10226_v5 = vpop.eup %10225  ;;  %7205 = vadd.xlane.f32.xlu1 %v7204_v53 }
 0xa20   : > { %v7415_v7 = vmul.f32 %v10226_v5, %v7176_v1  ;;  %v7182_v50 = vpop.xlane.xlu0 %7181  ;;  %v7347_v60 = vsel %vm7346_vm12, %v10222_v2, %v7343_v28  ;;  %vm7420_vm14 = vweird.f32 %v10226_v5 }
 0xa21   : > { %10229 = vrcp.f32 %v7182_v50  ;;  %v7352_v30 = vsel %vm7349_vm13, %v7351_v17, %v7347_v60  ;;  %v14372_v33 = vpop.eup %10227  ;;  %vm7421_vm2 = vmor %vm7419_vm15, %vm7420_vm14  ;;  %v7455_v16 = vand.u32 2147483648, %v7182_v50  ;;  %v7453_v32 = vand.u32 2147483647, %v7182_v50 }
 0xa22   : > { %v7416_v14 = vsub.f32 1.0, %v7415_v7  ;;  %v14367_v13 = vpop.xlane.xlu1 %7196  ;;  %v7353_v27 = vmul.f32 %v14153_v61, %v7352_v30  ;;  %10231 = vrcp.f32 %v14351_v55  ;;  %v7475_v61 = vmul.f32 %v14372_v33, %v14358_v31 }
 0xa23   : > { %vm7449_vm5 = vweird.f32 %v7182_v50  ;;  %v7456_v56 = vor.u32 1.1754944e-38, %v7455_v16  ;;  %vm7454_vm7 = vcmp.eq.f32.partialorder %v7453_v32, 8.507059e+37  ;;  %vm7480_vm8 = vweird.f32 %v14372_v33 }
 0xa24   : > { %v7417_v40 = vmul.f32 %v10226_v5, %v7416_v14  ;;  %9405 = vmatmul.msk.f32.gmra.mxu3 %vm1553_vm1, %v7353_v27  ;;  %v7476_v63 = vsub.f32 1.0, %v7475_v61  ;;  %vm7481_vm11 = vmor %vm7479_vm10, %vm7480_vm8  ;;  %v7500_v16 = vand.u32 2147483648, %v14351_v55  ;;  %v7498_v32 = vand.u32 2147483647, %v14351_v55 }
 0xa26   : > { %v7418_v38 = vadd.f32 %v10226_v5, %v7417_v40  ;;  %v7477_v28 = vmul.f32 %v14372_v33, %v7476_v63  ;;  %v7485_v40 = vand.u32 2147483648, %v14358_v31 }
 0xa27   : > { %v10230_v51 = vpop.eup %10229  ;;  %7034 = vmax.xlane.f32.xlu2 %v7033_v62 }
 0xa28   : > { %v7422_v2 = vsel %vm7421_vm2, %v10226_v5, %v7418_v38  ;;  %v7445_v18 = vmul.f32 %v10230_v51, %v7182_v50  ;;  %v7179_v21 = vpop.xlane.xlu0 %7178  ;;  %vm7450_vm4 = vweird.f32 %v10230_v51  ;;  %v14384_v6 = vpop.eup %10231  ;;  %v15574_v50 = vld [vmem:[#allocation72_spill] sm:$0xff]  ;;  %v7478_v29 = vadd.f32 %v14372_v33, %v7477_v28 }
 0xa29   : > { %v7427_v8 = vsel %vm7424_vm3, %v7426_v39, %v7422_v2  ;;  %10233 = vrcp.f32 %v7179_v21  ;;  %vm7451_vm6 = vmor %vm7449_vm5, %vm7450_vm4  ;;  %v7490_v59 = vmul.f32 %v14384_v6, %v14351_v55  ;;  %v9590_v14 = vpack.i.bf16 %v15574_v50, %v15486_v20 }
 0xa2a   : > { %v7428_v37 = vmul.f32 %v14165_v35, %v7427_v8  ;;  %v7446_v1 = vsub.f32 1.0, %v7445_v18  ;;  %v14381_v36 = vpop.xlane.xlu1 %7211  ;;  %v7440_v27 = vand.u32 2147483648, %v7179_v21  ;;  %v7438_v38 = vand.u32 2147483647, %v7179_v21 }
 0xa2b   : > { %v7491_v30 = vsub.f32 1.0, %v7490_v59  ;;  %vm7434_vm12 = vweird.f32 %v7179_v21  ;;  %v7486_v39 = vor.u32 1.1754944e-38, %v7485_v40  ;;  %vm7495_vm2 = vweird.f32 %v14384_v6 }
 0xa2c   : > { %v7447_v4 = vmul.f32 %v10230_v51, %v7446_v1  ;;  %9410 = vmatmul.msk.f32.vlgmr.msra.gmra.mxu2 %vm1553_vm1, %v7428_v37  ;;  %v7441_v2 = vor.u32 1.1754944e-38, %v7440_v27  ;;  %vm7439_vm15 = vcmp.eq.f32.partialorder %v7438_v38, 8.507059e+37  ;;  %vm7494_vm3 = vweird.f32 %v14351_v55 }
 0xa2d   : > { %v7492_v20 = vmul.f32 %v14384_v6, %v7491_v30  ;;  %vm7496_vm4 = vmor %vm7494_vm3, %vm7495_vm2  ;;  %vm7499_vm5 = vcmp.eq.f32.partialorder %v7498_v32, 8.507059e+37  ;;  %10235 = vrcp.f32 %v14381_v36 }
 0xa2e   : > { %v7448_v3 = vadd.f32 %v10230_v51, %v7447_v4 }
 0xa2f   : > { %v10234_v35 = vpop.eup %10233  ;;  %v7493_v1 = vadd.f32 %v14384_v6, %v7492_v20  ;;  %v7603_v20 = vand.u32 2147483647, %v14381_v36 }
 0xa30   : > { %v7452_v46 = vsel %vm7451_vm6, %v10230_v51, %v7448_v3  ;;  %v7430_v17 = vmul.f32 %v10234_v35, %v7179_v21  ;;  %vm7435_vm9 = vweird.f32 %v10234_v35  ;;  %v7482_v51 = vsel %vm7481_vm11, %v14372_v33, %v7478_v29 }
 0xa31   : > { %v7457_v53 = vsel %vm7454_vm7, %v7456_v56, %v7452_v46  ;;  %vm7436_vm13 = vmor %vm7434_vm12, %vm7435_vm9  ;;  %v7497_v3 = vsel %vm7496_vm4, %v14384_v6, %v7493_v1  ;;  %v7501_v56 = vor.u32 1.1754944e-38, %v7500_v16  ;;  %vm7599_vm7 = vweird.f32 %v14381_v36 }
 0xa32   : > { %v7458_v5 = vmul.f32 %v14178_v9, %v7457_v53  ;;  %v14390_v7 = vpop.xlane.xlu1 %7217  ;;  %v7431_v60 = vsub.f32 1.0, %v7430_v17  ;;  %v7483_v9 = vand.u32 2147483647, %v14358_v31  ;;  %v15575_v53 = vld [vmem:[#allocation94_spill] sm:$0xff]  ;;  %vm7604_vm10 = vcmp.eq.f32.partialorder %v7603_v20, 8.507059e+37 }
 0xa33   : > { %v10236_v28 = vpop.eup %10235 }
 0xa34   : > { %9412 = vmatmul.msk.f32.vlgmr.msra.gmra.mxu3 %vm1553_vm1, %v7458_v5  ;;  %v7432_v15 = vmul.f32 %v10234_v35, %v7431_v60  ;;  %vm7484_vm14 = vcmp.eq.f32.partialorder %v7483_v9, 8.507059e+37  ;;  %vm7600_vm6 = vweird.f32 %v10236_v28 }
 0xa35   : > { %v7487_v61 = vsel %vm7484_vm14, %v7486_v39, %v7482_v51  ;;  %vm7601_vm8 = vmor %vm7599_vm7, %vm7600_vm6 }
 0xa36   : > { %v7433_v62 = vadd.f32 %v10234_v35, %v7432_v15  ;;  %v7488_v63 = vmul.f32 %v14163_v22, %v7487_v61 }
 0xa38   : > { %9591 = vrot.lane.b32.xlu1 %v9590_v14, %s10410_s18  ;;  %v7437_v8 = vsel %vm7436_vm13, %v10234_v35, %v7433_v62  ;;  %v7502_v35 = vsel %vm7499_vm5, %v7501_v56, %v7497_v3  ;;  %v7605_v62 = vand.u32 2147483648, %v14381_v36  ;;  %v7530_v56 = vand.u32 2147483648, %v14367_v13 }
 0xa39   : > { %v7442_v37 = vsel %vm7439_vm15, %v7441_v2, %v7437_v8  ;;  %v7503_v22 = vmul.f32 %v14142_v24, %v7502_v35  ;;  %vm7524_vm15 = vweird.f32 %v14367_v13  ;;  %vm7629_vm5 = vweird.f32 %v14390_v7 }
 0xa3a   : > { %v14403_v18 = vpop.xlane.xlu1 %7220  ;;  %v7443_v33 = vmul.f32 %v14196_v57, %v7442_v37  ;;  %v7606_v1 = vor.u32 1.1754944e-38, %v7605_v62 }
 0xa3b   : > { %v9582_v31 = vpop.permute.xlu0 %9581 }
 0xa3c   : > { %v9584_v21 = vunpack.i.h.bf16 %v9582_v31  ;;  %v9583_v4 = vunpack.i.l.bf16 %v9582_v31  ;;  %9411 = vmatmul.msk.f32.gmra.mxu2 %vm1553_vm1, %v7443_v33 }
 0xa3e   : > { %8036 = vmatpush.msrb.mxu1 %v9584_v21  ;;  %8003 = vmatpush.msrb.mxu0 %v9583_v4 }
 0xa3f   : > { %9414 = vmatmul.msk.f32.vlgmr.msrb.gmra.mxu0 %vm1553_vm1, %v7488_v63 }
 0xa42   : > { %v7032_v46 = vpop.xlane.xlu1 %7031 }
 0xa43   : > { %v7070_v57 = vsub.f32 %v14254_v12, %v7032_v46  ;;  %v7595_v12 = vmul.f32 %v10236_v28, %v14381_v36 }
 0xa45   : > { %v7130_v55 = vmul.f32 1.442695, %v7070_v57  ;;  %v7596_v24 = vsub.f32 1.0, %v7595_v12 }
 0xa47   : > { %10237 = vpow2.f32 %v7130_v55  ;;  %9415 = vmatmul.msk.f32.gmra.mxu0 %vm1553_vm1, %v7503_v22  ;;  %v7597_v30 = vmul.f32 %v10236_v28, %v7596_v24  ;;  %v7528_v55 = vand.u32 2147483647, %v14367_v13  ;;  %v7635_v24 = vand.u32 2147483648, %v14390_v7 }
 0xa48   : > { %10239 = vrcp.f32 %v14367_v13 }
 0xa49   : > { %v7774_v59 = vpop.f32.mrf.mxu1  ;;  %v7598_v27 = vadd.f32 %v10236_v28, %v7597_v30  ;;  %vm7529_vm3 = vcmp.eq.f32.partialorder %v7528_v55, 8.507059e+37 }
 0xa4a   : > { %v9605_v5 = vpack.i.bf16 %v7774_v59, %v15575_v53 }
 0xa4b   : > { %v7602_v61 = vsel %vm7601_vm8, %v10236_v28, %v7598_v27 }
 0xa4c   : > { %9606 = vrot.lane.b32.xlu0 %v9605_v5, %s10410_s18  ;;  %v7607_v36 = vsel %vm7604_vm10, %v7606_v1, %v7602_v61  ;;  %v7531_v5 = vor.u32 1.1754944e-38, %v7530_v56 }
 0xa4d   : > { %v14422_v6 = vpop.eup %10237  ;;  %v7608_v22 = vmul.f32 %v14189_v11, %v7607_v36 }
 0xa4e   : > { %v7222_v17 = vsel %vm1553_vm1, %v14422_v6, 0.0  ;;  %v14427_v60 = vpop.eup %10239 }
 0xa4f   : > { %7223 = vadd.xlane.f32.xlu2 %v7222_v17  ;;  %v7520_v14 = vmul.f32 %v14427_v60, %v14367_v13  ;;  %vm7525_vm12 = vweird.f32 %v14427_v60 }
 0xa50   : > { %vm7526_vm2 = vmor %vm7524_vm15, %vm7525_vm12 }
 0xa51   : > { %v7194_v50 = vpop.xlane.xlu2 %7193  ;;  %v7521_v40 = vsub.f32 1.0, %v7520_v14 }
 0xa52   : > { %10241 = vrcp.f32 %v7194_v50  ;;  %v7515_v8 = vand.u32 2147483648, %v7194_v50  ;;  %v7513_v37 = vand.u32 2147483647, %v7194_v50  ;;  %vm7509_vm11 = vweird.f32 %v7194_v50 }
 0xa53   : > { %10243 = vrcp.f32 %v14390_v7  ;;  %v7522_v39 = vmul.f32 %v14427_v60, %v7521_v40  ;;  %v7636_v40 = vor.u32 1.1754944e-38, %v7635_v24  ;;  %v8567_v24 = vld [vmem:[%s15013_s4 + $0x28] sm:$0xff] }
 0xa54   : > { %10245 = vrcp.f32 %v14403_v18  ;;  %v7516_v16 = vor.u32 1.1754944e-38, %v7515_v8  ;;  %vm7514_vm14 = vcmp.eq.f32.partialorder %v7513_v37, 8.507059e+37 }
 0xa55   : > { %v7523_v4 = vadd.f32 %v14427_v60, %v7522_v39 }
 0xa57   : > { %v7527_v13 = vsel %vm7526_vm2, %v14427_v60, %v7523_v4 }
 0xa58   : > { %v10242_v29 = vpop.eup %10241 }
 0xa59   : > { %v14432_v15 = vpop.eup %10243  ;;  %v7505_v9 = vmul.f32 %v10242_v29, %v7194_v50  ;;  %v14434_v38 = vpop.xlane.xlu2 %7202  ;;  %vm7510_vm9 = vweird.f32 %v10242_v29  ;;  %v7633_v50 = vand.u32 2147483647, %v14390_v7 }
 0xa5a   : > { %v7625_v2 = vmul.f32 %v14432_v15, %v14390_v7  ;;  %vm7511_vm13 = vmor %vm7509_vm11, %vm7510_vm9  ;;  %v14445_v3 = vpop.eup %10245  ;;  %vm7630_vm4 = vweird.f32 %v14432_v15  ;;  %vm7644_vm9 = vweird.f32 %v14403_v18 }
 0xa5b   : > { %v7506_v51 = vsub.f32 1.0, %v7505_v9  ;;  %v7640_v53 = vmul.f32 %v14445_v3, %v14403_v18  ;;  %vm7631_vm6 = vmor %vm7629_vm5, %vm7630_vm4  ;;  %vm7634_vm7 = vcmp.eq.f32.partialorder %v7633_v50, 8.507059e+37  ;;  %vm7645_vm8 = vweird.f32 %v14445_v3 }
 0xa5c   : > { %v7626_v33 = vsub.f32 1.0, %v7625_v2  ;;  %vm14475_vm11 = vmor %vm7644_vm9, %vm7645_vm8 }
 0xa5d   : > { %v7507_v31 = vmul.f32 %v10242_v29, %v7506_v51  ;;  %v7641_v17 = vsub.f32 1.0, %v7640_v53 }
 0xa5e   : > { %v7627_v28 = vmul.f32 %v14432_v15, %v7626_v33 }
 0xa5f   : > { %v7508_v21 = vadd.f32 %v10242_v29, %v7507_v31  ;;  %v7642_v30 = vmul.f32 %v14445_v3, %v7641_v17  ;;  %v8568_v17 = vld [vmem:[%s15013_s4 + $0x30] sm:$0xff] }
 0xa60   : > { %v7628_v12 = vadd.f32 %v14432_v15, %v7627_v28 }
 0xa61   : > { %v7512_v32 = vsel %vm7511_vm13, %v10242_v29, %v7508_v21  ;;  %v9587_v63 = vpop.permute.xlu2 %9586  ;;  %v7643_v20 = vadd.f32 %v14445_v3, %v7642_v30  ;;  %v8565_v30 = vld [vmem:[%s15013_s4 + $0x18] sm:$0xff] }
 0xa62   : > { %v7517_v46 = vsel %vm7514_vm14, %v7516_v16, %v7512_v32  ;;  %v9589_v57 = vunpack.i.h.bf16 %v9587_v63  ;;  %v9588_v35 = vunpack.i.l.bf16 %v9587_v63  ;;  %v7632_v60 = vsel %vm7631_vm6, %v14432_v15, %v7628_v12  ;;  %v8569_v12 = vld [vmem:[%s15013_s4 + $0x38] sm:$0xff] }
 0xa63   : > { %v7518_v59 = vmul.f32 %v14294_v10, %v7517_v46  ;;  %v7532_v10 = vsel %vm7529_vm3, %v7531_v5, %v7527_v13  ;;  %v7637_v62 = vsel %vm7634_vm7, %v7636_v40, %v7632_v60  ;;  %v7650_v15 = vand.u32 2147483648, %v14403_v18  ;;  %v8573_v13 = vld [vmem:[%s15013_s4 + $0x58] sm:$0xff]  ;;  %v7200_v5 = vpop.xlane.xlu1 %7199  ;;  %v15578_v40 = vld [vmem:[#allocation40_spill] sm:$0xff] }
 0xa64   : > { %8135 = vmatpush.msra.mxu0 %v9588_v35  ;;  %8168 = vmatpush.msra.mxu1 %v9589_v57  ;;  %v7533_v14 = vmul.f32 %v14175_v34, %v7532_v10  ;;  %v7648_v34 = vand.u32 2147483647, %v14403_v18  ;;  %v7638_v39 = vmul.f32 %v14208_v48, %v7637_v62  ;;  %v7647_v37 = vsel %vm14475_vm11, %v14445_v3, %v7643_v20  ;;  %v8577_v18 = vld [vmem:[%s15013_s4 + $0x78] sm:$0xff]  ;;  %v8576_v48 = vld [vmem:[%s15013_s4 + $0x70] sm:$0xff]  ;;  %v8570_v10 = vld [vmem:[%s15013_s4 + $0x40] sm:$0xff] }
 0xa65   : > { %9416 = vmatmul.msk.f32.vlgmr.msrb.gmra.mxu1 %vm1553_vm1, %v7518_v59  ;;  %9422 = vmatmul.msk.f32.vlgmr.msra.gmra.mxu0 %vm1553_vm1, %v7608_v22  ;;  %v7651_v21 = vor.u32 1.1754944e-38, %v7650_v15  ;;  %vm7539_vm7 = vweird.f32 %v7200_v5  ;;  %vm7554_vm11 = vweird.f32 %v14434_v38 }
 0xa66   : > { %v7185_v11 = vpop.xlane.xlu0 %7184  ;;  %8598 = vmatpush.msrb.mxu0 %v8577_v18  ;;  %vm7649_vm14 = vcmp.eq.f32.partialorder %v7648_v34, 8.507059e+37  ;;  %v8563_v34 = vld [vmem:[%s15013_s4 + $0x8] sm:$0xff] }
 0xa67   : > { %10247 = vrcp.f32 %v7185_v11  ;;  %v7470_v51 = vand.u32 2147483648, %v7185_v11  ;;  %v7468_v8 = vand.u32 2147483647, %v7185_v11  ;;  %vm7464_vm12 = vweird.f32 %v7185_v11 }
 0xa68   : > { %v7652_v32 = vsel %vm7649_vm14, %v7651_v21, %v7647_v37  ;;  %8599 = vmatpush.msrb.mxu0 %v8576_v48  ;;  %v15579_v37 = vld [vmem:[#allocation34_spill] sm:$0xff] }
 0xa69   : > { %v7471_v36 = vor.u32 1.1754944e-38, %v7470_v51  ;;  %vm7469_vm15 = vcmp.eq.f32.partialorder %v7468_v8, 8.507059e+37  ;;  %v7653_v35 = vmul.f32 %v14228_v42, %v7652_v32  ;;  %v8574_v42 = vld [vmem:[%s15013_s4 + $0x60] sm:$0xff]  ;;  %v9630_v18 = vpack.i.bf16 %v15579_v37, %v15504_v0 }
 0xa6d   : > { %9417 = vmatmul.msk.f32.gmra.mxu1 %vm1553_vm1, %v7533_v14  ;;  %v10248_v29 = vpop.eup %10247  ;;  %v8566_v14 = vld [vmem:[%s15013_s4 + $0x20] sm:$0xff] }
 0xa6e   : > { %v7460_v27 = vmul.f32 %v10248_v29, %v7185_v11  ;;  %v7215_v9 = vpop.xlane.xlu0 %7214  ;;  %vm7465_vm10 = vweird.f32 %v10248_v29  ;;  %v8571_v11 = vld [vmem:[%s15013_s4 + $0x48] sm:$0xff] }
 0xa6f   : > { %10249 = vrcp.f32 %v7215_v9  ;;  %vm7466_vm13 = vmor %vm7464_vm12, %vm7465_vm10  ;;  %v7620_v56 = vand.u32 2147483648, %v7215_v9  ;;  %v7618_v57 = vand.u32 2147483647, %v7215_v9  ;;  %vm7614_vm3 = vweird.f32 %v7215_v9  ;;  %v14533_v20 = vpop.f32.mrf.mxu2 }
 0xa70   : > { %v7461_v7 = vsub.f32 1.0, %v7460_v27  ;;  %10251 = vrcp.f32 %v7200_v5 }
 0xa71   : > { %v7621_v22 = vor.u32 1.1754944e-38, %v7620_v56  ;;  %vm7619_vm5 = vcmp.eq.f32.partialorder %v7618_v57, 8.507059e+37  ;;  %10253 = vrcp.f32 %v14434_v38 }
 0xa72   : > { %v7462_v2 = vmul.f32 %v10248_v29, %v7461_v7 }
 0xa74   : > { %v7463_v31 = vadd.f32 %v10248_v29, %v7462_v2  ;;  %v8562_v2 = vld [vmem:[%s15013_s4] sm:$0xff] }
 0xa75   : > { %9424 = vmatmul.msk.f32.vlgmr.msra.gmra.mxu1 %vm1553_vm1, %v7638_v39  ;;  %v10250_v1 = vpop.eup %10249  ;;  %v14540_v39 = vpop.f32.mrf.mxu0 }
 0xa76   : > { %v7610_v16 = vmul.f32 %v10250_v1, %v7215_v9  ;;  %v7467_v4 = vsel %vm7466_vm13, %v10248_v29, %v7463_v31  ;;  %vm7615_vm2 = vweird.f32 %v10250_v1  ;;  %v10252_v50 = vpop.eup %10251  ;;  %v8564_v9 = vld [vmem:[%s15013_s4 + $0x10] sm:$0xff] }
 0xa77   : > { %v7472_v33 = vsel %vm7469_vm15, %v7471_v36, %v7467_v4  ;;  %vm7616_vm4 = vmor %vm7614_vm3, %vm7615_vm2  ;;  %v7535_v60 = vmul.f32 %v10252_v50, %v7200_v5  ;;  %v10254_v15 = vpop.eup %10253  ;;  %vm7540_vm6 = vweird.f32 %v10252_v50  ;;  %v7545_v36 = vand.u32 2147483648, %v7200_v5 }
 0xa78   : > { %v7611_v63 = vsub.f32 1.0, %v7610_v16  ;;  %v7473_v3 = vmul.f32 %v14329_v43, %v7472_v33  ;;  %v8575_v43 = vld [vmem:[%s15013_s4 + $0x68] sm:$0xff]  ;;  %v7550_v31 = vmul.f32 %v10254_v15, %v14434_v38  ;;  %v7543_v33 = vand.u32 2147483647, %v7200_v5  ;;  %vm7541_vm8 = vmor %vm7539_vm7, %vm7540_vm6 }
 0xa79   : > { %8600 = vmatpush.msrb.mxu0 %v8575_v43  ;;  %v7536_v62 = vsub.f32 1.0, %v7535_v60  ;;  %v15580_v16 = vld [vmem:[#allocation32_spill] sm:$0xff]  ;;  %v7546_v57 = vor.u32 1.1754944e-38, %v7545_v36  ;;  %vm7555_vm10 = vweird.f32 %v10254_v15  ;;  %v7558_v5 = vand.u32 2147483647, %v14434_v38 }
 0xa7a   : > { %v7612_v46 = vmul.f32 %v10250_v1, %v7611_v63  ;;  %9413 = vmatmul.msk.f32.gmra.mxu3 %vm1553_vm1, %v7473_v3  ;;  %v7777_v3 = vpop.f32.mrf.mxu1  ;;  %vm7544_vm9 = vcmp.eq.f32.partialorder %v7543_v33, 8.507059e+37  ;;  %vm7556_vm12 = vmor %vm7554_vm11, %vm7555_vm10 }
 0xa7b   : > { %8601 = vmatpush.msrb.mxu0 %v8574_v42  ;;  %v7537_v61 = vmul.f32 %v10252_v50, %v7536_v62  ;;  %vm7559_vm13 = vcmp.eq.f32.partialorder %v7558_v5, 8.507059e+37 }
 0xa7c   : > { %v7613_v55 = vadd.f32 %v10250_v1, %v7612_v46 }
 0xa7d   : > { %9425 = vmatmul.msk.f32.gmra.mxu1 %vm1553_vm1, %v7653_v35  ;;  %8602 = vmatpush.msrb.mxu0 %v8573_v13  ;;  %v7538_v48 = vadd.f32 %v10252_v50, %v7537_v61  ;;  %v7744_v63 = vpop.f32.mrf.mxu0 }
 0xa7e   : > { %v7617_v59 = vsel %vm7616_vm4, %v10250_v1, %v7613_v55 }
 0xa7f   : > { %v7622_v28 = vsel %vm7619_vm5, %v7621_v22, %v7617_v59  ;;  %v7542_v0 = vsel %vm7541_vm8, %v10252_v50, %v7538_v48 }
 0xa80   : > { %v7623_v53 = vmul.f32 %v14333_v52, %v7622_v28  ;;  %v8572_v52 = vld [vmem:[%s15013_s4 + $0x50] sm:$0xff]  ;;  %v7547_v35 = vsel %vm7544_vm9, %v7546_v57, %v7542_v0  ;;  %v7560_v28 = vand.u32 2147483648, %v14434_v38 }
 0xa81   : > { %8603 = vmatpush.msrb.mxu0 %v8572_v52  ;;  %v7548_v52 = vmul.f32 %v14281_v45, %v7547_v35  ;;  %v15591_v35 = vld [vmem:[#allocation114_spill] sm:$0xff] }
 0xa82   : > { %9423 = vmatmul.msk.f32.gmra.mxu0 %vm1553_vm1, %v7623_v53  ;;  %v15581_v53 = vld [vmem:[#allocation121_spill] sm:$0xff] }
 0xa83   : > { %8604 = vmatpush.msrb.mxu0 %v8571_v11  ;;  %v15582_v11 = vld [vmem:[#allocation124_spill] sm:$0xff] }
 0xa85   : > { %8605 = vmatpush.msrb.mxu0 %v8570_v10  ;;  %v7873_v50 = vpop.f32.mrf.mxu0 }
 0xa87   : > { %8606 = vmatpush.msrb.mxu0 %v8569_v12  ;;  %v14565_v12 = vpop.f32.mrf.mxu1 }
 0xa89   : > { %8607 = vmatpush.msrb.mxu0 %v8568_v17 }
 0xa8b   : > { %8608 = vmatpush.msrb.mxu0 %v8567_v24  ;;  %v7561_v24 = vor.u32 1.1754944e-38, %v7560_v28 }
 0xa8d   : > { %8609 = vmatpush.msrb.mxu0 %v8566_v14  ;;  %v9640_v14 = vpack.i.bf16 %v15509_v23, %v7873_v50 }
 0xa8f   : > { %8610 = vmatpush.msrb.mxu0 %v8565_v30  ;;  %v7909_v60 = vpop.f32.mrf.mxu1  ;;  %v7038_v30 = vpop.xlane.xlu0 %7037 }
 0xa91   : > { %8611 = vmatpush.msrb.mxu0 %v8564_v9  ;;  %v9595_v9 = vpack.i.bf16 %v15495_v49, %v14540_v39  ;;  %v15587_v49 = vld [vmem:[#allocation87_spill] sm:$0xff] }
 0xa92   : > { %v14548_v1 = vpop.xlane.xlu1 %7205  ;;  %v9610_v39 = vpack.i.bf16 %v7777_v3, %v15587_v49 }
 0xa93   : > { %8612 = vmatpush.msrb.mxu0 %v8563_v34  ;;  %v15585_v34 = vld [vmem:[#allocation117_spill] sm:$0xff]  ;;  %vm7569_vm9 = vweird.f32 %v14548_v1 }
 0xa95   : > { %8613 = vmatpush.msrb.mxu0 %v8562_v2  ;;  %v15586_v2 = vld [vmem:[#allocation37_spill] sm:$0xff] }
 0xa97   : > { %v7840_v29 = vpop.f32.mrf.mxu3 }
 0xa98   : > { %v9620_v27 = vpack.i.bf16 %v7840_v29, %v15578_v40  ;;  %v15583_v29 = vld [vmem:[#allocation78_spill] sm:$0xff] }
 0xa99   : > { %v9655_v40 = vpack.i.bf16 %v7909_v60, %v15583_v29 }
 0xa9a   : > { %v7035_v7 = vpop.xlane.xlu2 %7034  ;;  %9621 = vrot.lane.b32.xlu2 %v9620_v27, %s10410_s18  ;;  %v7072_v27 = vsub.f32 %v14339_v54, %v7038_v30  ;;  %v15593_v30 = vld [vmem:[#allocation79_spill] sm:$0xff] }
 0xa9b   : > { %v7071_v51 = vsub.f32 %v14369_v44, %v7035_v7  ;;  %v7551_v44 = vsub.f32 1.0, %v7550_v31  ;;  %v15588_v31 = vld [vmem:[#allocation30_spill] sm:$0xff] }
 0xa9c   : > { %v7134_v23 = vmul.f32 1.442695, %v7072_v27  ;;  %v9615_v37 = vpack.i.bf16 %v14533_v20, %v15588_v31  ;;  %v7041_v20 = vpop.xlane.xlu0 %7040  ;;  %v8589_v27 = vld [vmem:[%s15013_s4 + $0xd8] sm:$0xff]  ;;  %v8580_v31 = vld [vmem:[%s15013_s4 + $0x90] sm:$0xff] }
 0xa9d   : > { %v7132_v8 = vmul.f32 1.442695, %v7071_v51  ;;  %v7552_v56 = vmul.f32 %v10254_v15, %v7551_v44  ;;  %v15589_v44 = vld [vmem:[#allocation93_spill] sm:$0xff] }
 0xa9f   : > { %10255 = vpow2.f32 %v7132_v8  ;;  %v7553_v55 = vadd.f32 %v10254_v15, %v7552_v56 }
 0xaa0   : > { %10257 = vpow2.f32 %v7134_v23  ;;  %v8586_v23 = vld [vmem:[%s15013_s4 + $0xc0] sm:$0xff] }
 0xaa1   : > { %v7810_v21 = vpop.f32.mrf.mxu2  ;;  %v7557_v17 = vsel %vm7556_vm12, %v10254_v15, %v7553_v55  ;;  %v9600_v15 = vpack.i.bf16 %v7744_v63, %v15585_v34  ;;  %v15590_v63 = vld [vmem:[#allocation36_spill] sm:$0xff] }
 0xaa2   : > { %9631 = vrot.lane.b32.xlu2 %v9630_v18, %s10410_s18  ;;  %v9625_v4 = vpack.i.bf16 %v7810_v21, %v15580_v16  ;;  %v7562_v45 = vsel %vm7559_vm13, %v7561_v24, %v7557_v17  ;;  %v7876_v18 = vpop.f32.mrf.mxu0  ;;  %v8583_v34 = vld [vmem:[%s15013_s4 + $0xa8] sm:$0xff] }
 0xaa3   : > { %v7563_v38 = vmul.f32 %v14303_v41, %v7562_v45  ;;  %v15584_v41 = vld [vmem:[#allocation35_spill] sm:$0xff]  ;;  %v9645_v21 = vpack.i.bf16 %v7876_v18, %v15589_v44  ;;  %v15592_v45 = vld [vmem:[#allocation97_spill] sm:$0xff]  ;;  %v15595_v44 = vld [vmem:[#allocation90_spill] sm:$0xff] }
 0xaa4   : > { %9626 = vrot.lane.b32.xlu0 %v9625_v4, %s10410_s18  ;;  %v8578_v18 = vld [vmem:[%s15013_s4 + $0x80] sm:$0xff] }
 0xaa5   : > { %v14552_v32 = vpop.eup %10255 }
 0xaa6   : > { %v7225_v46 = vsel %vm1553_vm1, %v14552_v32, 0.0  ;;  %v14582_v54 = vpop.eup %10257 }
 0xaa7   : > { %7226 = vadd.xlane.f32.xlu1 %v7225_v46  ;;  %v7843_v22 = vpop.f32.mrf.mxu3  ;;  %v7228_v61 = vsel %vm1553_vm1, %v14582_v54, 0.0  ;;  %v7073_v46 = vsub.f32 %v14345_v26, %v7041_v20  ;;  %v8593_v26 = vld [vmem:[%s15013_s4 + $0xf8] sm:$0xff] }
 0xaa8   : > { %v9635_v43 = vpack.i.bf16 %v15581_v53, %v7843_v22  ;;  %8711 = vmatpush.msrb.mxu1 %v8593_v26  ;;  %v7575_v26 = vand.u32 2147483648, %v14548_v1 }
 0xaa9   : > { %v7136_v22 = vmul.f32 1.442695, %v7073_v46 }
 0xaaa   : > { %v9592_v59 = vpop.permute.xlu1 %9591  ;;  %9636 = vrot.lane.b32.xlu2 %v9635_v43, %s10410_s18 }
 0xaab   : > { %v9594_v42 = vunpack.i.h.bf16 %v9592_v59  ;;  %v9593_v13 = vunpack.i.l.bf16 %v9592_v59 }
 0xaad   : > { %8069 = vmatpush.msrb.mxu2 %v9593_v13  ;;  %v8498_v10 = vsel %vm378_vm0, %v15582_v11, %v9594_v42  ;;  %v8592_v13 = vld [vmem:[%s15013_s4 + $0xf0] sm:$0xff] }
 0xaae   : > { %9418 = vmatmul.msk.f32.vlgmr.msrb.gmra.mxu2 %vm1553_vm1, %v7548_v52  ;;  %8614 = vmatmul.f32.vlgmr.msrb.gmra.mxu0 %v8498_v10 }
 0xaaf   : > { %v7939_v62 = vpop.f32.mrf.mxu2  ;;  %8712 = vmatpush.msrb.mxu1 %v8592_v13 }
 0xab0   : > { %v9660_v7 = vpack.i.bf16 %v7939_v62, %v15584_v41  ;;  %v8587_v62 = vld [vmem:[%s15013_s4 + $0xc8] sm:$0xff]  ;;  %v8585_v41 = vld [vmem:[%s15013_s4 + $0xb8] sm:$0xff] }
 0xab2   : > { %9641 = vrot.lane.b32.xlu2 %v9640_v14, %s10410_s18 }
 0xab6   : > { %9419 = vmatmul.msk.f32.gmra.mxu2 %vm1553_vm1, %v7563_v38 }
 0xab7   : > { %v7972_v4 = vpop.f32.mrf.mxu3 }
 0xab8   : > { %v9670_v0 = vpack.i.bf16 %v7972_v4, %v15590_v63 }
 0xaba   : > { %9656 = vrot.lane.b32.xlu2 %v9655_v40, %s10410_s18  ;;  %v8591_v40 = vld [vmem:[%s15013_s4 + $0xe8] sm:$0xff] }
 0xabb   : > { %8713 = vmatpush.msrb.mxu1 %v8591_v40 }
 0xabc   : > { %v14595_v36 = vpop.f32.mrf.mxu0 }
 0xabf   : > { %v7942_v51 = vpop.f32.mrf.mxu2 }
 0xac0   : > { %9596 = vrot.lane.b32.xlu1 %v9595_v9, %s10410_s18  ;;  %v9665_v8 = vpack.i.bf16 %v7942_v51, %v15586_v2  ;;  %v8588_v9 = vld [vmem:[%s15013_s4 + $0xd0] sm:$0xff] }
 0xac1   : > { %v15594_v51 = vld [vmem:[#allocation65_spill] sm:$0xff] }
 0xac2   : > { %9661 = vrot.lane.b32.xlu2 %v9660_v7, %s10410_s18  ;;  %v7224_v48 = vpop.xlane.xlu2 %7223  ;;  %v8584_v7 = vld [vmem:[%s15013_s4 + $0xb0] sm:$0xff]  ;;  %v9650_v2 = vpack.i.bf16 %v14565_v12, %v15594_v51 }
 0xac3   : > { %10259 = vrcp.f32 %v7224_v48  ;;  %v7665_v53 = vand.u32 2147483648, %v7224_v48  ;;  %vm7659_vm15 = vweird.f32 %v7224_v48  ;;  %v7663_v43 = vand.u32 2147483647, %v7224_v48 }
 0xac4   : > { %v8008_v56 = vpop.f32.mrf.mxu0  ;;  %10261 = vpow2.f32 %v7136_v22  ;;  %v15596_v22 = vld [vmem:[#allocation29_spill] sm:$0xff] }
 0xac5   : > { %v9685_v55 = vpack.i.bf16 %v8008_v56, %v15591_v35  ;;  %v7666_v52 = vor.u32 1.1754944e-38, %v7665_v53  ;;  %vm7664_vm3 = vcmp.eq.f32.partialorder %v7663_v43, 8.507059e+37  ;;  %10263 = vrcp.f32 %v14548_v1 }
 0xac8   : > { %9601 = vrot.lane.b32.xlu1 %v9600_v15, %s10410_s18  ;;  %v8582_v15 = vld [vmem:[%s15013_s4 + $0xa0] sm:$0xff] }
 0xac9   : > { %v10260_v16 = vpop.eup %10259 }
 0xaca   : > { %9666 = vrot.lane.b32.xlu2 %v9665_v8, %s10410_s18  ;;  %v7655_v33 = vmul.f32 %v10260_v16, %v7224_v48  ;;  %vm7660_vm14 = vweird.f32 %v10260_v16  ;;  %v14613_v17 = vpop.eup %10261  ;;  %v14656_v8 = vpop.xlane.xlu0 %7208 }
 0xacb   : > { %vm7661_vm2 = vmor %vm7659_vm15, %vm7660_vm14  ;;  %v7231_v38 = vsel %vm1553_vm1, %v14613_v17, 0.0  ;;  %v7590_v40 = vand.u32 2147483648, %v14656_v8  ;;  %vm7584_vm13 = vweird.f32 %v14656_v8 }
 0xacc   : > { %v7656_v3 = vsub.f32 1.0, %v7655_v33 }
 0xace   : > { %7229 = vadd.xlane.f32.xlu0 %v7228_v61  ;;  %v7657_v57 = vmul.f32 %v10260_v16, %v7656_v3  ;;  %v10264_v61 = vpop.eup %10263 }
 0xacf   : > { %v7565_v12 = vmul.f32 %v10264_v61, %v14548_v1  ;;  %vm7570_vm7 = vweird.f32 %v10264_v61 }
 0xad0   : > { %9611 = vrot.lane.b32.xlu1 %v9610_v39, %s10410_s18  ;;  %v7658_v59 = vadd.f32 %v10260_v16, %v7657_v57  ;;  %v8581_v39 = vld [vmem:[%s15013_s4 + $0x98] sm:$0xff]  ;;  %vm7571_vm10 = vmor %vm7569_vm9, %vm7570_vm7 }
 0xad1   : > { %v7566_v4 = vsub.f32 1.0, %v7565_v12  ;;  %v15599_v12 = vld [vmem:[#allocation122_spill] sm:$0xff] }
 0xad2   : > { %v7662_v42 = vsel %vm7661_vm2, %v10260_v16, %v7658_v59 }
 0xad3   : > { %v7667_v5 = vsel %vm7664_vm3, %v7666_v52, %v7662_v42  ;;  %v7567_v20 = vmul.f32 %v10264_v61, %v7566_v4  ;;  %v7573_v52 = vand.u32 2147483647, %v14548_v1  ;;  %v15597_v1 = vld [vmem:[#allocation104_spill] sm:$0xff] }
 0xad4   : > { %v7668_v24 = vmul.f32 %v14422_v6, %v7667_v5  ;;  %v8590_v6 = vld [vmem:[%s15013_s4 + $0xe0] sm:$0xff] }
 0xad5   : > { %8714 = vmatpush.msrb.mxu1 %v8590_v6  ;;  %v7568_v43 = vadd.f32 %v10264_v61, %v7567_v20  ;;  %vm7574_vm11 = vcmp.eq.f32.partialorder %v7573_v52, 8.507059e+37 }
 0xad7   : > { %8715 = vmatpush.msrb.mxu1 %v8589_v27 }
 0xad8   : > { %9616 = vrot.lane.b32.xlu1 %v9615_v37, %s10410_s18  ;;  %v8579_v37 = vld [vmem:[%s15013_s4 + $0x88] sm:$0xff] }
 0xad9   : > { %8716 = vmatpush.msrb.mxu1 %v8588_v9  ;;  %v7588_v9 = vand.u32 2147483647, %v14656_v8 }
 0xadb   : > { %8717 = vmatpush.msrb.mxu1 %v8587_v62  ;;  %vm7589_vm15 = vcmp.eq.f32.partialorder %v7588_v9, 8.507059e+37 }
 0xadd   : > { %8718 = vmatpush.msrb.mxu1 %v8586_v23 }
 0xadf   : > { %8719 = vmatpush.msrb.mxu1 %v8585_v41 }
 0xae1   : > { %8720 = vmatpush.msrb.mxu1 %v8584_v7 }
 0xae2   : > { %9646 = vrot.lane.b32.xlu0 %v9645_v21, %s10410_s18  ;;  %v8038_v60 = vpop.f32.mrf.mxu1  ;;  %v9680_v21 = vpack.i.bf16 %v14595_v36, %v15595_v44 }
 0xae3   : > { %v9690_v29 = vpack.i.bf16 %v8038_v60, %v15593_v30  ;;  %8721 = vmatpush.msrb.mxu1 %v8583_v34  ;;  %v7591_v34 = vor.u32 1.1754944e-38, %v7590_v40  ;;  %v15607_v40 = vld [vmem:[#allocation56_spill] sm:$0xff] }
 0xae5   : > { %8722 = vmatpush.msrb.mxu1 %v8582_v15 }
 0xae7   : > { %8723 = vmatpush.msrb.mxu1 %v8581_v39 }
 0xae9   : > { %8724 = vmatpush.msrb.mxu1 %v8580_v31 }
 0xaea   : > { %9671 = vrot.lane.b32.xlu0 %v9670_v0, %s10410_s18  ;;  %v8041_v56 = vpop.f32.mrf.mxu1 }
 0xaeb   : > { %8725 = vmatpush.msrb.mxu1 %v8579_v37  ;;  %v9695_v59 = vpack.i.bf16 %v8041_v56, %v15596_v22 }
 0xaed   : > { %8726 = vmatpush.msrb.mxu1 %v8578_v18 }
 0xaf2   : > { %9686 = vrot.lane.b32.xlu0 %v9685_v55, %s10410_s18  ;;  %v14710_v31 = vpop.f32.mrf.mxu1 }
 0xaf4   : > { %v14602_v28 = vpop.permute.xlu2 %9621 }
 0xafa   : > { %v8173_v20 = vpop.f32.mrf.mxu1 }
 0xafc   : > { %v14610_v11 = vpop.permute.xlu2 %9631 }
 0xafd   : > { %v9633_v10 = vunpack.i.l.bf16 %v14610_v11  ;;  %v7975_v50 = vpop.f32.mrf.mxu3 }
 0xafe   : > { %v9675_v14 = vpack.i.bf16 %v7975_v50, %v15592_v45  ;;  %v7576_v50 = vor.u32 1.1754944e-38, %v7575_v26 }
 0xaff   : > { %8201 = vmatpush.msra.mxu2 %v9633_v10 }
 0xb00   : > { %9426 = vmatmul.msk.f32.vlgmr.msra.gmra.mxu2 %vm1553_vm1, %v7668_v24  ;;  %9676 = vrot.lane.b32.xlu2 %v9675_v14, %s10410_s18  ;;  %v7572_v24 = vsel %vm7571_vm10, %v10264_v61, %v7568_v43  ;;  %v9607_v14 = vpop.permute.xlu0 %9606  ;;  %v15604_v43 = vld [vmem:[#allocation108_spill] sm:$0xff] }
 0xb01   : > { %v7577_v45 = vsel %vm7574_vm11, %v7576_v50, %v7572_v24  ;;  %v9608_v44 = vunpack.i.l.bf16 %v9607_v14 }
 0xb02   : > { %7232 = vadd.xlane.f32.xlu1 %v7231_v38  ;;  %v7578_v62 = vmul.f32 %v14360_v58, %v7577_v45 }
 0xb04   : > { %v14680_v35 = vpop.permute.xlu2 %9636 }
 0xb08   : > { %9691 = vrot.lane.b32.xlu2 %v9690_v29, %s10410_s18 }
 0xb0c   : > { %v14692_v30 = vpop.permute.xlu2 %9641 }
 0xb0d   : > { %v9644_v23 = vunpack.i.h.bf16 %v14692_v30 }
 0xb16   : > { %v14705_v58 = vpop.permute.xlu0 %9626 }
 0xb17   : > { %v9629_v9 = vunpack.i.h.bf16 %v14705_v58 }
 0xb1a   : > { %v7227_v49 = vpop.xlane.xlu1 %7226 }
 0xb1b   : > { %10265 = vrcp.f32 %v7227_v49  ;;  %9651 = vrot.lane.b32.xlu1 %v9650_v2, %s10410_s18  ;;  %v7680_v3 = vand.u32 2147483648, %v7227_v49  ;;  %v7678_v57 = vand.u32 2147483647, %v7227_v49  ;;  %vm7674_vm5 = vweird.f32 %v7227_v49  ;;  %v15598_v2 = vld [vmem:[#allocation31_spill] sm:$0xff] }
 0xb1c   : > { %10267 = vrcp.f32 %v14656_v8 }
 0xb1d   : > { %v7681_v53 = vor.u32 1.1754944e-38, %v7680_v3  ;;  %vm7679_vm8 = vcmp.eq.f32.partialorder %v7678_v57, 8.507059e+37  ;;  %v15602_v3 = vld [vmem:[#allocation88_spill] sm:$0xff]  ;;  %v15603_v57 = vld [vmem:[#allocation38_spill] sm:$0xff] }
 0xb21   : > { %v10266_v48 = vpop.eup %10265 }
 0xb22   : > { %v14675_v16 = vpop.eup %10267  ;;  %v7670_v33 = vmul.f32 %v10266_v48, %v7227_v49  ;;  %vm7675_vm4 = vweird.f32 %v10266_v48 }
 0xb23   : > { %9681 = vrot.lane.b32.xlu1 %v9680_v21, %s10410_s18  ;;  %v7580_v0 = vmul.f32 %v14675_v16, %v14656_v8  ;;  %vm7676_vm6 = vmor %vm7674_vm5, %vm7675_vm4  ;;  %vm7585_vm12 = vweird.f32 %v14675_v16  ;;  %v9609_v21 = vunpack.i.h.bf16 %v9607_v14 }
 0xb24   : > { %v7671_v63 = vsub.f32 1.0, %v7670_v33  ;;  %vm7586_vm14 = vmor %vm7584_vm13, %vm7585_vm12 }
 0xb25   : > { %v7581_v55 = vsub.f32 1.0, %v7580_v0 }
 0xb26   : > { %v7672_v46 = vmul.f32 %v10266_v48, %v7671_v63  ;;  %v15601_v63 = vld [vmem:[#allocation61_spill] sm:$0xff] }
 0xb27   : > { %v7582_v10 = vmul.f32 %v14675_v16, %v7581_v55  ;;  %v8500_v0 = vsel %vm378_vm0, %v15601_v63, %v9608_v44 }
 0xb28   : > { %v7673_v36 = vadd.f32 %v10266_v48, %v7672_v46 }
 0xb29   : > { %v7583_v60 = vadd.f32 %v14675_v16, %v7582_v10 }
 0xb2a   : > { %v7677_v42 = vsel %vm7676_vm6, %v10266_v48, %v7673_v36  ;;  %v8137_v48 = vpop.f32.mrf.mxu0  ;;  %v9735_v36 = vpack.i.bf16 %v8173_v20, %v15603_v57 }
 0xb2b   : > { %9696 = vrot.lane.b32.xlu1 %v9695_v59, %s10410_s18  ;;  %v7682_v13 = vsel %vm7679_vm8, %v7681_v53, %v7677_v42  ;;  %v7587_v7 = vsel %vm7586_vm14, %v14675_v16, %v7583_v60  ;;  %v15600_v16 = vld [vmem:[#allocation120_spill] sm:$0xff] }
 0xb2c   : > { %v7683_v5 = vmul.f32 %v14552_v32, %v7682_v13  ;;  %v7592_v51 = vsel %vm7589_vm15, %v7591_v34, %v7587_v7  ;;  %v9720_v4 = vpack.i.bf16 %v8137_v48, %v15600_v16  ;;  %v9623_v7 = vunpack.i.l.bf16 %v14602_v28  ;;  %v15614_v48 = vld [vmem:[#allocation101_spill] sm:$0xff] }
 0xb2d   : > { %v9624_v34 = vunpack.i.h.bf16 %v14602_v28  ;;  %v9639_v28 = vunpack.i.h.bf16 %v14680_v35 }
 0xb2e   : > { %9427 = vmatmul.msk.f32.gmra.mxu2 %vm1553_vm1, %v7683_v5  ;;  %v15605_v5 = vld [vmem:[#allocation92_spill] sm:$0xff] }
 0xb2f   : > { %v8506_v44 = vsel %vm378_vm0, %v15614_v48, %v9639_v28 }
 0xb31   : > { %v8071_v38 = vpop.f32.mrf.mxu2 }
 0xb32   : > { %v9700_v29 = vpack.i.bf16 %v8071_v38, %v15597_v1  ;;  %v9597_v32 = vpop.permute.xlu1 %9596 }
 0xb33   : > { %v9599_v6 = vunpack.i.h.bf16 %v9597_v32  ;;  %v9598_v27 = vunpack.i.l.bf16 %v9597_v32 }
 0xb34   : > { %9701 = vrot.lane.b32.xlu0 %v9700_v29, %s10410_s18  ;;  %v15606_v29 = vld [vmem:[#allocation69_spill] sm:$0xff] }
 0xb35   : > { %8102 = vmatpush.msrb.mxu3 %v9599_v6  ;;  %v8530_v41 = vsel %vm378_vm0, %v13781_v19, %v9598_v27  ;;  %v7593_v19 = vmul.f32 %v14349_v25, %v7592_v51  ;;  %v9628_v27 = vunpack.i.l.bf16 %v14705_v58  ;;  %v9634_v58 = vunpack.i.h.bf16 %v14610_v11  ;;  %v15615_v11 = vld [vmem:[#allocation103_spill] sm:$0xff] }
 0xb36   : > { %9420 = vmatmul.msk.f32.vlgmr.msrb.gmra.mxu3 %vm1553_vm1, %v7578_v62  ;;  %8727 = vmatmul.f32.vlgmr.msrb.gmra.mxu1 %v8530_v41  ;;  %v15608_v62 = vld [vmem:[#allocation81_spill] sm:$0xff] }
 0xb37   : > { %8234 = vmatpush.msra.mxu3 %v9644_v23  ;;  %v8503_v23 = vsel %vm378_vm0, %v15608_v62, %v9628_v27  ;;  %v15609_v41 = vld [vmem:[#allocation25_spill] sm:$0xff] }
 0xb39   : > { %v8074_v15 = vpop.f32.mrf.mxu2 }
 0xb3a   : > { %v9705_v8 = vpack.i.bf16 %v8074_v15, %v15598_v2  ;;  %v9602_v49 = vpop.permute.xlu1 %9601  ;;  %v15610_v15 = vld [vmem:[#allocation119_spill] sm:$0xff] }
 0xb3b   : > { %v9604_v39 = vunpack.i.h.bf16 %v9602_v49  ;;  %v9603_v61 = vunpack.i.l.bf16 %v9602_v49  ;;  %v8504_v51 = vsel %vm378_vm0, %v15610_v15, %v9623_v7  ;;  %v15611_v2 = vld [vmem:[#allocation127_spill] sm:$0xff]  ;;  %v9638_v49 = vunpack.i.l.bf16 %v14680_v35 }
 0xb3c   : > { %9706 = vrot.lane.b32.xlu2 %v9705_v8, %s10410_s18  ;;  %v8536_v8 = vsel %vm378_vm0, %v15611_v2, %v9624_v34  ;;  %v15625_v34 = vld [vmem:[#allocation62_spill] sm:$0xff] }
 0xb3d   : > { %v8499_v37 = vsel %vm378_vm0, %v15599_v12, %v9603_v61  ;;  %v8531_v18 = vsel %vm378_vm0, %v13790_v47, %v9604_v39  ;;  %v8532_v47 = vsel %vm378_vm0, %v15602_v3, %v9609_v21  ;;  %v15612_v39 = vld [vmem:[#allocation106_spill] sm:$0xff] }
 0xb3e   : > { %9421 = vmatmul.msk.f32.gmra.mxu3 %vm1553_vm1, %v7593_v19  ;;  %8617 = vmatmul.f32.gmra.mxu0 %v8499_v37  ;;  %v8505_v61 = vsel %vm378_vm0, %v15612_v39, %v9634_v58  ;;  %v15613_v19 = vld [vmem:[#allocation111_spill] sm:$0xff]  ;;  %v9643_v37 = vunpack.i.l.bf16 %v14692_v30  ;;  %v15617_v30 = vld [vmem:[#allocation18_spill] sm:$0xff]  ;;  %v15626_v39 = vld [vmem:[#allocation64_spill] sm:$0xff] }
 0xb3f   : > { %8730 = vmatmul.f32.gmra.mxu1 %v8531_v18  ;;  %v8537_v12 = vsel %vm378_vm0, %v15613_v19, %v9638_v49  ;;  %v14784_v58 = vld [vmem:[%s15014_s5] ss:$0 sm:$0xff]  ;;  %v15627_v19 = vld [vmem:[#allocation14_spill] sm:$0xff] }
 0xb40   : > { %v8538_v16 = vsel %vm378_vm0, %v15615_v11, %v9643_v37  ;;  %v15628_v11 = vld [vmem:[#allocation102_spill] sm:$0xff] }
 0xb41   : > { %v7230_v33 = vpop.xlane.xlu0 %7229 }
 0xb42   : > { %10269 = vrcp.f32 %v7230_v33  ;;  %v9612_v25 = vpop.permute.xlu1 %9611  ;;  %v7695_v53 = vand.u32 2147483648, %v7230_v33  ;;  %v7693_v13 = vand.u32 2147483647, %v7230_v33  ;;  %vm7689_vm3 = vweird.f32 %v7230_v33 }
 0xb43   : > { %v9613_v46 = vunpack.i.l.bf16 %v9612_v25  ;;  %v9614_v22 = vunpack.i.h.bf16 %v9612_v25 }
 0xb44   : > { %9721 = vrot.lane.b32.xlu2 %v9720_v4, %s10410_s18  ;;  %v7696_v50 = vor.u32 1.1754944e-38, %v7695_v53  ;;  %vm7694_vm5 = vcmp.eq.f32.partialorder %v7693_v13, 8.507059e+37  ;;  %v9657_v53 = vpop.permute.xlu2 %9656  ;;  %v15618_v13 = vld [vmem:[#allocation126_spill] sm:$0xff] }
 0xb45   : > { %v8501_v42 = vsel %vm378_vm0, %v15604_v43, %v9613_v46  ;;  %v8533_v10 = vsel %vm378_vm0, %v15605_v5, %v9614_v22  ;;  %v15619_v5 = vld [vmem:[#allocation107_spill] sm:$0xff] }
 0xb46   : > { %8620 = vmatmul.f32.gmra.mxu0 %v8500_v0  ;;  %v15616_v0 = vld [vmem:[#allocation125_spill] sm:$0xff] }
 0xb47   : > { %8733 = vmatmul.f32.gmra.mxu1 %v8532_v47 }
 0xb48   : > { %v10270_v56 = vpop.eup %10269 }
 0xb49   : > { %v7685_v55 = vmul.f32 %v10270_v56, %v7230_v33  ;;  %vm7690_vm2 = vweird.f32 %v10270_v56 }
 0xb4a   : > { %v9617_v52 = vpop.permute.xlu1 %9616  ;;  %vm7691_vm4 = vmor %vm7689_vm3, %vm7690_vm2 }
 0xb4b   : > { %v7686_v59 = vsub.f32 1.0, %v7685_v55  ;;  %v9618_v45 = vunpack.i.l.bf16 %v9617_v52  ;;  %v9619_v38 = vunpack.i.h.bf16 %v9617_v52 }
 0xb4c   : > { %9736 = vrot.lane.b32.xlu2 %v9735_v36, %s10410_s18 }
 0xb4d   : > { %v7687_v26 = vmul.f32 %v10270_v56, %v7686_v59  ;;  %v8502_v32 = vsel %vm378_vm0, %v15606_v29, %v9618_v45  ;;  %v8534_v6 = vsel %vm378_vm0, %v15607_v40, %v9619_v38  ;;  %v9662_v45 = vpop.permute.xlu2 %9661  ;;  %v15621_v38 = vld [vmem:[#allocation68_spill] sm:$0xff] }
 0xb4e   : > { %8623 = vmatmul.f32.gmra.mxu0 %v8501_v42  ;;  %v9663_v29 = vunpack.i.l.bf16 %v9662_v45 }
 0xb4f   : > { %8736 = vmatmul.f32.gmra.mxu1 %v8533_v10  ;;  %v7688_v24 = vadd.f32 %v10270_v56, %v7687_v26 }
 0xb51   : > { %v7692_v14 = vsel %vm7691_vm4, %v10270_v56, %v7688_v24  ;;  %v9659_v24 = vunpack.i.h.bf16 %v9657_v53 }
 0xb52   : > { %v7697_v60 = vsel %vm7694_vm5, %v7696_v50, %v7692_v14  ;;  %v9658_v50 = vunpack.i.l.bf16 %v9657_v53  ;;  %v15620_v14 = vld [vmem:[#allocation98_spill] sm:$0xff] }
 0xb53   : > { %v7698_v1 = vmul.f32 %v14582_v54, %v7697_v60  ;;  %v8535_v54 = vsel %vm378_vm0, %v15609_v41, %v9629_v9  ;;  %v8541_v60 = vsel %vm378_vm0, %v15621_v38, %v9659_v24  ;;  %v8140_v41 = vpop.f32.mrf.mxu0 }
 0xb54   : > { %v9647_v21 = vpop.permute.xlu0 %9646 }
 0xb55   : > { %9428 = vmatmul.msk.f32.vlgmr.msra.gmra.mxu3 %vm1553_vm1, %v7698_v1  ;;  %v9648_v4 = vunpack.i.l.bf16 %v9647_v21  ;;  %v9649_v33 = vunpack.i.h.bf16 %v9647_v21  ;;  %v9664_v1 = vunpack.i.h.bf16 %v9662_v45  ;;  %v9667_v9 = vpop.permute.xlu2 %9666 }
 0xb56   : > { %8626 = vmatmul.f32.gmra.mxu0 %v8502_v32  ;;  %v15622_v32 = vld [vmem:[#allocation84_spill] sm:$0xff]  ;;  %v9669_v62 = vunpack.i.h.bf16 %v9667_v9 }
 0xb57   : > { %8739 = vmatmul.f32.gmra.mxu1 %v8534_v6  ;;  %v8507_v35 = vsel %vm378_vm0, %v15616_v0, %v9648_v4  ;;  %v8539_v3 = vsel %vm378_vm0, %v15617_v30, %v9649_v33  ;;  %v8510_v40 = vsel %vm378_vm0, %v15622_v32, %v9663_v29  ;;  %v15623_v6 = vld [vmem:[#allocation99_spill] sm:$0xff]  ;;  %v15637_v32 = vld [vmem:[#allocation33_spill] sm:$0xff] }
 0xb58   : > { %v8542_v27 = vsel %vm378_vm0, %v15623_v6, %v9664_v1  ;;  %v8543_v15 = vsel %vm378_vm0, %v15625_v34, %v9669_v62  ;;  %v15629_v4 = vld [vmem:[#allocation131_spill] sm:$0xff]  ;;  %v15638_v6 = vld [vmem:[#allocation52_spill] sm:$0xff] }
 0xb59   : > { %v15630_v0 = vld [vmem:[#allocation39_spill] sm:$0xff] }
 0xb5b   : > { %v8615_v49 = vpop.f32.mrf.mxu0 }
 0xb5c   : > { %v8616_v37 = vadd.f32 %v14784_v58, %v8615_v49  ;;  %v15641_v49 = vld [vmem:[#allocation12_spill] sm:$0xff] }
 0xb5d   : > { %v9677_v28 = vpop.permute.xlu2 %9676 }
 0xb5e   : > { %8629 = vmatmul.f32.gmra.mxu0 %v8503_v23  ;;  %v9668_v23 = vunpack.i.l.bf16 %v9667_v9  ;;  %v9679_v48 = vunpack.i.h.bf16 %v9677_v28 }
 0xb5f   : > { %8742 = vmatmul.f32.gmra.mxu1 %v8535_v54  ;;  %v15624_v54 = vld [vmem:[#allocation83_spill] sm:$0xff] }
 0xb60   : > { %v8511_v7 = vsel %vm378_vm0, %v15624_v54, %v9668_v23  ;;  %v8545_v33 = vsel %vm378_vm0, %v15629_v4, %v9679_v48  ;;  %v15642_v48 = vld [vmem:[#allocation109_spill] sm:$0xff] }
 0xb65   : > { %v9692_v29 = vpop.permute.xlu2 %9691 }
 0xb66   : > { %8632 = vmatmul.f32.gmra.mxu0 %v8504_v51  ;;  %v9672_v51 = vpop.permute.xlu0 %9671  ;;  %v9694_v62 = vunpack.i.h.bf16 %v9692_v29  ;;  %v9693_v23 = vunpack.i.l.bf16 %v9692_v29 }
 0xb67   : > { %8745 = vmatmul.f32.gmra.mxu1 %v8536_v8  ;;  %v9674_v2 = vunpack.i.h.bf16 %v9672_v51  ;;  %v9673_v8 = vunpack.i.l.bf16 %v9672_v51  ;;  %v15640_v51 = vld [vmem:[#allocation44_spill] sm:$0xff] }
 0xb6e   : > { %8635 = vmatmul.f32.gmra.mxu0 %v8505_v61  ;;  %v8512_v61 = vsel %vm378_vm0, %v15626_v39, %v9673_v8 }
 0xb6f   : > { %8748 = vmatmul.f32.gmra.mxu1 %v8537_v12  ;;  %v8544_v12 = vsel %vm378_vm0, %v15627_v19, %v9674_v2  ;;  %v8548_v2 = vsel %vm378_vm0, %v15640_v51, %v9694_v62 }
 0xb75   : > { %v7233_v18 = vpop.xlane.xlu1 %7232 }
 0xb76   : > { %10271 = vrcp.f32 %v7233_v18  ;;  %8638 = vmatmul.f32.gmra.mxu0 %v8506_v44  ;;  %v7710_v20 = vand.u32 2147483648, %v7233_v18  ;;  %v7708_v46 = vand.u32 2147483647, %v7233_v18  ;;  %vm7704_vm7 = vweird.f32 %v7233_v18 }
 0xb77   : > { %8751 = vmatmul.f32.gmra.mxu1 %v8538_v16  ;;  %v9678_v44 = vunpack.i.l.bf16 %v9677_v28 }
 0xb78   : > { %v7711_v36 = vor.u32 1.1754944e-38, %v7710_v20  ;;  %vm7709_vm9 = vcmp.eq.f32.partialorder %v7708_v46, 8.507059e+37 }
 0xb79   : > { %v8513_v16 = vsel %vm378_vm0, %v15628_v11, %v9678_v44 }
 0xb7c   : > { %v10272_v25 = vpop.eup %10271 }
 0xb7d   : > { %v7700_v63 = vmul.f32 %v10272_v25, %v7233_v18  ;;  %vm7705_vm6 = vweird.f32 %v10272_v25 }
 0xb7e   : > { %8641 = vmatmul.f32.gmra.mxu0 %v8507_v35  ;;  %vm7706_vm8 = vmor %vm7704_vm7, %vm7705_vm6 }
 0xb7f   : > { %v7701_v47 = vsub.f32 1.0, %v7700_v63  ;;  %8754 = vmatmul.f32.gmra.mxu1 %v8539_v3 }
 0xb81   : > { %v7702_v56 = vmul.f32 %v10272_v25, %v7701_v47 }
 0xb83   : > { %v7703_v57 = vadd.f32 %v10272_v25, %v7702_v56 }
 0xb85   : > { %v7707_v55 = vsel %vm7706_vm8, %v10272_v25, %v7703_v57  ;;  %v15631_v57 = vld [vmem:[#allocation123_spill] sm:$0xff] }
 0xb86   : > { %v7712_v22 = vsel %vm7709_vm9, %v7711_v36, %v7707_v55  ;;  %v15632_v55 = vld [vmem:[#allocation105_spill] sm:$0xff] }
 0xb87   : > { %v7713_v59 = vmul.f32 %v14613_v17, %v7712_v22  ;;  %v8509_v17 = vsel %vm378_vm0, %v15620_v14, %v9658_v50  ;;  %v8203_v14 = vpop.f32.mrf.mxu2 }
 0xb89   : > { %9429 = vmatmul.msk.f32.gmra.mxu3 %vm1553_vm1, %v7713_v59  ;;  %v9687_v59 = vpop.permute.xlu0 %9686 }
 0xb8d   : > { %v9652_v43 = vpop.permute.xlu1 %9651 }
 0xb8e   : > { %v9654_v42 = vunpack.i.h.bf16 %v9652_v43  ;;  %v9653_v26 = vunpack.i.l.bf16 %v9652_v43  ;;  %v15633_v43 = vld [vmem:[#allocation91_spill] sm:$0xff] }
 0xb90   : > { %v8508_v52 = vsel %vm378_vm0, %v15618_v13, %v9653_v26  ;;  %v8540_v10 = vsel %vm378_vm0, %v15619_v5, %v9654_v42  ;;  %v9725_v42 = vpack.i.bf16 %v8140_v41, %v15633_v43  ;;  %v15634_v26 = vld [vmem:[#allocation47_spill] sm:$0xff]  ;;  %v9689_v5 = vunpack.i.h.bf16 %v9687_v59 }
 0xb91   : > { %8644 = vmatmul.f32.gmra.mxu0 %v8508_v52  ;;  %8757 = vmatmul.f32.gmra.mxu1 %v8540_v10  ;;  %v9688_v10 = vunpack.i.l.bf16 %v9687_v59 }
 0xb95   : > { %v9682_v25 = vpop.permute.xlu1 %9681 }
 0xb96   : > { %v9684_v3 = vunpack.i.h.bf16 %v9682_v25  ;;  %v9683_v47 = vunpack.i.l.bf16 %v9682_v25 }
 0xb98   : > { %v8514_v36 = vsel %vm378_vm0, %v15631_v57, %v9683_v47  ;;  %v8546_v22 = vsel %vm378_vm0, %v15632_v55, %v9684_v3 }
 0xb99   : > { %8647 = vmatmul.f32.gmra.mxu0 %v8509_v17  ;;  %8760 = vmatmul.f32.gmra.mxu1 %v8541_v60  ;;  %v15635_v17 = vld [vmem:[#allocation71_spill] sm:$0xff] }
 0xb9a   : > { %v8515_v38 = vsel %vm378_vm0, %v15635_v17, %v9688_v10  ;;  %v15636_v60 = vld [vmem:[#allocation55_spill] sm:$0xff] }
 0xb9b   : > { %v8547_v1 = vsel %vm378_vm0, %v15636_v60, %v9689_v5 }
 0xb9d   : > { %v9697_v8 = vpop.permute.xlu1 %9696 }
 0xb9e   : > { %v9699_v19 = vunpack.i.h.bf16 %v9697_v8 }
 0xba1   : > { %8650 = vmatmul.f32.gmra.mxu0 %v8510_v40  ;;  %8763 = vmatmul.f32.gmra.mxu1 %v8542_v27  ;;  %v9730_v40 = vpack.i.bf16 %v14710_v31, %v15637_v32  ;;  %v9740_v27 = vpack.i.bf16 %v8203_v14, %v15638_v6 }
 0xba9   : > { %8653 = vmatmul.f32.gmra.mxu0 %v8511_v7  ;;  %8766 = vmatmul.f32.gmra.mxu1 %v8543_v15  ;;  %v15639_v15 = vld [vmem:[#allocation60_spill] sm:$0xff] }
 0xbaa   : > { %v8516_v31 = vsel %vm378_vm0, %v15639_v15, %v9693_v23 }
 0xbb1   : > { %8656 = vmatmul.f32.gmra.mxu0 %v8512_v61  ;;  %8769 = vmatmul.f32.gmra.mxu1 %v8544_v12  ;;  %v8206_v34 = vpop.f32.mrf.mxu2  ;;  %v9698_v12 = vunpack.i.l.bf16 %v9697_v8 }
 0xbb2   : > { %v9745_v39 = vpack.i.bf16 %v8206_v34, %v15641_v49 }
 0xbb3   : > { %v8728_v18 = vpop.f32.mrf.mxu1  ;;  %v8517_v44 = vsel %vm378_vm0, %v15642_v48, %v9698_v12 }
 0xbb4   : > { %v8729_v21 = vadd.f32 %v8728_v18, %v8616_v37 }
 0xbb6   : > { %8824 = vst.msk [vmem:[%s14793_s29] sm:$0xff] %vm378_vm0, %v8729_v21  ;;  %v15643_v21 = vld [vmem:[#allocation95_spill] sm:$0xff] }
 0xbb7   : > { %v8549_v11 = vsel %vm378_vm0, %v15643_v21, %v9699_v19 }
 0xbb9   : > { %v8104_v63 = vpop.f32.mrf.mxu3  ;;  %8659 = vmatmul.f32.gmra.mxu0 %v8513_v16  ;;  %8772 = vmatmul.f32.gmra.mxu1 %v8545_v33  ;;  %v9702_v16 = vpop.permute.xlu0 %9701  ;;  %v15644_v33 = vld [vmem:[#allocation49_spill] sm:$0xff] }
 0xbba   : > { %v9710_v35 = vpack.i.bf16 %v8104_v63, %v15630_v0  ;;  %v9704_v0 = vunpack.i.h.bf16 %v9702_v16 }
 0xbbb   : > { %v8618_v30 = vpop.f32.mrf.mxu0 }
 0xbbc   : > { %v8619_v20 = vadd.f32 %v14784_v58, %v8618_v30  ;;  %v8731_v56 = vpop.f32.mrf.mxu1  ;;  %9711 = vrot.lane.b32.xlu1 %v9710_v35, %s10410_s18  ;;  %v9703_v35 = vunpack.i.l.bf16 %v9702_v16 }
 0xbbe   : > { %v8732_v46 = vadd.f32 %v8731_v56, %v8619_v20  ;;  %v15645_v20 = vld [vmem:[#allocation75_spill] sm:$0xff] }
 0xbbf   : > { %v8518_v56 = vsel %vm378_vm0, %v15645_v20, %v9703_v35  ;;  %v15652_v20 = vld [vmem:[#allocation89_spill] sm:$0xff] }
 0xbc0   : > { %8825 = vst.msk [vmem:[%s14793_s29 + $0x8] sm:$0xff] %vm378_vm0, %v8732_v46  ;;  %v15646_v46 = vld [vmem:[#allocation45_spill] sm:$0xff] }
 0xbc1   : > { %v8107_v53 = vpop.f32.mrf.mxu3  ;;  %8662 = vmatmul.f32.gmra.mxu0 %v8514_v36  ;;  %8775 = vmatmul.f32.gmra.mxu1 %v8546_v22  ;;  %v8550_v57 = vsel %vm378_vm0, %v15646_v46, %v9704_v0  ;;  %v9707_v36 = vpop.permute.xlu2 %9706  ;;  %v15653_v46 = vld [vmem:[#allocation129_spill] sm:$0xff] }
 0xbc2   : > { %v9715_v13 = vpack.i.bf16 %v8107_v53, %v15634_v26  ;;  %v9709_v22 = vunpack.i.h.bf16 %v9707_v36  ;;  %v9708_v59 = vunpack.i.l.bf16 %v9707_v36  ;;  %v15647_v26 = vld [vmem:[#allocation110_spill] sm:$0xff] }
 0xbc3   : > { %v8621_v52 = vpop.f32.mrf.mxu0 }
 0xbc4   : > { %v8622_v24 = vadd.f32 %v14784_v58, %v8621_v52  ;;  %v8734_v50 = vpop.f32.mrf.mxu1  ;;  %9716 = vrot.lane.b32.xlu0 %v9715_v13, %s10410_s18  ;;  %9726 = vrot.lane.b32.xlu1 %v9725_v42, %s10410_s18  ;;  %v8519_v13 = vsel %vm378_vm0, %v15647_v26, %v9708_v59  ;;  %v15648_v52 = vld [vmem:[#allocation28_spill] sm:$0xff] }
 0xbc5   : > { %v8551_v5 = vsel %vm378_vm0, %v15648_v52, %v9709_v22  ;;  %v15654_v26 = vld [vmem:[#allocation96_spill] sm:$0xff]  ;;  %v15655_v52 = vld [vmem:[#allocation21_spill] sm:$0xff] }
 0xbc6   : > { %v8735_v45 = vadd.f32 %v8734_v50, %v8622_v24 }
 0xbc8   : > { %8826 = vst.msk [vmem:[%s14793_s29 + $0x10] sm:$0xff] %vm378_vm0, %v8735_v45 }
 0xbc9   : > { %8665 = vmatmul.f32.gmra.mxu0 %v8515_v38  ;;  %8778 = vmatmul.f32.gmra.mxu1 %v8547_v1  ;;  %v9722_v36 = vpop.permute.xlu2 %9721 }
 0xbca   : > { %v9724_v22 = vunpack.i.h.bf16 %v9722_v36  ;;  %v9723_v59 = vunpack.i.l.bf16 %v9722_v36 }
 0xbcb   : > { %v8624_v9 = vpop.f32.mrf.mxu0 }
 0xbcc   : > { %v8625_v41 = vadd.f32 %v14784_v58, %v8624_v9  ;;  %v8737_v54 = vpop.f32.mrf.mxu1  ;;  %9731 = vrot.lane.b32.xlu0 %v9730_v40, %s10410_s18  ;;  %9741 = vrot.lane.b32.xlu1 %v9740_v27, %s10410_s18  ;;  %v15649_v27 = vld [vmem:[#allocation13_spill] sm:$0xff] }
 0xbce   : > { %v8738_v7 = vadd.f32 %v8737_v54, %v8625_v41 }
 0xbd0   : > { %8827 = vst.msk [vmem:[%s14793_s29 + $0x18] sm:$0xff] %vm378_vm0, %v8738_v7 }
 0xbd1   : > { %8668 = vmatmul.f32.gmra.mxu0 %v8516_v31  ;;  %8781 = vmatmul.f32.gmra.mxu1 %v8548_v2 }
 0xbd3   : > { %v8627_v61 = vpop.f32.mrf.mxu0 }
 0xbd4   : > { %v8628_v28 = vadd.f32 %v14784_v58, %v8627_v61  ;;  %v8740_v37 = vpop.f32.mrf.mxu1  ;;  %9746 = vrot.lane.b32.xlu0 %v9745_v39, %s10410_s18 }
 0xbd6   : > { %v8741_v18 = vadd.f32 %v8740_v37, %v8628_v28 }
 0xbd8   : > { %8828 = vst.msk [vmem:[%s14793_s29 + $0x20] sm:$0xff] %vm378_vm0, %v8741_v18  ;;  %v8236_v4 = vpop.f32.mrf.mxu3 }
 0xbd9   : > { %8671 = vmatmul.f32.gmra.mxu0 %v8517_v44  ;;  %8784 = vmatmul.f32.gmra.mxu1 %v8549_v11  ;;  %v9750_v25 = vpack.i.bf16 %v8236_v4, %v15644_v33  ;;  %v15650_v11 = vld [vmem:[#allocation86_spill] sm:$0xff]  ;;  %v15651_v4 = vld [vmem:[#allocation53_spill] sm:$0xff] }
 0xbdb   : > { %v8630_v63 = vpop.f32.mrf.mxu0  ;;  %9751 = vrot.lane.b32.xlu2 %v9750_v25, %s10410_s18 }
 0xbdc   : > { %v8743_v30 = vpop.f32.mrf.mxu1  ;;  %v8631_v3 = vadd.f32 %v14784_v58, %v8630_v63 }
 0xbde   : > { %v8744_v47 = vadd.f32 %v8743_v30, %v8631_v3 }
 0xbe0   : > { %8829 = vst.msk [vmem:[%s14793_s29 + $0x28] sm:$0xff] %vm378_vm0, %v8744_v47 }
 0xbe1   : > { %8674 = vmatmul.f32.gmra.mxu0 %v8518_v56  ;;  %8787 = vmatmul.f32.gmra.mxu1 %v8550_v57 }
 0xbe3   : > { %v8633_v55 = vpop.f32.mrf.mxu0 }
 0xbe4   : > { %v8634_v53 = vadd.f32 %v14784_v58, %v8633_v55  ;;  %v8746_v43 = vpop.f32.mrf.mxu1 }
 0xbe6   : > { %v8747_v42 = vadd.f32 %v8746_v43, %v8634_v53 }
 0xbe8   : > { %8830 = vst.msk [vmem:[%s14793_s29 + $0x30] sm:$0xff] %vm378_vm0, %v8747_v42 }
 0xbe9   : > { %8677 = vmatmul.f32.gmra.mxu0 %v8519_v13  ;;  %8790 = vmatmul.f32.gmra.mxu1 %v8551_v5  ;;  %v8522_v13 = vsel %vm378_vm0, %v15654_v26, %v9723_v59  ;;  %v8554_v5 = vsel %vm378_vm0, %v15655_v52, %v9724_v22  ;;  %v15666_v26 = vld [vmem:[#allocation112_spill] sm:$0xff] }
 0xbea   : > { %v15667_v52 = vld [vmem:[#allocation116_spill] sm:$0xff] }
 0xbeb   : > { %v8636_v10 = vpop.f32.mrf.mxu0 }
 0xbec   : > { %v8637_v24 = vadd.f32 %v14784_v58, %v8636_v10  ;;  %v8749_v50 = vpop.f32.mrf.mxu1 }
 0xbee   : > { %v8750_v45 = vadd.f32 %v8749_v50, %v8637_v24 }
 0xbf0   : > { %8831 = vst.msk [vmem:[%s14793_s29 + $0x38] sm:$0xff] %vm378_vm0, %v8750_v45 }
 0xbf3   : > { %v8639_v14 = vpop.f32.mrf.mxu0 }
 0xbf4   : > { %v8640_v17 = vadd.f32 %v14784_v58, %v8639_v14  ;;  %v8752_v38 = vpop.f32.mrf.mxu1 }
 0xbf6   : > { %v8753_v60 = vadd.f32 %v8752_v38, %v8640_v17 }
 0xbf8   : > { %8832 = vst.msk [vmem:[%s14793_s29 + $0x40] sm:$0xff] %vm378_vm0, %v8753_v60  ;;  %v15656_v60 = vld [vmem:[#allocation118_spill] sm:$0xff] }
 0xbfb   : > { %v8642_v1 = vpop.f32.mrf.mxu0 }
 0xbfc   : > { %v8643_v29 = vadd.f32 %v14784_v58, %v8642_v1  ;;  %v8755_v32 = vpop.f32.mrf.mxu1 }
 0xbfe   : > { %v8756_v40 = vadd.f32 %v8755_v32, %v8643_v29  ;;  %v15657_v29 = vld [vmem:[#allocation51_spill] sm:$0xff] }
 0xc00   : > { %8833 = vst.msk [vmem:[%s14793_s29 + $0x48] sm:$0xff] %vm378_vm0, %v8756_v40 }
 0xc0c   : > { %v8239_v6 = vpop.f32.mrf.mxu3 }
 0xc0d   : > { %v9755_v9 = vpack.i.bf16 %v8239_v6, %v15649_v27 }
 0xc0e   : > { %v8645_v62 = vpop.f32.mrf.mxu0  ;;  %v8758_v23 = vpop.f32.mrf.mxu1 }
 0xc0f   : > { %v8646_v41 = vadd.f32 %v14784_v58, %v8645_v62  ;;  %9756 = vrot.lane.b32.xlu1 %v9755_v9, %s10410_s18 }
 0xc11   : > { %v8759_v54 = vadd.f32 %v8758_v23, %v8646_v41 }
 0xc13   : > { %8834 = vst.msk [vmem:[%s14793_s29 + $0x50] sm:$0xff] %vm378_vm0, %v8759_v54  ;;  %v15658_v54 = vld [vmem:[#allocation27_spill] sm:$0xff] }
 0xc16   : > { %v8648_v7 = vpop.f32.mrf.mxu0  ;;  %v8761_v34 = vpop.f32.mrf.mxu1 }
 0xc17   : > { %v8649_v15 = vadd.f32 %v14784_v58, %v8648_v7 }
 0xc19   : > { %v8762_v31 = vadd.f32 %v8761_v34, %v8649_v15  ;;  %v15659_v34 = vld [vmem:[#allocation130_spill] sm:$0xff] }
 0xc1b   : > { %8835 = vst.msk [vmem:[%s14793_s29 + $0x58] sm:$0xff] %vm378_vm0, %v8762_v31  ;;  %v9737_v31 = vpop.permute.xlu2 %9736 }
 0xc1e   : > { %v8651_v51 = vpop.f32.mrf.mxu0  ;;  %v8764_v2 = vpop.f32.mrf.mxu1 }
 0xc1f   : > { %v8652_v8 = vadd.f32 %v14784_v58, %v8651_v51 }
 0xc21   : > { %v8765_v49 = vadd.f32 %v8764_v2, %v8652_v8  ;;  %v9739_v2 = vunpack.i.h.bf16 %v9737_v31  ;;  %v9738_v8 = vunpack.i.l.bf16 %v9737_v31 }
 0xc23   : > { %8836 = vst.msk [vmem:[%s14793_s29 + $0x60] sm:$0xff] %vm378_vm0, %v8765_v49 }
 0xc26   : > { %v8654_v39 = vpop.f32.mrf.mxu0  ;;  %v8767_v61 = vpop.f32.mrf.mxu1 }
 0xc27   : > { %v8655_v19 = vadd.f32 %v14784_v58, %v8654_v39 }
 0xc29   : > { %v8768_v12 = vadd.f32 %v8767_v61, %v8655_v19  ;;  %v15660_v19 = vld [vmem:[#allocation80_spill] sm:$0xff] }
 0xc2b   : > { %8837 = vst.msk [vmem:[%s14793_s29 + $0x68] sm:$0xff] %vm378_vm0, %v8768_v12  ;;  %v8525_v12 = vsel %vm378_vm0, %v15660_v19, %v9738_v8 }
 0xc2e   : > { %v8770_v28 = vpop.f32.mrf.mxu1  ;;  %v9712_v37 = vpop.permute.xlu1 %9711 }
 0xc2f   : > { %v9714_v18 = vunpack.i.h.bf16 %v9712_v37  ;;  %v9713_v48 = vunpack.i.l.bf16 %v9712_v37  ;;  %v8657_v44 = vpop.f32.mrf.mxu0 }
 0xc30   : > { %v8658_v21 = vadd.f32 %v14784_v58, %v8657_v44 }
 0xc31   : > { %v8520_v16 = vsel %vm378_vm0, %v15650_v11, %v9713_v48  ;;  %v8552_v33 = vsel %vm378_vm0, %v15651_v4, %v9714_v18 }
 0xc32   : > { %v8771_v25 = vadd.f32 %v8770_v28, %v8658_v21  ;;  %8680 = vmatmul.f32.gmra.mxu0 %v8520_v16  ;;  %8793 = vmatmul.f32.gmra.mxu1 %v8552_v33  ;;  %v15661_v28 = vld [vmem:[#allocation43_spill] sm:$0xff] }
 0xc33   : > { %v8557_v37 = vsel %vm378_vm0, %v15661_v28, %v9739_v2  ;;  %v15662_v33 = vld [vmem:[#allocation67_spill] sm:$0xff] }
 0xc34   : > { %8838 = vst.msk [vmem:[%s14793_s29 + $0x70] sm:$0xff] %vm378_vm0, %v8771_v25 }
 0xc35   : > { %v9752_v59 = vpop.permute.xlu2 %9751 }
 0xc36   : > { %v8773_v63 = vpop.f32.mrf.mxu1  ;;  %v9717_v0 = vpop.permute.xlu0 %9716 }
 0xc37   : > { %v9719_v35 = vunpack.i.h.bf16 %v9717_v0  ;;  %v9718_v30 = vunpack.i.l.bf16 %v9717_v0  ;;  %v8660_v3 = vpop.f32.mrf.mxu0  ;;  %v9727_v10 = vpop.permute.xlu1 %9726 }
 0xc38   : > { %v8661_v47 = vadd.f32 %v14784_v58, %v8660_v3  ;;  %v9729_v50 = vunpack.i.h.bf16 %v9727_v10  ;;  %v9728_v45 = vunpack.i.l.bf16 %v9727_v10 }
 0xc39   : > { %v8521_v56 = vsel %vm378_vm0, %v15652_v20, %v9718_v30  ;;  %v8553_v57 = vsel %vm378_vm0, %v15653_v46, %v9719_v35 }
 0xc3a   : > { %v8774_v55 = vadd.f32 %v8773_v63, %v8661_v47  ;;  %8683 = vmatmul.f32.gmra.mxu0 %v8521_v56  ;;  %8796 = vmatmul.f32.gmra.mxu1 %v8553_v57  ;;  %v8523_v1 = vsel %vm378_vm0, %v15656_v60, %v9728_v45  ;;  %v8555_v32 = vsel %vm378_vm0, %v15657_v29, %v9729_v50  ;;  %v15663_v63 = vld [vmem:[#allocation41_spill] sm:$0xff]  ;;  %v15664_v57 = vld [vmem:[#allocation115_spill] sm:$0xff]  ;;  %v15668_v45 = vld [vmem:[#allocation100_spill] sm:$0xff] }
 0xc3c   : > { %8839 = vst.msk [vmem:[%s14793_s29 + $0x78] sm:$0xff] %vm378_vm0, %v8774_v55  ;;  %v15665_v55 = vld [vmem:[#allocation128_spill] sm:$0xff] }
 0xc3e   : > { %v8776_v53 = vpop.f32.mrf.mxu1  ;;  %v9732_v40 = vpop.permute.xlu0 %9731 }
 0xc3f   : > { %v8663_v43 = vpop.f32.mrf.mxu0  ;;  %v9734_v27 = vunpack.i.h.bf16 %v9732_v40  ;;  %v9733_v9 = vunpack.i.l.bf16 %v9732_v40  ;;  %v9742_v18 = vpop.permute.xlu1 %9741 }
 0xc40   : > { %v8664_v42 = vadd.f32 %v14784_v58, %v8663_v43  ;;  %v9744_v44 = vunpack.i.h.bf16 %v9742_v18  ;;  %v9743_v21 = vunpack.i.l.bf16 %v9742_v18  ;;  %v9754_v43 = vunpack.i.h.bf16 %v9752_v59 }
 0xc41   : > { %v8524_v7 = vsel %vm378_vm0, %v15658_v54, %v9733_v9  ;;  %v8556_v15 = vsel %vm378_vm0, %v15659_v34, %v9734_v27 }
 0xc42   : > { %v8777_v24 = vadd.f32 %v8776_v53, %v8664_v42  ;;  %8686 = vmatmul.f32.gmra.mxu0 %v8522_v13  ;;  %8799 = vmatmul.f32.gmra.mxu1 %v8554_v5  ;;  %v8526_v25 = vsel %vm378_vm0, %v15662_v33, %v9743_v21  ;;  %v8558_v0 = vsel %vm378_vm0, %v15663_v63, %v9744_v44  ;;  %v9753_v42 = vunpack.i.l.bf16 %v9752_v59 }
 0xc43   : > { %v8560_v5 = vsel %vm378_vm0, %v15667_v52, %v9754_v43 }
 0xc44   : > { %8840 = vst.msk [vmem:[%s14793_s29 + $0x80] sm:$0xff] %vm378_vm0, %v8777_v24  ;;  %v8528_v13 = vsel %vm378_vm0, %v15666_v26, %v9753_v42 }
 0xc46   : > { %v8779_v14 = vpop.f32.mrf.mxu1  ;;  %v9747_v35 = vpop.permute.xlu0 %9746 }
 0xc47   : > { %v8666_v17 = vpop.f32.mrf.mxu0  ;;  %v9749_v3 = vunpack.i.h.bf16 %v9747_v35  ;;  %v9748_v47 = vunpack.i.l.bf16 %v9747_v35 }
 0xc48   : > { %v8667_v38 = vadd.f32 %v14784_v58, %v8666_v17  ;;  %v15669_v17 = vld [vmem:[#allocation48_spill] sm:$0xff] }
 0xc49   : > { %v8527_v36 = vsel %vm378_vm0, %v15664_v57, %v9748_v47  ;;  %v8559_v22 = vsel %vm378_vm0, %v15665_v55, %v9749_v3 }
 0xc4a   : > { %v8780_v6 = vadd.f32 %v8779_v14, %v8667_v38  ;;  %8689 = vmatmul.f32.gmra.mxu0 %v8523_v1  ;;  %8802 = vmatmul.f32.gmra.mxu1 %v8555_v32 }
 0xc4c   : > { %8841 = vst.msk [vmem:[%s14793_s29 + $0x88] sm:$0xff] %vm378_vm0, %v8780_v6 }
 0xc4e   : > { %v8782_v62 = vpop.f32.mrf.mxu1 }
 0xc4f   : > { %v8669_v23 = vpop.f32.mrf.mxu0 }
 0xc50   : > { %v8670_v41 = vadd.f32 %v14784_v58, %v8669_v23 }
 0xc52   : > { %v8783_v51 = vadd.f32 %v8782_v62, %v8670_v41  ;;  %8692 = vmatmul.f32.gmra.mxu0 %v8524_v7  ;;  %8805 = vmatmul.f32.gmra.mxu1 %v8556_v15 }
 0xc54   : > { %8842 = vst.msk [vmem:[%s14793_s29 + $0x90] sm:$0xff] %vm378_vm0, %v8783_v51 }
 0xc56   : > { %v8785_v49 = vpop.f32.mrf.mxu1 }
 0xc57   : > { %v8672_v39 = vpop.f32.mrf.mxu0 }
 0xc58   : > { %v8673_v61 = vadd.f32 %v14784_v58, %v8672_v39 }
 0xc5a   : > { %v8786_v48 = vadd.f32 %v8785_v49, %v8673_v61  ;;  %8695 = vmatmul.f32.gmra.mxu0 %v8525_v12  ;;  %8808 = vmatmul.f32.gmra.mxu1 %v8557_v37 }
 0xc5c   : > { %8843 = vst.msk [vmem:[%s14793_s29 + $0x98] sm:$0xff] %vm378_vm0, %v8786_v48 }
 0xc5e   : > { %v8788_v16 = vpop.f32.mrf.mxu1 }
 0xc5f   : > { %v8675_v11 = vpop.f32.mrf.mxu0 }
 0xc60   : > { %v8676_v4 = vadd.f32 %v14784_v58, %v8675_v11 }
 0xc62   : > { %v8789_v30 = vadd.f32 %v8788_v16, %v8676_v4  ;;  %8698 = vmatmul.f32.gmra.mxu0 %v8526_v25  ;;  %8811 = vmatmul.f32.gmra.mxu1 %v8558_v0 }
 0xc64   : > { %8844 = vst.msk [vmem:[%s14793_s29 + $0xa0] sm:$0xff] %vm378_vm0, %v8789_v30 }
 0xc66   : > { %v8791_v46 = vpop.f32.mrf.mxu1 }
 0xc67   : > { %v8678_v20 = vpop.f32.mrf.mxu0 }
 0xc68   : > { %v8679_v56 = vadd.f32 %v14784_v58, %v8678_v20 }
 0xc6a   : > { %v8792_v53 = vadd.f32 %v8791_v46, %v8679_v56  ;;  %8701 = vmatmul.f32.gmra.mxu0 %v8527_v36  ;;  %8814 = vmatmul.f32.gmra.mxu1 %v8559_v22 }
 0xc6c   : > { %8845 = vst.msk [vmem:[%s14793_s29 + $0xa8] sm:$0xff] %vm378_vm0, %v8792_v53 }
 0xc72   : > { %8704 = vmatmul.f32.gmra.mxu0 %v8528_v13  ;;  %8817 = vmatmul.f32.gmra.mxu1 %v8560_v5 }
 0xc81   : > { %v9757_v10 = vpop.permute.xlu1 %9756 }
 0xc82   : > { %v9759_v24 = vunpack.i.h.bf16 %v9757_v10  ;;  %v9758_v50 = vunpack.i.l.bf16 %v9757_v10 }
 0xc84   : > { %v8529_v14 = vsel %vm378_vm0, %v15668_v45, %v9758_v50  ;;  %v8561_v38 = vsel %vm378_vm0, %v15669_v17, %v9759_v24 }
 0xc85   : > { %8707 = vmatmul.f32.gmra.mxu0 %v8529_v14  ;;  %8820 = vmatmul.f32.gmra.mxu1 %v8561_v38 }
 0xcaf   : > { %v8681_v60 = vpop.f32.mrf.mxu0  ;;  %v8794_v1 = vpop.f32.mrf.mxu1 }
 0xcb0   : > { %v8682_v29 = vadd.f32 %v14784_v58, %v8681_v60 }
 0xcb2   : > { %v8795_v32 = vadd.f32 %v8794_v1, %v8682_v29 }
 0xcb4   : > { %8846 = vst.msk [vmem:[%s14793_s29 + $0xb0] sm:$0xff] %vm378_vm0, %v8795_v32 }
 0xcb7   : > { %v8684_v40 = vpop.f32.mrf.mxu0  ;;  %v8797_v6 = vpop.f32.mrf.mxu1 }
 0xcb8   : > { %v8685_v27 = vadd.f32 %v14784_v58, %v8684_v40 }
 0xcba   : > { %v8798_v9 = vadd.f32 %v8797_v6, %v8685_v27 }
 0xcbc   : > { %8847 = vst.msk [vmem:[%s14793_s29 + $0xb8] sm:$0xff] %vm378_vm0, %v8798_v9 }
 0xcbf   : > { %v8687_v62 = vpop.f32.mrf.mxu0  ;;  %v8800_v23 = vpop.f32.mrf.mxu1 }
 0xcc0   : > { %v8688_v41 = vadd.f32 %v14784_v58, %v8687_v62 }
 0xcc2   : > { %v8801_v54 = vadd.f32 %v8800_v23, %v8688_v41 }
 0xcc4   : > { %8848 = vst.msk [vmem:[%s14793_s29 + $0xc0] sm:$0xff] %vm378_vm0, %v8801_v54 }
 0xcc7   : > { %v8690_v7 = vpop.f32.mrf.mxu0  ;;  %v8803_v34 = vpop.f32.mrf.mxu1 }
 0xcc8   : > { %v8691_v15 = vadd.f32 %v14784_v58, %v8690_v7 }
 0xcca   : > { %v8804_v31 = vadd.f32 %v8803_v34, %v8691_v15 }
 0xccc   : > { %8849 = vst.msk [vmem:[%s14793_s29 + $0xc8] sm:$0xff] %vm378_vm0, %v8804_v31 }
 0xccf   : > { %v8693_v51 = vpop.f32.mrf.mxu0  ;;  %v8806_v2 = vpop.f32.mrf.mxu1 }
 0xcd0   : > { %v8694_v8 = vadd.f32 %v14784_v58, %v8693_v51 }
 0xcd2   : > { %v8807_v49 = vadd.f32 %v8806_v2, %v8694_v8 }
 0xcd4   : > { %8850 = vst.msk [vmem:[%s14793_s29 + $0xd0] sm:$0xff] %vm378_vm0, %v8807_v49 }
 0xcd7   : > { %v8696_v39 = vpop.f32.mrf.mxu0  ;;  %v8809_v61 = vpop.f32.mrf.mxu1 }
 0xcd8   : > { %v8697_v19 = vadd.f32 %v14784_v58, %v8696_v39 }
 0xcda   : > { %v8810_v12 = vadd.f32 %v8809_v61, %v8697_v19 }
 0xcdc   : > { %8851 = vst.msk [vmem:[%s14793_s29 + $0xd8] sm:$0xff] %vm378_vm0, %v8810_v12 }
 0xcdf   : > { %v8699_v28 = vpop.f32.mrf.mxu0  ;;  %v8812_v37 = vpop.f32.mrf.mxu1 }
 0xce0   : > { %v8700_v18 = vadd.f32 %v14784_v58, %v8699_v28 }
 0xce2   : > { %v8813_v48 = vadd.f32 %v8812_v37, %v8700_v18 }
 0xce4   : > { %8852 = vst.msk [vmem:[%s14793_s29 + $0xe0] sm:$0xff] %vm378_vm0, %v8813_v48 }
 0xce7   : > { %v8702_v44 = vpop.f32.mrf.mxu0  ;;  %v8815_v21 = vpop.f32.mrf.mxu1 }
 0xce8   : > { %v8703_v11 = vadd.f32 %v14784_v58, %v8702_v44 }
 0xcea   : > { %v8816_v16 = vadd.f32 %v8815_v21, %v8703_v11 }
 0xcec   : > { %8853 = vst.msk [vmem:[%s14793_s29 + $0xe8] sm:$0xff] %vm378_vm0, %v8816_v16 }
 0xcef   : > { %v8705_v4 = vpop.f32.mrf.mxu0  ;;  %v8818_v25 = vpop.f32.mrf.mxu1 }
 0xcf0   : > { %v8706_v33 = vadd.f32 %v14784_v58, %v8705_v4 }
 0xcf2   : > { %v8819_v63 = vadd.f32 %v8818_v25, %v8706_v33 }
 0xcf4   : > { %8854 = vst.msk [vmem:[%s14793_s29 + $0xf0] sm:$0xff] %vm378_vm0, %v8819_v63 }
 0xd02   : > { %v8708_v0 = vpop.f32.mrf.mxu0  ;;  %v8821_v30 = vpop.f32.mrf.mxu1 }
 0xd03   : > { %v8709_v35 = vadd.f32 %v14784_v58, %v8708_v0 }
 0xd05   : > { %v8822_v3 = vadd.f32 %v8821_v30, %v8709_v35 }
 0xd07   : > { %8855 = vst.msk [vmem:[%s14793_s29 + $0xf8] sm:$0xff] %vm378_vm0, %v8822_v3 }
 0xd08   : > { %10360 = shalt.err (!%p10357_p12)
}
 0xd09   : > { %s10411_s19 = smov 128   ;;  %s10412_s29 = smov 8  }
 0xd0a   : > { %9462 = dma.vmem_to_hbm [thread:$0]  (%p10515_p7), %s8871_s15, 4096, %s8873_s8, %s8857_s7, %s10411_s19, %s10411_s19, %s10412_s29  }
 0xd0b PF: > { %s8887_s14 = sand.u32 1, %s10391_s21   ;;  %p15670_p13 = scmp.ge.s32.totalorder %s10403_s24, 2 }
 0xd0c   : > { %s8888_s18 = scalar_lea.sflag [#allocation4], %s8887_s14 }
 0xd0d   : > { %p9473_p0 = pnand %p15670_p13, %p10483_p6 }
 0xd0f   : > { %p9474_p3 = pneg %p9473_p0 }
 0xd11   : > { %10386 = dma.done.wait (%p9474_p3), %s8888_s18, 4096  }
 0xd12   : > { %10388 = vsyncadd (%p9474_p3), %s8888_s18, 4294963200  ;;  %p20_p5 = scmp.ge.s32.totalorder %s10501_s11, 4   ;;  %s15671_s21 = smov %s10395_s22 }
 0xd13   : > { %s15672_s22 = smov %s10399_s23  ;;  %s15673_s23 = smov %s10511_s16 }
 0xd14   : > { %s15674_s24 = smov %s10501_s11  ;;  %22 = sbr.rel (!%p20_p5) target bundleno = 6 (0x6), region = 96 }
 0xd19   :  { %8894 = vsyncpa [#allocation3], 1 }
 0xd1a   :  { %8896 = vsyncpa [#allocation3 + $0x1], 1 }
 0xd1b   :  { %8897 = vsyncpa [#allocation6], 1 }
 0xd1c   :  { %8898 = vsyncpa [#allocation4], 1 }
 0xd1d   :  { %8900 = vsyncpa [#allocation4 + $0x1], 1 }

</bundles_post_ra>
